<compile_context>
chip_gen: v7x
topology: tpu7x:2x2x1
jax: 0.10.0
libtpu: 0.0.40
codegen_flags: <defaults>
</compile_context>

<pallas_src>
import functools

import jax
import jax.numpy as jnp
from jax.experimental import pallas as pl
from jax.experimental.pallas import tpu as pltpu


# ----------------------------------------------------------------------------
# Single fused kernel: conv block + flatten + MLP head, all resident in VMEM.
# ----------------------------------------------------------------------------
def _fused_forward_kernel(*refs, N, H, W, Cin, C1, C2, n_fc):
    f32 = jnp.float32
    Ho, Wo = H // 2, W // 2
    Hq, Wq = Ho // 2, Wo // 2
    S = Hq * Wq

    n_in = 5 + 2 * n_fc
    xp_ref, w1_ref, b1_ref, w2_ref, b2_ref = refs[:5]
    mlp_refs = refs[5:n_in]
    h_ref, y_ref = refs[n_in], refs[n_in + 1]
    xpad2, pat1, pat2 = refs[n_in + 2:n_in + 5]

    def conv3x3_relu(src_ref, pat_ref, w_ref, b_ref, n, h, w, cin):
        rows = n * h * w
        # Assemble the (rows, 9*cin) patch tile in VMEM: one static slice store per
        # tap (taps are zero-cost static slices of the padded input ref).
        for ki in range(3):
            for kj in range(3):
                off = (ki * 3 + kj) * cin
                pat_ref[:, off:off + cin] = (
                    src_ref[:, ki:ki + h, kj:kj + w, :].reshape(rows, cin))
        # One GEMM per conv layer (K = 9*cin), f32 accumulation, + bias + ReLU.
        acc = jnp.dot(pat_ref[...], w_ref[...], preferred_element_type=f32)
        return jnp.maximum(acc + b_ref[...], 0.0)            # (rows, cout)

    def maxpool2x2(act, n, h, w, c):
        # act: (n*h*w, c), rows ordered (n, h, w).  All reshapes preserve the lane
        # (channel) dim; pair maxes run in registers (no scratch round trip).
        ho, wo = h // 2, w // 2
        a = act.reshape(n * ho, 2, w, c)
        a = jnp.max(a, axis=1)                               # (n*ho, w, c)
        a = a.reshape(n * ho, wo, 2, c)
        a = jnp.max(a, axis=2)                               # (n*ho, wo, c)
        return a.reshape(n * ho * wo, c)                     # rows = (n, ho, wo)

    # ---- layer 1: conv + ReLU + pool --------------------------------------
    a1 = conv3x3_relu(xp_ref, pat1, w1_ref, b1_ref, N, H, W, Cin)
    p1 = maxpool2x2(a1, N, H, W, C1)                         # (N*Ho*Wo, C1)

    # ---- zero-pad pool-1 output for conv2 (border only; interior rewritten) ----
    xpad2[:, 0:1, :, :] = jnp.zeros((N, 1, Wo + 2, C1), f32)
    xpad2[:, Ho + 1:Ho + 2, :, :] = jnp.zeros((N, 1, Wo + 2, C1), f32)
    xpad2[:, :, 0:1, :] = jnp.zeros((N, Ho + 2, 1, C1), f32)
    xpad2[:, :, Wo + 1:Wo + 2, :] = jnp.zeros((N, Ho + 2, 1, C1), f32)
    xpad2[:, 1:Ho + 1, 1:Wo + 1, :] = p1.reshape(N, Ho, Wo, C1)

    # ---- layer 2: conv + ReLU + pool --------------------------------------
    a2 = conv3x3_relu(xpad2, pat2, w2_ref, b2_ref, N, Ho, Wo, C1)
    p2 = maxpool2x2(a2, N, Ho, Wo, C2)                       # (N*Hq*Wq, C2)

    # ---- NCHW flatten inside VMEM: (n, s, c) -> (n, c, s) -> lane-dense (n, c*s) --
    xc = jnp.transpose(p2.reshape(N, S, C2), (0, 2, 1))      # (N, C2, S)
    for c in range(C2):
        h_ref[:, c * S:(c + 1) * S] = xc[:, c, :]
    hmat = h_ref[...]                                        # (N, C2*S)

    # ---- MLP head (Linear + ReLU ... Linear), f32 throughout ----------------
    a = hmat
    for li in range(n_fc):
        wv = mlp_refs[2 * li][...]
        bv = mlp_refs[2 * li + 1][...]
        a = jnp.dot(a, wv, preferred_element_type=f32) + bv
        if li < n_fc - 1:
            a = jnp.maximum(a, 0.0)
    y_ref[...] = a.astype(y_ref.dtype)


def fused_forward(xp, w1, b1, w2, b2, mlp_ws, mlp_bs):
    """xp: zero-padded NHWC f32 (N, H+2, W+2, Cin); conv weights (9*Cin, Cout) f32.

    Returns (h, y): h is (N, C2*(H//4)*(W//4)) in PyTorch NCHW-flatten order,
    y is (N, n_cls).
    """
    N, Hp, Wp, Cin = xp.shape
    H, W = Hp - 2, Wp - 2
    C1, C2 = w1.shape[-1], w2.shape[-1]
    Ho, Wo = H // 2, W // 2
    Hq, Wq = Ho // 2, Wo // 2
    n_fc = len(mlp_ws)
    n_cls = mlp_ws[-1].shape[-1]

    kernel = functools.partial(_fused_forward_kernel, N=N, H=H, W=W,
                               Cin=Cin, C1=C1, C2=C2, n_fc=n_fc)
    args = [xp, w1, b1, w2, b2]
    for wv, bv in zip(mlp_ws, mlp_bs):
        args.extend((wv, bv))

    # No grid: one invocation, every operand mapped whole into VMEM
    # (total footprint is well under 1 MiB).
    return pl.pallas_call(
        kernel,
        out_shape=(jax.ShapeDtypeStruct((N, C2 * Hq * Wq), jnp.float32),
                   jax.ShapeDtypeStruct((N, n_cls), jnp.float32)),
        scratch_shapes=[
            pltpu.VMEM((N, Ho + 2, Wo + 2, C1), jnp.float32),   # padded pool-1 out
            pltpu.VMEM((N * H * W, 9 * Cin), jnp.float32),      # layer-1 patch tile
            pltpu.VMEM((N * Ho * Wo, 9 * C1), jnp.float32),     # layer-2 patch tile
        ],
    )(*args)


# ----------------------------------------------------------------------------
# Model (parameters built deterministically in-script)
# ----------------------------------------------------------------------------
class PallasCoralModel:
    def __init__(self, in_shape=(3, 16, 16), n_cls=10, fc_hidden_dims=(64, 32),
                 conv_channels=(8, 16), seed=0):
        Cin, H, W = in_shape
        assert H % 4 == 0 and W % 4 == 0, "two 2x2 maxpools need H, W divisible by 4"
        C1, C2 = conv_channels
        self.in_shape = in_shape
        self.n_cls = n_cls
        self.cnn_out_shape = (C2, H // 4, W // 4)
        flat = C2 * (H // 4) * (W // 4)

        n_fc = len(fc_hidden_dims) + 1
        key = jax.random.PRNGKey(seed)
        ks = jax.random.split(key, 4 + 2 * n_fc)

        def init(k, shape, scale=0.05):
            return (scale * jax.random.normal(k, shape)).astype(jnp.float32)

        # PyTorch-layout parameters: conv weight (Cout, Cin, 3, 3).
        self.w_conv1 = init(ks[0], (C1, Cin, 3, 3))
        self.b_conv1 = init(ks[1], (C1,))
        self.w_conv2 = init(ks[2], (C2, C1, 3, 3))
        self.b_conv2 = init(ks[3], (C2,))

        # cls_head MLP: flat -> hidden... -> n_cls (ReLU between, none at end);
        # W0 rows are in NCHW-flatten order, matching PyTorch flatten(1).
        dims = (flat,) + tuple(fc_hidden_dims) + (n_cls,)
        self.mlp_w, self.mlp_b = [], []
        for li in range(n_fc):
            self.mlp_w.append(init(ks[4 + 2 * li], (dims[li], dims[li + 1])))
            self.mlp_b.append(init(ks[5 + 2 * li], (dims[li + 1],)))

        # Kernel-ready views (computed once):
        #   conv weights (OIHW) -> (9*Cin, Cout): row index = ki*3*Cin + kj*Cin + cin,
        #   matching the in-kernel patch-tile layout; biases -> (1, Cout).
        self._w1k = jnp.transpose(self.w_conv1, (2, 3, 1, 0)).reshape(9 * Cin, C1)
        self._w2k = jnp.transpose(self.w_conv2, (2, 3, 1, 0)).reshape(9 * C1, C2)
        self._b1k = self.b_conv1.reshape(1, C1)
        self._b2k = self.b_conv2.reshape(1, C2)
        self._mlp_bk = [b.reshape(1, -1) for b in self.mlp_b]

        self._forward_jit = jax.jit(self._forward_core)

    def _forward_core(self, x):
        N = x.shape[0]
        C2, Hq, Wq = self.cnn_out_shape
        # Boundary-only layout prep (one tiny fused XLA op): NCHW -> NHWC + zero pad.
        xp = jnp.pad(jnp.transpose(x, (0, 2, 3, 1)),
                     ((0, 0), (1, 1), (1, 1), (0, 0)))
        h, y = fused_forward(xp, self._w1k, self._b1k, self._w2k, self._b2k,
                             self.mlp_w, self._mlp_bk)
        # h is already NCHW-flatten ordered, so x is a free row-major reshape.
        x_out = h.reshape(N, C2, Hq, Wq)
        return x_out, h, y

    def forward(self, x, d):
        x_out, h, y1 = self._forward_jit(x)
        outputs = {"x": x_out, "h": h, "y1_lo": y1}
        if d == "src":
            outputs = {k + "_A": v for k, v in outputs.items()}
        elif d == "tgt":
            outputs = {k + "_B": v for k, v in outputs.items()}
        return outputs


# ----------------------------------------------------------------------------
# Pure-JAX f32 reference (structurally independent: lax.conv + reshape pooling)
# ----------------------------------------------------------------------------
def _reference_forward(x, model):
    hi = jax.lax.Precision.HIGHEST

    def block(xi, w, b):
        y = jax.lax.conv_general_dilated(
            xi, w, window_strides=(1, 1), padding=((1, 1), (1, 1)),
            dimension_numbers=("NCHW", "OIHW", "NCHW"), precision=hi)
        y = jnp.maximum(y + b.reshape(1, -1, 1, 1), 0.0)
        n, c, hh, ww = y.shape
        return y.reshape(n, c, hh // 2, 2, ww // 2, 2).max(axis=(3, 5))

    f = block(x, model.w_conv1, model.b_conv1)
    f = block(f, model.w_conv2, model.b_conv2)
    h = f.reshape(x.shape[0], -1)
    a = h
    nl = len(model.mlp_w)
    for li in range(nl):
        a = jnp.dot(a, model.mlp_w[li], precision=hi) + model.mlp_b[li]
        if li < nl - 1:
            a = jnp.maximum(a, 0.0)
    return f, h, a


# ----------------------------------------------------------------------------
if __name__ == "__main__":
    key = jax.random.PRNGKey(0)
    batch, in_shape, n_cls = 2, (3, 16, 16), 10
    x = jax.random.normal(key, (batch,) + in_shape, dtype=jnp.float32)

    model = PallasCoralModel(in_shape=in_shape, n_cls=n_cls,
                             fc_hidden_dims=(64, 32), conv_channels=(8, 16))

    out = model.forward(x, "src")
    out = jax.tree_util.tree_map(jax.block_until_ready, out)

    # shape sanity
    assert out["x_A"].shape == (batch, 16, 4, 4)
    assert out["h_A"].shape == (batch, 16 * 4 * 4)
    assert out["y1_lo_A"].shape == (batch, n_cls)

    # numerical check against an independent pure-f32 reference
    xr, hr, yr = _reference_forward(x, model)
    assert jnp.allclose(out["x_A"], xr, atol=5e-3, rtol=5e-3), "conv block mismatch"
    assert jnp.allclose(out["h_A"], hr, atol=5e-3, rtol=5e-3), "flatten mismatch"
    assert jnp.allclose(out["y1_lo_A"], yr, atol=5e-3, rtol=5e-3), "MLP head mismatch"

    # exercise the 'tgt' branch (pure dict-key relabeling)
    out_b = model.forward(x, "tgt")
    out_b = jax.tree_util.tree_map(jax.block_until_ready, out_b)
    assert "y1_lo_B" in out_b

    print("KERNEL_OK")
</pallas_src>

<mosaic_0001>
module attributes {stable_mosaic.version = 11 : i64} {
  func.func @_fused_forward_kernel(%arg0: memref<2x18x18x3xf32, #tpu.memory_space<vmem>>, %arg1: memref<27x8xf32, #tpu.memory_space<vmem>>, %arg2: memref<1x8xf32, #tpu.memory_space<vmem>>, %arg3: memref<72x16xf32, #tpu.memory_space<vmem>>, %arg4: memref<1x16xf32, #tpu.memory_space<vmem>>, %arg5: memref<256x64xf32, #tpu.memory_space<vmem>>, %arg6: memref<1x64xf32, #tpu.memory_space<vmem>>, %arg7: memref<64x32xf32, #tpu.memory_space<vmem>>, %arg8: memref<1x32xf32, #tpu.memory_space<vmem>>, %arg9: memref<32x10xf32, #tpu.memory_space<vmem>>, %arg10: memref<1x10xf32, #tpu.memory_space<vmem>>, %arg11: memref<2x256xf32, #tpu.memory_space<vmem>>, %arg12: memref<2x10xf32, #tpu.memory_space<vmem>>, %arg13: memref<2x10x10x8xf32, #tpu.memory_space<vmem>>, %arg14: memref<512x27xf32, #tpu.memory_space<vmem>>, %arg15: memref<128x72xf32, #tpu.memory_space<vmem>>) attributes {dimension_semantics = [], scalar_prefetch = 0 : i64, scratch_operands = 3 : i64, tpu.core_type = #tpu.core_type<tc>} {
    %c0 = arith.constant 0 : index
    %c0_0 = arith.constant 0 : index
    %c0_1 = arith.constant 0 : index
    %c0_2 = arith.constant 0 : index
    %0 = vector.load %arg0[%c0, %c0_0, %c0_1, %c0_2] : memref<2x18x18x3xf32, #tpu.memory_space<vmem>>, vector<2x16x16x3xf32>
    %1 = vector.shape_cast %0 : vector<2x16x16x3xf32> to vector<512x3xf32>
    %c0_3 = arith.constant 0 : index
    %c0_4 = arith.constant 0 : index
    %2 = vector.load %arg14[%c0_3, %c0_4] : memref<512x27xf32, #tpu.memory_space<vmem>>, vector<512x3xf32>
    tpu.vector_store %arg14[%c0_3, %c0_4], %1 {strides = array<i32>} : memref<512x27xf32, #tpu.memory_space<vmem>>, vector<512x3xf32>,
    %c0_5 = arith.constant 0 : index
    %c0_6 = arith.constant 0 : index
    %c1 = arith.constant 1 : index
    %c0_7 = arith.constant 0 : index
    %3 = vector.load %arg0[%c0_5, %c0_6, %c1, %c0_7] : memref<2x18x18x3xf32, #tpu.memory_space<vmem>>, vector<2x16x16x3xf32>
    %4 = vector.shape_cast %3 : vector<2x16x16x3xf32> to vector<512x3xf32>
    %c0_8 = arith.constant 0 : index
    %c3 = arith.constant 3 : index
    %5 = vector.load %arg14[%c0_8, %c3] : memref<512x27xf32, #tpu.memory_space<vmem>>, vector<512x3xf32>
    tpu.vector_store %arg14[%c0_8, %c3], %4 {strides = array<i32>} : memref<512x27xf32, #tpu.memory_space<vmem>>, vector<512x3xf32>,
    %c0_9 = arith.constant 0 : index
    %c0_10 = arith.constant 0 : index
    %c2 = arith.constant 2 : index
    %c0_11 = arith.constant 0 : index
    %6 = vector.load %arg0[%c0_9, %c0_10, %c2, %c0_11] : memref<2x18x18x3xf32, #tpu.memory_space<vmem>>, vector<2x16x16x3xf32>
    %7 = vector.shape_cast %6 : vector<2x16x16x3xf32> to vector<512x3xf32>
    %c0_12 = arith.constant 0 : index
    %c6 = arith.constant 6 : index
    %8 = vector.load %arg14[%c0_12, %c6] : memref<512x27xf32, #tpu.memory_space<vmem>>, vector<512x3xf32>
    tpu.vector_store %arg14[%c0_12, %c6], %7 {strides = array<i32>} : memref<512x27xf32, #tpu.memory_space<vmem>>, vector<512x3xf32>,
    %c0_13 = arith.constant 0 : index
    %c1_14 = arith.constant 1 : index
    %c0_15 = arith.constant 0 : index
    %c0_16 = arith.constant 0 : index
    %9 = vector.load %arg0[%c0_13, %c1_14, %c0_15, %c0_16] : memref<2x18x18x3xf32, #tpu.memory_space<vmem>>, vector<2x16x16x3xf32>
    %10 = vector.shape_cast %9 : vector<2x16x16x3xf32> to vector<512x3xf32>
    %c0_17 = arith.constant 0 : index
    %c9 = arith.constant 9 : index
    %11 = vector.load %arg14[%c0_17, %c9] : memref<512x27xf32, #tpu.memory_space<vmem>>, vector<512x3xf32>
    tpu.vector_store %arg14[%c0_17, %c9], %10 {strides = array<i32>} : memref<512x27xf32, #tpu.memory_space<vmem>>, vector<512x3xf32>,
    %c0_18 = arith.constant 0 : index
    %c1_19 = arith.constant 1 : index
    %c1_20 = arith.constant 1 : index
    %c0_21 = arith.constant 0 : index
    %12 = vector.load %arg0[%c0_18, %c1_19, %c1_20, %c0_21] : memref<2x18x18x3xf32, #tpu.memory_space<vmem>>, vector<2x16x16x3xf32>
    %13 = vector.shape_cast %12 : vector<2x16x16x3xf32> to vector<512x3xf32>
    %c0_22 = arith.constant 0 : index
    %c12 = arith.constant 12 : index
    %14 = vector.load %arg14[%c0_22, %c12] : memref<512x27xf32, #tpu.memory_space<vmem>>, vector<512x3xf32>
    tpu.vector_store %arg14[%c0_22, %c12], %13 {strides = array<i32>} : memref<512x27xf32, #tpu.memory_space<vmem>>, vector<512x3xf32>,
    %c0_23 = arith.constant 0 : index
    %c1_24 = arith.constant 1 : index
    %c2_25 = arith.constant 2 : index
    %c0_26 = arith.constant 0 : index
    %15 = vector.load %arg0[%c0_23, %c1_24, %c2_25, %c0_26] : memref<2x18x18x3xf32, #tpu.memory_space<vmem>>, vector<2x16x16x3xf32>
    %16 = vector.shape_cast %15 : vector<2x16x16x3xf32> to vector<512x3xf32>
    %c0_27 = arith.constant 0 : index
    %c15 = arith.constant 15 : index
    %17 = vector.load %arg14[%c0_27, %c15] : memref<512x27xf32, #tpu.memory_space<vmem>>, vector<512x3xf32>
    tpu.vector_store %arg14[%c0_27, %c15], %16 {strides = array<i32>} : memref<512x27xf32, #tpu.memory_space<vmem>>, vector<512x3xf32>,
    %c0_28 = arith.constant 0 : index
    %c2_29 = arith.constant 2 : index
    %c0_30 = arith.constant 0 : index
    %c0_31 = arith.constant 0 : index
    %18 = vector.load %arg0[%c0_28, %c2_29, %c0_30, %c0_31] : memref<2x18x18x3xf32, #tpu.memory_space<vmem>>, vector<2x16x16x3xf32>
    %19 = vector.shape_cast %18 : vector<2x16x16x3xf32> to vector<512x3xf32>
    %c0_32 = arith.constant 0 : index
    %c18 = arith.constant 18 : index
    %20 = vector.load %arg14[%c0_32, %c18] : memref<512x27xf32, #tpu.memory_space<vmem>>, vector<512x3xf32>
    tpu.vector_store %arg14[%c0_32, %c18], %19 {strides = array<i32>} : memref<512x27xf32, #tpu.memory_space<vmem>>, vector<512x3xf32>,
    %c0_33 = arith.constant 0 : index
    %c2_34 = arith.constant 2 : index
    %c1_35 = arith.constant 1 : index
    %c0_36 = arith.constant 0 : index
    %21 = vector.load %arg0[%c0_33, %c2_34, %c1_35, %c0_36] : memref<2x18x18x3xf32, #tpu.memory_space<vmem>>, vector<2x16x16x3xf32>
    %22 = vector.shape_cast %21 : vector<2x16x16x3xf32> to vector<512x3xf32>
    %c0_37 = arith.constant 0 : index
    %c21 = arith.constant 21 : index
    %23 = vector.load %arg14[%c0_37, %c21] : memref<512x27xf32, #tpu.memory_space<vmem>>, vector<512x3xf32>
    tpu.vector_store %arg14[%c0_37, %c21], %22 {strides = array<i32>} : memref<512x27xf32, #tpu.memory_space<vmem>>, vector<512x3xf32>,
    %c0_38 = arith.constant 0 : index
    %c2_39 = arith.constant 2 : index
    %c2_40 = arith.constant 2 : index
    %c0_41 = arith.constant 0 : index
    %24 = vector.load %arg0[%c0_38, %c2_39, %c2_40, %c0_41] : memref<2x18x18x3xf32, #tpu.memory_space<vmem>>, vector<2x16x16x3xf32>
    %25 = vector.shape_cast %24 : vector<2x16x16x3xf32> to vector<512x3xf32>
    %c0_42 = arith.constant 0 : index
    %c24 = arith.constant 24 : index
    %26 = vector.load %arg14[%c0_42, %c24] : memref<512x27xf32, #tpu.memory_space<vmem>>, vector<512x3xf32>
    tpu.vector_store %arg14[%c0_42, %c24], %25 {strides = array<i32>} : memref<512x27xf32, #tpu.memory_space<vmem>>, vector<512x3xf32>,
    %c0_43 = arith.constant 0 : index
    %c0_44 = arith.constant 0 : index
    %27 = vector.load %arg14[%c0_43, %c0_44] : memref<512x27xf32, #tpu.memory_space<vmem>>, vector<512x27xf32>
    %c0_45 = arith.constant 0 : index
    %c0_46 = arith.constant 0 : index
    %28 = vector.load %arg1[%c0_45, %c0_46] : memref<27x8xf32, #tpu.memory_space<vmem>>, vector<27x8xf32>
    %cst = arith.constant dense<0.000000e+00> : vector<512x8xf32>
    %29 = tpu.matmul %27, %28, %cst {dimension_numbers = #tpu.dot_dimension_numbers<[1], [0], [0], [1], [0, 0, 1, 1], [], []>} : vector<512x27xf32>, vector<27x8xf32>, vector<512x8xf32> -> vector<512x8xf32>
    %c0_47 = arith.constant 0 : index
    %c0_48 = arith.constant 0 : index
    %30 = vector.load %arg2[%c0_47, %c0_48] : memref<1x8xf32, #tpu.memory_space<vmem>>, vector<1x8xf32>
    %31 = vector.broadcast %30 : vector<1x8xf32> to vector<512x8xf32>
    %32 = arith.addf %29, %31 : vector<512x8xf32>
    %cst_49 = arith.constant 0.000000e+00 : f32
    %33 = vector.broadcast %cst_49 : f32 to vector<512x8xf32>
    %34 = arith.maximumf %32, %33 : vector<512x8xf32>
    %35 = vector.shape_cast %34 : vector<512x8xf32> to vector<16x2x16x8xf32>
    %cst_50 = arith.constant dense<0xFF800000> : vector<16x16x8xf32>
    %36 = vector.multi_reduction <maximumf>, %35, %cst_50 [1] : vector<16x2x16x8xf32> to vector<16x16x8xf32>
    %37 = vector.shape_cast %36 : vector<16x16x8xf32> to vector<16x8x2x8xf32>
    %cst_51 = arith.constant dense<0xFF800000> : vector<16x8x8xf32>
    %38 = vector.multi_reduction <maximumf>, %37, %cst_51 [2] : vector<16x8x2x8xf32> to vector<16x8x8xf32>
    %39 = vector.shape_cast %38 : vector<16x8x8xf32> to vector<128x8xf32>
    %cst_52 = arith.constant 0.000000e+00 : f32
    %40 = vector.broadcast %cst_52 : f32 to vector<2x1x10x8xf32>
    %c0_53 = arith.constant 0 : index
    %c0_54 = arith.constant 0 : index
    %c0_55 = arith.constant 0 : index
    %c0_56 = arith.constant 0 : index
    %41 = vector.load %arg13[%c0_53, %c0_54, %c0_55, %c0_56] : memref<2x10x10x8xf32, #tpu.memory_space<vmem>>, vector<2x1x10x8xf32>
    tpu.vector_store %arg13[%c0_53, %c0_54, %c0_55, %c0_56], %40 {strides = array<i32>} : memref<2x10x10x8xf32, #tpu.memory_space<vmem>>, vector<2x1x10x8xf32>,
    %cst_57 = arith.constant 0.000000e+00 : f32
    %42 = vector.broadcast %cst_57 : f32 to vector<2x1x10x8xf32>
    %c0_58 = arith.constant 0 : index
    %c9_59 = arith.constant 9 : index
    %c0_60 = arith.constant 0 : index
    %c0_61 = arith.constant 0 : index
    %43 = vector.load %arg13[%c0_58, %c9_59, %c0_60, %c0_61] : memref<2x10x10x8xf32, #tpu.memory_space<vmem>>, vector<2x1x10x8xf32>
    tpu.vector_store %arg13[%c0_58, %c9_59, %c0_60, %c0_61], %42 {strides = array<i32>} : memref<2x10x10x8xf32, #tpu.memory_space<vmem>>, vector<2x1x10x8xf32>,
    %cst_62 = arith.constant 0.000000e+00 : f32
    %44 = vector.broadcast %cst_62 : f32 to vector<2x10x1x8xf32>
    %c0_63 = arith.constant 0 : index
    %c0_64 = arith.constant 0 : index
    %c0_65 = arith.constant 0 : index
    %c0_66 = arith.constant 0 : index
    %45 = vector.load %arg13[%c0_63, %c0_64, %c0_65, %c0_66] : memref<2x10x10x8xf32, #tpu.memory_space<vmem>>, vector<2x10x1x8xf32>
    tpu.vector_store %arg13[%c0_63, %c0_64, %c0_65, %c0_66], %44 {strides = array<i32>} : memref<2x10x10x8xf32, #tpu.memory_space<vmem>>, vector<2x10x1x8xf32>,
    %cst_67 = arith.constant 0.000000e+00 : f32
    %46 = vector.broadcast %cst_67 : f32 to vector<2x10x1x8xf32>
    %c0_68 = arith.constant 0 : index
    %c0_69 = arith.constant 0 : index
    %c9_70 = arith.constant 9 : index
    %c0_71 = arith.constant 0 : index
    %47 = vector.load %arg13[%c0_68, %c0_69, %c9_70, %c0_71] : memref<2x10x10x8xf32, #tpu.memory_space<vmem>>, vector<2x10x1x8xf32>
    tpu.vector_store %arg13[%c0_68, %c0_69, %c9_70, %c0_71], %46 {strides = array<i32>} : memref<2x10x10x8xf32, #tpu.memory_space<vmem>>, vector<2x10x1x8xf32>,
    %48 = vector.shape_cast %39 : vector<128x8xf32> to vector<2x8x8x8xf32>
    %c0_72 = arith.constant 0 : index
    %c1_73 = arith.constant 1 : index
    %c1_74 = arith.constant 1 : index
    %c0_75 = arith.constant 0 : index
    %49 = vector.load %arg13[%c0_72, %c1_73, %c1_74, %c0_75] : memref<2x10x10x8xf32, #tpu.memory_space<vmem>>, vector<2x8x8x8xf32>
    tpu.vector_store %arg13[%c0_72, %c1_73, %c1_74, %c0_75], %48 {strides = array<i32>} : memref<2x10x10x8xf32, #tpu.memory_space<vmem>>, vector<2x8x8x8xf32>,
    %c0_76 = arith.constant 0 : index
    %c0_77 = arith.constant 0 : index
    %c0_78 = arith.constant 0 : index
    %c0_79 = arith.constant 0 : index
    %50 = vector.load %arg13[%c0_76, %c0_77, %c0_78, %c0_79] : memref<2x10x10x8xf32, #tpu.memory_space<vmem>>, vector<2x8x8x8xf32>
    %51 = vector.shape_cast %50 : vector<2x8x8x8xf32> to vector<128x8xf32>
    %c0_80 = arith.constant 0 : index
    %c0_81 = arith.constant 0 : index
    %52 = vector.load %arg15[%c0_80, %c0_81] : memref<128x72xf32, #tpu.memory_space<vmem>>, vector<128x8xf32>
    tpu.vector_store %arg15[%c0_80, %c0_81], %51 {strides = array<i32>} : memref<128x72xf32, #tpu.memory_space<vmem>>, vector<128x8xf32>,
    %c0_82 = arith.constant 0 : index
    %c0_83 = arith.constant 0 : index
    %c1_84 = arith.constant 1 : index
    %c0_85 = arith.constant 0 : index
    %53 = vector.load %arg13[%c0_82, %c0_83, %c1_84, %c0_85] : memref<2x10x10x8xf32, #tpu.memory_space<vmem>>, vector<2x8x8x8xf32>
    %54 = vector.shape_cast %53 : vector<2x8x8x8xf32> to vector<128x8xf32>
    %c0_86 = arith.constant 0 : index
    %c8 = arith.constant 8 : index
    %55 = vector.load %arg15[%c0_86, %c8] : memref<128x72xf32, #tpu.memory_space<vmem>>, vector<128x8xf32>
    tpu.vector_store %arg15[%c0_86, %c8], %54 {strides = array<i32>} : memref<128x72xf32, #tpu.memory_space<vmem>>, vector<128x8xf32>,
    %c0_87 = arith.constant 0 : index
    %c0_88 = arith.constant 0 : index
    %c2_89 = arith.constant 2 : index
    %c0_90 = arith.constant 0 : index
    %56 = vector.load %arg13[%c0_87, %c0_88, %c2_89, %c0_90] : memref<2x10x10x8xf32, #tpu.memory_space<vmem>>, vector<2x8x8x8xf32>
    %57 = vector.shape_cast %56 : vector<2x8x8x8xf32> to vector<128x8xf32>
    %c0_91 = arith.constant 0 : index
    %c16 = arith.constant 16 : index
    %58 = vector.load %arg15[%c0_91, %c16] : memref<128x72xf32, #tpu.memory_space<vmem>>, vector<128x8xf32>
    tpu.vector_store %arg15[%c0_91, %c16], %57 {strides = array<i32>} : memref<128x72xf32, #tpu.memory_space<vmem>>, vector<128x8xf32>,
    %c0_92 = arith.constant 0 : index
    %c1_93 = arith.constant 1 : index
    %c0_94 = arith.constant 0 : index
    %c0_95 = arith.constant 0 : index
    %59 = vector.load %arg13[%c0_92, %c1_93, %c0_94, %c0_95] : memref<2x10x10x8xf32, #tpu.memory_space<vmem>>, vector<2x8x8x8xf32>
    %60 = vector.shape_cast %59 : vector<2x8x8x8xf32> to vector<128x8xf32>
    %c0_96 = arith.constant 0 : index
    %c24_97 = arith.constant 24 : index
    %61 = vector.load %arg15[%c0_96, %c24_97] : memref<128x72xf32, #tpu.memory_space<vmem>>, vector<128x8xf32>
    tpu.vector_store %arg15[%c0_96, %c24_97], %60 {strides = array<i32>} : memref<128x72xf32, #tpu.memory_space<vmem>>, vector<128x8xf32>,
    %c0_98 = arith.constant 0 : index
    %c1_99 = arith.constant 1 : index
    %c1_100 = arith.constant 1 : index
    %c0_101 = arith.constant 0 : index
    %62 = vector.load %arg13[%c0_98, %c1_99, %c1_100, %c0_101] : memref<2x10x10x8xf32, #tpu.memory_space<vmem>>, vector<2x8x8x8xf32>
    %63 = vector.shape_cast %62 : vector<2x8x8x8xf32> to vector<128x8xf32>
    %c0_102 = arith.constant 0 : index
    %c32 = arith.constant 32 : index
    %64 = vector.load %arg15[%c0_102, %c32] : memref<128x72xf32, #tpu.memory_space<vmem>>, vector<128x8xf32>
    tpu.vector_store %arg15[%c0_102, %c32], %63 {strides = array<i32>} : memref<128x72xf32, #tpu.memory_space<vmem>>, vector<128x8xf32>,
    %c0_103 = arith.constant 0 : index
    %c1_104 = arith.constant 1 : index
    %c2_105 = arith.constant 2 : index
    %c0_106 = arith.constant 0 : index
    %65 = vector.load %arg13[%c0_103, %c1_104, %c2_105, %c0_106] : memref<2x10x10x8xf32, #tpu.memory_space<vmem>>, vector<2x8x8x8xf32>
    %66 = vector.shape_cast %65 : vector<2x8x8x8xf32> to vector<128x8xf32>
    %c0_107 = arith.constant 0 : index
    %c40 = arith.constant 40 : index
    %67 = vector.load %arg15[%c0_107, %c40] : memref<128x72xf32, #tpu.memory_space<vmem>>, vector<128x8xf32>
    tpu.vector_store %arg15[%c0_107, %c40], %66 {strides = array<i32>} : memref<128x72xf32, #tpu.memory_space<vmem>>, vector<128x8xf32>,
    %c0_108 = arith.constant 0 : index
    %c2_109 = arith.constant 2 : index
    %c0_110 = arith.constant 0 : index
    %c0_111 = arith.constant 0 : index
    %68 = vector.load %arg13[%c0_108, %c2_109, %c0_110, %c0_111] : memref<2x10x10x8xf32, #tpu.memory_space<vmem>>, vector<2x8x8x8xf32>
    %69 = vector.shape_cast %68 : vector<2x8x8x8xf32> to vector<128x8xf32>
    %c0_112 = arith.constant 0 : index
    %c48 = arith.constant 48 : index
    %70 = vector.load %arg15[%c0_112, %c48] : memref<128x72xf32, #tpu.memory_space<vmem>>, vector<128x8xf32>
    tpu.vector_store %arg15[%c0_112, %c48], %69 {strides = array<i32>} : memref<128x72xf32, #tpu.memory_space<vmem>>, vector<128x8xf32>,
    %c0_113 = arith.constant 0 : index
    %c2_114 = arith.constant 2 : index
    %c1_115 = arith.constant 1 : index
    %c0_116 = arith.constant 0 : index
    %71 = vector.load %arg13[%c0_113, %c2_114, %c1_115, %c0_116] : memref<2x10x10x8xf32, #tpu.memory_space<vmem>>, vector<2x8x8x8xf32>
    %72 = vector.shape_cast %71 : vector<2x8x8x8xf32> to vector<128x8xf32>
    %c0_117 = arith.constant 0 : index
    %c56 = arith.constant 56 : index
    %73 = vector.load %arg15[%c0_117, %c56] : memref<128x72xf32, #tpu.memory_space<vmem>>, vector<128x8xf32>
    tpu.vector_store %arg15[%c0_117, %c56], %72 {strides = array<i32>} : memref<128x72xf32, #tpu.memory_space<vmem>>, vector<128x8xf32>,
    %c0_118 = arith.constant 0 : index
    %c2_119 = arith.constant 2 : index
    %c2_120 = arith.constant 2 : index
    %c0_121 = arith.constant 0 : index
    %74 = vector.load %arg13[%c0_118, %c2_119, %c2_120, %c0_121] : memref<2x10x10x8xf32, #tpu.memory_space<vmem>>, vector<2x8x8x8xf32>
    %75 = vector.shape_cast %74 : vector<2x8x8x8xf32> to vector<128x8xf32>
    %c0_122 = arith.constant 0 : index
    %c64 = arith.constant 64 : index
    %76 = vector.load %arg15[%c0_122, %c64] : memref<128x72xf32, #tpu.memory_space<vmem>>, vector<128x8xf32>
    tpu.vector_store %arg15[%c0_122, %c64], %75 {strides = array<i32>} : memref<128x72xf32, #tpu.memory_space<vmem>>, vector<128x8xf32>,
    %c0_123 = arith.constant 0 : index
    %c0_124 = arith.constant 0 : index
    %77 = vector.load %arg15[%c0_123, %c0_124] : memref<128x72xf32, #tpu.memory_space<vmem>>, vector<128x72xf32>
    %c0_125 = arith.constant 0 : index
    %c0_126 = arith.constant 0 : index
    %78 = vector.load %arg3[%c0_125, %c0_126] : memref<72x16xf32, #tpu.memory_space<vmem>>, vector<72x16xf32>
    %cst_127 = arith.constant dense<0.000000e+00> : vector<128x16xf32>
    %79 = tpu.matmul %77, %78, %cst_127 {dimension_numbers = #tpu.dot_dimension_numbers<[1], [0], [0], [1], [0, 0, 1, 1], [], []>} : vector<128x72xf32>, vector<72x16xf32>, vector<128x16xf32> -> vector<128x16xf32>
    %c0_128 = arith.constant 0 : index
    %c0_129 = arith.constant 0 : index
    %80 = vector.load %arg4[%c0_128, %c0_129] : memref<1x16xf32, #tpu.memory_space<vmem>>, vector<1x16xf32>
    %81 = vector.broadcast %80 : vector<1x16xf32> to vector<128x16xf32>
    %82 = arith.addf %79, %81 : vector<128x16xf32>
    %cst_130 = arith.constant 0.000000e+00 : f32
    %83 = vector.broadcast %cst_130 : f32 to vector<128x16xf32>
    %84 = arith.maximumf %82, %83 : vector<128x16xf32>
    %85 = vector.shape_cast %84 : vector<128x16xf32> to vector<8x2x8x16xf32>
    %cst_131 = arith.constant dense<0xFF800000> : vector<8x8x16xf32>
    %86 = vector.multi_reduction <maximumf>, %85, %cst_131 [1] : vector<8x2x8x16xf32> to vector<8x8x16xf32>
    %87 = vector.shape_cast %86 : vector<8x8x16xf32> to vector<8x4x2x16xf32>
    %cst_132 = arith.constant dense<0xFF800000> : vector<8x4x16xf32>
    %88 = vector.multi_reduction <maximumf>, %87, %cst_132 [2] : vector<8x4x2x16xf32> to vector<8x4x16xf32>
    %89 = vector.shape_cast %88 : vector<8x4x16xf32> to vector<32x16xf32>
    %90 = vector.shape_cast %89 : vector<32x16xf32> to vector<2x16x16xf32>
    %91 = tpu.transpose %90, [0, 2, 1] : vector<2x16x16xf32> -> vector<2x16x16xf32>
    %92 = vector.extract_strided_slice %91 {offsets = [0, 0, 0], sizes = [2, 1, 16], strides = [1, 1, 1]} : vector<2x16x16xf32> to vector<2x1x16xf32>
    %93 = vector.shape_cast %92 : vector<2x1x16xf32> to vector<2x16xf32>
    %c0_133 = arith.constant 0 : index
    %c0_134 = arith.constant 0 : index
    %94 = vector.load %arg11[%c0_133, %c0_134] : memref<2x256xf32, #tpu.memory_space<vmem>>, vector<2x16xf32>
    tpu.vector_store %arg11[%c0_133, %c0_134], %93 {strides = array<i32>} : memref<2x256xf32, #tpu.memory_space<vmem>>, vector<2x16xf32>,
    %95 = vector.extract_strided_slice %91 {offsets = [0, 1, 0], sizes = [2, 1, 16], strides = [1, 1, 1]} : vector<2x16x16xf32> to vector<2x1x16xf32>
    %96 = vector.shape_cast %95 : vector<2x1x16xf32> to vector<2x16xf32>
    %c0_135 = arith.constant 0 : index
    %c16_136 = arith.constant 16 : index
    %97 = vector.load %arg11[%c0_135, %c16_136] : memref<2x256xf32, #tpu.memory_space<vmem>>, vector<2x16xf32>
    tpu.vector_store %arg11[%c0_135, %c16_136], %96 {strides = array<i32>} : memref<2x256xf32, #tpu.memory_space<vmem>>, vector<2x16xf32>,
    %98 = vector.extract_strided_slice %91 {offsets = [0, 2, 0], sizes = [2, 1, 16], strides = [1, 1, 1]} : vector<2x16x16xf32> to vector<2x1x16xf32>
    %99 = vector.shape_cast %98 : vector<2x1x16xf32> to vector<2x16xf32>
    %c0_137 = arith.constant 0 : index
    %c32_138 = arith.constant 32 : index
    %100 = vector.load %arg11[%c0_137, %c32_138] : memref<2x256xf32, #tpu.memory_space<vmem>>, vector<2x16xf32>
    tpu.vector_store %arg11[%c0_137, %c32_138], %99 {strides = array<i32>} : memref<2x256xf32, #tpu.memory_space<vmem>>, vector<2x16xf32>,
    %101 = vector.extract_strided_slice %91 {offsets = [0, 3, 0], sizes = [2, 1, 16], strides = [1, 1, 1]} : vector<2x16x16xf32> to vector<2x1x16xf32>
    %102 = vector.shape_cast %101 : vector<2x1x16xf32> to vector<2x16xf32>
    %c0_139 = arith.constant 0 : index
    %c48_140 = arith.constant 48 : index
    %103 = vector.load %arg11[%c0_139, %c48_140] : memref<2x256xf32, #tpu.memory_space<vmem>>, vector<2x16xf32>
    tpu.vector_store %arg11[%c0_139, %c48_140], %102 {strides = array<i32>} : memref<2x256xf32, #tpu.memory_space<vmem>>, vector<2x16xf32>,
    %104 = vector.extract_strided_slice %91 {offsets = [0, 4, 0], sizes = [2, 1, 16], strides = [1, 1, 1]} : vector<2x16x16xf32> to vector<2x1x16xf32>
    %105 = vector.shape_cast %104 : vector<2x1x16xf32> to vector<2x16xf32>
    %c0_141 = arith.constant 0 : index
    %c64_142 = arith.constant 64 : index
    %106 = vector.load %arg11[%c0_141, %c64_142] : memref<2x256xf32, #tpu.memory_space<vmem>>, vector<2x16xf32>
    tpu.vector_store %arg11[%c0_141, %c64_142], %105 {strides = array<i32>} : memref<2x256xf32, #tpu.memory_space<vmem>>, vector<2x16xf32>,
    %107 = vector.extract_strided_slice %91 {offsets = [0, 5, 0], sizes = [2, 1, 16], strides = [1, 1, 1]} : vector<2x16x16xf32> to vector<2x1x16xf32>
    %108 = vector.shape_cast %107 : vector<2x1x16xf32> to vector<2x16xf32>
    %c0_143 = arith.constant 0 : index
    %c80 = arith.constant 80 : index
    %109 = vector.load %arg11[%c0_143, %c80] : memref<2x256xf32, #tpu.memory_space<vmem>>, vector<2x16xf32>
    tpu.vector_store %arg11[%c0_143, %c80], %108 {strides = array<i32>} : memref<2x256xf32, #tpu.memory_space<vmem>>, vector<2x16xf32>,
    %110 = vector.extract_strided_slice %91 {offsets = [0, 6, 0], sizes = [2, 1, 16], strides = [1, 1, 1]} : vector<2x16x16xf32> to vector<2x1x16xf32>
    %111 = vector.shape_cast %110 : vector<2x1x16xf32> to vector<2x16xf32>
    %c0_144 = arith.constant 0 : index
    %c96 = arith.constant 96 : index
    %112 = vector.load %arg11[%c0_144, %c96] : memref<2x256xf32, #tpu.memory_space<vmem>>, vector<2x16xf32>
    tpu.vector_store %arg11[%c0_144, %c96], %111 {strides = array<i32>} : memref<2x256xf32, #tpu.memory_space<vmem>>, vector<2x16xf32>,
    %113 = vector.extract_strided_slice %91 {offsets = [0, 7, 0], sizes = [2, 1, 16], strides = [1, 1, 1]} : vector<2x16x16xf32> to vector<2x1x16xf32>
    %114 = vector.shape_cast %113 : vector<2x1x16xf32> to vector<2x16xf32>
    %c0_145 = arith.constant 0 : index
    %c112 = arith.constant 112 : index
    %115 = vector.load %arg11[%c0_145, %c112] : memref<2x256xf32, #tpu.memory_space<vmem>>, vector<2x16xf32>
    tpu.vector_store %arg11[%c0_145, %c112], %114 {strides = array<i32>} : memref<2x256xf32, #tpu.memory_space<vmem>>, vector<2x16xf32>,
    %116 = vector.extract_strided_slice %91 {offsets = [0, 8, 0], sizes = [2, 1, 16], strides = [1, 1, 1]} : vector<2x16x16xf32> to vector<2x1x16xf32>
    %117 = vector.shape_cast %116 : vector<2x1x16xf32> to vector<2x16xf32>
    %c0_146 = arith.constant 0 : index
    %c128 = arith.constant 128 : index
    %118 = vector.load %arg11[%c0_146, %c128] : memref<2x256xf32, #tpu.memory_space<vmem>>, vector<2x16xf32>
    tpu.vector_store %arg11[%c0_146, %c128], %117 {strides = array<i32>} : memref<2x256xf32, #tpu.memory_space<vmem>>, vector<2x16xf32>,
    %119 = vector.extract_strided_slice %91 {offsets = [0, 9, 0], sizes = [2, 1, 16], strides = [1, 1, 1]} : vector<2x16x16xf32> to vector<2x1x16xf32>
    %120 = vector.shape_cast %119 : vector<2x1x16xf32> to vector<2x16xf32>
    %c0_147 = arith.constant 0 : index
    %c144 = arith.constant 144 : index
    %121 = vector.load %arg11[%c0_147, %c144] : memref<2x256xf32, #tpu.memory_space<vmem>>, vector<2x16xf32>
    tpu.vector_store %arg11[%c0_147, %c144], %120 {strides = array<i32>} : memref<2x256xf32, #tpu.memory_space<vmem>>, vector<2x16xf32>,
    %122 = vector.extract_strided_slice %91 {offsets = [0, 10, 0], sizes = [2, 1, 16], strides = [1, 1, 1]} : vector<2x16x16xf32> to vector<2x1x16xf32>
    %123 = vector.shape_cast %122 : vector<2x1x16xf32> to vector<2x16xf32>
    %c0_148 = arith.constant 0 : index
    %c160 = arith.constant 160 : index
    %124 = vector.load %arg11[%c0_148, %c160] : memref<2x256xf32, #tpu.memory_space<vmem>>, vector<2x16xf32>
    tpu.vector_store %arg11[%c0_148, %c160], %123 {strides = array<i32>} : memref<2x256xf32, #tpu.memory_space<vmem>>, vector<2x16xf32>,
    %125 = vector.extract_strided_slice %91 {offsets = [0, 11, 0], sizes = [2, 1, 16], strides = [1, 1, 1]} : vector<2x16x16xf32> to vector<2x1x16xf32>
    %126 = vector.shape_cast %125 : vector<2x1x16xf32> to vector<2x16xf32>
    %c0_149 = arith.constant 0 : index
    %c176 = arith.constant 176 : index
    %127 = vector.load %arg11[%c0_149, %c176] : memref<2x256xf32, #tpu.memory_space<vmem>>, vector<2x16xf32>
    tpu.vector_store %arg11[%c0_149, %c176], %126 {strides = array<i32>} : memref<2x256xf32, #tpu.memory_space<vmem>>, vector<2x16xf32>,
    %128 = vector.extract_strided_slice %91 {offsets = [0, 12, 0], sizes = [2, 1, 16], strides = [1, 1, 1]} : vector<2x16x16xf32> to vector<2x1x16xf32>
    %129 = vector.shape_cast %128 : vector<2x1x16xf32> to vector<2x16xf32>
    %c0_150 = arith.constant 0 : index
    %c192 = arith.constant 192 : index
    %130 = vector.load %arg11[%c0_150, %c192] : memref<2x256xf32, #tpu.memory_space<vmem>>, vector<2x16xf32>
    tpu.vector_store %arg11[%c0_150, %c192], %129 {strides = array<i32>} : memref<2x256xf32, #tpu.memory_space<vmem>>, vector<2x16xf32>,
    %131 = vector.extract_strided_slice %91 {offsets = [0, 13, 0], sizes = [2, 1, 16], strides = [1, 1, 1]} : vector<2x16x16xf32> to vector<2x1x16xf32>
    %132 = vector.shape_cast %131 : vector<2x1x16xf32> to vector<2x16xf32>
    %c0_151 = arith.constant 0 : index
    %c208 = arith.constant 208 : index
    %133 = vector.load %arg11[%c0_151, %c208] : memref<2x256xf32, #tpu.memory_space<vmem>>, vector<2x16xf32>
    tpu.vector_store %arg11[%c0_151, %c208], %132 {strides = array<i32>} : memref<2x256xf32, #tpu.memory_space<vmem>>, vector<2x16xf32>,
    %134 = vector.extract_strided_slice %91 {offsets = [0, 14, 0], sizes = [2, 1, 16], strides = [1, 1, 1]} : vector<2x16x16xf32> to vector<2x1x16xf32>
    %135 = vector.shape_cast %134 : vector<2x1x16xf32> to vector<2x16xf32>
    %c0_152 = arith.constant 0 : index
    %c224 = arith.constant 224 : index
    %136 = vector.load %arg11[%c0_152, %c224] : memref<2x256xf32, #tpu.memory_space<vmem>>, vector<2x16xf32>
    tpu.vector_store %arg11[%c0_152, %c224], %135 {strides = array<i32>} : memref<2x256xf32, #tpu.memory_space<vmem>>, vector<2x16xf32>,
    %137 = vector.extract_strided_slice %91 {offsets = [0, 15, 0], sizes = [2, 1, 16], strides = [1, 1, 1]} : vector<2x16x16xf32> to vector<2x1x16xf32>
    %138 = vector.shape_cast %137 : vector<2x1x16xf32> to vector<2x16xf32>
    %c0_153 = arith.constant 0 : index
    %c240 = arith.constant 240 : index
    %139 = vector.load %arg11[%c0_153, %c240] : memref<2x256xf32, #tpu.memory_space<vmem>>, vector<2x16xf32>
    tpu.vector_store %arg11[%c0_153, %c240], %138 {strides = array<i32>} : memref<2x256xf32, #tpu.memory_space<vmem>>, vector<2x16xf32>,
    %c0_154 = arith.constant 0 : index
    %c0_155 = arith.constant 0 : index
    %140 = vector.load %arg11[%c0_154, %c0_155] : memref<2x256xf32, #tpu.memory_space<vmem>>, vector<2x256xf32>
    %c0_156 = arith.constant 0 : index
    %c0_157 = arith.constant 0 : index
    %141 = vector.load %arg5[%c0_156, %c0_157] : memref<256x64xf32, #tpu.memory_space<vmem>>, vector<256x64xf32>
    %c0_158 = arith.constant 0 : index
    %c0_159 = arith.constant 0 : index
    %142 = vector.load %arg6[%c0_158, %c0_159] : memref<1x64xf32, #tpu.memory_space<vmem>>, vector<1x64xf32>
    %cst_160 = arith.constant dense<0.000000e+00> : vector<2x64xf32>
    %143 = tpu.matmul %140, %141, %cst_160 {dimension_numbers = #tpu.dot_dimension_numbers<[1], [0], [0], [1], [0, 0, 1, 1], [], []>} : vector<2x256xf32>, vector<256x64xf32>, vector<2x64xf32> -> vector<2x64xf32>
    %144 = vector.broadcast %142 : vector<1x64xf32> to vector<2x64xf32>
    %145 = arith.addf %143, %144 : vector<2x64xf32>
    %cst_161 = arith.constant 0.000000e+00 : f32
    %146 = vector.broadcast %cst_161 : f32 to vector<2x64xf32>
    %147 = arith.maximumf %145, %146 : vector<2x64xf32>
    %c0_162 = arith.constant 0 : index
    %c0_163 = arith.constant 0 : index
    %148 = vector.load %arg7[%c0_162, %c0_163] : memref<64x32xf32, #tpu.memory_space<vmem>>, vector<64x32xf32>
    %c0_164 = arith.constant 0 : index
    %c0_165 = arith.constant 0 : index
    %149 = vector.load %arg8[%c0_164, %c0_165] : memref<1x32xf32, #tpu.memory_space<vmem>>, vector<1x32xf32>
    %cst_166 = arith.constant dense<0.000000e+00> : vector<2x32xf32>
    %150 = tpu.matmul %147, %148, %cst_166 {dimension_numbers = #tpu.dot_dimension_numbers<[1], [0], [0], [1], [0, 0, 1, 1], [], []>} : vector<2x64xf32>, vector<64x32xf32>, vector<2x32xf32> -> vector<2x32xf32>
    %151 = vector.broadcast %149 : vector<1x32xf32> to vector<2x32xf32>
    %152 = arith.addf %150, %151 : vector<2x32xf32>
    %cst_167 = arith.constant 0.000000e+00 : f32
    %153 = vector.broadcast %cst_167 : f32 to vector<2x32xf32>
    %154 = arith.maximumf %152, %153 : vector<2x32xf32>
    %c0_168 = arith.constant 0 : index
    %c0_169 = arith.constant 0 : index
    %155 = vector.load %arg9[%c0_168, %c0_169] : memref<32x10xf32, #tpu.memory_space<vmem>>, vector<32x10xf32>
    %c0_170 = arith.constant 0 : index
    %c0_171 = arith.constant 0 : index
    %156 = vector.load %arg10[%c0_170, %c0_171] : memref<1x10xf32, #tpu.memory_space<vmem>>, vector<1x10xf32>
    %cst_172 = arith.constant dense<0.000000e+00> : vector<2x10xf32>
    %157 = tpu.matmul %154, %155, %cst_172 {dimension_numbers = #tpu.dot_dimension_numbers<[1], [0], [0], [1], [0, 0, 1, 1], [], []>} : vector<2x32xf32>, vector<32x10xf32>, vector<2x10xf32> -> vector<2x10xf32>
    %158 = vector.broadcast %156 : vector<1x10xf32> to vector<2x10xf32>
    %159 = arith.addf %157, %158 : vector<2x10xf32>
    %c0_173 = arith.constant 0 : index
    %c0_174 = arith.constant 0 : index
    %160 = vector.load %arg12[%c0_173, %c0_174] : memref<2x10xf32, #tpu.memory_space<vmem>>, vector<2x10xf32>
    tpu.vector_store %arg12[%c0_173, %c0_174], %159 {strides = array<i32>} : memref<2x10xf32, #tpu.memory_space<vmem>>, vector<2x10xf32>,
    return
  }
}

</mosaic_0001>

<bundles_post_ra>
// kernel: _forward_core.1
= control target key start
LH: loop header
LB: loop body
LE: loop exit
PB: predicated region body
PF: predicated region fallthrough
CT: control target
= control target key end

     0   :  { %s9097_s25 = smov 6   ;;  %s9098_s26 = smov 3   ;;  %vm105_vm0 = vcmask 23552   ;;  %s13155_s0 = inlined_call_operand.vmem [shape: f32[2,18,18,3], index: 0, kind: input, shape index: {}]   ;;  %s13156_s1 = inlined_call_operand.vmem [shape: f32[27,8], index: 1, kind: input, shape index: {}]   ;;  %s13157_s2 = inlined_call_operand.vmem [shape: f32[1,8], index: 2, kind: input, shape index: {}]   ;;  %s13158_s3 = inlined_call_operand.vmem [shape: f32[72,16], index: 3, kind: input, shape index: {}]   ;;  %s13159_s4 = inlined_call_operand.vmem [shape: f32[1,16], index: 4, kind: input, shape index: {}]   ;;  %s13160_s5 = inlined_call_operand.vmem [shape: f32[256,64], index: 5, kind: input, shape index: {}]   ;;  %s13161_s6 = inlined_call_operand.vmem [shape: f32[1,64], index: 6, kind: input, shape index: {}]   ;;  %s13162_s7 = inlined_call_operand.vmem [shape: f32[64,32], index: 7, kind: input, shape index: {}]   ;;  %s13163_s8 = inlined_call_operand.vmem [shape: f32[1,32], index: 8, kind: input, shape index: {}]   ;;  %s13164_s9 = inlined_call_operand.vmem [shape: f32[32,10], index: 9, kind: input, shape index: {}]   ;;  %s13165_s10 = inlined_call_operand.vmem [shape: f32[1,10], index: 10, kind: input, shape index: {}]   ;;  %s13166_s11 = inlined_call_operand.vmem [shape: f32[2,256], index: 11, kind: output, shape index: {0}]   ;;  %s13167_s12 = inlined_call_operand.hbm [shape: f32[2,10], index: 12, kind: output, shape index: {1}]  }
   0x1   :  { %v555_v0 = vld [vmem:[%s13155_s0 + $0x2] sm:$0xff]  ;;  %v556_v3 = vld [vmem:[%s13155_s0 + $0xa] sm:$0xff]  ;;  %v8174_v5 = vld [vmem:[%s13155_s0 + $0x18] sm:$0xff]  ;;  %s9099_s13 = smov 9  }
   0x2   :  { %v170_v1 = vld [vmem:[%s13155_s0 + $0x1] sm:$0xff]  ;;  %683 = vrot.lane.b32.xlu1 %v555_v0, %s9097_s25  ;;  %v171_v4 = vld [vmem:[%s13155_s0 + $0x9] sm:$0xff]  ;;  %108 = vst.msk [vmem:[#allocation3 + $0x10] sm:$0xff] %vm105_vm0, %v8174_v5  ;;  %v8367_v7 = vld [vmem:[%s13155_s0 + $0x38] sm:$0xff] }
   0x3   :  { %298 = vrot.lane.b32.xlu0 %v170_v1, %s9098_s26  ;;  %v8175_v2 = vld [vmem:[%s13155_s0 + $0x20] sm:$0xff]  ;;  %v8366_v6 = vld [vmem:[%s13155_s0 + $0x30] sm:$0xff]  ;;  %111 = vst.msk [vmem:[#allocation3 + $0x28] sm:$0xff] %vm105_vm0, %v8367_v7  ;;  %v9221_v8 = vld [vmem:[%s13155_s0 + $0x48] sm:$0xff] }
   0x4   :  { %109 = vst.msk [vmem:[#allocation3 + $0x18] sm:$0xff] %vm105_vm0, %v8175_v2  ;;  %110 = vst.msk [vmem:[#allocation3 + $0x20] sm:$0xff] %vm105_vm0, %v8366_v6  ;;  %v9226_v9 = vld [vmem:[%s13155_s0 + $0x50] sm:$0xff]  ;;  %v9235_v10 = vld [vmem:[%s13155_s0 + $0x60] sm:$0xff] }
   0x5   :  { %112 = vst.msk [vmem:[#allocation3 + $0x30] sm:$0xff] %vm105_vm0, %v9221_v8  ;;  %113 = vst.msk [vmem:[#allocation3 + $0x38] sm:$0xff] %vm105_vm0, %v9226_v9  ;;  %v9240_v11 = vld [vmem:[%s13155_s0 + $0x68] sm:$0xff]  ;;  %v172_v12 = vld [vmem:[%s13155_s0 + $0x19] sm:$0xff] }
   0x6   :  { %685 = vrot.lane.b32.xlu1 %v556_v3, %s9097_s25  ;;  %114 = vst.msk [vmem:[#allocation3 + $0x40] sm:$0xff] %vm105_vm0, %v9235_v10  ;;  %115 = vst.msk [vmem:[#allocation3 + $0x48] sm:$0xff] %vm105_vm0, %v9240_v11  ;;  %v41_v13 = vld [vmem:[%s13155_s0] sm:$0xff]  ;;  %v42_v14 = vld [vmem:[%s13155_s0 + $0x8] sm:$0xff] }
   0x7   :  { %300 = vrot.lane.b32.xlu0 %v171_v4, %s9098_s26  ;;  %106 = vst.msk [vmem:[#allocation3] sm:$0xff] %vm105_vm0, %v41_v13  ;;  %107 = vst.msk [vmem:[#allocation3 + $0x8] sm:$0xff] %vm105_vm0, %v42_v14  ;;  %v9262_v15 = vld [vmem:[%s13155_s0 + $0x78] sm:$0xff]  ;;  %v9267_v16 = vld [vmem:[%s13155_s0 + $0x80] sm:$0xff] }
   0x8   :  { %116 = vst.msk [vmem:[#allocation3 + $0x50] sm:$0xff] %vm105_vm0, %v9262_v15  ;;  %117 = vst.msk [vmem:[#allocation3 + $0x58] sm:$0xff] %vm105_vm0, %v9267_v16 }
   0xa   :  { %1071 = vrot.lane.b32.xlu1 %v8175_v2, %s9099_s13 }
   0xb   :  { %1069 = vrot.lane.b32.xlu0 %v8174_v5, %s9099_s13 }
   0xc   :  { %18 = vsyncpa [#allocation6], 0  ;;  %s9100_s24 = smov 12   ;;  %v8302_v17 = vld [vmem:[%s13155_s0 + $0x1a] sm:$0xff]  ;;  %s9101_s14 = smov 15   ;;  %v8303_v19 = vld [vmem:[%s13155_s0 + $0x22] sm:$0xff] }
   0xd   :  { %v8239_v18 = vld [vmem:[%s13155_s0 + $0x21] sm:$0xff]  ;;  %v9291_v20 = vld [vmem:[%s13155_s0 + $0x90] sm:$0xff]  ;;  %s9102_s19 = smov 18   ;;  %v9305_v22 = vld [vmem:[%s13155_s0 + $0x98] sm:$0xff]  ;;  %s9103_s27 = smov 21   ;;  %vm3520_vm1 = vcmask 1042432  }
   0xe   :  { %302 = vrot.lane.b32.xlu1 %v172_v12, %s9098_s26  ;;  %118 = vst.msk [vmem:[#allocation3 + $0x60] sm:$0xff] %vm105_vm0, %v9291_v20  ;;  %v8430_v21 = vld [vmem:[%s13155_s0 + $0x31] sm:$0xff]  ;;  %119 = vst.msk [vmem:[#allocation3 + $0x68] sm:$0xff] %vm105_vm0, %v9305_v22  ;;  %v8431_v24 = vld [vmem:[%s13155_s0 + $0x39] sm:$0xff]  ;;  %s9104_s16 = smov 24   ;;  %vm9105_vm2 = vmmov 1  }
   0xf   :  { %1454 = vrot.lane.b32.xlu0 %v172_v12, %s9100_s24  ;;  %v8494_v23 = vld [vmem:[%s13155_s0 + $0x32] sm:$0xff]  ;;  %v3316_v25 = vld [vmem:[%s13156_s1] sm:$0xff]  ;;  %v3317_v26 = vld [vmem:[%s13156_s1 + $0x8] sm:$0xff]  ;;  %vm13174_vm4 = vcmask 48152   ;;  %vm13176_vm5 = vcmask 72752   ;;  %vm13169_vm6 = vcmask 97352  }
  0x10   :  { %v8965_v27 = vpack.c.bf16 %v3317_v26, %v3316_v25  ;;  %v8495_v28 = vld [vmem:[%s13155_s0 + $0x3a] sm:$0xff]  ;;  %v3318_v29 = vld [vmem:[%s13156_s1 + $0x10] sm:$0xff]  ;;  %vm8970_vm3 = vmpackc.low %vm3520_vm1, %vm9105_vm2  ;;  %vm1646_vm7 = vcmask 121952   ;;  %vm2031_vm8 = vcmask 146552   ;;  %vm2417_vm9 = vcmask 171152   ;;  %s9110_s17 = smov 32  }
  0x11   :  { %v3319_v30 = vld [vmem:[%s13156_s1 + $0x18] sm:$0x7]  ;;  %v9345_v32 = vld [vmem:[%s13155_s0 + $0xa8] sm:$0xff]  ;;  %v9361_v34 = vld [vmem:[%s13155_s0 + $0xb0] sm:$0xff]  ;;  %vm2802_vm10 = vcmask 195752   ;;  %vm3187_vm11 = vcmask 220352  }
  0x12   :  { %1839 = vrot.lane.b32.xlu1 %v8302_v17, %s9101_s14  ;;  %8966 = vmatprep.subr.bf16.mxu0 %v8965_v27  ;;  %v8969_v31 = vpack.c.bf16 %v3319_v30, %v3318_v29  ;;  %120 = vst.msk [vmem:[#allocation3 + $0x70] sm:$0xff] %vm105_vm0, %v9345_v32  ;;  %v8432_v33 = vld [vmem:[%s13155_s0 + $0x49] sm:$0xff]  ;;  %121 = vst.msk [vmem:[#allocation3 + $0x78] sm:$0xff] %vm105_vm0, %v9361_v34  ;;  %v8433_v36 = vld [vmem:[%s13155_s0 + $0x51] sm:$0xff]  ;;  %vm13175_vm12 = vcmask 220160   ;;  %vm13172_vm13 = vcmask 64512  }
  0x13   :  { %1456 = vrot.lane.b32.xlu0 %v8239_v18, %s9100_s24  ;;  %9041 = vmatprep.subr.bf16.mxu1 %v8965_v27  ;;  %v8496_v35 = vld [vmem:[%s13155_s0 + $0x4a] sm:$0xff]  ;;  %v8497_v37 = vld [vmem:[%s13155_s0 + $0x52] sm:$0xff]  ;;  %v9391_v38 = vld [vmem:[%s13155_s0 + $0xc0] sm:$0xff]  ;;  %vm13168_vm14 = vcmask 58368   ;;  %vm5680_vm15 = vcmask 57344   ;;  %vm13170_vm1 = vcmask 1041409  }
  0x14   :  { %8968 = vmatpush3.bf16.msra.mxu0 %v8965_v27  ;;  %9043 = vmatpush3.bf16.msra.mxu1 %v8965_v27  ;;  %122 = vst.msk [vmem:[#allocation3 + $0x80] sm:$0xff] %vm105_vm0, %v9391_v38  ;;  %v8434_v39 = vld [vmem:[%s13155_s0 + $0x61] sm:$0xff]  ;;  %v8435_v42 = vld [vmem:[%s13155_s0 + $0x69] sm:$0xff]  ;;  %v9440_v48 = vld [vmem:[%s13155_s0 + $0xd8] sm:$0xff]  ;;  %vm5851_vm2 = vcmask 1042434   ;;  %s9111_s18 = smov 40  }
  0x15   :  { %8971 = vmatprep.subr.msk.bf16.mxu0 %vm8970_vm3, %v8969_v31  ;;  %9042 = vmatprep.subr.msk.bf16.mxu1 %vm8970_vm3, %v8969_v31  ;;  %v9407_v40 = vld [vmem:[%s13155_s0 + $0xc8] sm:$0xff]  ;;  %124 = vst.msk [vmem:[#allocation3 + $0x90] sm:$0xff] %vm105_vm0, %v9440_v48  ;;  %v8436_v51 = vld [vmem:[%s13155_s0 + $0x79] sm:$0xff]  ;;  %s9112_s1 = smov 48   ;;  %s9114_s21 = smov 64  }
  0x16   :  { %687 = vrot.lane.b32.xlu1 %v8302_v17, %s9097_s25  ;;  %123 = vst.msk [vmem:[#allocation3 + $0x88] sm:$0xff] %vm105_vm0, %v9407_v40  ;;  %v8498_v41 = vld [vmem:[%s13155_s0 + $0x62] sm:$0xff]  ;;  %v8499_v43 = vld [vmem:[%s13155_s0 + $0x6a] sm:$0xff]  ;;  %v8500_v57 = vld [vmem:[%s13155_s0 + $0x7a] sm:$0xff]  ;;  %s9115_s30 = smov 80   ;;  %s9116_s28 = smov 96  }
  0x17   :  { %304 = vrot.lane.b32.xlu0 %v8239_v18, %s9098_s26  ;;  %v9461_v54 = vld [vmem:[%s13155_s0 + $0xe0] sm:$0xff]  ;;  %v9523_v12 = vld [vmem:[%s13155_s0 + $0xf8] sm:$0xff]  ;;  %v9567_v30 = vld [vmem:[%s13155_s0 + $0x108] sm:$0xff]  ;;  %s9117_s29 = smov 112   ;;  %s9120_s22 = smov [#allocation5]  }
  0x18   :  { %8974 = vmatpush3.bf16.msk.msra.mxu0 %vm8970_vm3, %v8969_v31  ;;  %9044 = vmatpush3.bf16.msk.msra.mxu1 %vm8970_vm3, %v8969_v31  ;;  %125 = vst.msk [vmem:[#allocation3 + $0x98] sm:$0xff] %vm105_vm0, %v9461_v54  ;;  %v8437_v58 = vld [vmem:[%s13155_s0 + $0x81] sm:$0xff]  ;;  %127 = vst.msk [vmem:[#allocation3 + $0xa8] sm:$0xff] %vm105_vm0, %v9523_v12  ;;  %v8439_v17 = vld [vmem:[%s13155_s0 + $0x99] sm:$0xff]  ;;  %vm13179_vm3 = vcmask 1043459  }
  0x19   :  { %v8501_v63 = vld [vmem:[%s13155_s0 + $0x82] sm:$0xff]  ;;  %128 = vst.msk [vmem:[#allocation3 + $0xb0] sm:$0xff] %vm105_vm0, %v9567_v30 }
  0x1a   :  { %2225 = vrot.lane.b32.xlu1 %v8366_v6, %s9102_s19 }
  0x1b   :  { %1841 = vrot.lane.b32.xlu0 %v8303_v19, %s9101_s14 }
  0x1e   :  { %1073 = vrot.lane.b32.xlu1 %v8366_v6, %s9099_s13  ;;  %v9503_v6 = vld [vmem:[%s13155_s0 + $0xf0] sm:$0xff] }
  0x1f   :  { %689 = vrot.lane.b32.xlu0 %v8303_v19, %s9097_s25  ;;  %126 = vst.msk [vmem:[#allocation3 + $0xa0] sm:$0xff] %vm105_vm0, %v9503_v6 }
  0x22   :  { %2610 = vrot.lane.b32.xlu1 %v8430_v21, %s9103_s27 }
  0x23   :  { %2227 = vrot.lane.b32.xlu0 %v8367_v7, %s9102_s19 }
  0x26   :  { %1458 = vrot.lane.b32.xlu1 %v8430_v21, %s9100_s24 }
  0x27   :  { %1075 = vrot.lane.b32.xlu0 %v8367_v7, %s9099_s13 }
  0x2a   :  { %2995 = vrot.lane.b32.xlu1 %v8494_v23, %s9104_s16 }
  0x2b   :  { %2612 = vrot.lane.b32.xlu0 %v8431_v24, %s9103_s27 }
  0x2e   :  { %1460 = vrot.lane.b32.xlu1 %v8431_v24, %s9100_s24 }
  0x2f   :  { %306 = vrot.lane.b32.xlu0 %v8430_v21, %s9098_s26 }
  0x32   :  { %2997 = vrot.lane.b32.xlu1 %v8495_v28, %s9104_s16 }
  0x33   :  { %1843 = vrot.lane.b32.xlu0 %v8494_v23, %s9101_s14 }
  0x36   :  { %691 = vrot.lane.b32.xlu1 %v8494_v23, %s9097_s25  ;;  %v8503_v23 = vld [vmem:[%s13155_s0 + $0x9a] sm:$0xff] }
  0x37   :  { %308 = vrot.lane.b32.xlu0 %v8431_v24, %s9098_s26 }
  0x3a   :  { %2229 = vrot.lane.b32.xlu1 %v9221_v8, %s9102_s19 }
  0x3b   :  { %1845 = vrot.lane.b32.xlu0 %v8495_v28, %s9101_s14 }
  0x3e   :  { %1077 = vrot.lane.b32.xlu1 %v9221_v8, %s9099_s13 }
  0x3f   :  { %693 = vrot.lane.b32.xlu0 %v8495_v28, %s9097_s25 }
  0x42   :  { %2614 = vrot.lane.b32.xlu1 %v8432_v33, %s9103_s27 }
  0x43   :  { %2231 = vrot.lane.b32.xlu0 %v9226_v9, %s9102_s19 }
  0x46   :  { %1462 = vrot.lane.b32.xlu1 %v8432_v33, %s9100_s24 }
  0x47   :  { %1079 = vrot.lane.b32.xlu0 %v9226_v9, %s9099_s13  ;;  %v8438_v9 = vld [vmem:[%s13155_s0 + $0x91] sm:$0xff] }
  0x4a   :  { %2999 = vrot.lane.b32.xlu1 %v8496_v35, %s9104_s16 }
  0x4b   :  { %2616 = vrot.lane.b32.xlu0 %v8433_v36, %s9103_s27 }
  0x4e   :  { %1464 = vrot.lane.b32.xlu1 %v8433_v36, %s9100_s24 }
  0x4f   :  { %310 = vrot.lane.b32.xlu0 %v8432_v33, %s9098_s26 }
  0x52   :  { %3001 = vrot.lane.b32.xlu1 %v8497_v37, %s9104_s16 }
  0x53   :  { %1847 = vrot.lane.b32.xlu0 %v8496_v35, %s9101_s14 }
  0x56   :  { %695 = vrot.lane.b32.xlu1 %v8496_v35, %s9097_s25  ;;  %v8440_v35 = vld [vmem:[%s13155_s0 + $0xa9] sm:$0xff] }
  0x57   :  { %312 = vrot.lane.b32.xlu0 %v8433_v36, %s9098_s26 }
  0x5a   :  { %2233 = vrot.lane.b32.xlu1 %v9235_v10, %s9102_s19 }
  0x5b   :  { %1849 = vrot.lane.b32.xlu0 %v8497_v37, %s9101_s14 }
  0x5e   :  { %1081 = vrot.lane.b32.xlu1 %v9235_v10, %s9099_s13 }
  0x5f   :  { %697 = vrot.lane.b32.xlu0 %v8497_v37, %s9097_s25 }
  0x62   :  { %2618 = vrot.lane.b32.xlu1 %v8434_v39, %s9103_s27 }
  0x63   :  { %2235 = vrot.lane.b32.xlu0 %v9240_v11, %s9102_s19 }
  0x66   :  { %1466 = vrot.lane.b32.xlu1 %v8434_v39, %s9100_s24 }
  0x67   :  { %1083 = vrot.lane.b32.xlu0 %v9240_v11, %s9099_s13 }
  0x6a   :  { %3003 = vrot.lane.b32.xlu1 %v8498_v41, %s9104_s16 }
  0x6b   :  { %2620 = vrot.lane.b32.xlu0 %v8435_v42, %s9103_s27 }
  0x6e   :  { %1468 = vrot.lane.b32.xlu1 %v8435_v42, %s9100_s24 }
  0x6f   :  { %314 = vrot.lane.b32.xlu0 %v8434_v39, %s9098_s26  ;;  %v9587_v39 = vld [vmem:[%s13155_s0 + $0x110] sm:$0xff] }
  0x70   :  { %129 = vst.msk [vmem:[#allocation3 + $0xb8] sm:$0xff] %vm105_vm0, %v9587_v39 }
  0x72   :  { %3005 = vrot.lane.b32.xlu1 %v8499_v43, %s9104_s16 }
  0x73   :  { %1851 = vrot.lane.b32.xlu0 %v8498_v41, %s9101_s14 }
  0x74   :  { %v684_v44 = vpop.permute.xlu1 %683 }
  0x75   :  { %v299_v45 = vpop.permute.xlu0 %298 }
  0x76   :  { %491 = vst.msk [vmem:[#allocation3] sm:$0xff] %vm13174_vm4, %v299_v45  ;;  %699 = vrot.lane.b32.xlu1 %v8498_v41, %s9097_s25 }
  0x77   :  { %316 = vrot.lane.b32.xlu0 %v8435_v42, %s9098_s26  ;;  %876 = vst.msk [vmem:[#allocation3] sm:$0xff] %vm13176_vm5, %v684_v44  ;;  %v8441_v44 = vld [vmem:[%s13155_s0 + $0xb1] sm:$0xff] }
  0x78   :  { %v686_v46 = vpop.permute.xlu1 %685 }
  0x79   :  { %v301_v47 = vpop.permute.xlu0 %300 }
  0x7a   :  { %492 = vst.msk [vmem:[#allocation3 + $0x8] sm:$0xff] %vm13174_vm4, %v301_v47  ;;  %2237 = vrot.lane.b32.xlu1 %v9262_v15, %s9102_s19 }
  0x7b   :  { %1853 = vrot.lane.b32.xlu0 %v8499_v43, %s9101_s14  ;;  %877 = vst.msk [vmem:[#allocation3 + $0x8] sm:$0xff] %vm13176_vm5, %v686_v46 }
  0x7c   :  { %v1072_v49 = vpop.permute.xlu1 %1071 }
  0x7d   :  { %v1070_v50 = vpop.permute.xlu0 %1069  ;;  %1263 = vst.msk [vmem:[#allocation3 + $0x8] sm:$0xff] %vm13169_vm6, %v1072_v49 }
  0x7e   :  { %1262 = vst.msk [vmem:[#allocation3] sm:$0xff] %vm13169_vm6, %v1070_v50  ;;  %1085 = vrot.lane.b32.xlu1 %v9262_v15, %s9099_s13  ;;  %v8505_v50 = vld [vmem:[%s13155_s0 + $0xb2] sm:$0xff] }
  0x7f   :  { %701 = vrot.lane.b32.xlu0 %v8499_v43, %s9097_s25  ;;  %v8504_v43 = vld [vmem:[%s13155_s0 + $0xaa] sm:$0xff] }
  0x80   :  { %v303_v52 = vpop.permute.xlu1 %302 }
  0x81   :  { %v1455_v53 = vpop.permute.xlu0 %1454  ;;  %493 = vst.msk [vmem:[#allocation3 + $0x10] sm:$0xff] %vm13174_vm4, %v303_v52 }
  0x82   :  { %1647 = vst.msk [vmem:[#allocation3] sm:$0xff] %vm1646_vm7, %v1455_v53  ;;  %2622 = vrot.lane.b32.xlu1 %v8436_v51, %s9103_s27 }
  0x83   :  { %2239 = vrot.lane.b32.xlu0 %v9267_v16, %s9102_s19 }
  0x84   :  { %v1840_v55 = vpop.permute.xlu1 %1839 }
  0x85   :  { %v1457_v56 = vpop.permute.xlu0 %1456  ;;  %2032 = vst.msk [vmem:[#allocation3] sm:$0xff] %vm2031_vm8, %v1840_v55 }
  0x86   :  { %1648 = vst.msk [vmem:[#allocation3 + $0x8] sm:$0xff] %vm1646_vm7, %v1457_v56  ;;  %1470 = vrot.lane.b32.xlu1 %v8436_v51, %s9100_s24 }
  0x87   :  { %1087 = vrot.lane.b32.xlu0 %v9267_v16, %s9099_s13  ;;  %v8502_v16 = vld [vmem:[%s13155_s0 + $0x92] sm:$0xff] }
  0x88   :  { %v688_v59 = vpop.permute.xlu1 %687 }
  0x89   :  { %v305_v60 = vpop.permute.xlu0 %304  ;;  %878 = vst.msk [vmem:[#allocation3 + $0x10] sm:$0xff] %vm13176_vm5, %v688_v59 }
  0x8a   :  { %494 = vst.msk [vmem:[#allocation3 + $0x18] sm:$0xff] %vm13174_vm4, %v305_v60  ;;  %3007 = vrot.lane.b32.xlu1 %v8500_v57, %s9104_s16 }
  0x8b   :  { %2624 = vrot.lane.b32.xlu0 %v8437_v58, %s9103_s27 }
  0x8c   :  { %v2226_v61 = vpop.permute.xlu1 %2225 }
  0x8d   :  { %v1842_v62 = vpop.permute.xlu0 %1841  ;;  %2418 = vst.msk [vmem:[#allocation3] sm:$0xff] %vm2417_vm9, %v2226_v61  ;;  %v8442_v61 = vld [vmem:[%s13155_s0 + $0xc1] sm:$0xff] }
  0x8e   :  { %2033 = vst.msk [vmem:[#allocation3 + $0x8] sm:$0xff] %vm2031_vm8, %v1842_v62  ;;  %1472 = vrot.lane.b32.xlu1 %v8437_v58, %s9100_s24 }
  0x8f   :  { %318 = vrot.lane.b32.xlu0 %v8436_v51, %s9098_s26 }
  0x90   :  { %v1074_v0 = vpop.permute.xlu1 %1073 }
  0x91   :  { %v690_v1 = vpop.permute.xlu0 %689  ;;  %1264 = vst.msk [vmem:[#allocation3 + $0x10] sm:$0xff] %vm13169_vm6, %v1074_v0  ;;  %v9651_v0 = vld [vmem:[%s13155_s0 + $0x128] sm:$0xff] }
  0x92   :  { %879 = vst.msk [vmem:[#allocation3 + $0x18] sm:$0xff] %vm13176_vm5, %v690_v1  ;;  %3009 = vrot.lane.b32.xlu1 %v8501_v63, %s9104_s16 }
  0x93   :  { %1855 = vrot.lane.b32.xlu0 %v8500_v57, %s9101_s14  ;;  %131 = vst.msk [vmem:[#allocation3 + $0xc8] sm:$0xff] %vm105_vm0, %v9651_v0 }
  0x94   :  { %v2611_v2 = vpop.permute.xlu1 %2610 }
  0x95   :  { %v2228_v3 = vpop.permute.xlu0 %2227  ;;  %2803 = vst.msk [vmem:[#allocation3] sm:$0xff] %vm2802_vm10, %v2611_v2 }
  0x96   :  { %2419 = vst.msk [vmem:[#allocation3 + $0x8] sm:$0xff] %vm2417_vm9, %v2228_v3  ;;  %703 = vrot.lane.b32.xlu1 %v8500_v57, %s9097_s25  ;;  %v8506_v3 = vld [vmem:[%s13155_s0 + $0xc2] sm:$0xff] }
  0x97   :  { %320 = vrot.lane.b32.xlu0 %v8437_v58, %s9098_s26  ;;  %v9631_v58 = vld [vmem:[%s13155_s0 + $0x120] sm:$0xff] }
  0x98   :  { %v1459_v4 = vpop.permute.xlu1 %1458  ;;  %130 = vst.msk [vmem:[#allocation3 + $0xc0] sm:$0xff] %vm105_vm0, %v9631_v58 }
  0x99   :  { %v1076_v5 = vpop.permute.xlu0 %1075  ;;  %1649 = vst.msk [vmem:[#allocation3 + $0x10] sm:$0xff] %vm1646_vm7, %v1459_v4  ;;  %v8443_v4 = vld [vmem:[%s13155_s0 + $0xc9] sm:$0xff] }
  0x9a   :  { %1265 = vst.msk [vmem:[#allocation3 + $0x18] sm:$0xff] %vm13169_vm6, %v1076_v5  ;;  %2241 = vrot.lane.b32.xlu1 %v9291_v20, %s9102_s19 }
  0x9b   :  { %1857 = vrot.lane.b32.xlu0 %v8501_v63, %s9101_s14 }
  0x9c   :  { %v2996_v7 = vpop.permute.xlu1 %2995 }
  0x9d   :  { %v2613_v8 = vpop.permute.xlu0 %2612  ;;  %3188 = vst.msk [vmem:[#allocation3] sm:$0xff] %vm3187_vm11, %v2996_v7 }
  0x9e   :  { %2804 = vst.msk [vmem:[#allocation3 + $0x8] sm:$0xff] %vm2802_vm10, %v2613_v8  ;;  %1089 = vrot.lane.b32.xlu1 %v9291_v20, %s9099_s13 }
  0x9f   :  { %705 = vrot.lane.b32.xlu0 %v8501_v63, %s9097_s25 }
  0xa0   :  { %v1461_v10 = vpop.permute.xlu1 %1460 }
  0xa1   :  { %v307_v11 = vpop.permute.xlu0 %306  ;;  %1650 = vst.msk [vmem:[#allocation3 + $0x18] sm:$0xff] %vm1646_vm7, %v1461_v10  ;;  %v8507_v10 = vld [vmem:[%s13155_s0 + $0xca] sm:$0xff] }
  0xa2   :  { %495 = vst.msk [vmem:[#allocation3 + $0x20] sm:$0xff] %vm13174_vm4, %v307_v11  ;;  %2626 = vrot.lane.b32.xlu1 %v8438_v9, %s9103_s27 }
  0xa3   :  { %2243 = vrot.lane.b32.xlu0 %v9305_v22, %s9102_s19 }
  0xa4   :  { %v2998_v13 = vpop.permute.xlu1 %2997  ;;  %v3252_v15 = vld [vmem:[#allocation3] sm:$0xff] }
  0xa5   :  { %v1844_v14 = vpop.permute.xlu0 %1843  ;;  %3189 = vst.msk [vmem:[#allocation3 + $0x8] sm:$0xff] %vm3187_vm11, %v2998_v13  ;;  %8797 = vmatprep.mubr.msk.f32.mxu0 %vm13175_vm12, %v3252_v15 }
  0xa6   :  { %2034 = vst.msk [vmem:[#allocation3 + $0x10] sm:$0xff] %vm2031_vm8, %v1844_v14  ;;  %1474 = vrot.lane.b32.xlu1 %v8438_v9, %s9100_s24 }
  0xa7   :  { %1091 = vrot.lane.b32.xlu0 %v9305_v22, %s9099_s13 }
  0xa8   :  { %v692_v18 = vpop.permute.xlu1 %691 }
  0xa9   :  { %v309_v19 = vpop.permute.xlu0 %308  ;;  %880 = vst.msk [vmem:[#allocation3 + $0x20] sm:$0xff] %vm13176_vm5, %v692_v18  ;;  %v9695_v18 = vld [vmem:[%s13155_s0 + $0x138] sm:$0xff] }
  0xaa   :  { %496 = vst.msk [vmem:[#allocation3 + $0x28] sm:$0xff] %vm13174_vm4, %v309_v19  ;;  %3011 = vrot.lane.b32.xlu1 %v8502_v16, %s9104_s16 }
  0xab   :  { %2628 = vrot.lane.b32.xlu0 %v8439_v17, %s9103_s27  ;;  %132 = vst.msk [vmem:[#allocation3 + $0xd0] sm:$0xff] %vm105_vm0, %v9695_v18 }
  0xac   :  { %v2230_v20 = vpop.permute.xlu1 %2229  ;;  %v3253_v22 = vld [vmem:[#allocation3 + $0x8] sm:$0xff] }
  0xad   :  { %v1846_v21 = vpop.permute.xlu0 %1845  ;;  %2420 = vst.msk [vmem:[#allocation3 + $0x10] sm:$0xff] %vm2417_vm9, %v2230_v20  ;;  %8798 = vmatmul.mubr.msk.f32.vlgmr.msra.gmra.mrb[0].mxu0 %vm13175_vm12, %v3253_v22 }
  0xae   :  { %2035 = vst.msk [vmem:[#allocation3 + $0x18] sm:$0xff] %vm2031_vm8, %v1846_v21  ;;  %1476 = vrot.lane.b32.xlu1 %v8439_v17, %s9100_s24  ;;  %v8444_v21 = vld [vmem:[%s13155_s0 + $0xd9] sm:$0xff] }
  0xaf   :  { %322 = vrot.lane.b32.xlu0 %v8438_v9, %s9098_s26 }
  0xb0   :  { %v1078_v24 = vpop.permute.xlu1 %1077 }
  0xb1   :  { %v694_v25 = vpop.permute.xlu0 %693  ;;  %1266 = vst.msk [vmem:[#allocation3 + $0x20] sm:$0xff] %vm13169_vm6, %v1078_v24  ;;  %v9715_v24 = vld [vmem:[%s13155_s0 + $0x140] sm:$0xff] }
  0xb2   :  { %881 = vst.msk [vmem:[#allocation3 + $0x28] sm:$0xff] %vm13176_vm5, %v694_v25  ;;  %3013 = vrot.lane.b32.xlu1 %v8503_v23, %s9104_s16 }
  0xb3   :  { %1859 = vrot.lane.b32.xlu0 %v8502_v16, %s9101_s14  ;;  %133 = vst.msk [vmem:[#allocation3 + $0xd8] sm:$0xff] %vm105_vm0, %v9715_v24 }
  0xb4   :  { %v2615_v26 = vpop.permute.xlu1 %2614 }
  0xb5   :  { %v2232_v27 = vpop.permute.xlu0 %2231  ;;  %2805 = vst.msk [vmem:[#allocation3 + $0x10] sm:$0xff] %vm2802_vm10, %v2615_v26 }
  0xb6   :  { %2421 = vst.msk [vmem:[#allocation3 + $0x18] sm:$0xff] %vm2417_vm9, %v2232_v27  ;;  %707 = vrot.lane.b32.xlu1 %v8502_v16, %s9097_s25  ;;  %v8508_v27 = vld [vmem:[%s13155_s0 + $0xda] sm:$0xff] }
  0xb7   :  { %324 = vrot.lane.b32.xlu0 %v8439_v17, %s9098_s26 }
  0xb8   :  { %v1463_v28 = vpop.permute.xlu1 %1462 }
  0xb9   :  { %v1080_v29 = vpop.permute.xlu0 %1079  ;;  %1651 = vst.msk [vmem:[#allocation3 + $0x20] sm:$0xff] %vm1646_vm7, %v1463_v28  ;;  %v8445_v28 = vld [vmem:[%s13155_s0 + $0xe1] sm:$0xff] }
  0xba   :  { %1267 = vst.msk [vmem:[#allocation3 + $0x28] sm:$0xff] %vm13169_vm6, %v1080_v29  ;;  %2245 = vrot.lane.b32.xlu1 %v9345_v32, %s9102_s19 }
  0xbb   :  { %1861 = vrot.lane.b32.xlu0 %v8503_v23, %s9101_s14 }
  0xbc   :  { %v3000_v31 = vpop.permute.xlu1 %2999 }
  0xbd   :  { %v2617_v33 = vpop.permute.xlu0 %2616  ;;  %3190 = vst.msk [vmem:[#allocation3 + $0x10] sm:$0xff] %vm3187_vm11, %v3000_v31 }
  0xbe   :  { %2806 = vst.msk [vmem:[#allocation3 + $0x18] sm:$0xff] %vm2802_vm10, %v2617_v33  ;;  %1093 = vrot.lane.b32.xlu1 %v9345_v32, %s9099_s13 }
  0xbf   :  { %709 = vrot.lane.b32.xlu0 %v8503_v23, %s9097_s25 }
  0xc0   :  { %v1465_v36 = vpop.permute.xlu1 %1464 }
  0xc1   :  { %v311_v37 = vpop.permute.xlu0 %310  ;;  %1652 = vst.msk [vmem:[#allocation3 + $0x28] sm:$0xff] %vm1646_vm7, %v1465_v36  ;;  %v8509_v36 = vld [vmem:[%s13155_s0 + $0xe2] sm:$0xff] }
  0xc2   :  { %497 = vst.msk [vmem:[#allocation3 + $0x30] sm:$0xff] %vm13174_vm4, %v311_v37  ;;  %2630 = vrot.lane.b32.xlu1 %v8440_v35, %s9103_s27 }
  0xc3   :  { %2247 = vrot.lane.b32.xlu0 %v9361_v34, %s9102_s19 }
  0xc4   :  { %v3002_v32 = vpop.permute.xlu1 %3001  ;;  %v3254_v42 = vld [vmem:[#allocation3 + $0x10] sm:$0xff] }
  0xc5   :  { %v1848_v41 = vpop.permute.xlu0 %1847  ;;  %3191 = vst.msk [vmem:[#allocation3 + $0x18] sm:$0xff] %vm3187_vm11, %v3002_v32  ;;  %8800 = vmatprep.mubr.msk.f32.mxu0 %vm13175_vm12, %v3254_v42 }
  0xc6   :  { %2036 = vst.msk [vmem:[#allocation3 + $0x20] sm:$0xff] %vm2031_vm8, %v1848_v41  ;;  %1478 = vrot.lane.b32.xlu1 %v8440_v35, %s9100_s24 }
  0xc7   :  { %1095 = vrot.lane.b32.xlu0 %v9361_v34, %s9099_s13 }
  0xc8   :  { %v696_v45 = vpop.permute.xlu1 %695 }
  0xc9   :  { %v313_v46 = vpop.permute.xlu0 %312  ;;  %882 = vst.msk [vmem:[#allocation3 + $0x30] sm:$0xff] %vm13176_vm5, %v696_v45  ;;  %v9759_v45 = vld [vmem:[%s13155_s0 + $0x150] sm:$0xff] }
  0xca   :  { %498 = vst.msk [vmem:[#allocation3 + $0x38] sm:$0xff] %vm13174_vm4, %v313_v46  ;;  %3015 = vrot.lane.b32.xlu1 %v8504_v43, %s9104_s16 }
  0xcb   :  { %2632 = vrot.lane.b32.xlu0 %v8441_v44, %s9103_s27  ;;  %134 = vst.msk [vmem:[#allocation3 + $0xe0] sm:$0xff] %vm105_vm0, %v9759_v45 }
  0xcc   :  { %v2234_v47 = vpop.permute.xlu1 %2233  ;;  %v3255_v49 = vld [vmem:[#allocation3 + $0x18] sm:$0xff] }
  0xcd   :  { %v1850_v34 = vpop.permute.xlu0 %1849  ;;  %2422 = vst.msk [vmem:[#allocation3 + $0x20] sm:$0xff] %vm2417_vm9, %v2234_v47  ;;  %8801 = vmatmul.mubr.msk.f32.gmra.mrb[2].mxu0 %vm13175_vm12, %v3255_v49 }
  0xce   :  { %2037 = vst.msk [vmem:[#allocation3 + $0x28] sm:$0xff] %vm2031_vm8, %v1850_v34  ;;  %1480 = vrot.lane.b32.xlu1 %v8441_v44, %s9100_s24  ;;  %v8446_v34 = vld [vmem:[%s13155_s0 + $0xf1] sm:$0xff] }
  0xcf   :  { %326 = vrot.lane.b32.xlu0 %v8440_v35, %s9098_s26 }
  0xd0   :  { %v1082_v51 = vpop.permute.xlu1 %1081 }
  0xd1   :  { %v698_v52 = vpop.permute.xlu0 %697  ;;  %1268 = vst.msk [vmem:[#allocation3 + $0x30] sm:$0xff] %vm13169_vm6, %v1082_v51 }
  0xd2   :  { %883 = vst.msk [vmem:[#allocation3 + $0x38] sm:$0xff] %vm13176_vm5, %v698_v52  ;;  %3017 = vrot.lane.b32.xlu1 %v8505_v50, %s9104_s16 }
  0xd3   :  { %1863 = vrot.lane.b32.xlu0 %v8504_v43, %s9101_s14 }
  0xd4   :  { %v2619_v53 = vpop.permute.xlu1 %2618 }
  0xd5   :  { %v2236_v55 = vpop.permute.xlu0 %2235  ;;  %2807 = vst.msk [vmem:[#allocation3 + $0x20] sm:$0xff] %vm2802_vm10, %v2619_v53  ;;  %v9782_v53 = vld [vmem:[%s13155_s0 + $0x158] sm:$0xff] }
  0xd6   :  { %2423 = vst.msk [vmem:[#allocation3 + $0x28] sm:$0xff] %vm2417_vm9, %v2236_v55  ;;  %711 = vrot.lane.b32.xlu1 %v8504_v43, %s9097_s25  ;;  %v8510_v55 = vld [vmem:[%s13155_s0 + $0xf2] sm:$0xff] }
  0xd7   :  { %328 = vrot.lane.b32.xlu0 %v8441_v44, %s9098_s26  ;;  %135 = vst.msk [vmem:[#allocation3 + $0xe8] sm:$0xff] %vm105_vm0, %v9782_v53 }
  0xd8   :  { %v1467_v56 = vpop.permute.xlu1 %1466 }
  0xd9   :  { %v1084_v57 = vpop.permute.xlu0 %1083  ;;  %1653 = vst.msk [vmem:[#allocation3 + $0x30] sm:$0xff] %vm1646_vm7, %v1467_v56  ;;  %v8447_v56 = vld [vmem:[%s13155_s0 + $0xf9] sm:$0xff] }
  0xda   :  { %1269 = vst.msk [vmem:[#allocation3 + $0x38] sm:$0xff] %vm13169_vm6, %v1084_v57  ;;  %2249 = vrot.lane.b32.xlu1 %v9391_v38, %s9102_s19 }
  0xdb   :  { %1865 = vrot.lane.b32.xlu0 %v8505_v50, %s9101_s14 }
  0xdc   :  { %v3004_v59 = vpop.permute.xlu1 %3003 }
  0xdd   :  { %v2621_v60 = vpop.permute.xlu0 %2620  ;;  %3192 = vst.msk [vmem:[#allocation3 + $0x20] sm:$0xff] %vm3187_vm11, %v3004_v59 }
  0xde   :  { %2808 = vst.msk [vmem:[#allocation3 + $0x28] sm:$0xff] %vm2802_vm10, %v2621_v60  ;;  %1097 = vrot.lane.b32.xlu1 %v9391_v38, %s9099_s13 }
  0xdf   :  { %713 = vrot.lane.b32.xlu0 %v8505_v50, %s9097_s25 }
  0xe0   :  { %v1469_v62 = vpop.permute.xlu1 %1468 }
  0xe1   :  { %v315_v63 = vpop.permute.xlu0 %314  ;;  %1654 = vst.msk [vmem:[#allocation3 + $0x38] sm:$0xff] %vm1646_vm7, %v1469_v62  ;;  %v8511_v62 = vld [vmem:[%s13155_s0 + $0xfa] sm:$0xff] }
  0xe2   :  { %499 = vst.msk [vmem:[#allocation3 + $0x40] sm:$0xff] %vm13174_vm4, %v315_v63  ;;  %2634 = vrot.lane.b32.xlu1 %v8442_v61, %s9103_s27 }
  0xe3   :  { %2251 = vrot.lane.b32.xlu0 %v9407_v40, %s9102_s19 }
  0xe4   :  { %v3006_v38 = vpop.permute.xlu1 %3005  ;;  %v3256_v2 = vld [vmem:[#allocation3 + $0x20] sm:$0xff] }
  0xe5   :  { %v1852_v1 = vpop.permute.xlu0 %1851  ;;  %3193 = vst.msk [vmem:[#allocation3 + $0x28] sm:$0xff] %vm3187_vm11, %v3006_v38  ;;  %8803 = vmatprep.mubr.msk.f32.mxu0 %vm13175_vm12, %v3256_v2 }
  0xe6   :  { %2038 = vst.msk [vmem:[#allocation3 + $0x30] sm:$0xff] %vm2031_vm8, %v1852_v1  ;;  %1482 = vrot.lane.b32.xlu1 %v8442_v61, %s9100_s24 }
  0xe7   :  { %1099 = vrot.lane.b32.xlu0 %v9407_v40, %s9099_s13 }
  0xe8   :  { %v700_v5 = vpop.permute.xlu1 %699 }
  0xe9   :  { %v317_v7 = vpop.permute.xlu0 %316  ;;  %884 = vst.msk [vmem:[#allocation3 + $0x40] sm:$0xff] %vm13176_vm5, %v700_v5 }
  0xea   :  { %500 = vst.msk [vmem:[#allocation3 + $0x48] sm:$0xff] %vm13174_vm4, %v317_v7  ;;  %3019 = vrot.lane.b32.xlu1 %v8506_v3, %s9104_s16 }
  0xeb   :  { %2636 = vrot.lane.b32.xlu0 %v8443_v4, %s9103_s27 }
  0xec   :  { %v2238_v8 = vpop.permute.xlu1 %2237  ;;  %v3257_v9 = vld [vmem:[#allocation3 + $0x28] sm:$0xff] }
  0xed   :  { %v1854_v40 = vpop.permute.xlu0 %1853  ;;  %2424 = vst.msk [vmem:[#allocation3 + $0x30] sm:$0xff] %vm2417_vm9, %v2238_v8  ;;  %8804 = vmatmul.mubr.msk.f32.gmra.mrb[4].mxu0 %vm13175_vm12, %v3257_v9  ;;  %v9826_v8 = vld [vmem:[%s13155_s0 + $0x168] sm:$0xff] }
  0xee   :  { %2039 = vst.msk [vmem:[#allocation3 + $0x38] sm:$0xff] %vm2031_vm8, %v1854_v40  ;;  %1484 = vrot.lane.b32.xlu1 %v8443_v4, %s9100_s24  ;;  %v9838_v40 = vld [vmem:[%s13155_s0 + $0x109] sm:$0xff] }
  0xef   :  { %330 = vrot.lane.b32.xlu0 %v8442_v61, %s9098_s26  ;;  %136 = vst.msk [vmem:[#allocation3 + $0xf0] sm:$0xff] %vm105_vm0, %v9826_v8 }
  0xf0   :  { %v1086_v11 = vpop.permute.xlu1 %1085 }
  0xf1   :  { %v702_v13 = vpop.permute.xlu0 %701  ;;  %1270 = vst.msk [vmem:[#allocation3 + $0x40] sm:$0xff] %vm13169_vm6, %v1086_v11 }
  0xf2   :  { %885 = vst.msk [vmem:[#allocation3 + $0x48] sm:$0xff] %vm13176_vm5, %v702_v13  ;;  %3021 = vrot.lane.b32.xlu1 %v8507_v10, %s9104_s16 }
  0xf3   :  { %1867 = vrot.lane.b32.xlu0 %v8506_v3, %s9101_s14 }
  0xf4   :  { %v2623_v14 = vpop.permute.xlu1 %2622 }
  0xf5   :  { %v2240_v15 = vpop.permute.xlu0 %2239  ;;  %2809 = vst.msk [vmem:[#allocation3 + $0x30] sm:$0xff] %vm2802_vm10, %v2623_v14  ;;  %v9849_v14 = vld [vmem:[%s13155_s0 + $0x170] sm:$0xff] }
  0xf6   :  { %2425 = vst.msk [vmem:[#allocation3 + $0x38] sm:$0xff] %vm2417_vm9, %v2240_v15  ;;  %715 = vrot.lane.b32.xlu1 %v8506_v3, %s9097_s25  ;;  %v9106_v15 = vmov 0.0  }
  0xf7   :  { %332 = vrot.lane.b32.xlu0 %v8443_v4, %s9098_s26  ;;  %5671 = vst.msk [vmem:[#allocation2] sm:$0xff] %vm13172_vm13, %v9106_v15  ;;  %5673 = vst.msk [vmem:[#allocation2 + $0xa0] sm:$0xff] %vm13172_vm13, %v9106_v15 }
  0xf8   :  { %v1471_v16 = vpop.permute.xlu1 %1470  ;;  %5672 = vst.msk [vmem:[#allocation2 + $0x8] sm:$0x3] %vm13168_vm14, %v9106_v15  ;;  %5674 = vst.msk [vmem:[#allocation2 + $0xa8] sm:$0x3] %vm13168_vm14, %v9106_v15 }
  0xf9   :  { %v1088_v17 = vpop.permute.xlu0 %1087  ;;  %1655 = vst.msk [vmem:[#allocation3 + $0x40] sm:$0xff] %vm1646_vm7, %v1471_v16  ;;  %v8512_v16 = vld [vmem:[%s13155_s0 + $0x10a] sm:$0xff] }
  0xfa   :  { %1271 = vst.msk [vmem:[#allocation3 + $0x48] sm:$0xff] %vm13169_vm6, %v1088_v17  ;;  %2253 = vrot.lane.b32.xlu1 %v9440_v48, %s9102_s19  ;;  %v8449_v17 = vld [vmem:[%s13155_s0 + $0x111] sm:$0xff] }
  0xfb   :  { %1869 = vrot.lane.b32.xlu0 %v8507_v10, %s9101_s14  ;;  %5676 = vst.msk [vmem:[#allocation2 + $0x90] sm:$0xff] %vm13172_vm13, %v9106_v15  ;;  %5678 = vst.msk [vmem:[#allocation2 + $0x130] sm:$0xff] %vm13172_vm13, %v9106_v15 }
  0xfc   :  { %v3008_v19 = vpop.permute.xlu1 %3007  ;;  %5677 = vst.msk [vmem:[#allocation2 + $0x98] sm:$0x3] %vm13168_vm14, %v9106_v15  ;;  %5679 = vst.msk [vmem:[#allocation2 + $0x138] sm:$0x3] %vm13168_vm14, %v9106_v15 }
  0xfd   :  { %v2625_v20 = vpop.permute.xlu0 %2624  ;;  %3194 = vst.msk [vmem:[#allocation3 + $0x30] sm:$0xff] %vm3187_vm11, %v3008_v19 }
  0xfe   :  { %2810 = vst.msk [vmem:[#allocation3 + $0x38] sm:$0xff] %vm2802_vm10, %v2625_v20  ;;  %1101 = vrot.lane.b32.xlu1 %v9440_v48, %s9099_s13 }
  0xff   :  { %717 = vrot.lane.b32.xlu0 %v8507_v10, %s9097_s25  ;;  %5682 = vst.msk [vmem:[#allocation2 + $0x10] sm:$0x1] %vm5680_vm15, %v9106_v15  ;;  %5683 = vst.msk [vmem:[#allocation2 + $0x20] sm:$0x1] %vm5680_vm15, %v9106_v15 }
 0x100   :  { %v1473_v22 = vpop.permute.xlu1 %1472  ;;  %5684 = vst.msk [vmem:[#allocation2 + $0x30] sm:$0x1] %vm5680_vm15, %v9106_v15  ;;  %5685 = vst.msk [vmem:[#allocation2 + $0x40] sm:$0x1] %vm5680_vm15, %v9106_v15 }
 0x101   :  { %v319_v23 = vpop.permute.xlu0 %318  ;;  %1656 = vst.msk [vmem:[#allocation3 + $0x48] sm:$0xff] %vm1646_vm7, %v1473_v22 }
 0x102   :  { %501 = vst.msk [vmem:[#allocation3 + $0x50] sm:$0xff] %vm13174_vm4, %v319_v23  ;;  %2638 = vrot.lane.b32.xlu1 %v8444_v21, %s9103_s27  ;;  %v8513_v23 = vld [vmem:[%s13155_s0 + $0x112] sm:$0xff] }
 0x103   :  { %2255 = vrot.lane.b32.xlu0 %v9461_v54, %s9102_s19  ;;  %5686 = vst.msk [vmem:[#allocation2 + $0x50] sm:$0x1] %vm5680_vm15, %v9106_v15  ;;  %5687 = vst.msk [vmem:[#allocation2 + $0x60] sm:$0x1] %vm5680_vm15, %v9106_v15 }
 0x104   :  { %v3010_v48 = vpop.permute.xlu1 %3009  ;;  %v3258_v26 = vld [vmem:[#allocation3 + $0x30] sm:$0xff]  ;;  %5688 = vst.msk [vmem:[#allocation2 + $0x70] sm:$0x1] %vm5680_vm15, %v9106_v15  ;;  %5689 = vst.msk [vmem:[#allocation2 + $0x80] sm:$0x1] %vm5680_vm15, %v9106_v15 }
 0x105   :  { %v1856_v25 = vpop.permute.xlu0 %1855  ;;  %3195 = vst.msk [vmem:[#allocation3 + $0x38] sm:$0xff] %vm3187_vm11, %v3010_v48  ;;  %8806 = vmatprep.mubr.msk.f32.mxu0 %vm13175_vm12, %v3258_v26 }
 0x106   :  { %2040 = vst.msk [vmem:[#allocation3 + $0x40] sm:$0xff] %vm2031_vm8, %v1856_v25  ;;  %1486 = vrot.lane.b32.xlu1 %v8444_v21, %s9100_s24 }
 0x107   :  { %1103 = vrot.lane.b32.xlu0 %v9461_v54, %s9099_s13  ;;  %5692 = vst.msk [vmem:[#allocation2 + $0xb0] sm:$0x1] %vm5680_vm15, %v9106_v15  ;;  %5693 = vst.msk [vmem:[#allocation2 + $0xc0] sm:$0x1] %vm5680_vm15, %v9106_v15 }
 0x108   :  { %v704_v29 = vpop.permute.xlu1 %703  ;;  %5694 = vst.msk [vmem:[#allocation2 + $0xd0] sm:$0x1] %vm5680_vm15, %v9106_v15  ;;  %5695 = vst.msk [vmem:[#allocation2 + $0xe0] sm:$0x1] %vm5680_vm15, %v9106_v15 }
 0x109   :  { %v321_v31 = vpop.permute.xlu0 %320  ;;  %886 = vst.msk [vmem:[#allocation3 + $0x50] sm:$0xff] %vm13176_vm5, %v704_v29 }
 0x10a   :  { %502 = vst.msk [vmem:[#allocation3 + $0x58] sm:$0xff] %vm13174_vm4, %v321_v31  ;;  %3023 = vrot.lane.b32.xlu1 %v8508_v27, %s9104_s16 }
 0x10b   :  { %2640 = vrot.lane.b32.xlu0 %v8445_v28, %s9103_s27  ;;  %5696 = vst.msk [vmem:[#allocation2 + $0xf0] sm:$0x1] %vm5680_vm15, %v9106_v15  ;;  %5697 = vst.msk [vmem:[#allocation2 + $0x100] sm:$0x1] %vm5680_vm15, %v9106_v15 }
 0x10c   :  { %v2242_v33 = vpop.permute.xlu1 %2241  ;;  %v3259_v35 = vld [vmem:[#allocation3 + $0x38] sm:$0xff]  ;;  %5698 = vst.msk [vmem:[#allocation2 + $0x110] sm:$0x1] %vm5680_vm15, %v9106_v15  ;;  %5699 = vst.msk [vmem:[#allocation2 + $0x120] sm:$0x1] %vm5680_vm15, %v9106_v15 }
 0x10d   :  { %v1858_v54 = vpop.permute.xlu0 %1857  ;;  %2426 = vst.msk [vmem:[#allocation3 + $0x40] sm:$0xff] %vm2417_vm9, %v2242_v33  ;;  %8807 = vmatmul.mubr.msk.f32.gmra.mrb[6].mxu0 %vm13175_vm12, %v3259_v35 }
 0x10e   :  { %2041 = vst.msk [vmem:[#allocation3 + $0x48] sm:$0xff] %vm2031_vm8, %v1858_v54  ;;  %1488 = vrot.lane.b32.xlu1 %v8445_v28, %s9100_s24  ;;  %v8450_v54 = vld [vmem:[%s13155_s0 + $0x121] sm:$0xff] }
 0x10f   :  { %334 = vrot.lane.b32.xlu0 %v8444_v21, %s9098_s26  ;;  %5702 = vst.msk [vmem:[#allocation2 + $0x19] sm:$0x1] %vm5680_vm15, %v9106_v15  ;;  %5703 = vst.msk [vmem:[#allocation2 + $0x29] sm:$0x1] %vm5680_vm15, %v9106_v15 }
 0x110   :  { %v1090_v37 = vpop.permute.xlu1 %1089  ;;  %5704 = vst.msk [vmem:[#allocation2 + $0x39] sm:$0x1] %vm5680_vm15, %v9106_v15  ;;  %5705 = vst.msk [vmem:[#allocation2 + $0x49] sm:$0x1] %vm5680_vm15, %v9106_v15 }
 0x111   :  { %v706_v32 = vpop.permute.xlu0 %705  ;;  %1272 = vst.msk [vmem:[#allocation3 + $0x50] sm:$0xff] %vm13169_vm6, %v1090_v37 }
 0x112   :  { %887 = vst.msk [vmem:[#allocation3 + $0x58] sm:$0xff] %vm13176_vm5, %v706_v32  ;;  %3025 = vrot.lane.b32.xlu1 %v8509_v36, %s9104_s16 }
 0x113   :  { %1871 = vrot.lane.b32.xlu0 %v8508_v27, %s9101_s14  ;;  %5706 = vst.msk [vmem:[#allocation2 + $0x59] sm:$0x1] %vm5680_vm15, %v9106_v15  ;;  %5707 = vst.msk [vmem:[#allocation2 + $0x69] sm:$0x1] %vm5680_vm15, %v9106_v15 }
 0x114   :  { %v2627_v41 = vpop.permute.xlu1 %2626  ;;  %5708 = vst.msk [vmem:[#allocation2 + $0x79] sm:$0x1] %vm5680_vm15, %v9106_v15  ;;  %5709 = vst.msk [vmem:[#allocation2 + $0x89] sm:$0x1] %vm5680_vm15, %v9106_v15 }
 0x115   :  { %v2244_v42 = vpop.permute.xlu0 %2243  ;;  %2811 = vst.msk [vmem:[#allocation3 + $0x40] sm:$0xff] %vm2802_vm10, %v2627_v41  ;;  %v8514_v41 = vld [vmem:[%s13155_s0 + $0x122] sm:$0xff] }
 0x116   :  { %2427 = vst.msk [vmem:[#allocation3 + $0x48] sm:$0xff] %vm2417_vm9, %v2244_v42  ;;  %719 = vrot.lane.b32.xlu1 %v8508_v27, %s9097_s25  ;;  %v8451_v42 = vld [vmem:[%s13155_s0 + $0x129] sm:$0xff] }
 0x117   :  { %336 = vrot.lane.b32.xlu0 %v8445_v28, %s9098_s26  ;;  %5712 = vst.msk [vmem:[#allocation2 + $0xb9] sm:$0x1] %vm5680_vm15, %v9106_v15  ;;  %5713 = vst.msk [vmem:[#allocation2 + $0xc9] sm:$0x1] %vm5680_vm15, %v9106_v15 }
 0x118   :  { %v1475_v43 = vpop.permute.xlu1 %1474  ;;  %5714 = vst.msk [vmem:[#allocation2 + $0xd9] sm:$0x1] %vm5680_vm15, %v9106_v15  ;;  %5715 = vst.msk [vmem:[#allocation2 + $0xe9] sm:$0x1] %vm5680_vm15, %v9106_v15 }
 0x119   :  { %v1092_v44 = vpop.permute.xlu0 %1091  ;;  %1657 = vst.msk [vmem:[#allocation3 + $0x50] sm:$0xff] %vm1646_vm7, %v1475_v43 }
 0x11a   :  { %1273 = vst.msk [vmem:[#allocation3 + $0x58] sm:$0xff] %vm13169_vm6, %v1092_v44  ;;  %2257 = vrot.lane.b32.xlu1 %v9503_v6, %s9102_s19 }
 0x11b   :  { %1873 = vrot.lane.b32.xlu0 %v8509_v36, %s9101_s14  ;;  %5716 = vst.msk [vmem:[#allocation2 + $0xf9] sm:$0x1] %vm5680_vm15, %v9106_v15  ;;  %5717 = vst.msk [vmem:[#allocation2 + $0x109] sm:$0x1] %vm5680_vm15, %v9106_v15 }
 0x11c   :  { %v3012_v46 = vpop.permute.xlu1 %3011  ;;  %5718 = vst.msk [vmem:[#allocation2 + $0x119] sm:$0x1] %vm5680_vm15, %v9106_v15  ;;  %5719 = vst.msk [vmem:[#allocation2 + $0x129] sm:$0x1] %vm5680_vm15, %v9106_v15 }
 0x11d   :  { %v2629_v47 = vpop.permute.xlu0 %2628  ;;  %3196 = vst.msk [vmem:[#allocation3 + $0x40] sm:$0xff] %vm3187_vm11, %v3012_v46 }
 0x11e   :  { %2812 = vst.msk [vmem:[#allocation3 + $0x48] sm:$0xff] %vm2802_vm10, %v2629_v47  ;;  %1105 = vrot.lane.b32.xlu1 %v9503_v6, %s9099_s13 }
 0x11f   :  { %721 = vrot.lane.b32.xlu0 %v8509_v36, %s9097_s25  ;;  %137 = vst.msk [vmem:[#allocation3 + $0xf8] sm:$0xff] %vm105_vm0, %v9849_v14 }
 0x120   :  { %v1477_v49 = vpop.permute.xlu1 %1476  ;;  %5701 = vst.msk [vmem:[#allocation2 + $0x9] sm:$0x1] %vm5680_vm15, %v9106_v15  ;;  %5681 = vst.msk [vmem:[#allocation2] sm:$0x1] %vm5680_vm15, %v9106_v15 }
 0x121   :  { %v323_v50 = vpop.permute.xlu0 %322  ;;  %1658 = vst.msk [vmem:[#allocation3 + $0x58] sm:$0xff] %vm1646_vm7, %v1477_v49 }
 0x122   :  { %503 = vst.msk [vmem:[#allocation3 + $0x60] sm:$0xff] %vm13174_vm4, %v323_v50  ;;  %2642 = vrot.lane.b32.xlu1 %v8446_v34, %s9103_s27 }
 0x123   :  { %2259 = vrot.lane.b32.xlu0 %v9523_v12, %s9102_s19  ;;  %5690 = vst.msk [vmem:[#allocation2 + $0x90] sm:$0x1] %vm5680_vm15, %v9106_v15  ;;  %5691 = vst.msk [vmem:[#allocation2 + $0xa0] sm:$0x1] %vm5680_vm15, %v9106_v15 }
 0x124   :  { %v3014_v51 = vpop.permute.xlu1 %3013  ;;  %v3260_v6 = vld [vmem:[#allocation3 + $0x40] sm:$0xff]  ;;  %5700 = vst.msk [vmem:[#allocation2 + $0x130] sm:$0x1] %vm5680_vm15, %v9106_v15  ;;  %5710 = vst.msk [vmem:[#allocation2 + $0x99] sm:$0x1] %vm5680_vm15, %v9106_v15 }
 0x125   :  { %v1860_v52 = vpop.permute.xlu0 %1859  ;;  %3197 = vst.msk [vmem:[#allocation3 + $0x48] sm:$0xff] %vm3187_vm11, %v3014_v51  ;;  %8809 = vmatprep.mubr.msk.f32.mxu0 %vm13175_vm12, %v3260_v6 }
 0x126   :  { %2042 = vst.msk [vmem:[#allocation3 + $0x50] sm:$0xff] %vm2031_vm8, %v1860_v52  ;;  %1490 = vrot.lane.b32.xlu1 %v8446_v34, %s9100_s24 }
 0x127   :  { %1107 = vrot.lane.b32.xlu0 %v9523_v12, %s9099_s13  ;;  %5711 = vst.msk [vmem:[#allocation2 + $0xa9] sm:$0x1] %vm5680_vm15, %v9106_v15  ;;  %5720 = vst.msk [vmem:[#allocation2 + $0x139] sm:$0x1] %vm5680_vm15, %v9106_v15  ;;  %vm13178_vm15 = vcmask 1044484  }
 0x128   :  { %v708_v57 = vpop.permute.xlu1 %707 }
 0x129   :  { %v325_v59 = vpop.permute.xlu0 %324  ;;  %888 = vst.msk [vmem:[#allocation3 + $0x60] sm:$0xff] %vm13176_vm5, %v708_v57 }
 0x12a   :  { %504 = vst.msk [vmem:[#allocation3 + $0x68] sm:$0xff] %vm13174_vm4, %v325_v59  ;;  %3027 = vrot.lane.b32.xlu1 %v8510_v55, %s9104_s16  ;;  %v8452_v59 = vld [vmem:[%s13155_s0 + $0x139] sm:$0xff] }
 0x12b   :  { %2644 = vrot.lane.b32.xlu0 %v8447_v56, %s9103_s27 }
 0x12c   :  { %v2246_v60 = vpop.permute.xlu1 %2245  ;;  %v3261_v61 = vld [vmem:[#allocation3 + $0x48] sm:$0xff] }
 0x12d   :  { %v1862_v12 = vpop.permute.xlu0 %1861  ;;  %2428 = vst.msk [vmem:[#allocation3 + $0x50] sm:$0xff] %vm2417_vm9, %v2246_v60  ;;  %8810 = vmatmul.mubr.msk.f32.gmra.mrb[8].mxu0 %vm13175_vm12, %v3261_v61  ;;  %v10049_v61 = vld [vmem:[%s13155_s0 + $0x1c8] sm:$0xff] }
 0x12e   :  { %2043 = vst.msk [vmem:[#allocation3 + $0x58] sm:$0xff] %vm2031_vm8, %v1862_v12  ;;  %1492 = vrot.lane.b32.xlu1 %v8447_v56, %s9100_s24 }
 0x12f   :  { %338 = vrot.lane.b32.xlu0 %v8446_v34, %s9098_s26  ;;  %v8515_v34 = vld [vmem:[%s13155_s0 + $0x12a] sm:$0xff]  ;;  %140 = vst.msk [vmem:[#allocation3 + $0x110] sm:$0xff] %vm105_vm0, %v10049_v61 }
 0x130   :  { %v1094_v63 = vpop.permute.xlu1 %1093 }
 0x131   :  { %v710_v38 = vpop.permute.xlu0 %709  ;;  %1274 = vst.msk [vmem:[#allocation3 + $0x60] sm:$0xff] %vm13169_vm6, %v1094_v63 }
 0x132   :  { %889 = vst.msk [vmem:[#allocation3 + $0x68] sm:$0xff] %vm13176_vm5, %v710_v38  ;;  %3029 = vrot.lane.b32.xlu1 %v8511_v62, %s9104_s16 }
 0x133   :  { %1875 = vrot.lane.b32.xlu0 %v8510_v55, %s9101_s14 }
 0x134   :  { %v2631_v1 = vpop.permute.xlu1 %2630 }
 0x135   :  { %v2248_v2 = vpop.permute.xlu0 %2247  ;;  %2813 = vst.msk [vmem:[#allocation3 + $0x50] sm:$0xff] %vm2802_vm10, %v2631_v1 }
 0x136   :  { %2429 = vst.msk [vmem:[#allocation3 + $0x58] sm:$0xff] %vm2417_vm9, %v2248_v2  ;;  %723 = vrot.lane.b32.xlu1 %v8510_v55, %s9097_s25  ;;  %v10067_v2 = vld [vmem:[%s13155_s0 + $0x1d0] sm:$0xff] }
 0x137   :  { %340 = vrot.lane.b32.xlu0 %v8447_v56, %s9098_s26  ;;  %141 = vst.msk [vmem:[#allocation3 + $0x118] sm:$0xff] %vm105_vm0, %v10067_v2 }
 0x138   :  { %v1479_v3 = vpop.permute.xlu1 %1478 }
 0x139   :  { %v1096_v4 = vpop.permute.xlu0 %1095  ;;  %1659 = vst.msk [vmem:[#allocation3 + $0x60] sm:$0xff] %vm1646_vm7, %v1479_v3  ;;  %v8516_v3 = vld [vmem:[%s13155_s0 + $0x13a] sm:$0xff] }
 0x13a   :  { %1275 = vst.msk [vmem:[#allocation3 + $0x68] sm:$0xff] %vm13169_vm6, %v1096_v4  ;;  %2261 = vrot.lane.b32.xlu1 %v9567_v30, %s9102_s19  ;;  %v8453_v4 = vld [vmem:[%s13155_s0 + $0x141] sm:$0xff] }
 0x13b   :  { %1877 = vrot.lane.b32.xlu0 %v8511_v62, %s9101_s14 }
 0x13c   :  { %v3016_v5 = vpop.permute.xlu1 %3015 }
 0x13d   :  { %v2633_v7 = vpop.permute.xlu0 %2632  ;;  %3198 = vst.msk [vmem:[#allocation3 + $0x50] sm:$0xff] %vm3187_vm11, %v3016_v5 }
 0x13e   :  { %2814 = vst.msk [vmem:[#allocation3 + $0x58] sm:$0xff] %vm2802_vm10, %v2633_v7  ;;  %1109 = vrot.lane.b32.xlu1 %v9567_v30, %s9099_s13 }
 0x13f   :  { %725 = vrot.lane.b32.xlu0 %v8511_v62, %s9097_s25 }
 0x140   :  { %v1481_v9 = vpop.permute.xlu1 %1480 }
 0x141   :  { %v327_v10 = vpop.permute.xlu0 %326  ;;  %1660 = vst.msk [vmem:[#allocation3 + $0x68] sm:$0xff] %vm1646_vm7, %v1481_v9 }
 0x142   :  { %505 = vst.msk [vmem:[#allocation3 + $0x70] sm:$0xff] %vm13174_vm4, %v327_v10  ;;  %2646 = vrot.lane.b32.xlu1 %v9838_v40, %s9103_s27  ;;  %v8517_v10 = vld [vmem:[%s13155_s0 + $0x142] sm:$0xff] }
 0x143   :  { %2263 = vrot.lane.b32.xlu0 %v9587_v39, %s9102_s19 }
 0x144   :  { %v3018_v30 = vpop.permute.xlu1 %3017  ;;  %v3262_v13 = vld [vmem:[#allocation3 + $0x50] sm:$0xff] }
 0x145   :  { %v1864_v11 = vpop.permute.xlu0 %1863  ;;  %3199 = vst.msk [vmem:[#allocation3 + $0x58] sm:$0xff] %vm3187_vm11, %v3018_v30  ;;  %8812 = vmatprep.mubr.msk.f32.mxu0 %vm13175_vm12, %v3262_v13 }
 0x146   :  { %2044 = vst.msk [vmem:[#allocation3 + $0x60] sm:$0xff] %vm2031_vm8, %v1864_v11  ;;  %1494 = vrot.lane.b32.xlu1 %v9838_v40, %s9100_s24 }
 0x147   :  { %1111 = vrot.lane.b32.xlu0 %v9587_v39, %s9099_s13 }
 0x148   :  { %v712_v19 = vpop.permute.xlu1 %711 }
 0x149   :  { %v329_v20 = vpop.permute.xlu0 %328  ;;  %890 = vst.msk [vmem:[#allocation3 + $0x70] sm:$0xff] %vm13176_vm5, %v712_v19 }
 0x14a   :  { %506 = vst.msk [vmem:[#allocation3 + $0x78] sm:$0xff] %vm13174_vm4, %v329_v20  ;;  %3031 = vrot.lane.b32.xlu1 %v8512_v16, %s9104_s16  ;;  %v10102_v20 = vld [vmem:[%s13155_s0 + $0x1e0] sm:$0xff] }
 0x14b   :  { %2648 = vrot.lane.b32.xlu0 %v8449_v17, %s9103_s27  ;;  %142 = vst.msk [vmem:[#allocation3 + $0x120] sm:$0xff] %vm105_vm0, %v10102_v20 }
 0x14c   :  { %v2250_v21 = vpop.permute.xlu1 %2249  ;;  %v3263_v22 = vld [vmem:[#allocation3 + $0x58] sm:$0xff] }
 0x14d   :  { %v1866_v39 = vpop.permute.xlu0 %1865  ;;  %2430 = vst.msk [vmem:[#allocation3 + $0x60] sm:$0xff] %vm2417_vm9, %v2250_v21  ;;  %8813 = vmatmul.mubr.msk.f32.gmra.mrb[10].mxu0 %vm13175_vm12, %v3263_v22  ;;  %v10112_v21 = vld [vmem:[%s13157_s2] ss:$0 sm:$0xff] }
 0x14e   :  { %2045 = vst.msk [vmem:[#allocation3 + $0x68] sm:$0xff] %vm2031_vm8, %v1866_v39  ;;  %1496 = vrot.lane.b32.xlu1 %v8449_v17, %s9100_s24 }
 0x14f   :  { %342 = vrot.lane.b32.xlu0 %v9838_v40, %s9098_s26 }
 0x150   :  { %v1098_v48 = vpop.permute.xlu1 %1097 }
 0x151   :  { %v714_v25 = vpop.permute.xlu0 %713  ;;  %1276 = vst.msk [vmem:[#allocation3 + $0x70] sm:$0xff] %vm13169_vm6, %v1098_v48 }
 0x152   :  { %891 = vst.msk [vmem:[#allocation3 + $0x78] sm:$0xff] %vm13176_vm5, %v714_v25  ;;  %3033 = vrot.lane.b32.xlu1 %v8513_v23, %s9104_s16  ;;  %v4106_v25 = vlaneseq }
 0x153   :  { %1879 = vrot.lane.b32.xlu0 %v8512_v16, %s9101_s14 }
 0x154   :  { %v2635_v26 = vpop.permute.xlu1 %2634 }
 0x155   :  { %v2252_v27 = vpop.permute.xlu0 %2251  ;;  %2815 = vst.msk [vmem:[#allocation3 + $0x60] sm:$0xff] %vm2802_vm10, %v2635_v26 }
 0x156   :  { %2431 = vst.msk [vmem:[#allocation3 + $0x68] sm:$0xff] %vm2417_vm9, %v2252_v27  ;;  %727 = vrot.lane.b32.xlu1 %v8512_v16, %s9097_s25 }
 0x157   :  { %344 = vrot.lane.b32.xlu0 %v8449_v17, %s9098_s26 }
 0x158   :  { %v1483_v28 = vpop.permute.xlu1 %1482 }
 0x159   :  { %v1100_v29 = vpop.permute.xlu0 %1099  ;;  %1661 = vst.msk [vmem:[#allocation3 + $0x70] sm:$0xff] %vm1646_vm7, %v1483_v28  ;;  %v10124_v28 = vld [vmem:[%s13155_s0 + $0x151] sm:$0xff] }
 0x15a   :  { %1277 = vst.msk [vmem:[#allocation3 + $0x78] sm:$0xff] %vm13169_vm6, %v1100_v29  ;;  %2265 = vrot.lane.b32.xlu1 %v9631_v58, %s9102_s19 }
 0x15b   :  { %1881 = vrot.lane.b32.xlu0 %v8513_v23, %s9101_s14 }
 0x15c   :  { %v3020_v31 = vpop.permute.xlu1 %3019 }
 0x15d   :  { %v2637_v33 = vpop.permute.xlu0 %2636  ;;  %3200 = vst.msk [vmem:[#allocation3 + $0x60] sm:$0xff] %vm3187_vm11, %v3020_v31 }
 0x15e   :  { %2816 = vst.msk [vmem:[#allocation3 + $0x68] sm:$0xff] %vm2802_vm10, %v2637_v33  ;;  %1113 = vrot.lane.b32.xlu1 %v9631_v58, %s9099_s13 }
 0x15f   :  { %729 = vrot.lane.b32.xlu0 %v8513_v23, %s9097_s25  ;;  %v9107_v23 = vmov 1983009808  }
 0x160   :  { %v1485_v35 = vpop.permute.xlu1 %1484  ;;  %v4104_v48 = vunpack.c.l.s4 %v9107_v23 }
 0x161   :  { %v331_v36 = vpop.permute.xlu0 %330  ;;  %1662 = vst.msk [vmem:[#allocation3 + $0x78] sm:$0xff] %vm1646_vm7, %v1485_v35  ;;  %v4107_v35 = vshrl.u32 %v4106_v25, 7  ;;  %v10191_v25 = vld [vmem:[%s13155_s0 + $0x15a] sm:$0xff] }
 0x162   :  { %507 = vst.msk [vmem:[#allocation3 + $0x80] sm:$0xff] %vm13174_vm4, %v331_v36  ;;  %2650 = vrot.lane.b32.xlu1 %v8450_v54, %s9103_s27 }
 0x163   :  { %2267 = vrot.lane.b32.xlu0 %v9651_v0, %s9102_s19 }
 0x164   :  { %v3022_v37 = vpop.permute.xlu1 %3021  ;;  %v3264_v58 = vld [vmem:[#allocation3 + $0x60] sm:$0xff] }
 0x165   :  { %v1868_v32 = vpop.permute.xlu0 %1867  ;;  %3201 = vst.msk [vmem:[#allocation3 + $0x68] sm:$0xff] %vm3187_vm11, %v3022_v37  ;;  %8815 = vmatprep.mubr.msk.f32.mxu0 %vm13175_vm12, %v3264_v58 }
 0x166   :  { %2046 = vst.msk [vmem:[#allocation3 + $0x70] sm:$0xff] %vm2031_vm8, %v1868_v32  ;;  %1498 = vrot.lane.b32.xlu1 %v8450_v54, %s9100_s24 }
 0x167   :  { %1115 = vrot.lane.b32.xlu0 %v9651_v0, %s9099_s13 }
 0x168   :  { %v716_v43 = vpop.permute.xlu1 %715 }
 0x169   :  { %v333_v44 = vpop.permute.xlu0 %332  ;;  %892 = vst.msk [vmem:[#allocation3 + $0x80] sm:$0xff] %vm13176_vm5, %v716_v43 }
 0x16a   :  { %508 = vst.msk [vmem:[#allocation3 + $0x88] sm:$0xff] %vm13174_vm4, %v333_v44  ;;  %3035 = vrot.lane.b32.xlu1 %v8514_v41, %s9104_s16 }
 0x16b   :  { %2652 = vrot.lane.b32.xlu0 %v8451_v42, %s9103_s27 }
 0x16c   :  { %v2254_v46 = vpop.permute.xlu1 %2253  ;;  %v3265_v47 = vld [vmem:[#allocation3 + $0x68] sm:$0xff] }
 0x16d   :  { %v1870_v0 = vpop.permute.xlu0 %1869  ;;  %2432 = vst.msk [vmem:[#allocation3 + $0x70] sm:$0xff] %vm2417_vm9, %v2254_v46  ;;  %8816 = vmatmul.mubr.msk.f32.gmra.mrb[12].mxu0 %vm13175_vm12, %v3265_v47  ;;  %v10137_v46 = vld [vmem:[%s13155_s0 + $0x1e8] sm:$0xff] }
 0x16e   :  { %2047 = vst.msk [vmem:[#allocation3 + $0x78] sm:$0xff] %vm2031_vm8, %v1870_v0  ;;  %1500 = vrot.lane.b32.xlu1 %v8451_v42, %s9100_s24 }
 0x16f   :  { %346 = vrot.lane.b32.xlu0 %v8450_v54, %s9098_s26  ;;  %v4105_v54 = vunpack.c.0.s8 %v4104_v48  ;;  %143 = vst.msk [vmem:[#allocation3 + $0x128] sm:$0xff] %vm105_vm0, %v10137_v46 }
 0x170   :  { %v1102_v49 = vpop.permute.xlu1 %1101 }
 0x171   :  { %v718_v50 = vpop.permute.xlu0 %717  ;;  %1278 = vst.msk [vmem:[#allocation3 + $0x80] sm:$0xff] %vm13169_vm6, %v1102_v49  ;;  %v10139_v0 = vsub.s32 %v4105_v54, %v4107_v35 }
 0x172   :  { %893 = vst.msk [vmem:[#allocation3 + $0x88] sm:$0xff] %vm13176_vm5, %v718_v50  ;;  %3037 = vrot.lane.b32.xlu1 %v8515_v34, %s9104_s16 }
 0x173   :  { %1883 = vrot.lane.b32.xlu0 %v8514_v41, %s9101_s14 }
 0x174   :  { %v2639_v51 = vpop.permute.xlu1 %2638 }
 0x175   :  { %v2256_v52 = vpop.permute.xlu0 %2255  ;;  %2817 = vst.msk [vmem:[#allocation3 + $0x70] sm:$0xff] %vm2802_vm10, %v2639_v51 }
 0x176   :  { %2433 = vst.msk [vmem:[#allocation3 + $0x78] sm:$0xff] %vm2417_vm9, %v2256_v52  ;;  %731 = vrot.lane.b32.xlu1 %v8514_v41, %s9097_s25 }
 0x177   :  { %348 = vrot.lane.b32.xlu0 %v8451_v42, %s9098_s26 }
 0x178   :  { %v1487_v6 = vpop.permute.xlu1 %1486 }
 0x179   :  { %v1104_v55 = vpop.permute.xlu0 %1103  ;;  %1663 = vst.msk [vmem:[#allocation3 + $0x80] sm:$0xff] %vm1646_vm7, %v1487_v6  ;;  %v10157_v6 = vld [vmem:[%s13155_s0 + $0x152] sm:$0xff] }
 0x17a   :  { %1279 = vst.msk [vmem:[#allocation3 + $0x88] sm:$0xff] %vm13169_vm6, %v1104_v55  ;;  %2269 = vrot.lane.b32.xlu1 %v9695_v18, %s9102_s19  ;;  %v10162_v55 = vld [vmem:[%s13155_s0 + $0x159] sm:$0xff] }
 0x17b   :  { %1885 = vrot.lane.b32.xlu0 %v8515_v34, %s9101_s14 }
 0x17c   :  { %v3024_v56 = vpop.permute.xlu1 %3023 }
 0x17d   :  { %v2641_v57 = vpop.permute.xlu0 %2640  ;;  %3202 = vst.msk [vmem:[#allocation3 + $0x70] sm:$0xff] %vm3187_vm11, %v3024_v56 }
 0x17e   :  { %2818 = vst.msk [vmem:[#allocation3 + $0x78] sm:$0xff] %vm2802_vm10, %v2641_v57  ;;  %1117 = vrot.lane.b32.xlu1 %v9695_v18, %s9099_s13 }
 0x17f   :  { %733 = vrot.lane.b32.xlu0 %v8515_v34, %s9097_s25 }
 0x180   :  { %v1489_v60 = vpop.permute.xlu1 %1488  ;;  %v8799_v62 = vpop.f32.mrb[0].mxu0 }
 0x181   :  { %v335_v12 = vpop.permute.xlu0 %334  ;;  %1664 = vst.msk [vmem:[#allocation3 + $0x88] sm:$0xff] %vm1646_vm7, %v1489_v60  ;;  %v3590_v18 = vpop.f32.mrb[1].mxu0  ;;  %v3596_v26 = vadd.f32 %v8799_v62, %v10112_v21 }
 0x182   :  { %509 = vst.msk [vmem:[#allocation3 + $0x90] sm:$0xff] %vm13174_vm4, %v335_v12  ;;  %2654 = vrot.lane.b32.xlu1 %v8452_v59, %s9103_s27  ;;  %v3591_v27 = vadd.f32 %v10112_v21, %v3590_v18 }
 0x183   :  { %2271 = vrot.lane.b32.xlu0 %v9715_v24, %s9102_s19  ;;  %v3910_v36 = vmax.f32 %v3596_v26, 0.0 }
 0x184   :  { %v3026_v63 = vpop.permute.xlu1 %3025  ;;  %v3266_v1 = vld [vmem:[#allocation3 + $0x70] sm:$0xff]  ;;  %v3909_v32 = vmax.f32 %v3591_v27, 0.0 }
 0x185   :  { %v1872_v38 = vpop.permute.xlu0 %1871  ;;  %3203 = vst.msk [vmem:[#allocation3 + $0x78] sm:$0xff] %vm3187_vm11, %v3026_v63  ;;  %8818 = vmatprep.mubr.msk.f32.mxu0 %vm13175_vm12, %v3266_v1  ;;  %v3977_v34 = vsel %vm13172_vm13, %v3910_v36, -inf }
 0x186   :  { %2048 = vst.msk [vmem:[#allocation3 + $0x80] sm:$0xff] %vm2031_vm8, %v1872_v38  ;;  %1502 = vrot.lane.b32.xlu1 %v8452_v59, %s9100_s24  ;;  %v3974_v50 = vsel %vm13172_vm13, %v3909_v32, -inf }
 0x187   :  { %1119 = vrot.lane.b32.xlu0 %v9715_v24, %s9099_s13 }
 0x188   :  { %v720_v5 = vpop.permute.xlu1 %719 }
 0x189   :  { %v337_v7 = vpop.permute.xlu0 %336  ;;  %894 = vst.msk [vmem:[#allocation3 + $0x90] sm:$0xff] %vm13176_vm5, %v720_v5 }
 0x18a   :  { %510 = vst.msk [vmem:[#allocation3 + $0x98] sm:$0xff] %vm13174_vm4, %v337_v7  ;;  %3039 = vrot.lane.b32.xlu1 %v8516_v3, %s9104_s16 }
 0x18b   :  { %2656 = vrot.lane.b32.xlu0 %v8453_v4, %s9103_s27 }
 0x18c   :  { %v2258_v24 = vpop.permute.xlu1 %2257  ;;  %v3267_v9 = vld [vmem:[#allocation3 + $0x78] sm:$0xff] }
 0x18d   :  { %v1874_v40 = vpop.permute.xlu0 %1873  ;;  %2434 = vst.msk [vmem:[#allocation3 + $0x80] sm:$0xff] %vm2417_vm9, %v2258_v24  ;;  %8819 = vmatmul.mubr.msk.f32.gmra.mrb[14].mxu0 %vm13175_vm12, %v3267_v9 }
 0x18e   :  { %2049 = vst.msk [vmem:[#allocation3 + $0x88] sm:$0xff] %vm2031_vm8, %v1874_v40  ;;  %1504 = vrot.lane.b32.xlu1 %v8453_v4, %s9100_s24 }
 0x18f   :  { %350 = vrot.lane.b32.xlu0 %v8452_v59, %s9098_s26 }
 0x190   :  { %v1106_v30 = vpop.permute.xlu1 %1105 }
 0x191   :  { %v722_v11 = vpop.permute.xlu0 %721  ;;  %1280 = vst.msk [vmem:[#allocation3 + $0x90] sm:$0xff] %vm13169_vm6, %v1106_v30 }
 0x192   :  { %895 = vst.msk [vmem:[#allocation3 + $0x98] sm:$0xff] %vm13176_vm5, %v722_v11  ;;  %3041 = vrot.lane.b32.xlu1 %v8517_v10, %s9104_s16 }
 0x193   :  { %1887 = vrot.lane.b32.xlu0 %v8516_v3, %s9101_s14 }
 0x194   :  { %v2643_v13 = vpop.permute.xlu1 %2642 }
 0x195   :  { %v2260_v16 = vpop.permute.xlu0 %2259  ;;  %2819 = vst.msk [vmem:[#allocation3 + $0x80] sm:$0xff] %vm2802_vm10, %v2643_v13 }
 0x196   :  { %2435 = vst.msk [vmem:[#allocation3 + $0x88] sm:$0xff] %vm2417_vm9, %v2260_v16  ;;  %735 = vrot.lane.b32.xlu1 %v8516_v3, %s9097_s25 }
 0x197   :  { %352 = vrot.lane.b32.xlu0 %v8453_v4, %s9098_s26 }
 0x198   :  { %v1491_v17 = vpop.permute.xlu1 %1490 }
 0x199   :  { %v1108_v19 = vpop.permute.xlu0 %1107  ;;  %1665 = vst.msk [vmem:[#allocation3 + $0x90] sm:$0xff] %vm1646_vm7, %v1491_v17 }
 0x19a   :  { %1281 = vst.msk [vmem:[#allocation3 + $0x98] sm:$0xff] %vm13169_vm6, %v1108_v19  ;;  %2273 = vrot.lane.b32.xlu1 %v9759_v45, %s9102_s19 }
 0x19b   :  { %1889 = vrot.lane.b32.xlu0 %v8517_v10, %s9101_s14 }
 0x19c   :  { %v3028_v39 = vpop.permute.xlu1 %3027 }
 0x19d   :  { %v2645_v22 = vpop.permute.xlu0 %2644  ;;  %3204 = vst.msk [vmem:[#allocation3 + $0x80] sm:$0xff] %vm3187_vm11, %v3028_v39 }
 0x19e   :  { %2820 = vst.msk [vmem:[#allocation3 + $0x88] sm:$0xff] %vm2802_vm10, %v2645_v22  ;;  %1121 = vrot.lane.b32.xlu1 %v9759_v45, %s9099_s13 }
 0x19f   :  { %737 = vrot.lane.b32.xlu0 %v8517_v10, %s9097_s25 }
 0x1a0   :  { %v1493_v29 = vpop.permute.xlu1 %1492  ;;  %v8802_v33 = vpop.f32.mrb[2].mxu0 }
 0x1a1   :  { %v339_v31 = vpop.permute.xlu0 %338  ;;  %1666 = vst.msk [vmem:[#allocation3 + $0x98] sm:$0xff] %vm1646_vm7, %v1493_v29  ;;  %v3606_v45 = vadd.f32 %v8802_v33, %v10112_v21  ;;  %v3600_v37 = vpop.f32.mrb[3].mxu0 }
 0x1a2   :  { %511 = vst.msk [vmem:[#allocation3 + $0xa0] sm:$0xff] %vm13174_vm4, %v339_v31  ;;  %2658 = vrot.lane.b32.xlu1 %v10124_v28, %s9103_s27  ;;  %v3601_v58 = vadd.f32 %v10112_v21, %v3600_v37 }
 0x1a3   :  { %2275 = vrot.lane.b32.xlu0 %v9782_v53, %s9102_s19  ;;  %v3912_v41 = vmax.f32 %v3606_v45, 0.0 }
 0x1a4   :  { %v3030_v42 = vpop.permute.xlu1 %3029  ;;  %v3268_v44 = vld [vmem:[#allocation3 + $0x80] sm:$0xff]  ;;  %v3911_v47 = vmax.f32 %v3601_v58, 0.0 }
 0x1a5   :  { %v1876_v43 = vpop.permute.xlu0 %1875  ;;  %3205 = vst.msk [vmem:[#allocation3 + $0x88] sm:$0xff] %vm3187_vm11, %v3030_v42  ;;  %8821 = vmatprep.mubr.msk.f32.mxu0 %vm13175_vm12, %v3268_v44  ;;  %v3978_v49 = vsel %vm13172_vm13, %v3912_v41, -inf }
 0x1a6   :  { %2050 = vst.msk [vmem:[#allocation3 + $0x90] sm:$0xff] %vm2031_vm8, %v1876_v43  ;;  %1506 = vrot.lane.b32.xlu1 %v10124_v28, %s9100_s24  ;;  %v3979_v51 = vmax.f32 %v3977_v34, %v3978_v49  ;;  %v3975_v52 = vsel %vm13172_vm13, %v3911_v47, -inf }
 0x1a7   :  { %1123 = vrot.lane.b32.xlu0 %v9782_v53, %s9099_s13  ;;  %v3976_v56 = vmax.f32 %v3974_v50, %v3975_v52 }
 0x1a8   :  { %v724_v57 = vpop.permute.xlu1 %723  ;;  %v4119_v60 = vcombine.high %v3979_v51, %v3979_v51  ;;  %v4126_v53 = vrot.slane %v3979_v51, %v10139_v0 }
 0x1a9   :  { %v341_v59 = vpop.permute.xlu0 %340  ;;  %896 = vst.msk [vmem:[#allocation3 + $0xa0] sm:$0xff] %vm13176_vm5, %v724_v57  ;;  %v4102_v12 = vcombine.high %v3976_v56, %v3976_v56  ;;  %v4109_v62 = vrot.slane %v3976_v56, %v10139_v0 }
 0x1aa   :  { %512 = vst.msk [vmem:[#allocation3 + $0xa8] sm:$0xff] %vm13174_vm4, %v341_v59  ;;  %3043 = vrot.lane.b32.xlu1 %v10157_v6, %s9104_s16  ;;  %v4133_v18 = vrot.slane %v4119_v60, %v10139_v0  ;;  %v4134_v63 = vcombine.high %v4126_v53, %v4126_v53  ;;  %v4803_v38 = vsel %vm13168_vm14, %v4126_v53, -inf }
 0x1ab   :  { %2660 = vrot.lane.b32.xlu0 %v10162_v55, %s9103_s27  ;;  %v4804_v1 = vrot.slane %v4803_v38, 4  ;;  %v4116_v3 = vrot.slane %v4102_v12, %v10139_v0  ;;  %v4117_v4 = vcombine.high %v4109_v62, %v4109_v62  ;;  %v4775_v5 = vsel %vm13168_vm14, %v4109_v62, -inf }
 0x1ac   :  { %v2262_v7 = vpop.permute.xlu1 %2261  ;;  %v3269_v40 = vld [vmem:[#allocation3 + $0x88] sm:$0xff]  ;;  %v4135_v9 = vcombine.high %v4133_v18, %v4133_v18  ;;  %v4810_v10 = vsel %vm13168_vm14, %v4134_v63, -inf  ;;  %v4817_v30 = vsel %vm13168_vm14, %v4133_v18, -inf  ;;  %v4776_v11 = vrot.slane %v4775_v5, 4 }
 0x1ad   :  { %v1878_v24 = vpop.permute.xlu0 %1877  ;;  %2436 = vst.msk [vmem:[#allocation3 + $0x90] sm:$0xff] %vm2417_vm9, %v2262_v7  ;;  %8822 = vmatmul.mubr.msk.f32.gmra.mrb[16].mxu0 %vm13175_vm12, %v3269_v40  ;;  %v4805_v13 = vmax.f32 %v4803_v38, %v4804_v1  ;;  %v4811_v16 = vrot.slane %v4810_v10, 4  ;;  %v4818_v17 = vrot.slane %v4817_v30, 4  ;;  %v4118_v19 = vcombine.high %v4116_v3, %v4116_v3 }
 0x1ae   :  { %2051 = vst.msk [vmem:[#allocation3 + $0x98] sm:$0xff] %vm2031_vm8, %v1878_v24  ;;  %1508 = vrot.lane.b32.xlu1 %v10162_v55, %s9100_s24  ;;  %v4824_v39 = vsel %vm13168_vm14, %v4135_v9, -inf  ;;  %v4777_v22 = vmax.f32 %v4775_v5, %v4776_v11  ;;  %v4782_v23 = vsel %vm13168_vm14, %v4117_v4, -inf  ;;  %v4789_v48 = vsel %vm13168_vm14, %v4116_v3, -inf }
 0x1af   :  { %354 = vrot.lane.b32.xlu0 %v10124_v28, %s9098_s26  ;;  %v4812_v26 = vmax.f32 %v4810_v10, %v4811_v16  ;;  %v4819_v27 = vmax.f32 %v4817_v30, %v4818_v17  ;;  %v4825_v29 = vrot.slane %v4824_v39, 4  ;;  %v4783_v35 = vrot.slane %v4782_v23, 4 }
 0x1b0   :  { %v1110_v31 = vpop.permute.xlu1 %1109  ;;  %v4778_v54 = vrot.slane %v4777_v22, 2  ;;  %v4790_v28 = vrot.slane %v4789_v48, 4  ;;  %v4796_v36 = vsel %vm13168_vm14, %v4118_v19, -inf  ;;  %v4806_v45 = vrot.slane %v4805_v13, 2 }
 0x1b1   :  { %v726_v33 = vpop.permute.xlu0 %725  ;;  %1282 = vst.msk [vmem:[#allocation3 + $0xa0] sm:$0xff] %vm13169_vm6, %v1110_v31  ;;  %v4813_v37 = vrot.slane %v4812_v26, 2  ;;  %v4826_v32 = vmax.f32 %v4824_v39, %v4825_v29  ;;  %v4784_v41 = vmax.f32 %v4782_v23, %v4783_v35  ;;  %v4797_v43 = vrot.slane %v4796_v36, 4  ;;  %v8456_v23 = vld [vmem:[%s13155_s0 + $0x169] sm:$0xff] }
 0x1b2   :  { %897 = vst.msk [vmem:[#allocation3 + $0xa8] sm:$0xff] %vm13176_vm5, %v726_v33  ;;  %3045 = vrot.lane.b32.xlu1 %v10191_v25, %s9104_s16  ;;  %v4779_v58 = vmax.f32 %v4777_v22, %v4778_v54  ;;  %v4791_v42 = vmax.f32 %v4789_v48, %v4790_v28  ;;  %v4820_v44 = vrot.slane %v4819_v27, 2  ;;  %v4807_v56 = vmax.f32 %v4805_v13, %v4806_v45 }
 0x1b3   :  { %1891 = vrot.lane.b32.xlu0 %v10157_v6, %s9101_s14  ;;  %v4827_v49 = vrot.slane %v4826_v32, 2  ;;  %v4785_v50 = vrot.slane %v4784_v41, 2  ;;  %v4798_v52 = vmax.f32 %v4796_v36, %v4797_v43  ;;  %v4814_v57 = vmax.f32 %v4812_v26, %v4813_v37  ;;  %v10239_v37 = vld [vmem:[%s13155_s0 + $0x1f8] sm:$0xff] }
 0x1b4   :  { %v2647_v47 = vpop.permute.xlu1 %2646  ;;  %v4792_v51 = vrot.slane %v4791_v42, 2  ;;  %v4780_v59 = vrot.slane %v4779_v58, 1  ;;  %v4821_v62 = vmax.f32 %v4819_v27, %v4820_v44  ;;  %v4808_v5 = vrot.slane %v4807_v56, 1  ;;  %144 = vst.msk [vmem:[#allocation3 + $0x130] sm:$0xff] %vm105_vm0, %v10239_v37 }
 0x1b5   :  { %v2264_v34 = vpop.permute.xlu0 %2263  ;;  %2821 = vst.msk [vmem:[#allocation3 + $0x90] sm:$0xff] %vm2802_vm10, %v2647_v47  ;;  %v4786_v60 = vmax.f32 %v4784_v41, %v4785_v50  ;;  %v4799_v12 = vrot.slane %v4798_v52, 2  ;;  %v4828_v38 = vmax.f32 %v4826_v32, %v4827_v49  ;;  %vm13177_vm14 = vcmask 1045509   ;;  %v8520_v32 = vld [vmem:[%s13155_s0 + $0x16a] sm:$0xff]  ;;  %v8521_v49 = vld [vmem:[%s13155_s0 + $0x172] sm:$0xff] }
 0x1b6   :  { %2437 = vst.msk [vmem:[#allocation3 + $0x98] sm:$0xff] %vm2417_vm9, %v2264_v34  ;;  %739 = vrot.lane.b32.xlu1 %v10157_v6, %s9097_s25  ;;  %v4793_v53 = vmax.f32 %v4791_v42, %v4792_v51  ;;  %v4815_v6 = vrot.slane %v4814_v57, 1  ;;  %v4822_v9 = vrot.slane %v4821_v62, 1  ;;  %v4809_v17 = vmax.f32 %v4807_v56, %v4808_v5 }
 0x1b7   :  { %356 = vrot.lane.b32.xlu0 %v10162_v55, %s9098_s26  ;;  %v4787_v1 = vrot.slane %v4786_v60, 1  ;;  %v4800_v4 = vmax.f32 %v4798_v52, %v4799_v12  ;;  %v4781_v55 = vmax.f32 %v4779_v58, %v4780_v59  ;;  %v4829_v11 = vrot.slane %v4828_v38, 1  ;;  %v8457_v58 = vld [vmem:[%s13155_s0 + $0x171] sm:$0xff]  ;;  %v8394_v59 = vld [vmem:[%s13155_s0 + $0x180] sm:$0xff] }
 0x1b8   :  { %v1495_v18 = vpop.permute.xlu1 %1494  ;;  %v4794_v3 = vrot.slane %v4793_v53, 1  ;;  %v4816_v39 = vmax.f32 %v4814_v57, %v4815_v6  ;;  %v4823_v48 = vmax.f32 %v4821_v62, %v4822_v9  ;;  %v10285_v52 = vld [vmem:[%s13155_s0 + $0x290] sm:$0xff] }
 0x1b9   :  { %v1112_v63 = vpop.permute.xlu0 %1111  ;;  %1667 = vst.msk [vmem:[#allocation3 + $0xa0] sm:$0xff] %vm1646_vm7, %v1495_v18  ;;  %v4788_v7 = vmax.f32 %v4786_v60, %v4787_v1  ;;  %v4801_v40 = vrot.slane %v4800_v4, 1  ;;  %v4830_v31 = vmax.f32 %v4828_v38, %v4829_v11  ;;  %v8458_v38 = vld [vmem:[%s13155_s0 + $0x181] sm:$0xff]  ;;  %v73_v6 = vld [vmem:[%s13155_s0 + $0x1b0] sm:$0xff] }
 0x1ba   :  { %1283 = vst.msk [vmem:[#allocation3 + $0xa8] sm:$0xff] %vm13169_vm6, %v1112_v63  ;;  %2277 = vrot.lane.b32.xlu1 %v9826_v8, %s9102_s19  ;;  %v4795_v24 = vmax.f32 %v4793_v53, %v4794_v3  ;;  %vm13173_vm6 = vcmask 1046534   ;;  %v8395_v1 = vld [vmem:[%s13155_s0 + $0x188] sm:$0xff] }
 0x1bb   :  { %1893 = vrot.lane.b32.xlu0 %v10191_v25, %s9101_s14  ;;  %v4802_v13 = vmax.f32 %v4800_v4, %v4801_v40  ;;  %v5850_v16 = vsel %vm13170_vm1, %v4788_v7, %v4781_v55  ;;  %vm13171_vm1 = vcmask 1047559   ;;  %157 = vst.msk [vmem:[#allocation3 + $0x198] sm:$0xff] %vm105_vm0, %v10285_v52  ;;  %138 = vst.msk [vmem:[#allocation3 + $0x100] sm:$0xff] %vm105_vm0, %v73_v6 }
 0x1bc   :  { %v3032_v10 = vpop.permute.xlu1 %3031  ;;  %v5852_v19 = vsel %vm5851_vm2, %v4795_v24, %v5850_v16 }
 0x1bd   :  { %v2649_v30 = vpop.permute.xlu0 %2648  ;;  %3206 = vst.msk [vmem:[#allocation3 + $0x90] sm:$0xff] %vm3187_vm11, %v3032_v10  ;;  %v5854_v22 = vsel %vm13179_vm3, %v4802_v13, %v5852_v19 }
 0x1be   :  { %2822 = vst.msk [vmem:[#allocation3 + $0x98] sm:$0xff] %vm2802_vm10, %v2649_v30  ;;  %1125 = vrot.lane.b32.xlu1 %v9826_v8, %s9099_s13  ;;  %v5856_v26 = vsel %vm13178_vm15, %v4809_v17, %v5854_v22 }
 0x1bf   :  { %741 = vrot.lane.b32.xlu0 %v10191_v25, %s9097_s25  ;;  %v5858_v8 = vsel %vm13177_vm14, %v4816_v39, %v5856_v26  ;;  %v8459_v26 = vld [vmem:[%s13155_s0 + $0x189] sm:$0xff] }
 0x1c0   :  { %v1497_v27 = vpop.permute.xlu1 %1496  ;;  %v10228_v25 = vpop.f32.mrb[4].mxu0  ;;  %v5860_v33 = vsel %vm13173_vm6, %v4823_v48, %v5858_v8  ;;  %v8522_v48 = vld [vmem:[%s13155_s0 + $0x182] sm:$0xff] }
 0x1c1   :  { %v343_v29 = vpop.permute.xlu0 %342  ;;  %1668 = vst.msk [vmem:[#allocation3 + $0xa8] sm:$0xff] %vm1646_vm7, %v1497_v27  ;;  %v3610_v54 = vpop.f32.mrb[5].mxu0  ;;  %v5862_v35 = vsel %vm13171_vm1, %v4830_v31, %v5860_v33  ;;  %vm13182_vm1 = vcmask 97352   ;;  %v3616_v18 = vadd.f32 %v10228_v25, %v10112_v21 }
 0x1c2   :  { %513 = vst.msk [vmem:[#allocation3 + $0xb0] sm:$0xff] %vm13174_vm4, %v343_v29  ;;  %2662 = vrot.lane.b32.xlu1 %v8456_v23, %s9103_s27  ;;  %v3611_v63 = vadd.f32 %v10112_v21, %v3610_v54 }
 0x1c3   :  { %2279 = vrot.lane.b32.xlu0 %v9849_v14, %s9102_s19  ;;  %5985 = vst.msk [vmem:[#allocation2 + $0x11] sm:$0xff] %vm13172_vm13, %v5862_v35  ;;  %v3914_v55 = vmax.f32 %v3616_v18, 0.0  ;;  %v74_v35 = vld [vmem:[%s13155_s0 + $0x1b8] sm:$0xff] }
 0x1c4   :  { %v3034_v28 = vpop.permute.xlu1 %3033  ;;  %v3270_v45 = vld [vmem:[#allocation3 + $0x90] sm:$0xff]  ;;  %v3913_v40 = vmax.f32 %v3611_v63, 0.0  ;;  %139 = vst.msk [vmem:[#allocation3 + $0x108] sm:$0xff] %vm105_vm0, %v74_v35 }
 0x1c5   :  { %v1880_v36 = vpop.permute.xlu0 %1879  ;;  %3207 = vst.msk [vmem:[#allocation3 + $0x98] sm:$0xff] %vm3187_vm11, %v3034_v28  ;;  %8824 = vmatprep.mubr.msk.f32.mxu0 %vm13175_vm12, %v3270_v45  ;;  %v3983_v17 = vsel %vm13172_vm13, %v3914_v55, -inf }
 0x1c6   :  { %2052 = vst.msk [vmem:[#allocation3 + $0xa0] sm:$0xff] %vm2031_vm8, %v1880_v36  ;;  %1510 = vrot.lane.b32.xlu1 %v8456_v23, %s9100_s24  ;;  %v3980_v39 = vsel %vm13172_vm13, %v3913_v40, -inf }
 0x1c7   :  { %1127 = vrot.lane.b32.xlu0 %v9849_v14, %s9099_s13  ;;  %v10262_v14 = vld [vmem:[%s13155_s0 + $0x288] sm:$0xff] }
 0x1c8   :  { %v728_v41 = vpop.permute.xlu1 %727  ;;  %156 = vst.msk [vmem:[#allocation3 + $0x190] sm:$0xff] %vm105_vm0, %v10262_v14 }
 0x1c9   :  { %v345_v42 = vpop.permute.xlu0 %344  ;;  %898 = vst.msk [vmem:[#allocation3 + $0xb0] sm:$0xff] %vm13176_vm5, %v728_v41 }
 0x1ca   :  { %514 = vst.msk [vmem:[#allocation3 + $0xb8] sm:$0xff] %vm13174_vm4, %v345_v42  ;;  %3047 = vrot.lane.b32.xlu1 %v8520_v32, %s9104_s16  ;;  %v10266_v43 = vld [vmem:[#allocation2 + $0x10] sm:$0xff] }
 0x1cb   :  { %2664 = vrot.lane.b32.xlu0 %v8457_v58, %s9103_s27  ;;  %6018 = vst.msk [vmem:[#allocation4 + $0x8] sm:$0xff] %vm13172_vm13, %v10266_v43 }
 0x1cc   :  { %v2266_v44 = vpop.permute.xlu1 %2265  ;;  %v3271_v34 = vld [vmem:[#allocation3 + $0x98] sm:$0xff] }
 0x1cd   :  { %v1882_v47 = vpop.permute.xlu0 %1881  ;;  %2438 = vst.msk [vmem:[#allocation3 + $0xa0] sm:$0xff] %vm2417_vm9, %v2266_v44  ;;  %8825 = vmatmul.mubr.msk.f32.gmra.mrb[18].mxu0 %vm13175_vm12, %v3271_v34 }
 0x1ce   :  { %2053 = vst.msk [vmem:[#allocation3 + $0xa8] sm:$0xff] %vm2031_vm8, %v1882_v47  ;;  %1512 = vrot.lane.b32.xlu1 %v8457_v58, %s9100_s24 }
 0x1cf   :  { %358 = vrot.lane.b32.xlu0 %v8456_v23, %s9098_s26 }
 0x1d0   :  { %v1114_v50 = vpop.permute.xlu1 %1113 }
 0x1d1   :  { %v730_v51 = vpop.permute.xlu0 %729  ;;  %1284 = vst.msk [vmem:[#allocation3 + $0xb0] sm:$0xff] %vm13182_vm1, %v1114_v50 }
 0x1d2   :  { %899 = vst.msk [vmem:[#allocation3 + $0xb8] sm:$0xff] %vm13176_vm5, %v730_v51  ;;  %3049 = vrot.lane.b32.xlu1 %v8521_v49, %s9104_s16 }
 0x1d3   :  { %1895 = vrot.lane.b32.xlu0 %v8520_v32, %s9101_s14 }
 0x1d4   :  { %v2651_v56 = vpop.permute.xlu1 %2650 }
 0x1d5   :  { %v2268_v57 = vpop.permute.xlu0 %2267  ;;  %2823 = vst.msk [vmem:[#allocation3 + $0xa0] sm:$0xff] %vm2802_vm10, %v2651_v56 }
 0x1d6   :  { %2439 = vst.msk [vmem:[#allocation3 + $0xa8] sm:$0xff] %vm2417_vm9, %v2268_v57  ;;  %743 = vrot.lane.b32.xlu1 %v8520_v32, %s9097_s25  ;;  %v202_v32 = vld [vmem:[%s13155_s0 + $0x1b1] sm:$0xff] }
 0x1d7   :  { %360 = vrot.lane.b32.xlu0 %v8457_v58, %s9098_s26 }
 0x1d8   :  { %v1499_v60 = vpop.permute.xlu1 %1498 }
 0x1d9   :  { %v1116_v53 = vpop.permute.xlu0 %1115  ;;  %1669 = vst.msk [vmem:[#allocation3 + $0xb0] sm:$0xff] %vm1646_vm7, %v1499_v60 }
 0x1da   :  { %1285 = vst.msk [vmem:[#allocation3 + $0xb8] sm:$0xff] %vm13182_vm1, %v1116_v53  ;;  %2281 = vrot.lane.b32.xlu1 %v8394_v59, %s9102_s19  ;;  %vm13183_vm1 = vcmask 58368  }
 0x1db   :  { %1897 = vrot.lane.b32.xlu0 %v8521_v49, %s9101_s14  ;;  %vm13185_vm6 = vmmov %vm13183_vm1 }
 0x1dc   :  { %v3036_v12 = vpop.permute.xlu1 %3035 }
 0x1dd   :  { %v2653_v62 = vpop.permute.xlu0 %2652  ;;  %3208 = vst.msk [vmem:[#allocation3 + $0xa0] sm:$0xff] %vm3187_vm11, %v3036_v12 }
 0x1de   :  { %2824 = vst.msk [vmem:[#allocation3 + $0xa8] sm:$0xff] %vm2802_vm10, %v2653_v62  ;;  %1129 = vrot.lane.b32.xlu1 %v8394_v59, %s9099_s13 }
 0x1df   :  { %745 = vrot.lane.b32.xlu0 %v8521_v49, %s9097_s25 }
 0x1e0   :  { %v1501_v3 = vpop.permute.xlu1 %1500  ;;  %v8808_v5 = vpop.f32.mrb[6].mxu0 }
 0x1e1   :  { %v347_v4 = vpop.permute.xlu0 %346  ;;  %1670 = vst.msk [vmem:[#allocation3 + $0xb8] sm:$0xff] %vm1646_vm7, %v1501_v3  ;;  %v3626_v7 = vadd.f32 %v8808_v5, %v10112_v21  ;;  %v3620_v24 = vpop.f32.mrb[7].mxu0 }
 0x1e2   :  { %515 = vst.msk [vmem:[#allocation3 + $0xc0] sm:$0xff] %vm13174_vm4, %v347_v4  ;;  %2666 = vrot.lane.b32.xlu1 %v8458_v38, %s9103_s27  ;;  %v3621_v9 = vadd.f32 %v10112_v21, %v3620_v24 }
 0x1e3   :  { %2283 = vrot.lane.b32.xlu0 %v8395_v1, %s9102_s19  ;;  %v3916_v10 = vmax.f32 %v3626_v7, 0.0 }
 0x1e4   :  { %v3038_v30 = vpop.permute.xlu1 %3037  ;;  %v3272_v13 = vld [vmem:[#allocation3 + $0xa0] sm:$0xff]  ;;  %v3915_v16 = vmax.f32 %v3621_v9, 0.0 }
 0x1e5   :  { %v1884_v11 = vpop.permute.xlu0 %1883  ;;  %3209 = vst.msk [vmem:[#allocation3 + $0xa8] sm:$0xff] %vm3187_vm11, %v3038_v30  ;;  %8827 = vmatprep.mubr.msk.f32.mxu0 %vm13175_vm12, %v3272_v13  ;;  %v3984_v19 = vsel %vm13172_vm13, %v3916_v10, -inf }
 0x1e6   :  { %2054 = vst.msk [vmem:[#allocation3 + $0xb0] sm:$0xff] %vm2031_vm8, %v1884_v11  ;;  %1514 = vrot.lane.b32.xlu1 %v8458_v38, %s9100_s24  ;;  %v3985_v22 = vmax.f32 %v3983_v17, %v3984_v19  ;;  %v3981_v23 = vsel %vm13172_vm13, %v3915_v16, -inf  ;;  %vm13184_vm13 = vmmov %vm13183_vm1 }
 0x1e7   :  { %1131 = vrot.lane.b32.xlu0 %v8395_v1, %s9099_s13  ;;  %v3982_v27 = vmax.f32 %v3980_v39, %v3981_v23  ;;  %v8523_v1 = vld [vmem:[%s13155_s0 + $0x18a] sm:$0xff]  ;;  %v587_v39 = vld [vmem:[%s13155_s0 + $0x1b2] sm:$0xff] }
 0x1e8   :  { %v732_v29 = vpop.permute.xlu1 %731  ;;  %v4153_v8 = vcombine.high %v3985_v22, %v3985_v22  ;;  %v4160_v25 = vrot.slane %v3985_v22, %v10139_v0  ;;  %v203_v22 = vld [vmem:[%s13155_s0 + $0x1b9] sm:$0xff] }
 0x1e9   :  { %v349_v31 = vpop.permute.xlu0 %348  ;;  %900 = vst.msk [vmem:[#allocation3 + $0xc0] sm:$0xff] %vm13176_vm5, %v732_v29  ;;  %v4136_v33 = vcombine.high %v3982_v27, %v3982_v27  ;;  %v4143_v54 = vrot.slane %v3982_v27, %v10139_v0 }
 0x1ea   :  { %516 = vst.msk [vmem:[#allocation3 + $0xc8] sm:$0xff] %vm13174_vm4, %v349_v31  ;;  %3051 = vrot.lane.b32.xlu1 %v8522_v48, %s9104_s16  ;;  %v4167_v28 = vrot.slane %v4153_v8, %v10139_v0  ;;  %v4168_v36 = vcombine.high %v4160_v25, %v4160_v25  ;;  %v4859_v45 = vsel %vm13183_vm1, %v4160_v25, -inf  ;;  %vm13186_vm4 = vmmov %vm13183_vm1 }
 0x1eb   :  { %2668 = vrot.lane.b32.xlu0 %v8459_v26, %s9103_s27  ;;  %v4860_v58 = vrot.slane %v4859_v45, 4  ;;  %v4150_v41 = vrot.slane %v4136_v33, %v10139_v0  ;;  %v4151_v42 = vcombine.high %v4143_v54, %v4143_v54  ;;  %v4831_v44 = vsel %vm13184_vm13, %v4143_v54, -inf  ;;  %vm13187_vm13 = vmmov %vm13183_vm1 }
 0x1ec   :  { %v2270_v47 = vpop.permute.xlu1 %2269  ;;  %v3273_v49 = vld [vmem:[#allocation3 + $0xa8] sm:$0xff]  ;;  %v4169_v50 = vcombine.high %v4167_v28, %v4167_v28  ;;  %v4866_v51 = vsel %vm13185_vm6, %v4168_v36, -inf  ;;  %v4873_v56 = vsel %vm13186_vm4, %v4167_v28, -inf  ;;  %v4832_v57 = vrot.slane %v4831_v44, 4  ;;  %vm13188_vm6 = vmmov %vm13183_vm1 }
 0x1ed   :  { %v1886_v34 = vpop.permute.xlu0 %1885  ;;  %2440 = vst.msk [vmem:[#allocation3 + $0xb0] sm:$0xff] %vm2417_vm9, %v2270_v47  ;;  %8828 = vmatmul.mubr.msk.f32.gmra.mrb[20].mxu0 %vm13175_vm12, %v3273_v49  ;;  %v4861_v59 = vmax.f32 %v4859_v45, %v4860_v58  ;;  %v4867_v60 = vrot.slane %v4866_v51, 4  ;;  %v4874_v53 = vrot.slane %v4873_v56, 4  ;;  %v4152_v12 = vcombine.high %v4150_v41, %v4150_v41  ;;  %vm13189_vm4 = vmmov %vm13183_vm1  ;;  %v8396_v45 = vld [vmem:[%s13155_s0 + $0x198] sm:$0xff] }
 0x1ee   :  { %2055 = vst.msk [vmem:[#allocation3 + $0xb8] sm:$0xff] %vm2031_vm8, %v1886_v34  ;;  %1516 = vrot.lane.b32.xlu1 %v8459_v26, %s9100_s24  ;;  %v4880_v62 = vsel %vm13187_vm13, %v4169_v50, -inf  ;;  %v4833_v18 = vmax.f32 %v4831_v44, %v4832_v57  ;;  %v4838_v63 = vsel %vm13188_vm6, %v4151_v42, -inf  ;;  %v4845_v38 = vsel %vm13189_vm4, %v4150_v41, -inf }
 0x1ef   :  { %362 = vrot.lane.b32.xlu0 %v202_v32, %s9098_s26  ;;  %v4868_v3 = vmax.f32 %v4866_v51, %v4867_v60  ;;  %v4875_v4 = vmax.f32 %v4873_v56, %v4874_v53  ;;  %v4881_v5 = vrot.slane %v4880_v62, 4  ;;  %v4839_v24 = vrot.slane %v4838_v63, 4  ;;  %v588_v60 = vld [vmem:[%s13155_s0 + $0x1ba] sm:$0xff] }
 0x1f0   :  { %v1118_v6 = vpop.permute.xlu1 %1117  ;;  %v4834_v7 = vrot.slane %v4833_v18, 2  ;;  %v4846_v40 = vrot.slane %v4845_v38, 4  ;;  %v4852_v9 = vsel %vm13183_vm1, %v4152_v12, -inf  ;;  %vm13190_vm13 = vcmask 97352  }
 0x1f1   :  { %v734_v55 = vpop.permute.xlu0 %733  ;;  %1286 = vst.msk [vmem:[#allocation3 + $0xc0] sm:$0xff] %vm13190_vm13, %v1118_v6  ;;  %v4862_v10 = vrot.slane %v4861_v59, 2  ;;  %v4869_v30 = vrot.slane %v4868_v3, 2  ;;  %v4882_v11 = vmax.f32 %v4880_v62, %v4881_v5  ;;  %v4840_v16 = vmax.f32 %v4838_v63, %v4839_v24  ;;  %vm13191_vm6 = vmmov %vm13190_vm13  ;;  %v8460_v6 = vld [vmem:[%s13155_s0 + $0x199] sm:$0xff] }
 0x1f2   :  { %901 = vst.msk [vmem:[#allocation3 + $0xc8] sm:$0xff] %vm13176_vm5, %v734_v55  ;;  %3053 = vrot.lane.b32.xlu1 %v8523_v1, %s9104_s16  ;;  %v4835_v13 = vmax.f32 %v4833_v18, %v4834_v7  ;;  %v4847_v17 = vmax.f32 %v4845_v38, %v4846_v40  ;;  %v4853_v19 = vrot.slane %v4852_v9, 4  ;;  %v4876_v23 = vrot.slane %v4875_v4, 2  ;;  %v8397_v55 = vld [vmem:[%s13155_s0 + $0x1a0] sm:$0xff] }
 0x1f3   :  { %1899 = vrot.lane.b32.xlu0 %v8522_v48, %s9101_s14  ;;  %v4883_v29 = vrot.slane %v4882_v11, 2  ;;  %v4841_v31 = vrot.slane %v4840_v16, 2  ;;  %v4863_v48 = vmax.f32 %v4861_v59, %v4862_v10  ;;  %v4870_v33 = vmax.f32 %v4868_v3, %v4869_v30 }
 0x1f4   :  { %v2655_v26 = vpop.permute.xlu1 %2654  ;;  %v4848_v8 = vrot.slane %v4847_v17, 2  ;;  %v4854_v25 = vmax.f32 %v4852_v9, %v4853_v19  ;;  %v4836_v54 = vrot.slane %v4835_v13, 1  ;;  %v4877_v32 = vmax.f32 %v4875_v4, %v4876_v23  ;;  %v8524_v23 = vld [vmem:[%s13155_s0 + $0x19a] sm:$0xff] }
 0x1f5   :  { %v2272_v27 = vpop.permute.xlu0 %2271  ;;  %2825 = vst.msk [vmem:[#allocation3 + $0xb0] sm:$0xff] %vm2802_vm10, %v2655_v26  ;;  %v4842_v35 = vmax.f32 %v4840_v16, %v4841_v31  ;;  %v4884_v42 = vmax.f32 %v4882_v11, %v4883_v29  ;;  %v4864_v49 = vrot.slane %v4863_v48, 1  ;;  %v4871_v50 = vrot.slane %v4870_v33, 1  ;;  %v8461_v26 = vld [vmem:[%s13155_s0 + $0x1a1] sm:$0xff] }
 0x1f6   :  { %2441 = vst.msk [vmem:[#allocation3 + $0xb8] sm:$0xff] %vm2417_vm9, %v2272_v27  ;;  %747 = vrot.lane.b32.xlu1 %v587_v39, %s9097_s25  ;;  %v4849_v28 = vmax.f32 %v4847_v17, %v4848_v8  ;;  %v4855_v36 = vrot.slane %v4854_v25, 2  ;;  %v4837_v51 = vmax.f32 %v4835_v13, %v4836_v54  ;;  %v4878_v53 = vrot.slane %v4877_v32, 1  ;;  %v8270_v17 = vld [vmem:[%s13155_s0 + $0x1c9] sm:$0xff] }
 0x1f7   :  { %364 = vrot.lane.b32.xlu0 %v203_v22, %s9098_s26  ;;  %v4843_v44 = vrot.slane %v4842_v35, 1  ;;  %v4885_v18 = vrot.slane %v4884_v42, 1  ;;  %vm13192_vm4 = vcmask 1041409   ;;  %v4872_v4 = vmax.f32 %v4870_v33, %v4871_v50  ;;  %v8525_v33 = vld [vmem:[%s13155_s0 + $0x1a2] sm:$0xff]  ;;  %v8334_v54 = vld [vmem:[%s13155_s0 + $0x1ca] sm:$0xff] }
 0x1f8   :  { %v1503_v58 = vpop.permute.xlu1 %1502  ;;  %v4850_v47 = vrot.slane %v4849_v28, 1  ;;  %v4856_v34 = vmax.f32 %v4854_v25, %v4855_v36  ;;  %v4879_v7 = vmax.f32 %v4877_v32, %v4878_v53  ;;  %vm13193_vm1 = vcmask 48152   ;;  %v8335_v32 = vld [vmem:[%s13155_s0 + $0x1d2] sm:$0xff] }
 0x1f9   :  { %v1120_v41 = vpop.permute.xlu0 %1119  ;;  %1671 = vst.msk [vmem:[#allocation3 + $0xc0] sm:$0xff] %vm1646_vm7, %v1503_v58  ;;  %v4844_v56 = vmax.f32 %v4842_v35, %v4843_v44  ;;  %v4886_v10 = vmax.f32 %v4884_v42, %v4885_v18  ;;  %vm13194_vm13 = vcmask 1046534  }
 0x1fa   :  { %1287 = vst.msk [vmem:[#allocation3 + $0xc8] sm:$0xff] %vm13191_vm6, %v1120_v41  ;;  %2285 = vrot.lane.b32.xlu1 %v8396_v45, %s9102_s19  ;;  %v4851_v57 = vmax.f32 %v4849_v28, %v4850_v47  ;;  %v4857_v59 = vrot.slane %v4856_v34, 1  ;;  %vm13195_vm6 = vcmask 1047559  }
 0x1fb   :  { %1901 = vrot.lane.b32.xlu0 %v8523_v1, %s9101_s14  ;;  %v5863_v38 = vsel %vm13192_vm4, %v4844_v56, %v4837_v51  ;;  %v4865_v1 = vmax.f32 %v4863_v48, %v4864_v49  ;;  %vm13196_vm4 = vcmask 64512   ;;  %v10479_v49 = vld [vmem:[%s13155_s0 + $0x1e1] sm:$0xff]  ;;  %v89_v56 = vld [vmem:[%s13155_s0 + $0x270] sm:$0xff] }
 0x1fc   :  { %v3040_v12 = vpop.permute.xlu1 %3039  ;;  %v4858_v63 = vmax.f32 %v4856_v34, %v4857_v59  ;;  %v5864_v3 = vsel %vm5851_vm2, %v4851_v57, %v5863_v38  ;;  %154 = vst.msk [vmem:[#allocation3 + $0x180] sm:$0xff] %vm105_vm0, %v89_v56 }
 0x1fd   :  { %v2657_v62 = vpop.permute.xlu0 %2656  ;;  %3210 = vst.msk [vmem:[#allocation3 + $0xb0] sm:$0xff] %vm3187_vm11, %v3040_v12 }
 0x1fe   :  { %2826 = vst.msk [vmem:[#allocation3 + $0xb8] sm:$0xff] %vm2802_vm10, %v2657_v62  ;;  %1133 = vrot.lane.b32.xlu1 %v10049_v61, %s9099_s13  ;;  %v5865_v5 = vsel %vm13179_vm3, %v4858_v63, %v5864_v3 }
 0x1ff   :  { %749 = vrot.lane.b32.xlu0 %v588_v60, %s9097_s25  ;;  %v5866_v24 = vsel %vm13178_vm15, %v4865_v1, %v5865_v5 }
 0x200   :  { %v1505_v40 = vpop.permute.xlu1 %1504  ;;  %v5867_v61 = vsel %vm13177_vm14, %v4872_v4, %v5866_v24  ;;  %v8811_v30 = vpop.f32.mrb[8].mxu0 }
 0x201   :  { %v351_v9 = vpop.permute.xlu0 %350  ;;  %1672 = vst.msk [vmem:[#allocation3 + $0xc8] sm:$0xff] %vm1646_vm7, %v1505_v40  ;;  %v5868_v11 = vsel %vm13194_vm13, %v4879_v7, %v5867_v61  ;;  %v3630_v13 = vpop.f32.mrb[9].mxu0  ;;  %vm13197_vm13 = vmmov %vm13196_vm4  ;;  %v3636_v47 = vadd.f32 %v8811_v30, %v10112_v21  ;;  %v10512_v7 = vld [vmem:[%s13155_s0 + $0x1e9] sm:$0xff] }
 0x202   :  { %517 = vst.msk [vmem:[#allocation3 + $0xd0] sm:$0xff] %vm13193_vm1, %v351_v9  ;;  %2670 = vrot.lane.b32.xlu1 %v8460_v6, %s9103_s27  ;;  %v5869_v16 = vsel %vm13195_vm6, %v4886_v10, %v5868_v11  ;;  %vm13198_vm6 = vcmask 97352   ;;  %v3631_v34 = vadd.f32 %v10112_v21, %v3630_v13 }
 0x203   :  { %2287 = vrot.lane.b32.xlu0 %v8397_v55, %s9102_s19  ;;  %5986 = vst.msk [vmem:[#allocation2 + $0x21] sm:$0xff] %vm13196_vm4, %v5869_v16  ;;  %vm13199_vm4 = vmmov %vm13198_vm6  ;;  %v3918_v57 = vmax.f32 %v3636_v47, 0.0  ;;  %v10507_v55 = vld [vmem:[%s13155_s0 + $0x1e2] sm:$0xff] }
 0x204   :  { %v3042_v19 = vpop.permute.xlu1 %3041  ;;  %v3274_v22 = vld [vmem:[#allocation3 + $0xb0] sm:$0xff]  ;;  %v3917_v53 = vmax.f32 %v3631_v34, 0.0 }
 0x205   :  { %v1888_v39 = vpop.permute.xlu0 %1887  ;;  %3211 = vst.msk [vmem:[#allocation3 + $0xb8] sm:$0xff] %vm3187_vm11, %v3042_v19  ;;  %8830 = vmatprep.mubr.msk.f32.mxu0 %vm13175_vm12, %v3274_v22  ;;  %v3989_v3 = vsel %vm13197_vm13, %v3918_v57, -inf }
 0x206   :  { %2056 = vst.msk [vmem:[#allocation3 + $0xc0] sm:$0xff] %vm2031_vm8, %v1888_v39  ;;  %1518 = vrot.lane.b32.xlu1 %v8270_v17, %s9100_s24 }
 0x207   :  { %1135 = vrot.lane.b32.xlu0 %v10067_v2, %s9099_s13  ;;  %v8271_v2 = vld [vmem:[%s13155_s0 + $0x1d1] sm:$0xff] }
 0x208   :  { %v736_v27 = vpop.permute.xlu1 %735 }
 0x209   :  { %v353_v29 = vpop.permute.xlu0 %352  ;;  %902 = vst.msk [vmem:[#allocation3 + $0xd0] sm:$0xff] %vm13176_vm5, %v736_v27 }
 0x20a   :  { %518 = vst.msk [vmem:[#allocation3 + $0xd8] sm:$0xff] %vm13193_vm1, %v353_v29  ;;  %3055 = vrot.lane.b32.xlu1 %v8524_v23, %s9104_s16  ;;  %v10438_v31 = vld [vmem:[#allocation2 + $0x20] sm:$0xff] }
 0x20b   :  { %2672 = vrot.lane.b32.xlu0 %v8461_v26, %s9103_s27  ;;  %6019 = vst.msk [vmem:[#allocation4 + $0x10] sm:$0xff] %vm13197_vm13, %v10438_v31 }
 0x20c   :  { %v2274_v8 = vpop.permute.xlu1 %2273  ;;  %v3275_v48 = vld [vmem:[#allocation3 + $0xb8] sm:$0xff] }
 0x20d   :  { %v1890_v25 = vpop.permute.xlu0 %1889  ;;  %2442 = vst.msk [vmem:[#allocation3 + $0xc0] sm:$0xff] %vm2417_vm9, %v2274_v8  ;;  %8831 = vmatmul.mubr.msk.f32.gmra.mrb[22].mxu0 %vm13175_vm12, %v3275_v48 }
 0x20e   :  { %2057 = vst.msk [vmem:[#allocation3 + $0xc8] sm:$0xff] %vm2031_vm8, %v1890_v25  ;;  %1520 = vrot.lane.b32.xlu1 %v8271_v2, %s9100_s24 }
 0x20f   :  { %366 = vrot.lane.b32.xlu0 %v8270_v17, %s9098_s26  ;;  %v218_v17 = vld [vmem:[%s13155_s0 + $0x271] sm:$0xff] }
 0x210   :  { %v1122_v35 = vpop.permute.xlu1 %1121 }
 0x211   :  { %v738_v28 = vpop.permute.xlu0 %737  ;;  %1288 = vst.msk [vmem:[#allocation3 + $0xd0] sm:$0xff] %vm13198_vm6, %v1122_v35  ;;  %vm13200_vm6 = vmmov %vm13197_vm13  ;;  %vm13203_vm13 = vcmask 48152  }
 0x212   :  { %903 = vst.msk [vmem:[#allocation3 + $0xd8] sm:$0xff] %vm13176_vm5, %v738_v28  ;;  %3057 = vrot.lane.b32.xlu1 %v8525_v33, %s9104_s16 }
 0x213   :  { %1903 = vrot.lane.b32.xlu0 %v8334_v54, %s9101_s14 }
 0x214   :  { %v2659_v36 = vpop.permute.xlu1 %2658 }
 0x215   :  { %v2276_v45 = vpop.permute.xlu0 %2275  ;;  %2827 = vst.msk [vmem:[#allocation3 + $0xc0] sm:$0xff] %vm2802_vm10, %v2659_v36  ;;  %v90_v36 = vld [vmem:[%s13155_s0 + $0x278] sm:$0xff] }
 0x216   :  { %2443 = vst.msk [vmem:[#allocation3 + $0xc8] sm:$0xff] %vm2417_vm9, %v2276_v45  ;;  %751 = vrot.lane.b32.xlu1 %v8334_v54, %s9097_s25 }
 0x217   :  { %368 = vrot.lane.b32.xlu0 %v8271_v2, %s9098_s26  ;;  %155 = vst.msk [vmem:[#allocation3 + $0x188] sm:$0xff] %vm105_vm0, %v90_v36 }
 0x218   :  { %v1507_v58 = vpop.permute.xlu1 %1506 }
 0x219   :  { %v1124_v41 = vpop.permute.xlu0 %1123  ;;  %1673 = vst.msk [vmem:[#allocation3 + $0xd0] sm:$0xff] %vm1646_vm7, %v1507_v58 }
 0x21a   :  { %1289 = vst.msk [vmem:[#allocation3 + $0xd8] sm:$0xff] %vm13199_vm4, %v1124_v41  ;;  %2289 = vrot.lane.b32.xlu1 %v10102_v20, %s9102_s19  ;;  %vm13201_vm4 = vmmov %vm13200_vm6 }
 0x21b   :  { %1905 = vrot.lane.b32.xlu0 %v8335_v32, %s9101_s14 }
 0x21c   :  { %v3044_v42 = vpop.permute.xlu1 %3043 }
 0x21d   :  { %v2661_v44 = vpop.permute.xlu0 %2660  ;;  %3212 = vst.msk [vmem:[#allocation3 + $0xc0] sm:$0xff] %vm3187_vm11, %v3044_v42 }
 0x21e   :  { %2828 = vst.msk [vmem:[#allocation3 + $0xc8] sm:$0xff] %vm2802_vm10, %v2661_v44  ;;  %1137 = vrot.lane.b32.xlu1 %v10102_v20, %s9099_s13 }
 0x21f   :  { %753 = vrot.lane.b32.xlu0 %v8335_v32, %s9097_s25 }
 0x220   :  { %v1509_v50 = vpop.permute.xlu1 %1508  ;;  %v8814_v20 = vpop.f32.mrb[10].mxu0 }
 0x221   :  { %v355_v51 = vpop.permute.xlu0 %354  ;;  %1674 = vst.msk [vmem:[#allocation3 + $0xd8] sm:$0xff] %vm1646_vm7, %v1509_v50  ;;  %v3646_v59 = vadd.f32 %v8814_v20, %v10112_v21  ;;  %v3640_v60 = vpop.f32.mrb[11].mxu0 }
 0x222   :  { %519 = vst.msk [vmem:[#allocation3 + $0xe0] sm:$0xff] %vm13193_vm1, %v355_v51  ;;  %2674 = vrot.lane.b32.xlu1 %v10479_v49, %s9103_s27  ;;  %v3641_v12 = vadd.f32 %v10112_v21, %v3640_v60  ;;  %v3986_v21 = vsel %vm13201_vm4, %v3917_v53, -inf  ;;  %vm13202_vm1 = vmmov %vm13201_vm4 }
 0x223   :  { %2291 = vrot.lane.b32.xlu0 %v10137_v46, %s9102_s19  ;;  %v3920_v62 = vmax.f32 %v3646_v59, 0.0 }
 0x224   :  { %v3046_v18 = vpop.permute.xlu1 %3045  ;;  %v3276_v38 = vld [vmem:[#allocation3 + $0xc0] sm:$0xff]  ;;  %v3919_v1 = vmax.f32 %v3641_v12, 0.0 }
 0x225   :  { %v1892_v63 = vpop.permute.xlu0 %1891  ;;  %3213 = vst.msk [vmem:[#allocation3 + $0xc8] sm:$0xff] %vm3187_vm11, %v3046_v18  ;;  %8833 = vmatprep.mubr.msk.f32.mxu0 %vm13175_vm12, %v3276_v38  ;;  %v3990_v4 = vsel %vm13200_vm6, %v3920_v62, -inf  ;;  %vm13204_vm6 = vcmask 58368  }
 0x226   :  { %2058 = vst.msk [vmem:[#allocation3 + $0xd0] sm:$0xff] %vm2031_vm8, %v1892_v63  ;;  %1522 = vrot.lane.b32.xlu1 %v10479_v49, %s9100_s24  ;;  %v3991_v5 = vmax.f32 %v3989_v3, %v3990_v4  ;;  %v3987_v6 = vsel %vm13202_vm1, %v3919_v1, -inf  ;;  %vm13205_vm4 = vmmov %vm13204_vm6  ;;  %v8527_v63 = vld [vmem:[%s13155_s0 + $0x1ea] sm:$0xff] }
 0x227   :  { %1139 = vrot.lane.b32.xlu0 %v10137_v46, %s9099_s13  ;;  %v3988_v24 = vmax.f32 %v3986_v21, %v3987_v6  ;;  %vm13206_vm1 = vmmov %vm13205_vm4 }
 0x228   :  { %v740_v40 = vpop.permute.xlu1 %739  ;;  %v4187_v10 = vcombine.high %v3991_v5, %v3991_v5  ;;  %v4194_v46 = vrot.slane %v3991_v5, %v10139_v0 }
 0x229   :  { %v357_v9 = vpop.permute.xlu0 %356  ;;  %904 = vst.msk [vmem:[#allocation3 + $0xe0] sm:$0xff] %vm13176_vm5, %v740_v40  ;;  %v4170_v61 = vcombine.high %v3988_v24, %v3988_v24  ;;  %v4177_v30 = vrot.slane %v3988_v24, %v10139_v0 }
 0x22a   :  { %520 = vst.msk [vmem:[#allocation3 + $0xe8] sm:$0xff] %vm13203_vm13, %v357_v9  ;;  %3059 = vrot.lane.b32.xlu1 %v10507_v55, %s9104_s16  ;;  %v4201_v11 = vrot.slane %v4187_v10, %v10139_v0  ;;  %v4202_v13 = vcombine.high %v4194_v46, %v4194_v46  ;;  %v4915_v16 = vsel %vm13204_vm6, %v4194_v46, -inf  ;;  %vm13207_vm13 = vmmov %vm13206_vm1 }
 0x22b   :  { %2676 = vrot.lane.b32.xlu0 %v10512_v7, %s9103_s27  ;;  %v4916_v19 = vrot.slane %v4915_v16, 4  ;;  %v4184_v39 = vrot.slane %v4170_v61, %v10139_v0  ;;  %v4185_v22 = vcombine.high %v4177_v30, %v4177_v30  ;;  %v4887_v23 = vsel %vm13205_vm4, %v4177_v30, -inf  ;;  %vm13208_vm6 = vmmov %vm13206_vm1  ;;  %v219_v30 = vld [vmem:[%s13155_s0 + $0x279] sm:$0xff] }
 0x22c   :  { %v2278_v26 = vpop.permute.xlu1 %2277  ;;  %v3277_v29 = vld [vmem:[#allocation3 + $0xc8] sm:$0xff]  ;;  %v4203_v2 = vcombine.high %v4201_v11, %v4201_v11  ;;  %v4922_v8 = vsel %vm13206_vm1, %v4202_v13, -inf  ;;  %v4929_v25 = vsel %vm13207_vm13, %v4201_v11, -inf  ;;  %v4888_v48 = vrot.slane %v4887_v23, 4  ;;  %vm13209_vm4 = vmmov %vm13206_vm1 }
 0x22d   :  { %v1894_v27 = vpop.permute.xlu0 %1893  ;;  %2444 = vst.msk [vmem:[#allocation3 + $0xd0] sm:$0xff] %vm2417_vm9, %v2278_v26  ;;  %8834 = vmatmul.mubr.msk.f32.gmra.mrb[24].mxu0 %vm13175_vm12, %v3277_v29  ;;  %v4917_v33 = vmax.f32 %v4915_v16, %v4916_v19  ;;  %v4923_v54 = vrot.slane %v4922_v8, 4  ;;  %v4930_v35 = vrot.slane %v4929_v25, 4  ;;  %v4186_v28 = vcombine.high %v4184_v39, %v4184_v39  ;;  %vm13210_vm13 = vmmov %vm13206_vm1 }
 0x22e   :  { %2059 = vst.msk [vmem:[#allocation3 + $0xd8] sm:$0xff] %vm2031_vm8, %v1894_v27  ;;  %394 = vrot.lane.b32.xlu1 %v218_v17, %s9098_s26  ;;  %v4936_v45 = vsel %vm13208_vm6, %v4203_v2, -inf  ;;  %v4889_v32 = vmax.f32 %v4887_v23, %v4888_v48  ;;  %v4894_v58 = vsel %vm13209_vm4, %v4185_v22, -inf  ;;  %v4901_v41 = vsel %vm13206_vm1, %v4184_v39, -inf }
 0x22f   :  { %370 = vrot.lane.b32.xlu0 %v10479_v49, %s9098_s26  ;;  %v4924_v42 = vmax.f32 %v4922_v8, %v4923_v54  ;;  %v4931_v44 = vmax.f32 %v4929_v25, %v4930_v35  ;;  %v4937_v47 = vrot.slane %v4936_v45, 4  ;;  %v4895_v49 = vrot.slane %v4894_v58, 4  ;;  %v603_v8 = vld [vmem:[%s13155_s0 + $0x272] sm:$0xff] }
 0x230   :  { %v1126_v34 = vpop.permute.xlu1 %1125  ;;  %v4890_v51 = vrot.slane %v4889_v32, 2  ;;  %v4902_v56 = vrot.slane %v4901_v41, 4  ;;  %v4908_v20 = vsel %vm13210_vm13, %v4186_v28, -inf  ;;  %vm13211_vm12 = vcmask 97352  }
 0x231   :  { %v742_v50 = vpop.permute.xlu0 %741  ;;  %1290 = vst.msk [vmem:[#allocation3 + $0xe0] sm:$0xff] %vm13211_vm12, %v1126_v34  ;;  %v4918_v57 = vrot.slane %v4917_v33, 2  ;;  %v4925_v59 = vrot.slane %v4924_v42, 2  ;;  %v4938_v60 = vmax.f32 %v4936_v45, %v4937_v47  ;;  %v4896_v12 = vmax.f32 %v4894_v58, %v4895_v49 }
 0x232   :  { %905 = vst.msk [vmem:[#allocation3 + $0xe8] sm:$0xff] %vm13176_vm5, %v742_v50  ;;  %1907 = vrot.lane.b32.xlu1 %v10507_v55, %s9101_s14  ;;  %v4891_v53 = vmax.f32 %v4889_v32, %v4890_v51  ;;  %v4903_v62 = vmax.f32 %v4901_v41, %v4902_v56  ;;  %v4909_v18 = vrot.slane %v4908_v20, 4  ;;  %v4932_v38 = vrot.slane %v4931_v44, 2 }
 0x233   :  { %1524 = vrot.lane.b32.xlu0 %v10512_v7, %s9100_s24  ;;  %v4939_v4 = vrot.slane %v4938_v60, 2  ;;  %v4897_v21 = vrot.slane %v4896_v12, 2  ;;  %v4919_v24 = vmax.f32 %v4917_v33, %v4918_v57  ;;  %v4926_v40 = vmax.f32 %v4924_v42, %v4925_v59 }
 0x234   :  { %v2663_v1 = vpop.permute.xlu1 %2662  ;;  %v4904_v5 = vrot.slane %v4903_v62, 2  ;;  %v4910_v6 = vmax.f32 %v4908_v20, %v4909_v18  ;;  %v4892_v9 = vrot.slane %v4891_v53, 1  ;;  %v4933_v11 = vmax.f32 %v4931_v44, %v4932_v38  ;;  %v604_v20 = vld [vmem:[%s13155_s0 + $0x27a] sm:$0xff] }
 0x235   :  { %v2280_v3 = vpop.permute.xlu0 %2279  ;;  %2829 = vst.msk [vmem:[#allocation3 + $0xd0] sm:$0xff] %vm2802_vm10, %v2663_v1  ;;  %v4898_v10 = vmax.f32 %v4896_v12, %v4897_v21  ;;  %v4940_v17 = vmax.f32 %v4938_v60, %v4939_v4  ;;  %v4927_v23 = vrot.slane %v4926_v40, 1  ;;  %vm13212_vm6 = vcmask 1041409   ;;  %v10624_v4 = vld [vmem:[%s13155_s0 + $0x201] sm:$0xff]  ;;  %v8286_v21 = vld [vmem:[%s13155_s0 + $0x289] sm:$0xff] }
 0x236   :  { %2445 = vst.msk [vmem:[#allocation3 + $0xd8] sm:$0xff] %vm2417_vm9, %v2280_v3  ;;  %372 = vrot.lane.b32.xlu1 %v10512_v7, %s9098_s26  ;;  %v4905_v46 = vmax.f32 %v4903_v62, %v4904_v5  ;;  %v4911_v61 = vrot.slane %v4910_v6, 2  ;;  %v4920_v7 = vrot.slane %v4919_v24, 1  ;;  %v4893_v26 = vmax.f32 %v4891_v53, %v4892_v9  ;;  %v8401_v53 = vld [vmem:[%s13155_s0 + $0x200] sm:$0xff] }
 0x237   :  { %3061 = vrot.lane.b32.xlu0 %v8527_v63, %s9104_s16  ;;  %v4899_v19 = vrot.slane %v4898_v10, 1  ;;  %v4934_v25 = vrot.slane %v4933_v11, 1  ;;  %v4941_v54 = vrot.slane %v4940_v17, 1  ;;  %v4928_v45 = vmax.f32 %v4926_v40, %v4927_v23 }
 0x238   :  { %v1511_v13 = vpop.permute.xlu1 %1510  ;;  %v4906_v39 = vrot.slane %v4905_v46, 1  ;;  %v4912_v22 = vmax.f32 %v4910_v6, %v4911_v61  ;;  %vm13213_vm4 = vcmask 48152   ;;  %vm13214_vm1 = vcmask 1046534   ;;  %v10652_v61 = vld [vmem:[%s13157_s2] ss:$0 sm:$0xff] }
 0x239   :  { %v1128_v16 = vpop.permute.xlu0 %1127  ;;  %1675 = vst.msk [vmem:[#allocation3 + $0xe0] sm:$0xff] %vm1646_vm7, %v1511_v13  ;;  %v4900_v27 = vmax.f32 %v4898_v10, %v4899_v19  ;;  %v4935_v58 = vmax.f32 %v4933_v11, %v4934_v25  ;;  %v4942_v47 = vmax.f32 %v4940_v17, %v4941_v54  ;;  %vm13215_vm13 = vcmask 1047559   ;;  %v8287_v13 = vld [vmem:[%s13155_s0 + $0x291] sm:$0xff] }
 0x23a   :  { %1291 = vst.msk [vmem:[#allocation3 + $0xe8] sm:$0xff] %vm13211_vm12, %v1128_v16  ;;  %755 = vrot.lane.b32.xlu1 %v10507_v55, %s9097_s25  ;;  %v4907_v29 = vmax.f32 %v4905_v46, %v4906_v39  ;;  %v4913_v2 = vrot.slane %v4912_v22, 1  ;;  %v4921_v55 = vmax.f32 %v4919_v24, %v4920_v7  ;;  %vm13216_vm12 = vcmask 64512   ;;  %v80_v46 = vld [vmem:[%s13155_s0 + $0x200] sm:$0xff] }
 0x23b   :  { %396 = vrot.lane.b32.xlu0 %v219_v30, %s9098_s26  ;;  %v5870_v28 = vsel %vm13212_vm6, %v4900_v27, %v4893_v26  ;;  %vm13217_vm6 = vcmask 220160   ;;  %145 = vst.msk [vmem:[#allocation3 + $0x138] sm:$0xff] %vm105_vm0, %v80_v46  ;;  %v10673_v27 = vld [vmem:[%s13155_s0 + $0x202] sm:$0xff] }
 0x23c   :  { %v3048_v48 = vpop.permute.xlu1 %3047  ;;  %v4914_v35 = vmax.f32 %v4912_v22, %v4913_v2  ;;  %v5871_v36 = vsel %vm5851_vm2, %v4907_v29, %v5870_v28  ;;  %v8350_v29 = vld [vmem:[%s13155_s0 + $0x28a] sm:$0xff] }
 0x23d   :  { %v2665_v33 = vpop.permute.xlu0 %2664  ;;  %3214 = vst.msk [vmem:[#allocation3 + $0xd0] sm:$0xff] %vm3187_vm11, %v3048_v48 }
 0x23e   :  { %2830 = vst.msk [vmem:[#allocation3 + $0xd8] sm:$0xff] %vm2802_vm10, %v2665_v33  ;;  %1909 = vrot.lane.b32.xlu1 %v8527_v63, %s9101_s14  ;;  %v5872_v32 = vsel %vm13179_vm3, %v4914_v35, %v5871_v36 }
 0x23f   :  { %779 = vrot.lane.b32.xlu0 %v603_v8, %s9097_s25  ;;  %v5873_v41 = vsel %vm13178_vm15, %v4921_v55, %v5872_v32 }
 0x240   :  { %v1513_v42 = vpop.permute.xlu1 %1512  ;;  %v5874_v34 = vsel %vm13177_vm14, %v4928_v45, %v5873_v41  ;;  %v8817_v50 = vpop.f32.mrb[12].mxu0 }
 0x241   :  { %v359_v44 = vpop.permute.xlu0 %358  ;;  %1676 = vst.msk [vmem:[#allocation3 + $0xe8] sm:$0xff] %vm1646_vm7, %v1513_v42  ;;  %v5875_v51 = vsel %vm13214_vm1, %v4935_v58, %v5874_v34  ;;  %v3650_v49 = vpop.f32.mrb[13].mxu0  ;;  %vm13218_vm1 = vmmov %vm13216_vm12  ;;  %v3656_v30 = vadd.f32 %v10652_v61, %v8817_v50 }
 0x242   :  { %521 = vst.msk [vmem:[#allocation3 + $0xf0] sm:$0xff] %vm13213_vm4, %v359_v44  ;;  %757 = vrot.lane.b32.xlu1 %v8527_v63, %s9097_s25  ;;  %v5876_v56 = vsel %vm13215_vm13, %v4942_v47, %v5875_v51  ;;  %vm13219_vm13 = vmmov %vm13217_vm6  ;;  %v3651_v11 = vadd.f32 %v10652_v61, %v3650_v49 }
 0x243   :  { %2293 = vrot.lane.b32.xlu0 %v10239_v37, %s9102_s19  ;;  %5987 = vst.msk [vmem:[#allocation2 + $0x31] sm:$0xff] %vm13216_vm12, %v5876_v56  ;;  %vm13220_vm12 = vcmask 97352   ;;  %v3922_v39 = vmax.f32 %v3656_v30, 0.0 }
 0x244   :  { %v3050_v57 = vpop.permute.xlu1 %3049  ;;  %v3278_v60 = vld [vmem:[#allocation3 + $0xd0] sm:$0xff]  ;;  %v3921_v23 = vmax.f32 %v3651_v11, 0.0 }
 0x245   :  { %v1896_v59 = vpop.permute.xlu0 %1895  ;;  %3215 = vst.msk [vmem:[#allocation3 + $0xd8] sm:$0xff] %vm3187_vm11, %v3050_v57  ;;  %8836 = vmatprep.mubr.msk.f32.mxu0 %vm13217_vm6, %v3278_v60  ;;  %vm13221_vm6 = vmmov %vm13220_vm12 }
 0x246   :  { %2060 = vst.msk [vmem:[#allocation3 + $0xe0] sm:$0xff] %vm2031_vm8, %v1896_v59  ;;  %1141 = vrot.lane.b32.xlu1 %v10239_v37, %s9099_s13  ;;  %v8464_v37 = vld [vmem:[%s13155_s0 + $0x1f9] sm:$0xff] }
 0x247   :  { %781 = vrot.lane.b32.xlu0 %v604_v20, %s9097_s25 }
 0x248   :  { %v744_v12 = vpop.permute.xlu1 %743 }
 0x249   :  { %v361_v62 = vpop.permute.xlu0 %360  ;;  %906 = vst.msk [vmem:[#allocation3 + $0xf0] sm:$0xff] %vm13176_vm5, %v744_v12 }
 0x24a   :  { %522 = vst.msk [vmem:[#allocation3 + $0xf8] sm:$0xff] %vm13213_vm4, %v361_v62  ;;  %2295 = vrot.lane.b32.xlu1 %v8401_v53, %s9102_s19  ;;  %v10607_v18 = vld [vmem:[#allocation2 + $0x30] sm:$0xff] }
 0x24b   :  { %1165 = vrot.lane.b32.xlu0 %v10262_v14, %s9099_s13  ;;  %6020 = vst.msk [vmem:[#allocation4 + $0x18] sm:$0xff] %vm13218_vm1, %v10607_v18  ;;  %vm13222_vm1 = vmmov %vm13219_vm13 }
 0x24c   :  { %v2282_v63 = vpop.permute.xlu1 %2281  ;;  %v3279_v1 = vld [vmem:[#allocation3 + $0xd8] sm:$0xff] }
 0x24d   :  { %v1898_v38 = vpop.permute.xlu0 %1897  ;;  %2446 = vst.msk [vmem:[#allocation3 + $0xe0] sm:$0xff] %vm2417_vm9, %v2282_v63  ;;  %8837 = vmatmul.mubr.msk.f32.gmra.mrb[26].mxu0 %vm13219_vm13, %v3279_v1  ;;  %vm13223_vm13 = vcmask 64512  }
 0x24e   :  { %2061 = vst.msk [vmem:[#allocation3 + $0xe8] sm:$0xff] %vm2031_vm8, %v1898_v38  ;;  %1143 = vrot.lane.b32.xlu1 %v8401_v53, %s9099_s13  ;;  %v3995_v54 = vsel %vm13223_vm13, %v3922_v39, -inf }
 0x24f   :  { %2678 = vrot.lane.b32.xlu0 %v8464_v37, %s9103_s27 }
 0x250   :  { %v1130_v14 = vpop.permute.xlu1 %1129 }
 0x251   :  { %v746_v3 = vpop.permute.xlu0 %745  ;;  %1292 = vst.msk [vmem:[#allocation3 + $0xf0] sm:$0xff] %vm13220_vm12, %v1130_v14  ;;  %vm13224_vm12 = vmmov %vm13223_vm13  ;;  %vm13228_vm13 = vcmask 58368  }
 0x252   :  { %907 = vst.msk [vmem:[#allocation3 + $0xf8] sm:$0xff] %vm13176_vm5, %v746_v3  ;;  %1526 = vrot.lane.b32.xlu1 %v8464_v37, %s9100_s24 }
 0x253   :  { %1167 = vrot.lane.b32.xlu0 %v10285_v52, %s9099_s13  ;;  %v10637_v52 = vld [vmem:[%s13155_s0 + $0x1fa] sm:$0xff] }
 0x254   :  { %v2667_v5 = vpop.permute.xlu1 %2666 }
 0x255   :  { %v2284_v6 = vpop.permute.xlu0 %2283  ;;  %2831 = vst.msk [vmem:[#allocation3 + $0xe0] sm:$0xff] %vm2802_vm10, %v2667_v5 }
 0x256   :  { %2447 = vst.msk [vmem:[#allocation3 + $0xe8] sm:$0xff] %vm2417_vm9, %v2284_v6  ;;  %2680 = vrot.lane.b32.xlu1 %v10624_v4, %s9103_s27 }
 0x257   :  { %1550 = vrot.lane.b32.xlu0 %v8286_v21, %s9100_s24 }
 0x258   :  { %v1515_v24 = vpop.permute.xlu1 %1514 }
 0x259   :  { %v1132_v40 = vpop.permute.xlu0 %1131  ;;  %1677 = vst.msk [vmem:[#allocation3 + $0xf0] sm:$0xff] %vm1646_vm7, %v1515_v24  ;;  %v8351_v24 = vld [vmem:[%s13155_s0 + $0x292] sm:$0xff] }
 0x25a   :  { %1293 = vst.msk [vmem:[#allocation3 + $0xf8] sm:$0xff] %vm13221_vm6, %v1132_v40  ;;  %374 = vrot.lane.b32.xlu1 %v8464_v37, %s9098_s26  ;;  %vm13225_vm6 = vmmov %vm13224_vm12 }
 0x25b   :  { %3063 = vrot.lane.b32.xlu0 %v10637_v52, %s9104_s16  ;;  %v3992_v28 = vsel %vm13225_vm6, %v3921_v23, -inf }
 0x25c   :  { %v3052_v9 = vpop.permute.xlu1 %3051 }
 0x25d   :  { %v2669_v10 = vpop.permute.xlu0 %2668  ;;  %3216 = vst.msk [vmem:[#allocation3 + $0xe0] sm:$0xff] %vm3187_vm11, %v3052_v9 }
 0x25e   :  { %2832 = vst.msk [vmem:[#allocation3 + $0xe8] sm:$0xff] %vm2802_vm10, %v2669_v10  ;;  %1528 = vrot.lane.b32.xlu1 %v10624_v4, %s9100_s24 }
 0x25f   :  { %398 = vrot.lane.b32.xlu0 %v8286_v21, %s9098_s26 }
 0x260   :  { %v1517_v16 = vpop.permute.xlu1 %1516  ;;  %v8820_v19 = vpop.f32.mrb[14].mxu0 }
 0x261   :  { %v363_v17 = vpop.permute.xlu0 %362  ;;  %1678 = vst.msk [vmem:[#allocation3 + $0xf8] sm:$0xff] %vm1646_vm7, %v1517_v16  ;;  %v3666_v22 = vadd.f32 %v10652_v61, %v8820_v19  ;;  %v3660_v7 = vpop.f32.mrb[15].mxu0 }
 0x262   :  { %523 = vst.msk [vmem:[#allocation3 + $0x100] sm:$0xff] %vm13213_vm4, %v363_v17  ;;  %1911 = vrot.lane.b32.xlu1 %v10637_v52, %s9101_s14  ;;  %v3661_v26 = vadd.f32 %v10652_v61, %v3660_v7  ;;  %vm13226_vm4 = vmmov %vm13225_vm6 }
 0x263   :  { %1552 = vrot.lane.b32.xlu0 %v8287_v13, %s9100_s24  ;;  %v3924_v2 = vmax.f32 %v3666_v22, 0.0 }
 0x264   :  { %v3054_v8 = vpop.permute.xlu1 %3053  ;;  %v3280_v48 = vld [vmem:[#allocation3 + $0xe0] sm:$0xff]  ;;  %v3923_v33 = vmax.f32 %v3661_v26, 0.0 }
 0x265   :  { %v1900_v25 = vpop.permute.xlu0 %1899  ;;  %3217 = vst.msk [vmem:[#allocation3 + $0xe8] sm:$0xff] %vm3187_vm11, %v3054_v8  ;;  %8839 = vmatprep.mubr.msk.f32.mxu0 %vm13222_vm1, %v3280_v48  ;;  %v3996_v35 = vsel %vm13224_vm12, %v3924_v2, -inf  ;;  %vm13227_vm1 = vcmask 48152   ;;  %vm13229_vm12 = vmmov %vm13228_vm13  ;;  %v8402_v2 = vld [vmem:[%s13155_s0 + $0x210] sm:$0xff] }
 0x266   :  { %2062 = vst.msk [vmem:[#allocation3 + $0xf0] sm:$0xff] %vm2031_vm8, %v1900_v25  ;;  %3065 = vrot.lane.b32.xlu1 %v10673_v27, %s9104_s16  ;;  %v3997_v55 = vmax.f32 %v3995_v54, %v3996_v35  ;;  %v3993_v36 = vsel %vm13226_vm4, %v3923_v33, -inf  ;;  %vm13230_vm6 = vmmov %vm13229_vm12 }
 0x267   :  { %1935 = vrot.lane.b32.xlu0 %v8350_v29, %s9101_s14  ;;  %v3994_v45 = vmax.f32 %v3992_v28, %v3993_v36  ;;  %vm13231_vm4 = vmmov %vm13230_vm6 }
 0x268   :  { %v748_v32 = vpop.permute.xlu1 %747  ;;  %v4221_v41 = vcombine.high %v3997_v55, %v3997_v55  ;;  %v4228_v42 = vrot.slane %v3997_v55, %v10139_v0 }
 0x269   :  { %v365_v58 = vpop.permute.xlu0 %364  ;;  %908 = vst.msk [vmem:[#allocation3 + $0x100] sm:$0xff] %vm13176_vm5, %v748_v32  ;;  %v4204_v44 = vcombine.high %v3994_v45, %v3994_v45  ;;  %v4211_v47 = vrot.slane %v3994_v45, %v10139_v0 }
 0x26a   :  { %524 = vst.msk [vmem:[#allocation3 + $0x108] sm:$0xff] %vm13227_vm1, %v365_v58  ;;  %400 = vrot.lane.b32.xlu1 %v8287_v13, %s9098_s26  ;;  %v4235_v34 = vrot.slane %v4221_v41, %v10139_v0  ;;  %v4236_v50 = vcombine.high %v4228_v42, %v4228_v42  ;;  %v4971_v51 = vsel %vm13228_vm13, %v4228_v42, -inf  ;;  %vm13232_vm1 = vcmask 220160   ;;  %vm13233_vm13 = vmmov %vm13231_vm4 }
 0x26b   :  { %376 = vrot.lane.b32.xlu0 %v10624_v4, %s9098_s26  ;;  %v4972_v49 = vrot.slane %v4971_v51, 4  ;;  %v4218_v56 = vrot.slane %v4204_v44, %v10139_v0  ;;  %v4219_v20 = vcombine.high %v4211_v47, %v4211_v47  ;;  %v4943_v57 = vsel %vm13229_vm12, %v4211_v47, -inf  ;;  %vm13234_vm12 = vmmov %vm13231_vm4 }
 0x26c   :  { %v2286_v59 = vpop.permute.xlu1 %2285  ;;  %v3281_v53 = vld [vmem:[#allocation3 + $0xe8] sm:$0xff]  ;;  %v4237_v12 = vcombine.high %v4235_v34, %v4235_v34  ;;  %v4978_v62 = vsel %vm13230_vm6, %v4236_v50, -inf  ;;  %v4985_v37 = vsel %vm13231_vm4, %v4235_v34, -inf  ;;  %v4944_v63 = vrot.slane %v4943_v57, 4  ;;  %vm13235_vm6 = vmmov %vm13231_vm4 }
 0x26d   :  { %v1902_v60 = vpop.permute.xlu0 %1901  ;;  %2448 = vst.msk [vmem:[#allocation3 + $0xf0] sm:$0xff] %vm2417_vm9, %v2286_v59  ;;  %8840 = vmatmul.mubr.msk.f32.gmra.mrb[28].mxu0 %vm13232_vm1, %v3281_v53  ;;  %v4973_v38 = vmax.f32 %v4971_v51, %v4972_v49  ;;  %v4979_v1 = vrot.slane %v4978_v62, 4  ;;  %v4986_v14 = vrot.slane %v4985_v37, 4  ;;  %v4220_v3 = vcombine.high %v4218_v56, %v4218_v56 }
 0x26e   :  { %2063 = vst.msk [vmem:[#allocation3 + $0xf8] sm:$0xff] %vm2031_vm8, %v1902_v60  ;;  %783 = vrot.lane.b32.xlu1 %v8350_v29, %s9097_s25  ;;  %v4992_v4 = vsel %vm13233_vm13, %v4237_v12, -inf  ;;  %v4945_v21 = vmax.f32 %v4943_v57, %v4944_v63  ;;  %v4950_v5 = vsel %vm13234_vm12, %v4219_v20, -inf  ;;  %v4957_v6 = vsel %vm13235_vm6, %v4218_v56, -inf  ;;  %v8414_v29 = vld [vmem:[%s13155_s0 + $0x2a0] sm:$0xff] }
 0x26f   :  { %759 = vrot.lane.b32.xlu0 %v10637_v52, %s9097_s25  ;;  %v4980_v40 = vmax.f32 %v4978_v62, %v4979_v1  ;;  %v4987_v9 = vmax.f32 %v4985_v37, %v4986_v14  ;;  %v4993_v10 = vrot.slane %v4992_v4, 4  ;;  %v4951_v13 = vrot.slane %v4950_v5, 4 }
 0x270   :  { %v1134_v46 = vpop.permute.xlu1 %1133  ;;  %v4946_v11 = vrot.slane %v4945_v21, 2  ;;  %v4958_v16 = vrot.slane %v4957_v6, 4  ;;  %v4964_v52 = vsel %vm13231_vm4, %v4220_v3, -inf  ;;  %vm13236_vm1 = vcmask 97352  }
 0x271   :  { %v750_v30 = vpop.permute.xlu0 %749  ;;  %1294 = vst.msk [vmem:[#allocation3 + $0x100] sm:$0xff] %vm13236_vm1, %v1134_v46  ;;  %v4974_v17 = vrot.slane %v4973_v38, 2  ;;  %v4981_v19 = vrot.slane %v4980_v40, 2  ;;  %v4994_v39 = vmax.f32 %v4992_v4, %v4993_v10  ;;  %v4952_v7 = vmax.f32 %v4950_v5, %v4951_v13  ;;  %vm13237_vm13 = vmmov %vm13236_vm1  ;;  %v8403_v5 = vld [vmem:[%s13155_s0 + $0x218] sm:$0xff] }
 0x272   :  { %909 = vst.msk [vmem:[#allocation3 + $0x108] sm:$0xff] %vm13176_vm5, %v750_v30  ;;  %1937 = vrot.lane.b32.xlu1 %v8351_v24, %s9101_s14  ;;  %v4947_v22 = vmax.f32 %v4945_v21, %v4946_v11  ;;  %v4959_v23 = vmax.f32 %v4957_v6, %v4958_v16  ;;  %v4965_v26 = vrot.slane %v4964_v52, 4  ;;  %v4988_v8 = vrot.slane %v4987_v9, 2  ;;  %v8415_v21 = vld [vmem:[%s13155_s0 + $0x2a8] sm:$0xff] }
 0x273   :  { %1913 = vrot.lane.b32.xlu0 %v10673_v27, %s9101_s14  ;;  %v4995_v33 = vrot.slane %v4994_v39, 2  ;;  %v4953_v54 = vrot.slane %v4952_v7, 2  ;;  %v4975_v55 = vmax.f32 %v4973_v38, %v4974_v17  ;;  %v4982_v36 = vmax.f32 %v4980_v40, %v4981_v19  ;;  %v8466_v17 = vld [vmem:[%s13155_s0 + $0x211] sm:$0xff] }
 0x274   :  { %v2671_v25 = vpop.permute.xlu1 %2670  ;;  %v4960_v35 = vrot.slane %v4959_v23, 2  ;;  %v4966_v28 = vmax.f32 %v4964_v52, %v4965_v26  ;;  %v4948_v45 = vrot.slane %v4947_v22, 1  ;;  %v4989_v42 = vmax.f32 %v4987_v9, %v4988_v8  ;;  %v8478_v52 = vld [vmem:[%s13155_s0 + $0x2a1] sm:$0xff] }
 0x275   :  { %v2288_v48 = vpop.permute.xlu0 %2287  ;;  %2833 = vst.msk [vmem:[#allocation3 + $0xf0] sm:$0xff] %vm2802_vm10, %v2671_v25  ;;  %v4954_v32 = vmax.f32 %v4952_v7, %v4953_v54  ;;  %v4996_v34 = vmax.f32 %v4994_v39, %v4995_v33  ;;  %v4976_v56 = vrot.slane %v4975_v55, 1  ;;  %v4983_v20 = vrot.slane %v4982_v36, 1  ;;  %v93_v25 = vld [vmem:[%s13155_s0 + $0x2a0] sm:$0xff]  ;;  %v10795_v33 = vld [vmem:[%s13155_s0 + $0x2a9] sm:$0xff] }
 0x276   :  { %2449 = vst.msk [vmem:[#allocation3 + $0xf8] sm:$0xff] %vm2417_vm9, %v2288_v48  ;;  %2321 = vrot.lane.b32.xlu1 %v8414_v29, %s9102_s19  ;;  %v4961_v58 = vmax.f32 %v4959_v23, %v4960_v35  ;;  %v4967_v41 = vrot.slane %v4966_v28, 2  ;;  %v4949_v57 = vmax.f32 %v4947_v22, %v4948_v45  ;;  %v4990_v12 = vrot.slane %v4989_v42, 1  ;;  %v81_v48 = vld [vmem:[%s13155_s0 + $0x210] sm:$0xff]  ;;  %v10800_v54 = vld [vmem:[%s13155_s0 + $0x219] sm:$0xff] }
 0x277   :  { %2297 = vrot.lane.b32.xlu0 %v8402_v2, %s9102_s19  ;;  %v4955_v50 = vrot.slane %v4954_v32, 1  ;;  %v4997_v63 = vrot.slane %v4996_v34, 1  ;;  %vm13238_vm12 = vcmask 1041409   ;;  %v4977_v14 = vmax.f32 %v4975_v55, %v4976_v56  ;;  %158 = vst.msk [vmem:[#allocation3 + $0x1a0] sm:$0xff] %vm105_vm0, %v93_v25  ;;  %146 = vst.msk [vmem:[#allocation3 + $0x140] sm:$0xff] %vm105_vm0, %v81_v48  ;;  %v10811_v55 = vld [vmem:[%s13155_s0 + $0x2a2] sm:$0xff] }
 0x278   :  { %v1519_v44 = vpop.permute.xlu1 %1518  ;;  %v4962_v51 = vrot.slane %v4961_v58, 1  ;;  %v4968_v49 = vmax.f32 %v4966_v28, %v4967_v41  ;;  %v4991_v6 = vmax.f32 %v4989_v42, %v4990_v12  ;;  %vm13239_vm6 = vcmask 48152  }
 0x279   :  { %v1136_v47 = vpop.permute.xlu0 %1135  ;;  %1679 = vst.msk [vmem:[#allocation3 + $0x100] sm:$0xff] %vm1646_vm7, %v1519_v44  ;;  %v4956_v59 = vmax.f32 %v4954_v32, %v4955_v50  ;;  %v4998_v10 = vmax.f32 %v4996_v34, %v4997_v63  ;;  %vm13240_vm4 = vcmask 1046534   ;;  %vm13241_vm1 = vcmask 1047559   ;;  %v82_v34 = vld [vmem:[%s13155_s0 + $0x218] sm:$0xff] }
 0x27a   :  { %1295 = vst.msk [vmem:[#allocation3 + $0x108] sm:$0xff] %vm13237_vm13, %v1136_v47  ;;  %785 = vrot.lane.b32.xlu1 %v8351_v24, %s9097_s25  ;;  %v4963_v60 = vmax.f32 %v4961_v58, %v4962_v51  ;;  %v4969_v53 = vrot.slane %v4968_v49, 1  ;;  %vm13242_vm13 = vcmask 64512   ;;  %v94_v47 = vld [vmem:[%s13155_s0 + $0x2a8] sm:$0xff] }
 0x27b   :  { %761 = vrot.lane.b32.xlu0 %v10673_v27, %s9097_s25  ;;  %v5877_v1 = vsel %vm13238_vm12, %v4956_v59, %v4949_v57  ;;  %v4984_v27 = vmax.f32 %v4982_v36, %v4983_v20  ;;  %vm13243_vm12 = vcmask 220160   ;;  %v10816_v36 = vld [vmem:[%s13155_s0 + $0x212] sm:$0xff]  ;;  %159 = vst.msk [vmem:[#allocation3 + $0x1a8] sm:$0xff] %vm105_vm0, %v94_v47  ;;  %147 = vst.msk [vmem:[#allocation3 + $0x148] sm:$0xff] %vm105_vm0, %v82_v34 }
 0x27c   :  { %v3056_v62 = vpop.permute.xlu1 %3055  ;;  %v4970_v38 = vmax.f32 %v4968_v49, %v4969_v53  ;;  %v5878_v3 = vsel %vm5851_vm2, %v4963_v60, %v5877_v1 }
 0x27d   :  { %v2673_v37 = vpop.permute.xlu0 %2672  ;;  %3218 = vst.msk [vmem:[#allocation3 + $0xf0] sm:$0xff] %vm3187_vm11, %v3056_v62  ;;  %v10857_v62 = vld [vmem:[%s13155_s0 + $0x2aa] sm:$0xff] }
 0x27e   :  { %2834 = vst.msk [vmem:[#allocation3 + $0xf8] sm:$0xff] %vm2802_vm10, %v2673_v37  ;;  %1169 = vrot.lane.b32.xlu1 %v8414_v29, %s9099_s13  ;;  %v5879_v4 = vsel %vm13179_vm3, %v4970_v38, %v5878_v3  ;;  %v10862_v37 = vld [vmem:[%s13155_s0 + $0x21a] sm:$0xff] }
 0x27f   :  { %1145 = vrot.lane.b32.xlu0 %v8402_v2, %s9099_s13  ;;  %v5880_v24 = vsel %vm13178_vm15, %v4977_v14, %v5879_v4 }
 0x280   :  { %v1521_v40 = vpop.permute.xlu1 %1520  ;;  %v5881_v46 = vsel %vm13177_vm14, %v4984_v27, %v5880_v24  ;;  %v10751_v30 = vpop.f32.mrb[16].mxu0 }
 0x281   :  { %v367_v9 = vpop.permute.xlu0 %366  ;;  %1680 = vst.msk [vmem:[#allocation3 + $0x108] sm:$0xff] %vm1646_vm7, %v1521_v40  ;;  %v5882_v11 = vsel %vm13240_vm4, %v4991_v6, %v5881_v46  ;;  %v10756_v13 = vpop.f32.mrb[17].mxu0  ;;  %vm13244_vm4 = vmmov %vm13242_vm13  ;;  %v3676_v50 = vadd.f32 %v10652_v61, %v10751_v30 }
 0x282   :  { %525 = vst.msk [vmem:[#allocation3 + $0x110] sm:$0xff] %vm13239_vm6, %v367_v9  ;;  %2323 = vrot.lane.b32.xlu1 %v8415_v21, %s9102_s19  ;;  %v5883_v16 = vsel %vm13241_vm1, %v4998_v10, %v5882_v11  ;;  %vm13245_vm1 = vmmov %vm13243_vm12  ;;  %v3671_v51 = vadd.f32 %v10652_v61, %v10756_v13 }
 0x283   :  { %2299 = vrot.lane.b32.xlu0 %v8403_v5, %s9102_s19  ;;  %5988 = vst.msk [vmem:[#allocation2 + $0x41] sm:$0xff] %vm13242_vm13, %v5883_v16  ;;  %vm13246_vm13 = vcmask 97352   ;;  %v3926_v57 = vmax.f32 %v3676_v50, 0.0 }
 0x284   :  { %v3058_v19 = vpop.permute.xlu1 %3057  ;;  %v3282_v22 = vld [vmem:[#allocation3 + $0xf0] sm:$0xff]  ;;  %v3925_v53 = vmax.f32 %v3671_v51, 0.0 }
 0x285   :  { %v1904_v39 = vpop.permute.xlu0 %1903  ;;  %3219 = vst.msk [vmem:[#allocation3 + $0xf8] sm:$0xff] %vm3187_vm11, %v3058_v19  ;;  %8842 = vmatprep.mubr.msk.f32.mxu0 %vm13243_vm12, %v3282_v22  ;;  %vm13247_vm12 = vmmov %vm13246_vm13 }
 0x286   :  { %2064 = vst.msk [vmem:[#allocation3 + $0x100] sm:$0xff] %vm2031_vm8, %v1904_v39  ;;  %2706 = vrot.lane.b32.xlu1 %v8478_v52, %s9103_s27 }
 0x287   :  { %2682 = vrot.lane.b32.xlu0 %v8466_v17, %s9103_s27 }
 0x288   :  { %v752_v7 = vpop.permute.xlu1 %751 }
 0x289   :  { %v369_v23 = vpop.permute.xlu0 %368  ;;  %910 = vst.msk [vmem:[#allocation3 + $0x110] sm:$0xff] %vm13176_vm5, %v752_v7 }
 0x28a   :  { %526 = vst.msk [vmem:[#allocation3 + $0x118] sm:$0xff] %vm13239_vm6, %v369_v23  ;;  %1171 = vrot.lane.b32.xlu1 %v8415_v21, %s9099_s13  ;;  %v10775_v26 = vld [vmem:[#allocation2 + $0x40] sm:$0xff] }
 0x28b   :  { %1147 = vrot.lane.b32.xlu0 %v8403_v5, %s9099_s13  ;;  %6021 = vst.msk [vmem:[#allocation4 + $0x20] sm:$0xff] %vm13244_vm4, %v10775_v26  ;;  %vm13248_vm4 = vmmov %vm13239_vm6 }
 0x28c   :  { %v2290_v29 = vpop.permute.xlu1 %2289  ;;  %v3283_v8 = vld [vmem:[#allocation3 + $0xf8] sm:$0xff] }
 0x28d   :  { %v1906_v2 = vpop.permute.xlu0 %1905  ;;  %2450 = vst.msk [vmem:[#allocation3 + $0x100] sm:$0xff] %vm2417_vm9, %v2290_v29  ;;  %8843 = vmatmul.mubr.msk.f32.gmra.mrb[30].mxu0 %vm13245_vm1, %v3283_v8 }
 0x28e   :  { %2065 = vst.msk [vmem:[#allocation3 + $0x108] sm:$0xff] %vm2031_vm8, %v1906_v2  ;;  %1554 = vrot.lane.b32.xlu1 %v8478_v52, %s9100_s24 }
 0x28f   :  { %1530 = vrot.lane.b32.xlu0 %v8466_v17, %s9100_s24 }
 0x290   :  { %v1138_v35 = vpop.permute.xlu1 %1137 }
 0x291   :  { %v754_v28 = vpop.permute.xlu0 %753  ;;  %1296 = vst.msk [vmem:[#allocation3 + $0x110] sm:$0xff] %vm13246_vm13, %v1138_v35  ;;  %vm13249_vm13 = vcmask 64512  }
 0x292   :  { %911 = vst.msk [vmem:[#allocation3 + $0x118] sm:$0xff] %vm13176_vm5, %v754_v28  ;;  %2708 = vrot.lane.b32.xlu1 %v10795_v33, %s9103_s27  ;;  %v4001_v27 = vsel %vm13249_vm13, %v3926_v57, -inf }
 0x293   :  { %2684 = vrot.lane.b32.xlu0 %v10800_v54, %s9103_s27 }
 0x294   :  { %v2675_v45 = vpop.permute.xlu1 %2674 }
 0x295   :  { %v2292_v32 = vpop.permute.xlu0 %2291  ;;  %2835 = vst.msk [vmem:[#allocation3 + $0x100] sm:$0xff] %vm2802_vm10, %v2675_v45 }
 0x296   :  { %2451 = vst.msk [vmem:[#allocation3 + $0x108] sm:$0xff] %vm2417_vm9, %v2292_v32  ;;  %3091 = vrot.lane.b32.xlu1 %v10811_v55, %s9104_s16 }
 0x297   :  { %3067 = vrot.lane.b32.xlu0 %v10816_v36, %s9104_s16 }
 0x298   :  { %v1523_v58 = vpop.permute.xlu1 %1522 }
 0x299   :  { %v1140_v41 = vpop.permute.xlu0 %1139  ;;  %1681 = vst.msk [vmem:[#allocation3 + $0x110] sm:$0xff] %vm1646_vm7, %v1523_v58 }
 0x29a   :  { %1297 = vst.msk [vmem:[#allocation3 + $0x118] sm:$0xff] %vm13247_vm12, %v1140_v41  ;;  %402 = vrot.lane.b32.xlu1 %v8478_v52, %s9098_s26  ;;  %vm13250_vm12 = vmmov %vm13249_vm13  ;;  %vm13254_vm13 = vcmask 58368  }
 0x29b   :  { %378 = vrot.lane.b32.xlu0 %v8466_v17, %s9098_s26 }
 0x29c   :  { %v3060_v42 = vpop.permute.xlu1 %3059 }
 0x29d   :  { %v2677_v44 = vpop.permute.xlu0 %2676  ;;  %3220 = vst.msk [vmem:[#allocation3 + $0x100] sm:$0xff] %vm3187_vm11, %v3060_v42 }
 0x29e   :  { %2836 = vst.msk [vmem:[#allocation3 + $0x108] sm:$0xff] %vm2802_vm10, %v2677_v44  ;;  %1556 = vrot.lane.b32.xlu1 %v10795_v33, %s9100_s24 }
 0x29f   :  { %1532 = vrot.lane.b32.xlu0 %v10800_v54, %s9100_s24 }
 0x2a0   :  { %v395_v49 = vpop.permute.xlu1 %394  ;;  %v8826_v20 = vpop.f32.mrb[18].mxu0 }
 0x2a1   :  { %v371_v56 = vpop.permute.xlu0 %370  ;;  %539 = vst.msk [vmem:[#allocation3 + $0x180] sm:$0xff] %vm13239_vm6, %v395_v49  ;;  %v3686_v59 = vadd.f32 %v10652_v61, %v8826_v20  ;;  %v3680_v60 = vpop.f32.mrb[19].mxu0  ;;  %vm13251_vm6 = vmmov %vm13250_vm12 }
 0x2a2   :  { %527 = vst.msk [vmem:[#allocation3 + $0x120] sm:$0xff] %vm13248_vm4, %v371_v56  ;;  %1939 = vrot.lane.b32.xlu1 %v10811_v55, %s9101_s14  ;;  %v3681_v12 = vadd.f32 %v10652_v61, %v3680_v60  ;;  %v3998_v21 = vsel %vm13251_vm6, %v3925_v53, -inf  ;;  %vm13252_vm4 = vmmov %vm13251_vm6 }
 0x2a3   :  { %1915 = vrot.lane.b32.xlu0 %v10816_v36, %s9101_s14  ;;  %v3928_v63 = vmax.f32 %v3686_v59, 0.0 }
 0x2a4   :  { %v1908_v38 = vpop.permute.xlu1 %1907  ;;  %v3284_v14 = vld [vmem:[#allocation3 + $0x100] sm:$0xff]  ;;  %v3927_v3 = vmax.f32 %v3681_v12, 0.0 }
 0x2a5   :  { %v1525_v1 = vpop.permute.xlu0 %1524  ;;  %2066 = vst.msk [vmem:[#allocation3 + $0x110] sm:$0xff] %vm2031_vm8, %v1908_v38  ;;  %8845 = vmatprep.mubr.msk.f32.mxu0 %vm13245_vm1, %v3284_v14  ;;  %v4002_v4 = vsel %vm13250_vm12, %v3928_v63, -inf  ;;  %vm13253_vm1 = vcmask 48152   ;;  %vm13255_vm12 = vmmov %vm13254_vm13  ;;  %v8416_v63 = vld [vmem:[%s13155_s0 + $0x2b8] sm:$0xff]  ;;  %v8404_v38 = vld [vmem:[%s13155_s0 + $0x228] sm:$0xff] }
 0x2a6   :  { %1682 = vst.msk [vmem:[#allocation3 + $0x118] sm:$0xff] %vm1646_vm7, %v1525_v1  ;;  %3093 = vrot.lane.b32.xlu1 %v10857_v62, %s9104_s16  ;;  %v4003_v5 = vmax.f32 %v4001_v27, %v4002_v4  ;;  %v3999_v6 = vsel %vm13252_vm4, %v3927_v3, -inf  ;;  %vm13256_vm6 = vmmov %vm13255_vm12 }
 0x2a7   :  { %3069 = vrot.lane.b32.xlu0 %v10862_v37, %s9104_s16  ;;  %v4000_v24 = vmax.f32 %v3998_v21, %v3999_v6  ;;  %vm13257_vm4 = vmmov %vm13256_vm6 }
 0x2a8   :  { %v373_v40 = vpop.permute.xlu1 %372  ;;  %v4255_v10 = vcombine.high %v4003_v5, %v4003_v5  ;;  %v4262_v46 = vrot.slane %v4003_v5, %v10139_v0 }
 0x2a9   :  { %v3062_v9 = vpop.permute.xlu0 %3061  ;;  %528 = vst.msk [vmem:[#allocation3 + $0x128] sm:$0xff] %vm13253_vm1, %v373_v40  ;;  %v4238_v30 = vcombine.high %v4000_v24, %v4000_v24  ;;  %v4245_v11 = vrot.slane %v4000_v24, %v10139_v0 }
 0x2aa   :  { %3221 = vst.msk [vmem:[#allocation3 + $0x108] sm:$0xff] %vm3187_vm11, %v3062_v9  ;;  %404 = vrot.lane.b32.xlu1 %v10795_v33, %s9098_s26  ;;  %v4269_v13 = vrot.slane %v4255_v10, %v10139_v0  ;;  %v4270_v16 = vcombine.high %v4262_v46, %v4262_v46  ;;  %v5027_v52 = vsel %vm13254_vm13, %v4262_v46, -inf  ;;  %vm13258_vm13 = vmmov %vm13257_vm4 }
 0x2ab   :  { %380 = vrot.lane.b32.xlu0 %v10800_v54, %s9098_s26  ;;  %v5028_v17 = vrot.slane %v5027_v52, 4  ;;  %v4252_v19 = vrot.slane %v4238_v30, %v10139_v0  ;;  %v4253_v39 = vcombine.high %v4245_v11, %v4245_v11  ;;  %v4999_v22 = vsel %vm13255_vm12, %v4245_v11, -inf  ;;  %vm13259_vm12 = vmmov %vm13257_vm4 }
 0x2ac   :  { %v756_v7 = vpop.permute.xlu1 %755  ;;  %v4271_v29 = vcombine.high %v4269_v13, %v4269_v13  ;;  %v5034_v2 = vsel %vm13256_vm6, %v4270_v16, -inf  ;;  %v5041_v8 = vsel %vm13257_vm4, %v4269_v13, -inf  ;;  %v5000_v25 = vrot.slane %v4999_v22, 4  ;;  %vm13260_vm6 = vmmov %vm13257_vm4 }
 0x2ad   :  { %v397_v23 = vpop.permute.xlu0 %396  ;;  %912 = vst.msk [vmem:[#allocation3 + $0x120] sm:$0xff] %vm13176_vm5, %v756_v7  ;;  %v5029_v48 = vmax.f32 %v5027_v52, %v5028_v17  ;;  %v5035_v33 = vrot.slane %v5034_v2, 4  ;;  %v5042_v54 = vrot.slane %v5041_v8, 4  ;;  %v4254_v35 = vcombine.high %v4252_v19, %v4252_v19 }
 0x2ae   :  { %540 = vst.msk [vmem:[#allocation3 + $0x188] sm:$0xff] %vm13253_vm1, %v397_v23  ;;  %787 = vrot.lane.b32.xlu1 %v10811_v55, %s9097_s25  ;;  %v5048_v28 = vsel %vm13258_vm13, %v4271_v29, -inf  ;;  %v5001_v45 = vmax.f32 %v4999_v22, %v5000_v25  ;;  %v5006_v32 = vsel %vm13259_vm12, %v4253_v39, -inf  ;;  %v5013_v58 = vsel %vm13260_vm6, %v4252_v19, -inf }
 0x2af   :  { %763 = vrot.lane.b32.xlu0 %v10816_v36, %s9097_s25  ;;  %v5036_v41 = vmax.f32 %v5034_v2, %v5035_v33  ;;  %v5043_v42 = vmax.f32 %v5041_v8, %v5042_v54  ;;  %v5049_v44 = vrot.slane %v5048_v28, 4  ;;  %v5007_v49 = vrot.slane %v5006_v32, 4 }
 0x2b0   :  { %v1910_v47 = vpop.permute.xlu1 %1909  ;;  %v5002_v51 = vrot.slane %v5001_v45, 2  ;;  %v5014_v56 = vrot.slane %v5013_v58, 4  ;;  %v5020_v55 = vsel %vm13257_vm4, %v4254_v35, -inf  ;;  %vm13261_vm1 = vcmask 220160  }
 0x2b1   :  { %v780_v34 = vpop.permute.xlu0 %779  ;;  %v3285_v50 = vld [vmem:[#allocation3 + $0x108] sm:$0xff]  ;;  %2067 = vst.msk [vmem:[#allocation3 + $0x118] sm:$0xff] %vm2031_vm8, %v1910_v47  ;;  %v5030_v36 = vrot.slane %v5029_v48, 2  ;;  %v5037_v20 = vrot.slane %v5036_v41, 2  ;;  %v5050_v57 = vmax.f32 %v5048_v28, %v5049_v44  ;;  %v5008_v60 = vmax.f32 %v5006_v32, %v5007_v49  ;;  %v8417_v32 = vld [vmem:[%s13155_s0 + $0x2c0] sm:$0xff] }
 0x2b2   :  { %924 = vst.msk [vmem:[#allocation3 + $0x180] sm:$0xff] %vm13176_vm5, %v780_v34  ;;  %8846 = vmatmul.mubr.msk.f32.gmra.mrb[32].mxu0 %vm13261_vm1, %v3285_v50  ;;  %1941 = vrot.lane.b32.xlu1 %v10857_v62, %s9101_s14  ;;  %v5003_v59 = vmax.f32 %v5001_v45, %v5002_v51  ;;  %v5015_v53 = vmax.f32 %v5013_v58, %v5014_v56  ;;  %v5021_v12 = vrot.slane %v5020_v55, 4  ;;  %v5044_v1 = vrot.slane %v5043_v42, 2  ;;  %v8405_v58 = vld [vmem:[%s13155_s0 + $0x230] sm:$0xff] }
 0x2b3   :  { %1917 = vrot.lane.b32.xlu0 %v10862_v37, %s9101_s14  ;;  %v5051_v27 = vrot.slane %v5050_v57, 2  ;;  %v5009_v4 = vrot.slane %v5008_v60, 2  ;;  %v5031_v6 = vmax.f32 %v5029_v48, %v5030_v36  ;;  %v5038_v24 = vmax.f32 %v5036_v41, %v5037_v20  ;;  %v8480_v36 = vld [vmem:[%s13155_s0 + $0x2b9] sm:$0xff]  ;;  %v8468_v20 = vld [vmem:[%s13155_s0 + $0x229] sm:$0xff] }
 0x2b4   :  { %v758_v14 = vpop.permute.xlu1 %757  ;;  %v5016_v21 = vrot.slane %v5015_v53, 2  ;;  %v5022_v5 = vmax.f32 %v5020_v55, %v5021_v12  ;;  %v5004_v40 = vrot.slane %v5003_v59, 1  ;;  %v5045_v30 = vmax.f32 %v5043_v42, %v5044_v1  ;;  %v95_v1 = vld [vmem:[%s13155_s0 + $0x2b8] sm:$0xff] }
 0x2b5   :  { %v2294_v3 = vpop.permute.xlu0 %2293  ;;  %913 = vst.msk [vmem:[#allocation3 + $0x128] sm:$0xff] %vm13176_vm5, %v758_v14  ;;  %v5010_v9 = vmax.f32 %v5008_v60, %v5009_v4  ;;  %v5052_v16 = vmax.f32 %v5050_v57, %v5051_v27  ;;  %vm13262_vm13 = vcmask 97352   ;;  %v5032_v39 = vrot.slane %v5031_v6, 1  ;;  %v83_v14 = vld [vmem:[%s13155_s0 + $0x228] sm:$0xff]  ;;  %v10986_v27 = vld [vmem:[%s13155_s0 + $0x231] sm:$0xff] }
 0x2b6   :  { %2452 = vst.msk [vmem:[#allocation3 + $0x110] sm:$0xff] %vm2417_vm9, %v2294_v3  ;;  %2325 = vrot.lane.b32.xlu1 %v8416_v63, %s9102_s19  ;;  %v5017_v10 = vmax.f32 %v5015_v53, %v5016_v21  ;;  %v5023_v46 = vrot.slane %v5022_v5, 2  ;;  %v5039_v22 = vrot.slane %v5038_v24, 1  ;;  %v5005_v7 = vmax.f32 %v5003_v59, %v5004_v40  ;;  %vm13264_vm6 = vmmov %vm13262_vm13  ;;  %v10981_v3 = vld [vmem:[%s13155_s0 + $0x2c1] sm:$0xff] }
 0x2b7   :  { %2301 = vrot.lane.b32.xlu0 %v8404_v38, %s9102_s19  ;;  %v5011_v52 = vrot.slane %v5010_v9, 1  ;;  %v5046_v8 = vrot.slane %v5045_v30, 1  ;;  %v5053_v33 = vrot.slane %v5052_v16, 1  ;;  %vm13263_vm12 = vcmask 1041409   ;;  %vm13265_vm4 = vmmov %vm13264_vm6  ;;  %160 = vst.msk [vmem:[#allocation3 + $0x1b0] sm:$0xff] %vm105_vm0, %v95_v1 }
 0x2b8   :  { %v1142_v11 = vpop.permute.xlu1 %1141  ;;  %v5018_v17 = vrot.slane %v5017_v10, 1  ;;  %v5024_v19 = vmax.f32 %v5022_v5, %v5023_v46  ;;  %v5033_v28 = vmax.f32 %v5031_v6, %v5032_v39  ;;  %vm13266_vm1 = vcmask 1046534   ;;  %148 = vst.msk [vmem:[#allocation3 + $0x150] sm:$0xff] %vm105_vm0, %v83_v14  ;;  %v10997_v5 = vld [vmem:[%s13155_s0 + $0x2ba] sm:$0xff]  ;;  %v11002_v6 = vld [vmem:[%s13155_s0 + $0x22a] sm:$0xff] }
 0x2b9   :  { %v782_v13 = vpop.permute.xlu0 %781  ;;  %1298 = vst.msk [vmem:[#allocation3 + $0x120] sm:$0xff] %vm13262_vm13, %v1142_v11  ;;  %v5012_v23 = vmax.f32 %v5010_v9, %v5011_v52  ;;  %v5047_v41 = vmax.f32 %v5045_v30, %v5046_v8  ;;  %v5054_v34 = vmax.f32 %v5052_v16, %v5053_v33  ;;  %vm13267_vm13 = vcmask 1047559   ;;  %v84_v16 = vld [vmem:[%s13155_s0 + $0x230] sm:$0xff] }
 0x2ba   :  { %925 = vst.msk [vmem:[#allocation3 + $0x188] sm:$0xff] %vm13176_vm5, %v782_v13  ;;  %789 = vrot.lane.b32.xlu1 %v10857_v62, %s9097_s25  ;;  %v5019_v29 = vmax.f32 %v5017_v10, %v5018_v17  ;;  %v5025_v2 = vrot.slane %v5024_v19, 1  ;;  %v96_v13 = vld [vmem:[%s13155_s0 + $0x2c0] sm:$0xff]  ;;  %v11050_v33 = vld [vmem:[%s13155_s0 + $0x232] sm:$0xff] }
 0x2bb   :  { %765 = vrot.lane.b32.xlu0 %v10862_v37, %s9097_s25  ;;  %v5884_v35 = vsel %vm13263_vm12, %v5012_v23, %v5005_v7  ;;  %v5040_v37 = vmax.f32 %v5038_v24, %v5039_v22  ;;  %vm13268_vm12 = vcmask 64512   ;;  %161 = vst.msk [vmem:[#allocation3 + $0x1b8] sm:$0xff] %vm105_vm0, %v96_v13  ;;  %149 = vst.msk [vmem:[#allocation3 + $0x158] sm:$0xff] %vm105_vm0, %v84_v16 }
 0x2bc   :  { %v2296_v25 = vpop.permute.xlu1 %2295  ;;  %v5026_v54 = vmax.f32 %v5024_v19, %v5025_v2  ;;  %v5885_v62 = vsel %vm5851_vm2, %v5019_v29, %v5884_v35 }
 0x2bd   :  { %v1166_v48 = vpop.permute.xlu0 %1165  ;;  %2453 = vst.msk [vmem:[#allocation3 + $0x118] sm:$0xff] %vm2417_vm9, %v2296_v25 }
 0x2be   :  { %1310 = vst.msk [vmem:[#allocation3 + $0x180] sm:$0xff] %vm13264_vm6, %v1166_v48  ;;  %1173 = vrot.lane.b32.xlu1 %v8416_v63, %s9099_s13  ;;  %v5886_v45 = vsel %vm13179_vm3, %v5026_v54, %v5885_v62  ;;  %vm13269_vm6 = vmmov %vm13265_vm4  ;;  %v11045_v48 = vld [vmem:[%s13155_s0 + $0x2c2] sm:$0xff] }
 0x2bf   :  { %1149 = vrot.lane.b32.xlu0 %v8404_v38, %s9099_s13  ;;  %v5887_v42 = vsel %vm13178_vm15, %v5033_v28, %v5886_v45 }
 0x2c0   :  { %v1144_v44 = vpop.permute.xlu1 %1143  ;;  %v5888_v50 = vsel %vm13177_vm14, %v5040_v37, %v5887_v42  ;;  %v10939_v51 = vpop.f32.mrb[20].mxu0 }
 0x2c1   :  { %v2679_v47 = vpop.permute.xlu0 %2678  ;;  %1299 = vst.msk [vmem:[#allocation3 + $0x128] sm:$0xff] %vm13265_vm4, %v1144_v44  ;;  %v5889_v49 = vsel %vm13266_vm1, %v5047_v41, %v5888_v50  ;;  %v10944_v56 = vpop.f32.mrb[21].mxu0  ;;  %vm13270_vm4 = vmmov %vm13268_vm12  ;;  %vm13271_vm1 = vcmask 48152   ;;  %v3696_v52 = vadd.f32 %v10652_v61, %v10939_v51 }
 0x2c2   :  { %2837 = vst.msk [vmem:[#allocation3 + $0x110] sm:$0xff] %vm2802_vm10, %v2679_v47  ;;  %2327 = vrot.lane.b32.xlu1 %v8417_v32, %s9102_s19  ;;  %v5890_v55 = vsel %vm13267_vm13, %v5054_v34, %v5889_v49  ;;  %vm13272_vm13 = vmmov %vm13271_vm1  ;;  %v3691_v17 = vadd.f32 %v10652_v61, %v10944_v56 }
 0x2c3   :  { %2303 = vrot.lane.b32.xlu0 %v8405_v58, %s9102_s19  ;;  %5989 = vst.msk [vmem:[#allocation2 + $0x51] sm:$0xff] %vm13268_vm12, %v5890_v55  ;;  %vm13273_vm12 = vcmask 220160   ;;  %v3930_v23 = vmax.f32 %v3696_v52, 0.0 }
 0x2c4   :  { %v1527_v57 = vpop.permute.xlu1 %1526  ;;  %v3929_v8 = vmax.f32 %v3691_v17, 0.0 }
 0x2c5   :  { %v1168_v59 = vpop.permute.xlu0 %1167  ;;  %1683 = vst.msk [vmem:[#allocation3 + $0x120] sm:$0xff] %vm1646_vm7, %v1527_v57 }
 0x2c6   :  { %1311 = vst.msk [vmem:[#allocation3 + $0x188] sm:$0xff] %vm13269_vm6, %v1168_v59  ;;  %2710 = vrot.lane.b32.xlu1 %v8480_v36, %s9103_s27  ;;  %vm13274_vm6 = vmmov %vm13271_vm1 }
 0x2c7   :  { %2686 = vrot.lane.b32.xlu0 %v8468_v20, %s9103_s27 }
 0x2c8   :  { %v2681_v60 = vpop.permute.xlu1 %2680 }
 0x2c9   :  { %v1551_v53 = vpop.permute.xlu0 %1550  ;;  %2838 = vst.msk [vmem:[#allocation3 + $0x118] sm:$0xff] %vm2802_vm10, %v2681_v60 }
 0x2ca   :  { %1695 = vst.msk [vmem:[#allocation3 + $0x180] sm:$0xff] %vm1646_vm7, %v1551_v53  ;;  %1175 = vrot.lane.b32.xlu1 %v8417_v32, %s9099_s13  ;;  %v10962_v12 = vld [vmem:[#allocation2 + $0x50] sm:$0xff] }
 0x2cb   :  { %1151 = vrot.lane.b32.xlu0 %v8405_v58, %s9099_s13  ;;  %6022 = vst.msk [vmem:[#allocation4 + $0x28] sm:$0xff] %vm13270_vm4, %v10962_v12  ;;  %vm13275_vm4 = vmmov %vm13271_vm1 }
 0x2cc   :  { %v375_v63 = vpop.permute.xlu1 %374 }
 0x2cd   :  { %v3064_v38 = vpop.permute.xlu0 %3063  ;;  %529 = vst.msk [vmem:[#allocation3 + $0x130] sm:$0xff] %vm13271_vm1, %v375_v63  ;;  %vm13276_vm1 = vmmov %vm13273_vm12 }
 0x2ce   :  { %3222 = vst.msk [vmem:[#allocation3 + $0x110] sm:$0xff] %vm3187_vm11, %v3064_v38  ;;  %1558 = vrot.lane.b32.xlu1 %v8480_v36, %s9100_s24 }
 0x2cf   :  { %1534 = vrot.lane.b32.xlu0 %v8468_v20, %s9100_s24 }
 0x2d0   :  { %v1529_v4 = vpop.permute.xlu1 %1528 }
 0x2d1   :  { %v399_v21 = vpop.permute.xlu0 %398  ;;  %1684 = vst.msk [vmem:[#allocation3 + $0x128] sm:$0xff] %vm1646_vm7, %v1529_v4 }
 0x2d2   :  { %541 = vst.msk [vmem:[#allocation3 + $0x190] sm:$0xff] %vm13272_vm13, %v399_v21  ;;  %2712 = vrot.lane.b32.xlu1 %v10981_v3, %s9103_s27  ;;  %vm13277_vm13 = vcmask 64512  }
 0x2d3   :  { %2688 = vrot.lane.b32.xlu0 %v10986_v27, %s9103_s27 }
 0x2d4   :  { %v1912_v24 = vpop.permute.xlu1 %1911 }
 0x2d5   :  { %v1553_v40 = vpop.permute.xlu0 %1552  ;;  %v3286_v9 = vld [vmem:[#allocation3 + $0x110] sm:$0xff]  ;;  %2068 = vst.msk [vmem:[#allocation3 + $0x120] sm:$0xff] %vm2031_vm8, %v1912_v24 }
 0x2d6   :  { %1696 = vst.msk [vmem:[#allocation3 + $0x188] sm:$0xff] %vm1646_vm7, %v1553_v40  ;;  %8848 = vmatprep.mubr.msk.f32.mxu0 %vm13273_vm12, %v3286_v9  ;;  %3095 = vrot.lane.b32.xlu1 %v10997_v5, %s9104_s16  ;;  %vm13278_vm12 = vmmov %vm13277_vm13 }
 0x2d7   :  { %3071 = vrot.lane.b32.xlu0 %v11002_v6, %s9104_s16 }
 0x2d8   :  { %v3066_v10 = vpop.permute.xlu1 %3065 }
 0x2d9   :  { %v1936_v46 = vpop.permute.xlu0 %1935  ;;  %3223 = vst.msk [vmem:[#allocation3 + $0x118] sm:$0xff] %vm3187_vm11, %v3066_v10 }
 0x2da   :  { %2080 = vst.msk [vmem:[#allocation3 + $0x180] sm:$0xff] %vm2031_vm8, %v1936_v46  ;;  %406 = vrot.lane.b32.xlu1 %v8480_v36, %s9098_s26 }
 0x2db   :  { %382 = vrot.lane.b32.xlu0 %v8468_v20, %s9098_s26 }
 0x2dc   :  { %v401_v30 = vpop.permute.xlu1 %400 }
 0x2dd   :  { %v377_v11 = vpop.permute.xlu0 %376  ;;  %542 = vst.msk [vmem:[#allocation3 + $0x198] sm:$0xff] %vm13274_vm6, %v401_v30  ;;  %vm13279_vm6 = vmmov %vm13278_vm12 }
 0x2de   :  { %530 = vst.msk [vmem:[#allocation3 + $0x138] sm:$0xff] %vm13275_vm4, %v377_v11  ;;  %1560 = vrot.lane.b32.xlu1 %v10981_v3, %s9100_s24  ;;  %v4004_v45 = vsel %vm13279_vm6, %v3929_v8, -inf  ;;  %vm13280_vm4 = vmmov %vm13279_vm6  ;;  %v8418_v8 = vld [vmem:[%s13155_s0 + $0x2d0] sm:$0xff] }
 0x2df   :  { %1536 = vrot.lane.b32.xlu0 %v10986_v27, %s9100_s24 }
 0x2e0   :  { %v784_v19 = vpop.permute.xlu1 %783  ;;  %v3287_v22 = vld [vmem:[#allocation3 + $0x118] sm:$0xff]  ;;  %v8832_v7 = vpop.f32.mrb[22].mxu0 }
 0x2e1   :  { %v760_v39 = vpop.permute.xlu0 %759  ;;  %926 = vst.msk [vmem:[#allocation3 + $0x190] sm:$0xff] %vm13176_vm5, %v784_v19  ;;  %8849 = vmatmul.mubr.msk.f32.gmra.mrb[34].mxu0 %vm13276_vm1, %v3287_v22  ;;  %v3706_v29 = vadd.f32 %v10652_v61, %v8832_v7  ;;  %v3700_v2 = vpop.f32.mrb[23].mxu0  ;;  %vm13281_vm1 = vcmask 58368  }
 0x2e2   :  { %914 = vst.msk [vmem:[#allocation3 + $0x130] sm:$0xff] %vm13176_vm5, %v760_v39  ;;  %1943 = vrot.lane.b32.xlu1 %v10997_v5, %s9101_s14  ;;  %v3701_v25 = vadd.f32 %v10652_v61, %v3700_v2  ;;  %v4007_v61 = vsel %vm13277_vm13, %v3930_v23, -inf  ;;  %vm13282_vm13 = vmmov %vm13281_vm1 }
 0x2e3   :  { %1919 = vrot.lane.b32.xlu0 %v11002_v6, %s9101_s14  ;;  %v3932_v54 = vmax.f32 %v3706_v29, 0.0  ;;  %vm13284_vm6 = vmmov %vm13281_vm1 }
 0x2e4   :  { %v1938_v35 = vpop.permute.xlu1 %1937  ;;  %v3931_v62 = vmax.f32 %v3701_v25, 0.0  ;;  %v8406_v25 = vld [vmem:[%s13155_s0 + $0x240] sm:$0xff] }
 0x2e5   :  { %v1914_v28 = vpop.permute.xlu0 %1913  ;;  %2081 = vst.msk [vmem:[#allocation3 + $0x188] sm:$0xff] %vm2031_vm8, %v1938_v35  ;;  %v4008_v37 = vsel %vm13278_vm12, %v3932_v54, -inf  ;;  %vm13283_vm12 = vmmov %vm13281_vm1 }
 0x2e6   :  { %2069 = vst.msk [vmem:[#allocation3 + $0x128] sm:$0xff] %vm2031_vm8, %v1914_v28  ;;  %3097 = vrot.lane.b32.xlu1 %v11045_v48, %s9104_s16  ;;  %v4009_v32 = vmax.f32 %v4007_v61, %v4008_v37  ;;  %v4005_v58 = vsel %vm13280_vm4, %v3931_v62, -inf  ;;  %vm13285_vm4 = vmmov %vm13281_vm1 }
 0x2e7   :  { %3073 = vrot.lane.b32.xlu0 %v11050_v33, %s9104_s16  ;;  %v4006_v41 = vmax.f32 %v4004_v45, %v4005_v58 }
 0x2e8   :  { %v2322_v42 = vpop.permute.xlu1 %2321  ;;  %v4289_v47 = vcombine.high %v4009_v32, %v4009_v32  ;;  %v4296_v34 = vrot.slane %v4009_v32, %v10139_v0 }
 0x2e9   :  { %v2298_v44 = vpop.permute.xlu0 %2297  ;;  %2466 = vst.msk [vmem:[#allocation3 + $0x180] sm:$0xff] %vm2417_vm9, %v2322_v42  ;;  %v4272_v50 = vcombine.high %v4006_v41, %v4006_v41  ;;  %v4279_v51 = vrot.slane %v4006_v41, %v10139_v0 }
 0x2ea   :  { %2454 = vst.msk [vmem:[#allocation3 + $0x120] sm:$0xff] %vm2417_vm9, %v2298_v44  ;;  %408 = vrot.lane.b32.xlu1 %v10981_v3, %s9098_s26  ;;  %v4303_v49 = vrot.slane %v4289_v47, %v10139_v0  ;;  %v4304_v56 = vcombine.high %v4296_v34, %v4296_v34  ;;  %v5083_v55 = vsel %vm13281_vm1, %v4296_v34, -inf }
 0x2eb   :  { %384 = vrot.lane.b32.xlu0 %v10986_v27, %s9098_s26  ;;  %v5084_v36 = vrot.slane %v5083_v55, 4  ;;  %v4286_v20 = vrot.slane %v4272_v50, %v10139_v0  ;;  %v4287_v57 = vcombine.high %v4279_v51, %v4279_v51  ;;  %v5055_v59 = vsel %vm13282_vm13, %v4279_v51, -inf  ;;  %vm13286_vm13 = vmmov %vm13281_vm1 }
 0x2ec   :  { %v786_v60 = vpop.permute.xlu1 %785  ;;  %v4305_v63 = vcombine.high %v4303_v49, %v4303_v49  ;;  %v5090_v38 = vsel %vm13283_vm12, %v4304_v56, -inf  ;;  %v5097_v1 = vsel %vm13284_vm6, %v4303_v49, -inf  ;;  %v5056_v14 = vrot.slane %v5055_v59, 4  ;;  %vm13287_vm12 = vmmov %vm13281_vm1  ;;  %v11105_v49 = vld [vmem:[%s13155_s0 + $0x300] sm:$0xff] }
 0x2ed   :  { %v762_v53 = vpop.permute.xlu0 %761  ;;  %927 = vst.msk [vmem:[#allocation3 + $0x198] sm:$0xff] %vm13176_vm5, %v786_v60  ;;  %v5085_v3 = vmax.f32 %v5083_v55, %v5084_v36  ;;  %v5091_v27 = vrot.slane %v5090_v38, 4  ;;  %v5098_v4 = vrot.slane %v5097_v1, 4  ;;  %v4288_v21 = vcombine.high %v4286_v20, %v4286_v20 }
 0x2ee   :  { %915 = vst.msk [vmem:[#allocation3 + $0x138] sm:$0xff] %vm13176_vm5, %v762_v53  ;;  %791 = vrot.lane.b32.xlu1 %v10997_v5, %s9097_s25  ;;  %v5104_v24 = vsel %vm13285_vm4, %v4305_v63, -inf  ;;  %v5057_v40 = vmax.f32 %v5055_v59, %v5056_v14  ;;  %v5062_v9 = vsel %vm13281_vm1, %v4287_v57, -inf  ;;  %v5069_v10 = vsel %vm13286_vm13, %v4286_v20, -inf }
 0x2ef   :  { %767 = vrot.lane.b32.xlu0 %v11002_v6, %s9097_s25  ;;  %v5092_v46 = vmax.f32 %v5090_v38, %v5091_v27  ;;  %v5099_v30 = vmax.f32 %v5097_v1, %v5098_v4  ;;  %v5105_v11 = vrot.slane %v5104_v24, 4  ;;  %v5063_v17 = vrot.slane %v5062_v9, 4  ;;  %166 = vst.msk [vmem:[#allocation3 + $0x1e0] sm:$0xff] %vm105_vm0, %v11105_v49 }
 0x2f0   :  { %v1170_v13 = vpop.permute.xlu1 %1169  ;;  %v5058_v52 = vrot.slane %v5057_v40, 2  ;;  %v5070_v19 = vrot.slane %v5069_v10, 4  ;;  %v5076_v5 = vsel %vm13287_vm12, %v4288_v21, -inf  ;;  %vm13288_vm6 = vcmask 97352  }
 0x2f1   :  { %v1146_v16 = vpop.permute.xlu0 %1145  ;;  %1312 = vst.msk [vmem:[#allocation3 + $0x190] sm:$0xff] %vm13288_vm6, %v1170_v13  ;;  %vm13289_vm5 = vmmov %vm13288_vm6  ;;  %v5086_v6 = vrot.slane %v5085_v3, 2  ;;  %v5093_v39 = vrot.slane %v5092_v46, 2  ;;  %v5106_v22 = vmax.f32 %v5104_v24, %v5105_v11  ;;  %v5064_v23 = vmax.f32 %v5062_v9, %v5063_v17  ;;  %v8419_v9 = vld [vmem:[%s13155_s0 + $0x2d8] sm:$0xff] }
 0x2f2   :  { %1300 = vst.msk [vmem:[#allocation3 + $0x130] sm:$0xff] %vm13289_vm5, %v1146_v16  ;;  %1945 = vrot.lane.b32.xlu1 %v11045_v48, %s9101_s14  ;;  %v5059_v7 = vmax.f32 %v5057_v40, %v5058_v52  ;;  %v5071_v29 = vmax.f32 %v5069_v10, %v5070_v19  ;;  %v5077_v2 = vrot.slane %v5076_v5, 4  ;;  %v5100_v54 = vrot.slane %v5099_v30, 2  ;;  %vm13291_vm4 = vmmov %vm13288_vm6  ;;  %v8407_v10 = vld [vmem:[%s13155_s0 + $0x248] sm:$0xff] }
 0x2f3   :  { %1921 = vrot.lane.b32.xlu0 %v11050_v33, %s9101_s14  ;;  %v5107_v62 = vrot.slane %v5106_v22, 2  ;;  %v5065_v61 = vrot.slane %v5064_v23, 2  ;;  %v5087_v32 = vmax.f32 %v5085_v3, %v5086_v6  ;;  %v5094_v58 = vmax.f32 %v5092_v46, %v5093_v39  ;;  %vm13292_vm1 = vmmov %vm13291_vm4  ;;  %v8482_v39 = vld [vmem:[%s13155_s0 + $0x2d1] sm:$0xff] }
 0x2f4   :  { %v2324_v35 = vpop.permute.xlu1 %2323  ;;  %v5072_v37 = vrot.slane %v5071_v29, 2  ;;  %v5078_v45 = vmax.f32 %v5076_v5, %v5077_v2  ;;  %v5060_v41 = vrot.slane %v5059_v7, 1  ;;  %v5101_v34 = vmax.f32 %v5099_v30, %v5100_v54 }
 0x2f5   :  { %v2300_v28 = vpop.permute.xlu0 %2299  ;;  %2467 = vst.msk [vmem:[#allocation3 + $0x188] sm:$0xff] %vm2417_vm9, %v2324_v35  ;;  %v5066_v42 = vmax.f32 %v5064_v23, %v5065_v61  ;;  %v5108_v56 = vmax.f32 %v5106_v22, %v5107_v62  ;;  %v5088_v57 = vrot.slane %v5087_v32, 1  ;;  %v5095_v59 = vrot.slane %v5094_v58, 1  ;;  %v8470_v22 = vld [vmem:[%s13155_s0 + $0x241] sm:$0xff]  ;;  %v11181_v61 = vld [vmem:[%s13155_s0 + $0x2d9] sm:$0xff] }
 0x2f6   :  { %2455 = vst.msk [vmem:[#allocation3 + $0x128] sm:$0xff] %vm2417_vm9, %v2300_v28  ;;  %2329 = vrot.lane.b32.xlu1 %v8418_v8, %s9102_s19  ;;  %v5073_v44 = vmax.f32 %v5071_v29, %v5072_v37  ;;  %v5079_v47 = vrot.slane %v5078_v45, 2  ;;  %v5061_v60 = vmax.f32 %v5059_v7, %v5060_v41  ;;  %v5102_v1 = vrot.slane %v5101_v34, 1  ;;  %v11150_v29 = vld [vmem:[%s13155_s0 + $0x308] sm:$0xff]  ;;  %v97_v28 = vld [vmem:[%s13155_s0 + $0x2d0] sm:$0xff]  ;;  %v85_v62 = vld [vmem:[%s13155_s0 + $0x240] sm:$0xff] }
 0x2f7   :  { %2305 = vrot.lane.b32.xlu0 %v8406_v25, %s9102_s19  ;;  %v5067_v55 = vrot.slane %v5066_v42, 1  ;;  %v5109_v27 = vrot.slane %v5108_v56, 1  ;;  %vm13290_vm5 = vcmask 1041409   ;;  %v5089_v24 = vmax.f32 %v5087_v32, %v5088_v57  ;;  %167 = vst.msk [vmem:[#allocation3 + $0x1e8] sm:$0xff] %vm105_vm0, %v11150_v29  ;;  %162 = vst.msk [vmem:[#allocation3 + $0x1c0] sm:$0xff] %vm105_vm0, %v97_v28  ;;  %v11186_v37 = vld [vmem:[%s13155_s0 + $0x249] sm:$0xff] }
 0x2f8   :  { %v2707_v50 = vpop.permute.xlu1 %2706  ;;  %v5074_v36 = vrot.slane %v5073_v44, 1  ;;  %v5080_v20 = vmax.f32 %v5078_v45, %v5079_v47  ;;  %v5103_v46 = vmax.f32 %v5101_v34, %v5102_v1  ;;  %vm13293_vm13 = vcmask 1046534   ;;  %150 = vst.msk [vmem:[#allocation3 + $0x160] sm:$0xff] %vm105_vm0, %v85_v62  ;;  %v11228_v57 = vld [vmem:[%s13157_s2] ss:$0 sm:$0xff] }
 0x2f9   :  { %v2683_v51 = vpop.permute.xlu0 %2682  ;;  %2851 = vst.msk [vmem:[#allocation3 + $0x180] sm:$0xff] %vm2802_vm10, %v2707_v50  ;;  %v5068_v53 = vmax.f32 %v5066_v42, %v5067_v55  ;;  %v5110_v16 = vmax.f32 %v5108_v56, %v5109_v27  ;;  %vm13294_vm12 = vcmask 1047559   ;;  %vm13295_vm6 = vcmask 64512   ;;  %v11199_v42 = vld [vmem:[%s13155_s0 + $0x2d2] sm:$0xff] }
 0x2fa   :  { %2839 = vst.msk [vmem:[#allocation3 + $0x120] sm:$0xff] %vm2802_vm10, %v2683_v51  ;;  %793 = vrot.lane.b32.xlu1 %v11045_v48, %s9097_s25  ;;  %v5075_v63 = vmax.f32 %v5073_v44, %v5074_v36  ;;  %v5081_v38 = vrot.slane %v5080_v20, 1  ;;  %v11204_v44 = vld [vmem:[%s13155_s0 + $0x242] sm:$0xff]  ;;  %v98_v36 = vld [vmem:[%s13155_s0 + $0x2d8] sm:$0xff] }
 0x2fb   :  { %769 = vrot.lane.b32.xlu0 %v11050_v33, %s9097_s25  ;;  %v5891_v21 = vsel %vm13290_vm5, %v5068_v53, %v5061_v60  ;;  %v5096_v33 = vmax.f32 %v5094_v58, %v5095_v59  ;;  %vm13296_vm5 = vmmov %vm13295_vm6  ;;  %163 = vst.msk [vmem:[#allocation3 + $0x1c8] sm:$0xff] %vm105_vm0, %v98_v36 }
 0x2fc   :  { %v1172_v14 = vpop.permute.xlu1 %1171  ;;  %v5082_v4 = vmax.f32 %v5080_v20, %v5081_v38  ;;  %v5892_v48 = vsel %vm5851_vm2, %v5075_v63, %v5891_v21  ;;  %v86_v20 = vld [vmem:[%s13155_s0 + $0x248] sm:$0xff] }
 0x2fd   :  { %v1148_v3 = vpop.permute.xlu0 %1147  ;;  %1313 = vst.msk [vmem:[#allocation3 + $0x198] sm:$0xff] %vm13291_vm4, %v1172_v14  ;;  %vm13297_vm4 = vcmask 48152  }
 0x2fe   :  { %1301 = vst.msk [vmem:[#allocation3 + $0x138] sm:$0xff] %vm13292_vm1, %v1148_v3  ;;  %1177 = vrot.lane.b32.xlu1 %v8418_v8, %s9099_s13  ;;  %v5893_v40 = vsel %vm13179_vm3, %v5082_v4, %v5892_v48  ;;  %vm13298_vm1 = vmmov %vm13297_vm4  ;;  %v11252_v48 = vld [vmem:[%s13155_s0 + $0x2da] sm:$0xff] }
 0x2ff   :  { %1153 = vrot.lane.b32.xlu0 %v8406_v25, %s9099_s13  ;;  %v5894_v30 = vsel %vm13178_vm15, %v5089_v24, %v5893_v40  ;;  %151 = vst.msk [vmem:[#allocation3 + $0x168] sm:$0xff] %vm105_vm0, %v86_v20 }
 0x300   :  { %v1555_v11 = vpop.permute.xlu1 %1554  ;;  %v5895_v52 = vsel %vm13177_vm14, %v5096_v33, %v5894_v30  ;;  %v11132_v17 = vpop.f32.mrb[24].mxu0  ;;  %v11257_v33 = vld [vmem:[%s13155_s0 + $0x24a] sm:$0xff] }
 0x301   :  { %v1531_v13 = vpop.permute.xlu0 %1530  ;;  %1697 = vst.msk [vmem:[#allocation3 + $0x190] sm:$0xff] %vm1646_vm7, %v1555_v11  ;;  %v5896_v19 = vsel %vm13293_vm13, %v5103_v46, %v5895_v52  ;;  %v11137_v5 = vpop.f32.mrb[25].mxu0  ;;  %vm13299_vm13 = vcmask 220160   ;;  %v3716_v59 = vadd.f32 %v11228_v57, %v11132_v17 }
 0x302   :  { %1685 = vst.msk [vmem:[#allocation3 + $0x130] sm:$0xff] %vm1646_vm7, %v1531_v13  ;;  %2331 = vrot.lane.b32.xlu1 %v8419_v9, %s9102_s19  ;;  %v5897_v6 = vsel %vm13294_vm12, %v5110_v16, %v5896_v19  ;;  %vm13300_vm12 = vmmov %vm13299_vm13  ;;  %v3711_v60 = vadd.f32 %v11228_v57, %v11137_v5 }
 0x303   :  { %2307 = vrot.lane.b32.xlu0 %v8407_v10, %s9102_s19  ;;  %5990 = vst.msk [vmem:[#allocation2 + $0x61] sm:$0xff] %vm13295_vm6, %v5897_v6  ;;  %vm13301_vm6 = vmmov %vm13298_vm1  ;;  %v3934_v3 = vmax.f32 %v3716_v59, 0.0 }
 0x304   :  { %v2709_v7 = vpop.permute.xlu1 %2708  ;;  %v3933_v21 = vmax.f32 %v3711_v60, 0.0 }
 0x305   :  { %v2685_v23 = vpop.permute.xlu0 %2684  ;;  %2852 = vst.msk [vmem:[#allocation3 + $0x188] sm:$0xff] %vm2802_vm10, %v2709_v7 }
 0x306   :  { %2840 = vst.msk [vmem:[#allocation3 + $0x128] sm:$0xff] %vm2802_vm10, %v2685_v23  ;;  %2714 = vrot.lane.b32.xlu1 %v8482_v39, %s9103_s27 }
 0x307   :  { %2690 = vrot.lane.b32.xlu0 %v8470_v22, %s9103_s27 }
 0x308   :  { %v3092_v2 = vpop.permute.xlu1 %3091 }
 0x309   :  { %v3068_v8 = vpop.permute.xlu0 %3067  ;;  %3236 = vst.msk [vmem:[#allocation3 + $0x180] sm:$0xff] %vm3187_vm11, %v3092_v2 }
 0x30a   :  { %3224 = vst.msk [vmem:[#allocation3 + $0x120] sm:$0xff] %vm3187_vm11, %v3068_v8  ;;  %1179 = vrot.lane.b32.xlu1 %v8419_v9, %s9099_s13  ;;  %v11162_v25 = vld [vmem:[#allocation2 + $0x60] sm:$0xff] }
 0x30b   :  { %1155 = vrot.lane.b32.xlu0 %v8407_v10, %s9099_s13  ;;  %6023 = vst.msk [vmem:[#allocation4 + $0x30] sm:$0xff] %vm13296_vm5, %v11162_v25  ;;  %vm13302_vm5 = vmmov %vm13298_vm1 }
 0x30c   :  { %v403_v54 = vpop.permute.xlu1 %402 }
 0x30d   :  { %v379_v35 = vpop.permute.xlu0 %378  ;;  %543 = vst.msk [vmem:[#allocation3 + $0x1a0] sm:$0xff] %vm13297_vm4, %v403_v54  ;;  %vm13303_vm4 = vcmask 72752  }
 0x30e   :  { %531 = vst.msk [vmem:[#allocation3 + $0x140] sm:$0xff] %vm13298_vm1, %v379_v35  ;;  %1562 = vrot.lane.b32.xlu1 %v8482_v39, %s9100_s24  ;;  %vm13304_vm1 = vmmov %vm13303_vm4 }
 0x30f   :  { %1538 = vrot.lane.b32.xlu0 %v8470_v22, %s9100_s24 }
 0x310   :  { %v1557_v45 = vpop.permute.xlu1 %1556  ;;  %v3300_v41 = vld [vmem:[#allocation3 + $0x180] sm:$0xff] }
 0x311   :  { %v1533_v32 = vpop.permute.xlu0 %1532  ;;  %v3288_v58 = vld [vmem:[#allocation3 + $0x120] sm:$0xff]  ;;  %1698 = vst.msk [vmem:[#allocation3 + $0x198] sm:$0xff] %vm1646_vm7, %v1557_v45  ;;  %8869 = vmatprep.mubr.msk.f32.mxu1 %vm13300_vm12, %v3300_v41 }
 0x312   :  { %1686 = vst.msk [vmem:[#allocation3 + $0x138] sm:$0xff] %vm1646_vm7, %v1533_v32  ;;  %8851 = vmatprep.mubr.msk.f32.mxu0 %vm13299_vm13, %v3288_v58  ;;  %2716 = vrot.lane.b32.xlu1 %v11181_v61, %s9103_s27  ;;  %vm13305_vm13 = vmmov %vm13300_vm12 }
 0x313   :  { %2692 = vrot.lane.b32.xlu0 %v11186_v37, %s9103_s27 }
 0x314   :  { %v1940_v47 = vpop.permute.xlu1 %1939 }
 0x315   :  { %v1916_v34 = vpop.permute.xlu0 %1915  ;;  %2082 = vst.msk [vmem:[#allocation3 + $0x190] sm:$0xff] %vm2031_vm8, %v1940_v47 }
 0x316   :  { %2070 = vst.msk [vmem:[#allocation3 + $0x130] sm:$0xff] %vm2031_vm8, %v1916_v34  ;;  %3099 = vrot.lane.b32.xlu1 %v11199_v42, %s9104_s16 }
 0x317   :  { %3075 = vrot.lane.b32.xlu0 %v11204_v44, %s9104_s16 }
 0x318   :  { %v3094_v50 = vpop.permute.xlu1 %3093 }
 0x319   :  { %v3070_v51 = vpop.permute.xlu0 %3069  ;;  %3237 = vst.msk [vmem:[#allocation3 + $0x188] sm:$0xff] %vm3187_vm11, %v3094_v50 }
 0x31a   :  { %3225 = vst.msk [vmem:[#allocation3 + $0x128] sm:$0xff] %vm3187_vm11, %v3070_v51  ;;  %410 = vrot.lane.b32.xlu1 %v8482_v39, %s9098_s26 }
 0x31b   :  { %386 = vrot.lane.b32.xlu0 %v8470_v22, %s9098_s26 }
 0x31c   :  { %v405_v56 = vpop.permute.xlu1 %404 }
 0x31d   :  { %v381_v55 = vpop.permute.xlu0 %380  ;;  %544 = vst.msk [vmem:[#allocation3 + $0x1a8] sm:$0xff] %vm13301_vm6, %v405_v56  ;;  %vm13306_vm6 = vcmask 64512  }
 0x31e   :  { %532 = vst.msk [vmem:[#allocation3 + $0x148] sm:$0xff] %vm13302_vm5, %v381_v55  ;;  %1564 = vrot.lane.b32.xlu1 %v11181_v61, %s9100_s24  ;;  %v4013_v30 = vsel %vm13306_vm6, %v3934_v3, -inf  ;;  %vm13307_vm5 = vmmov %vm13306_vm6 }
 0x31f   :  { %1540 = vrot.lane.b32.xlu0 %v11186_v37, %s9100_s24 }
 0x320   :  { %v788_v53 = vpop.permute.xlu1 %787  ;;  %v3301_v1 = vld [vmem:[#allocation3 + $0x188] sm:$0xff]  ;;  %v8838_v14 = vpop.f32.mrb[26].mxu0 }
 0x321   :  { %v764_v63 = vpop.permute.xlu0 %763  ;;  %v3289_v38 = vld [vmem:[#allocation3 + $0x128] sm:$0xff]  ;;  %928 = vst.msk [vmem:[#allocation3 + $0x1a0] sm:$0xff] %vm13303_vm4, %v788_v53  ;;  %8870 = vmatmul.mubr.msk.f32.vlgmr.msra.gmra.mrb[0].mxu1 %vm13300_vm12, %v3301_v1  ;;  %v3726_v27 = vadd.f32 %v11228_v57, %v8838_v14  ;;  %v3720_v4 = vpop.f32.mrb[27].mxu0  ;;  %vm13308_vm4 = vmmov %vm13307_vm5 }
 0x322   :  { %916 = vst.msk [vmem:[#allocation3 + $0x140] sm:$0xff] %vm13304_vm1, %v764_v63  ;;  %8852 = vmatmul.mubr.msk.f32.gmra.mrb[36].mxu0 %vm13305_vm13, %v3289_v38  ;;  %1947 = vrot.lane.b32.xlu1 %v11199_v42, %s9101_s14  ;;  %v3721_v24 = vadd.f32 %v11228_v57, %v3720_v4  ;;  %v4010_v13 = vsel %vm13308_vm4, %v3933_v21, -inf  ;;  %vm13309_vm1 = vmmov %vm13308_vm4  ;;  %vm13310_vm13 = vcmask 58368   ;;  %vm13314_vm4 = vcmask 72752  }
 0x323   :  { %1923 = vrot.lane.b32.xlu0 %v11204_v44, %s9101_s14  ;;  %v3936_v40 = vmax.f32 %v3726_v27, 0.0  ;;  %vm13311_vm12 = vmmov %vm13310_vm13 }
 0x324   :  { %v1942_v9 = vpop.permute.xlu1 %1941  ;;  %v3935_v46 = vmax.f32 %v3721_v24, 0.0  ;;  %vm13312_vm6 = vmmov %vm13311_vm12 }
 0x325   :  { %v1918_v10 = vpop.permute.xlu0 %1917  ;;  %2083 = vst.msk [vmem:[#allocation3 + $0x198] sm:$0xff] %vm2031_vm8, %v1942_v9  ;;  %v4014_v11 = vsel %vm13307_vm5, %v3936_v40, -inf  ;;  %vm13313_vm5 = vmmov %vm13312_vm6 }
 0x326   :  { %2071 = vst.msk [vmem:[#allocation3 + $0x138] sm:$0xff] %vm2031_vm8, %v1918_v10  ;;  %3101 = vrot.lane.b32.xlu1 %v11252_v48, %s9104_s16  ;;  %v4015_v16 = vmax.f32 %v4013_v30, %v4014_v11  ;;  %v4011_v52 = vsel %vm13309_vm1, %v3935_v46, -inf  ;;  %vm13315_vm1 = vmmov %vm13314_vm4  ;;  %v8420_v10 = vld [vmem:[%s13155_s0 + $0x2e8] sm:$0xff]  ;;  %v8408_v46 = vld [vmem:[%s13155_s0 + $0x258] sm:$0xff] }
 0x327   :  { %3077 = vrot.lane.b32.xlu0 %v11257_v33, %s9104_s16  ;;  %v4012_v17 = vmax.f32 %v4010_v13, %v4011_v52 }
 0x328   :  { %v2326_v19 = vpop.permute.xlu1 %2325  ;;  %v4323_v6 = vcombine.high %v4015_v16, %v4015_v16  ;;  %v4330_v39 = vrot.slane %v4015_v16, %v10139_v0 }
 0x329   :  { %v2302_v5 = vpop.permute.xlu0 %2301  ;;  %2468 = vst.msk [vmem:[#allocation3 + $0x190] sm:$0xff] %vm2417_vm9, %v2326_v19  ;;  %v4306_v22 = vcombine.high %v4012_v17, %v4012_v17  ;;  %v4313_v7 = vrot.slane %v4012_v17, %v10139_v0 }
 0x32a   :  { %2456 = vst.msk [vmem:[#allocation3 + $0x130] sm:$0xff] %vm2417_vm9, %v2302_v5  ;;  %412 = vrot.lane.b32.xlu1 %v11181_v61, %s9098_s26  ;;  %v4337_v23 = vrot.slane %v4323_v6, %v10139_v0  ;;  %v4338_v2 = vcombine.high %v4330_v39, %v4330_v39  ;;  %v5139_v8 = vsel %vm13310_vm13, %v4330_v39, -inf  ;;  %vm13316_vm13 = vmmov %vm13313_vm5 }
 0x32b   :  { %388 = vrot.lane.b32.xlu0 %v11186_v37, %s9098_s26  ;;  %v5140_v54 = vrot.slane %v5139_v8, 4  ;;  %v4320_v35 = vrot.slane %v4306_v22, %v10139_v0  ;;  %v4321_v28 = vcombine.high %v4313_v7, %v4313_v7  ;;  %v5111_v62 = vsel %vm13311_vm12, %v4313_v7, -inf  ;;  %vm13317_vm12 = vmmov %vm13313_vm5 }
 0x32c   :  { %v790_v45 = vpop.permute.xlu1 %789  ;;  %v4339_v58 = vcombine.high %v4337_v23, %v4337_v23  ;;  %v5146_v41 = vsel %vm13312_vm6, %v4338_v2, -inf  ;;  %v5153_v61 = vsel %vm13313_vm5, %v4337_v23, -inf  ;;  %v5112_v47 = vrot.slane %v5111_v62, 4  ;;  %vm13318_vm6 = vmmov %vm13313_vm5 }
 0x32d   :  { %v766_v32 = vpop.permute.xlu0 %765  ;;  %929 = vst.msk [vmem:[#allocation3 + $0x1a8] sm:$0xff] %vm13314_vm4, %v790_v45  ;;  %v5141_v37 = vmax.f32 %v5139_v8, %v5140_v54  ;;  %v5147_v34 = vrot.slane %v5146_v41, 4  ;;  %v5154_v50 = vrot.slane %v5153_v61, 4  ;;  %v4322_v51 = vcombine.high %v4320_v35, %v4320_v35 }
 0x32e   :  { %917 = vst.msk [vmem:[#allocation3 + $0x148] sm:$0xff] %vm13315_vm1, %v766_v32  ;;  %795 = vrot.lane.b32.xlu1 %v11199_v42, %s9097_s25  ;;  %v5160_v56 = vsel %vm13316_vm13, %v4339_v58, -inf  ;;  %v5113_v55 = vmax.f32 %v5111_v62, %v5112_v47  ;;  %v5118_v36 = vsel %vm13317_vm12, %v4321_v28, -inf  ;;  %v5125_v20 = vsel %vm13318_vm6, %v4320_v35, -inf }
 0x32f   :  { %771 = vrot.lane.b32.xlu0 %v11204_v44, %s9097_s25  ;;  %v5148_v59 = vmax.f32 %v5146_v41, %v5147_v34  ;;  %v5155_v60 = vmax.f32 %v5153_v61, %v5154_v50  ;;  %v5161_v53 = vrot.slane %v5160_v56, 4  ;;  %v5119_v14 = vrot.slane %v5118_v36, 4 }
 0x330   :  { %v1174_v63 = vpop.permute.xlu1 %1173  ;;  %v5114_v1 = vrot.slane %v5113_v55, 2  ;;  %v5126_v3 = vrot.slane %v5125_v20, 4  ;;  %v5132_v42 = vsel %vm13313_vm5, %v4322_v51, -inf  ;;  %vm13319_vm4 = vcmask 97352  }
 0x331   :  { %v1150_v38 = vpop.permute.xlu0 %1149  ;;  %1314 = vst.msk [vmem:[#allocation3 + $0x1a0] sm:$0xff] %vm13319_vm4, %v1174_v63  ;;  %vm13320_vm1 = vmmov %vm13319_vm4  ;;  %v5142_v44 = vrot.slane %v5141_v37, 2  ;;  %v5149_v27 = vrot.slane %v5148_v59, 2  ;;  %v5162_v4 = vmax.f32 %v5160_v56, %v5161_v53  ;;  %v5120_v24 = vmax.f32 %v5118_v36, %v5119_v14  ;;  %v8409_v53 = vld [vmem:[%s13155_s0 + $0x260] sm:$0xff] }
 0x332   :  { %1302 = vst.msk [vmem:[#allocation3 + $0x140] sm:$0xff] %vm13320_vm1, %v1150_v38  ;;  %1949 = vrot.lane.b32.xlu1 %v11252_v48, %s9101_s14  ;;  %v5115_v21 = vmax.f32 %v5113_v55, %v5114_v1  ;;  %v5127_v40 = vmax.f32 %v5125_v20, %v5126_v3  ;;  %v5133_v9 = vrot.slane %v5132_v42, 4  ;;  %v5156_v30 = vrot.slane %v5155_v60, 2  ;;  %vm13322_vm12 = vmmov %vm13320_vm1 }
 0x333   :  { %1925 = vrot.lane.b32.xlu0 %v11257_v33, %s9101_s14  ;;  %v5163_v16 = vrot.slane %v5162_v4, 2  ;;  %v5121_v52 = vrot.slane %v5120_v24, 2  ;;  %v5143_v5 = vmax.f32 %v5141_v37, %v5142_v44  ;;  %v5150_v6 = vmax.f32 %v5148_v59, %v5149_v27  ;;  %vm13323_vm6 = vmmov %vm13320_vm1 }
 0x334   :  { %v2328_v11 = vpop.permute.xlu1 %2327  ;;  %v5128_v17 = vrot.slane %v5127_v40, 2  ;;  %v5134_v19 = vmax.f32 %v5132_v42, %v5133_v9  ;;  %v5116_v39 = vrot.slane %v5115_v21, 1  ;;  %v5157_v2 = vmax.f32 %v5155_v60, %v5156_v30  ;;  %v8421_v60 = vld [vmem:[%s13155_s0 + $0x2f0] sm:$0xff] }
 0x335   :  { %v2304_v13 = vpop.permute.xlu0 %2303  ;;  %2469 = vst.msk [vmem:[#allocation3 + $0x198] sm:$0xff] %vm2417_vm9, %v2328_v11  ;;  %v5122_v22 = vmax.f32 %v5120_v24, %v5121_v52  ;;  %v5164_v35 = vmax.f32 %v5162_v4, %v5163_v16  ;;  %v5144_v32 = vrot.slane %v5143_v5, 1  ;;  %v5151_v58 = vrot.slane %v5150_v6, 1  ;;  %v8484_v24 = vld [vmem:[%s13155_s0 + $0x2e9] sm:$0xff]  ;;  %v87_v52 = vld [vmem:[%s13155_s0 + $0x258] sm:$0xff] }
 0x336   :  { %2457 = vst.msk [vmem:[#allocation3 + $0x138] sm:$0xff] %vm2417_vm9, %v2304_v13  ;;  %2333 = vrot.lane.b32.xlu1 %v8420_v10, %s9102_s19  ;;  %v5129_v7 = vmax.f32 %v5127_v40, %v5128_v17  ;;  %v5135_v23 = vrot.slane %v5134_v19, 2  ;;  %v5117_v41 = vmax.f32 %v5115_v21, %v5116_v39  ;;  %v5158_v34 = vrot.slane %v5157_v2, 1  ;;  %v8472_v40 = vld [vmem:[%s13155_s0 + $0x259] sm:$0xff]  ;;  %v11369_v17 = vld [vmem:[%s13155_s0 + $0x2f1] sm:$0xff] }
 0x337   :  { %2309 = vrot.lane.b32.xlu0 %v8408_v46, %s9102_s19  ;;  %v5123_v28 = vrot.slane %v5122_v22, 1  ;;  %v5165_v56 = vrot.slane %v5164_v35, 1  ;;  %vm13321_vm13 = vcmask 1041409   ;;  %v5145_v20 = vmax.f32 %v5143_v5, %v5144_v32  ;;  %152 = vst.msk [vmem:[#allocation3 + $0x170] sm:$0xff] %vm105_vm0, %v87_v52  ;;  %v100_v32 = vld [vmem:[%s13155_s0 + $0x2f0] sm:$0xff] }
 0x338   :  { %v2711_v8 = vpop.permute.xlu1 %2710  ;;  %v5130_v62 = vrot.slane %v5129_v7, 1  ;;  %v5136_v45 = vmax.f32 %v5134_v19, %v5135_v23  ;;  %v5159_v63 = vmax.f32 %v5157_v2, %v5158_v34  ;;  %vm13324_vm5 = vcmask 1046534   ;;  %v11374_v19 = vld [vmem:[%s13155_s0 + $0x261] sm:$0xff]  ;;  %165 = vst.msk [vmem:[#allocation3 + $0x1d8] sm:$0xff] %vm105_vm0, %v100_v32 }
 0x339   :  { %v2687_v54 = vpop.permute.xlu0 %2686  ;;  %2853 = vst.msk [vmem:[#allocation3 + $0x190] sm:$0xff] %vm2802_vm10, %v2711_v8  ;;  %v5124_v61 = vmax.f32 %v5122_v22, %v5123_v28  ;;  %v5166_v3 = vmax.f32 %v5164_v35, %v5165_v56  ;;  %vm13325_vm4 = vcmask 1047559   ;;  %vm13326_vm1 = vcmask 64512   ;;  %v11393_v23 = vld [vmem:[%s13155_s0 + $0x25a] sm:$0xff]  ;;  %v99_v28 = vld [vmem:[%s13155_s0 + $0x2e8] sm:$0xff] }
 0x33a   :  { %2841 = vst.msk [vmem:[#allocation3 + $0x130] sm:$0xff] %vm2802_vm10, %v2687_v54  ;;  %797 = vrot.lane.b32.xlu1 %v11252_v48, %s9097_s25  ;;  %v5131_v47 = vmax.f32 %v5129_v7, %v5130_v62  ;;  %v5137_v37 = vrot.slane %v5136_v45, 1  ;;  %v11388_v7 = vld [vmem:[%s13155_s0 + $0x2ea] sm:$0xff] }
 0x33b   :  { %773 = vrot.lane.b32.xlu0 %v11257_v33, %s9097_s25  ;;  %v5898_v36 = vsel %vm13321_vm13, %v5124_v61, %v5117_v41  ;;  %v5152_v33 = vmax.f32 %v5150_v6, %v5151_v58  ;;  %vm13327_vm13 = vmmov %vm13326_vm1  ;;  %164 = vst.msk [vmem:[#allocation3 + $0x1d0] sm:$0xff] %vm105_vm0, %v99_v28  ;;  %v88_v58 = vld [vmem:[%s13155_s0 + $0x260] sm:$0xff] }
 0x33c   :  { %v1176_v50 = vpop.permute.xlu1 %1175  ;;  %v5138_v55 = vmax.f32 %v5136_v45, %v5137_v37  ;;  %v5899_v48 = vsel %vm5851_vm2, %v5131_v47, %v5898_v36  ;;  %153 = vst.msk [vmem:[#allocation3 + $0x178] sm:$0xff] %vm105_vm0, %v88_v58 }
 0x33d   :  { %v1152_v51 = vpop.permute.xlu0 %1151  ;;  %1315 = vst.msk [vmem:[#allocation3 + $0x1a8] sm:$0xff] %vm13322_vm12, %v1176_v50  ;;  %vm13328_vm12 = vcmask 48152  }
 0x33e   :  { %1303 = vst.msk [vmem:[#allocation3 + $0x148] sm:$0xff] %vm13323_vm6, %v1152_v51  ;;  %1181 = vrot.lane.b32.xlu1 %v8420_v10, %s9099_s13  ;;  %v5900_v59 = vsel %vm13179_vm3, %v5138_v55, %v5899_v48  ;;  %vm13329_vm6 = vmmov %vm13328_vm12 }
 0x33f   :  { %1157 = vrot.lane.b32.xlu0 %v8408_v46, %s9099_s13  ;;  %v5901_v38 = vsel %vm13178_vm15, %v5145_v20, %v5900_v59  ;;  %v11445_v59 = vld [vmem:[%s13155_s0 + $0x262] sm:$0xff] }
 0x340   :  { %v1559_v1 = vpop.permute.xlu1 %1558  ;;  %v5902_v42 = vsel %vm13177_vm14, %v5152_v33, %v5901_v38  ;;  %v11332_v44 = vpop.f32.mrb[28].mxu0  ;;  %v11440_v33 = vld [vmem:[%s13155_s0 + $0x2f2] sm:$0xff] }
 0x341   :  { %v1535_v14 = vpop.permute.xlu0 %1534  ;;  %1699 = vst.msk [vmem:[#allocation3 + $0x1a0] sm:$0xff] %vm1646_vm7, %v1559_v1  ;;  %v5903_v27 = vsel %vm13324_vm5, %v5159_v63, %v5902_v42  ;;  %v11337_v4 = vpop.f32.mrb[29].mxu0  ;;  %vm13330_vm5 = vcmask 220160   ;;  %v3736_v41 = vadd.f32 %v11228_v57, %v11332_v44 }
 0x342   :  { %1687 = vst.msk [vmem:[#allocation3 + $0x140] sm:$0xff] %vm1646_vm7, %v1535_v14  ;;  %2335 = vrot.lane.b32.xlu1 %v8421_v60, %s9102_s19  ;;  %v5904_v21 = vsel %vm13325_vm4, %v5166_v3, %v5903_v27  ;;  %vm13331_vm4 = vmmov %vm13330_vm5  ;;  %v3731_v61 = vadd.f32 %v11228_v57, %v11337_v4 }
 0x343   :  { %2311 = vrot.lane.b32.xlu0 %v8409_v53, %s9102_s19  ;;  %5991 = vst.msk [vmem:[#allocation2 + $0x71] sm:$0xff] %vm13326_vm1, %v5904_v21  ;;  %vm13332_vm1 = vmmov %vm13329_vm6  ;;  %v3938_v56 = vmax.f32 %v3736_v41, 0.0 }
 0x344   :  { %v2713_v9 = vpop.permute.xlu1 %2712  ;;  %v3937_v20 = vmax.f32 %v3731_v61, 0.0 }
 0x345   :  { %v2689_v10 = vpop.permute.xlu0 %2688  ;;  %2854 = vst.msk [vmem:[#allocation3 + $0x198] sm:$0xff] %vm2802_vm10, %v2713_v9 }
 0x346   :  { %2842 = vst.msk [vmem:[#allocation3 + $0x138] sm:$0xff] %vm2802_vm10, %v2689_v10  ;;  %2718 = vrot.lane.b32.xlu1 %v8484_v24, %s9103_s27 }
 0x347   :  { %2694 = vrot.lane.b32.xlu0 %v8472_v40, %s9103_s27 }
 0x348   :  { %v3096_v46 = vpop.permute.xlu1 %3095 }
 0x349   :  { %v3072_v30 = vpop.permute.xlu0 %3071  ;;  %3238 = vst.msk [vmem:[#allocation3 + $0x190] sm:$0xff] %vm3187_vm11, %v3096_v46 }
 0x34a   :  { %3226 = vst.msk [vmem:[#allocation3 + $0x130] sm:$0xff] %vm3187_vm11, %v3072_v30  ;;  %1183 = vrot.lane.b32.xlu1 %v8421_v60, %s9099_s13  ;;  %v11355_v11 = vld [vmem:[#allocation2 + $0x70] sm:$0xff] }
 0x34b   :  { %1159 = vrot.lane.b32.xlu0 %v8409_v53, %s9099_s13  ;;  %6024 = vst.msk [vmem:[#allocation4 + $0x38] sm:$0xff] %vm13327_vm13, %v11355_v11  ;;  %vm13333_vm13 = vmmov %vm13332_vm1 }
 0x34c   :  { %v407_v13 = vpop.permute.xlu1 %406 }
 0x34d   :  { %v383_v16 = vpop.permute.xlu0 %382  ;;  %545 = vst.msk [vmem:[#allocation3 + $0x1b0] sm:$0xff] %vm13328_vm12, %v407_v13  ;;  %vm13334_vm12 = vcmask 72752  }
 0x34e   :  { %533 = vst.msk [vmem:[#allocation3 + $0x150] sm:$0xff] %vm13329_vm6, %v383_v16  ;;  %1566 = vrot.lane.b32.xlu1 %v8484_v24, %s9100_s24  ;;  %vm13335_vm6 = vmmov %vm13334_vm12 }
 0x34f   :  { %1542 = vrot.lane.b32.xlu0 %v8472_v40, %s9100_s24 }
 0x350   :  { %v1561_v5 = vpop.permute.xlu1 %1560  ;;  %v3302_v22 = vld [vmem:[#allocation3 + $0x190] sm:$0xff] }
 0x351   :  { %v1537_v6 = vpop.permute.xlu0 %1536  ;;  %v3290_v39 = vld [vmem:[#allocation3 + $0x130] sm:$0xff]  ;;  %1700 = vst.msk [vmem:[#allocation3 + $0x1a8] sm:$0xff] %vm1646_vm7, %v1561_v5  ;;  %8872 = vmatprep.mubr.msk.f32.mxu1 %vm13331_vm4, %v3302_v22 }
 0x352   :  { %1688 = vst.msk [vmem:[#allocation3 + $0x148] sm:$0xff] %vm1646_vm7, %v1537_v6  ;;  %8854 = vmatprep.mubr.msk.f32.mxu0 %vm13330_vm5, %v3290_v39  ;;  %2720 = vrot.lane.b32.xlu1 %v11369_v17, %s9103_s27  ;;  %vm13336_vm5 = vmmov %vm13331_vm4 }
 0x353   :  { %2696 = vrot.lane.b32.xlu0 %v11374_v19, %s9103_s27 }
 0x354   :  { %v1944_v2 = vpop.permute.xlu1 %1943 }
 0x355   :  { %v1920_v8 = vpop.permute.xlu0 %1919  ;;  %2084 = vst.msk [vmem:[#allocation3 + $0x1a0] sm:$0xff] %vm2031_vm8, %v1944_v2 }
 0x356   :  { %2072 = vst.msk [vmem:[#allocation3 + $0x140] sm:$0xff] %vm2031_vm8, %v1920_v8  ;;  %3103 = vrot.lane.b32.xlu1 %v11388_v7, %s9104_s16 }
 0x357   :  { %3079 = vrot.lane.b32.xlu0 %v11393_v23, %s9104_s16 }
 0x358   :  { %v3098_v54 = vpop.permute.xlu1 %3097 }
 0x359   :  { %v3074_v35 = vpop.permute.xlu0 %3073  ;;  %3239 = vst.msk [vmem:[#allocation3 + $0x198] sm:$0xff] %vm3187_vm11, %v3098_v54 }
 0x35a   :  { %3227 = vst.msk [vmem:[#allocation3 + $0x138] sm:$0xff] %vm3187_vm11, %v3074_v35  ;;  %414 = vrot.lane.b32.xlu1 %v8484_v24, %s9098_s26 }
 0x35b   :  { %390 = vrot.lane.b32.xlu0 %v8472_v40, %s9098_s26 }
 0x35c   :  { %v409_v62 = vpop.permute.xlu1 %408 }
 0x35d   :  { %v385_v45 = vpop.permute.xlu0 %384  ;;  %546 = vst.msk [vmem:[#allocation3 + $0x1b8] sm:$0xff] %vm13332_vm1, %v409_v62  ;;  %vm13337_vm1 = vcmask 64512  }
 0x35e   :  { %534 = vst.msk [vmem:[#allocation3 + $0x158] sm:$0xff] %vm13333_vm13, %v385_v45  ;;  %1568 = vrot.lane.b32.xlu1 %v11369_v17, %s9100_s24  ;;  %v4019_v1 = vsel %vm13337_vm1, %v3938_v56, -inf  ;;  %vm13338_vm13 = vmmov %vm13337_vm1 }
 0x35f   :  { %1544 = vrot.lane.b32.xlu0 %v11374_v19, %s9100_s24 }
 0x360   :  { %v792_v47 = vpop.permute.xlu1 %791  ;;  %v3303_v50 = vld [vmem:[#allocation3 + $0x198] sm:$0xff]  ;;  %v8844_v51 = vpop.f32.mrb[30].mxu0 }
 0x361   :  { %v768_v37 = vpop.permute.xlu0 %767  ;;  %v3291_v34 = vld [vmem:[#allocation3 + $0x138] sm:$0xff]  ;;  %930 = vst.msk [vmem:[#allocation3 + $0x1b0] sm:$0xff] %vm13334_vm12, %v792_v47  ;;  %8873 = vmatmul.mubr.msk.f32.gmra.mrb[2].mxu1 %vm13331_vm4, %v3303_v50  ;;  %v3746_v55 = vadd.f32 %v11228_v57, %v8844_v51  ;;  %v3740_v36 = vpop.f32.mrb[31].mxu0  ;;  %vm13339_vm12 = vmmov %vm13337_vm1 }
 0x362   :  { %918 = vst.msk [vmem:[#allocation3 + $0x150] sm:$0xff] %vm13335_vm6, %v768_v37  ;;  %8855 = vmatmul.mubr.msk.f32.gmra.mrb[38].mxu0 %vm13336_vm5, %v3291_v34  ;;  %1951 = vrot.lane.b32.xlu1 %v11388_v7, %s9101_s14  ;;  %v3741_v48 = vadd.f32 %v11228_v57, %v3740_v36  ;;  %v4016_v3 = vsel %vm13339_vm12, %v3937_v20, -inf  ;;  %vm13340_vm6 = vmmov %vm13337_vm1  ;;  %vm13341_vm5 = vcmask 58368   ;;  %vm13345_vm12 = vcmask 72752  }
 0x363   :  { %1927 = vrot.lane.b32.xlu0 %v11393_v23, %s9101_s14  ;;  %v3940_v60 = vmax.f32 %v3746_v55, 0.0  ;;  %vm13342_vm4 = vmmov %vm13341_vm5 }
 0x364   :  { %v1946_v53 = vpop.permute.xlu1 %1945  ;;  %v3939_v38 = vmax.f32 %v3741_v48, 0.0  ;;  %vm13343_vm1 = vmmov %vm13342_vm4 }
 0x365   :  { %v1922_v63 = vpop.permute.xlu0 %1921  ;;  %2085 = vst.msk [vmem:[#allocation3 + $0x1a8] sm:$0xff] %vm2031_vm8, %v1946_v53  ;;  %v4020_v14 = vsel %vm13338_vm13, %v3940_v60, -inf  ;;  %vm13344_vm13 = vmmov %vm13343_vm1 }
 0x366   :  { %2073 = vst.msk [vmem:[#allocation3 + $0x148] sm:$0xff] %vm2031_vm8, %v1922_v63  ;;  %3105 = vrot.lane.b32.xlu1 %v11440_v33, %s9104_s16  ;;  %v4021_v42 = vmax.f32 %v4019_v1, %v4020_v14  ;;  %v4017_v44 = vsel %vm13340_vm6, %v3939_v38, -inf  ;;  %vm13346_vm6 = vmmov %vm13345_vm12  ;;  %v8410_v38 = vld [vmem:[%s13155_s0 + $0x270] sm:$0xff] }
 0x367   :  { %3081 = vrot.lane.b32.xlu0 %v11445_v59, %s9104_s16  ;;  %v4018_v27 = vmax.f32 %v4016_v3, %v4017_v44 }
 0x368   :  { %v2330_v4 = vpop.permute.xlu1 %2329  ;;  %v4357_v24 = vcombine.high %v4021_v42, %v4021_v42  ;;  %v4364_v40 = vrot.slane %v4021_v42, %v10139_v0 }
 0x369   :  { %v2306_v21 = vpop.permute.xlu0 %2305  ;;  %2470 = vst.msk [vmem:[#allocation3 + $0x1a0] sm:$0xff] %vm2417_vm9, %v2330_v4  ;;  %v4340_v9 = vcombine.high %v4018_v27, %v4018_v27  ;;  %v4347_v10 = vrot.slane %v4018_v27, %v10139_v0 }
 0x36a   :  { %2458 = vst.msk [vmem:[#allocation3 + $0x140] sm:$0xff] %vm2417_vm9, %v2306_v21  ;;  %416 = vrot.lane.b32.xlu1 %v11369_v17, %s9098_s26  ;;  %v4371_v46 = vrot.slane %v4357_v24, %v10139_v0  ;;  %v4372_v30 = vcombine.high %v4364_v40, %v4364_v40  ;;  %v5195_v13 = vsel %vm13341_vm5, %v4364_v40, -inf  ;;  %vm13347_vm5 = vmmov %vm13343_vm1 }
 0x36b   :  { %392 = vrot.lane.b32.xlu0 %v11374_v19, %s9098_s26  ;;  %v5196_v16 = vrot.slane %v5195_v13, 4  ;;  %v4354_v52 = vrot.slane %v4340_v9, %v10139_v0  ;;  %v4355_v5 = vcombine.high %v4347_v10, %v4347_v10  ;;  %v5167_v6 = vsel %vm13342_vm4, %v4347_v10, -inf  ;;  %vm13348_vm4 = vmmov %vm13343_vm1 }
 0x36c   :  { %v794_v39 = vpop.permute.xlu1 %793  ;;  %v4373_v2 = vcombine.high %v4371_v46, %v4371_v46  ;;  %v5202_v8 = vsel %vm13343_vm1, %v4372_v30, -inf  ;;  %v5209_v17 = vsel %vm13344_vm13, %v4371_v46, -inf  ;;  %v5168_v54 = vrot.slane %v5167_v6, 4  ;;  %vm13349_vm13 = vmmov %vm13343_vm1 }
 0x36d   :  { %v770_v22 = vpop.permute.xlu0 %769  ;;  %931 = vst.msk [vmem:[#allocation3 + $0x1b8] sm:$0xff] %vm13345_vm12, %v794_v39  ;;  %v5197_v19 = vmax.f32 %v5195_v13, %v5196_v16  ;;  %v5203_v35 = vrot.slane %v5202_v8, 4  ;;  %v5210_v28 = vrot.slane %v5209_v17, 4  ;;  %v4356_v62 = vcombine.high %v4354_v52, %v4354_v52 }
 0x36e   :  { %919 = vst.msk [vmem:[#allocation3 + $0x158] sm:$0xff] %vm13346_vm6, %v770_v22  ;;  %799 = vrot.lane.b32.xlu1 %v11388_v7, %s9097_s25  ;;  %v5216_v45 = vsel %vm13347_vm5, %v4373_v2, -inf  ;;  %v5169_v32 = vmax.f32 %v5167_v6, %v5168_v54  ;;  %v5174_v58 = vsel %vm13348_vm4, %v4355_v5, -inf  ;;  %v5181_v41 = vsel %vm13343_vm1, %v4354_v52, -inf }
 0x36f   :  { %775 = vrot.lane.b32.xlu0 %v11393_v23, %s9097_s25  ;;  %v5204_v61 = vmax.f32 %v5202_v8, %v5203_v35  ;;  %v5211_v47 = vmax.f32 %v5209_v17, %v5210_v28  ;;  %v5217_v37 = vrot.slane %v5216_v45, 4  ;;  %v5175_v56 = vrot.slane %v5174_v58, 4 }
 0x370   :  { %v1178_v34 = vpop.permute.xlu1 %1177  ;;  %v5170_v51 = vrot.slane %v5169_v32, 2  ;;  %v5182_v55 = vrot.slane %v5181_v41, 4  ;;  %v5188_v7 = vsel %vm13349_vm13, %v4356_v62, -inf  ;;  %vm13350_vm12 = vcmask 97352  }
 0x371   :  { %v1154_v50 = vpop.permute.xlu0 %1153  ;;  %1316 = vst.msk [vmem:[#allocation3 + $0x1b0] sm:$0xff] %vm13350_vm12, %v1178_v34  ;;  %vm13351_vm6 = vmmov %vm13350_vm12  ;;  %v5198_v23 = vrot.slane %v5197_v19, 2  ;;  %v5205_v36 = vrot.slane %v5204_v61, 2  ;;  %v5218_v20 = vmax.f32 %v5216_v45, %v5217_v37  ;;  %v5176_v60 = vmax.f32 %v5174_v58, %v5175_v56 }
 0x372   :  { %1304 = vst.msk [vmem:[#allocation3 + $0x150] sm:$0xff] %vm13351_vm6, %v1154_v50  ;;  %1953 = vrot.lane.b32.xlu1 %v11440_v33, %s9101_s14  ;;  %v5171_v48 = vmax.f32 %v5169_v32, %v5170_v51  ;;  %v5183_v53 = vmax.f32 %v5181_v41, %v5182_v55  ;;  %v5189_v63 = vrot.slane %v5188_v7, 4  ;;  %v5212_v1 = vrot.slane %v5211_v47, 2  ;;  %vm13353_vm4 = vmmov %vm13351_vm6 }
 0x373   :  { %1929 = vrot.lane.b32.xlu0 %v11445_v59, %s9101_s14  ;;  %v5219_v42 = vrot.slane %v5218_v20, 2  ;;  %v5177_v44 = vrot.slane %v5176_v60, 2  ;;  %v5199_v21 = vmax.f32 %v5197_v19, %v5198_v23  ;;  %v5206_v24 = vmax.f32 %v5204_v61, %v5205_v36  ;;  %vm13354_vm1 = vmmov %vm13353_vm4  ;;  %v8486_v23 = vld [vmem:[%s13155_s0 + $0x301] sm:$0xff]  ;;  %v8474_v36 = vld [vmem:[%s13155_s0 + $0x271] sm:$0xff] }
 0x374   :  { %v2332_v14 = vpop.permute.xlu1 %2331  ;;  %v5184_v27 = vrot.slane %v5183_v53, 2  ;;  %v5190_v4 = vmax.f32 %v5188_v7, %v5189_v63  ;;  %v5172_v40 = vrot.slane %v5171_v48, 1  ;;  %v5213_v30 = vmax.f32 %v5211_v47, %v5212_v1  ;;  %v8411_v47 = vld [vmem:[%s13155_s0 + $0x278] sm:$0xff] }
 0x375   :  { %v2308_v3 = vpop.permute.xlu0 %2307  ;;  %2471 = vst.msk [vmem:[#allocation3 + $0x1a8] sm:$0xff] %vm2417_vm9, %v2332_v14  ;;  %v5178_v9 = vmax.f32 %v5176_v60, %v5177_v44  ;;  %v5220_v52 = vmax.f32 %v5218_v20, %v5219_v42  ;;  %v5200_v22 = vrot.slane %v5199_v21, 1  ;;  %v5207_v2 = vrot.slane %v5206_v24, 1 }
 0x376   :  { %2459 = vst.msk [vmem:[#allocation3 + $0x148] sm:$0xff] %vm2417_vm9, %v2308_v3  ;;  %2337 = vrot.lane.b32.xlu1 %v11105_v49, %s9102_s19  ;;  %v5185_v10 = vmax.f32 %v5183_v53, %v5184_v27  ;;  %v5191_v46 = vrot.slane %v5190_v4, 2  ;;  %v5173_v8 = vmax.f32 %v5171_v48, %v5172_v40  ;;  %v5214_v35 = vrot.slane %v5213_v30, 1  ;;  %v8487_v3 = vld [vmem:[%s13155_s0 + $0x309] sm:$0xff] }
 0x377   :  { %2313 = vrot.lane.b32.xlu0 %v8410_v38, %s9102_s19  ;;  %v5179_v5 = vrot.slane %v5178_v9, 1  ;;  %v5221_v45 = vrot.slane %v5220_v52, 1  ;;  %vm13352_vm5 = vcmask 1041409   ;;  %v5201_v41 = vmax.f32 %v5199_v21, %v5200_v22  ;;  %v8550_v21 = vld [vmem:[%s13155_s0 + $0x302] sm:$0xff]  ;;  %v8551_v22 = vld [vmem:[%s13155_s0 + $0x30a] sm:$0xff] }
 0x378   :  { %v2715_v13 = vpop.permute.xlu1 %2714  ;;  %v5186_v6 = vrot.slane %v5185_v10, 1  ;;  %v5192_v39 = vmax.f32 %v5190_v4, %v5191_v46  ;;  %v5215_v37 = vmax.f32 %v5213_v30, %v5214_v35  ;;  %vm13355_vm13 = vcmask 1046534  }
 0x379   :  { %v2691_v16 = vpop.permute.xlu0 %2690  ;;  %2855 = vst.msk [vmem:[#allocation3 + $0x1a0] sm:$0xff] %vm2802_vm10, %v2715_v13  ;;  %v5180_v17 = vmax.f32 %v5178_v9, %v5179_v5  ;;  %v5222_v56 = vmax.f32 %v5220_v52, %v5221_v45  ;;  %vm13356_vm12 = vcmask 1047559   ;;  %vm13357_vm6 = vcmask 64512  }
 0x37a   :  { %2843 = vst.msk [vmem:[#allocation3 + $0x140] sm:$0xff] %vm2802_vm10, %v2691_v16  ;;  %801 = vrot.lane.b32.xlu1 %v11440_v33, %s9097_s25  ;;  %v5187_v54 = vmax.f32 %v5185_v10, %v5186_v6  ;;  %v5193_v19 = vrot.slane %v5192_v39, 1  ;;  %v8539_v16 = vld [vmem:[%s13155_s0 + $0x27a] sm:$0xff] }
 0x37b   :  { %777 = vrot.lane.b32.xlu0 %v11445_v59, %s9097_s25  ;;  %v5905_v58 = vsel %vm13352_vm5, %v5180_v17, %v5173_v8  ;;  %v5208_v59 = vmax.f32 %v5206_v24, %v5207_v2  ;;  %vm13358_vm5 = vcmask 48152   ;;  %v8538_v24 = vld [vmem:[%s13155_s0 + $0x272] sm:$0xff] }
 0x37c   :  { %v1180_v28 = vpop.permute.xlu1 %1179  ;;  %v5194_v32 = vmax.f32 %v5192_v39, %v5193_v19  ;;  %v5906_v33 = vsel %vm5851_vm2, %v5187_v54, %v5905_v58  ;;  %v8412_v19 = vld [vmem:[%s13155_s0 + $0x288] sm:$0xff] }
 0x37d   :  { %v1156_v62 = vpop.permute.xlu0 %1155  ;;  %1317 = vst.msk [vmem:[#allocation3 + $0x1b8] sm:$0xff] %vm13353_vm4, %v1180_v28  ;;  %vm13359_vm4 = vmmov %vm13358_vm5 }
 0x37e   :  { %1305 = vst.msk [vmem:[#allocation3 + $0x158] sm:$0xff] %vm13354_vm1, %v1156_v62  ;;  %1185 = vrot.lane.b32.xlu1 %v11105_v49, %s9099_s13  ;;  %v5907_v61 = vsel %vm13179_vm3, %v5194_v32, %v5906_v33  ;;  %vm13360_vm1 = vcmask 220160   ;;  %v8424_v62 = vld [vmem:[%s13155_s0 + $0x318] sm:$0xff]  ;;  %v8413_v33 = vld [vmem:[%s13155_s0 + $0x290] sm:$0xff] }
 0x37f   :  { %1161 = vrot.lane.b32.xlu0 %v8410_v38, %s9099_s13  ;;  %v5908_v34 = vsel %vm13178_vm15, %v5201_v41, %v5907_v61 }
 0x380   :  { %v1563_v50 = vpop.permute.xlu1 %1562  ;;  %v5909_v55 = vsel %vm13177_vm14, %v5208_v59, %v5908_v34 }
 0x381   :  { %v1539_v51 = vpop.permute.xlu0 %1538  ;;  %1701 = vst.msk [vmem:[#allocation3 + $0x1b0] sm:$0xff] %vm1646_vm7, %v1563_v50  ;;  %v5910_v49 = vsel %vm13355_vm13, %v5215_v37, %v5909_v55  ;;  %vm13361_vm13 = vmmov %vm13360_vm1  ;;  %v8476_v55 = vld [vmem:[%s13155_s0 + $0x289] sm:$0xff] }
 0x382   :  { %1689 = vst.msk [vmem:[#allocation3 + $0x150] sm:$0xff] %vm1646_vm7, %v1539_v51  ;;  %2339 = vrot.lane.b32.xlu1 %v11150_v29, %s9102_s19  ;;  %v5911_v7 = vsel %vm13356_vm12, %v5222_v56, %v5910_v49  ;;  %vm13362_vm12 = vmmov %vm13359_vm4  ;;  %v8425_v49 = vld [vmem:[%s13155_s0 + $0x320] sm:$0xff] }
 0x383   :  { %2315 = vrot.lane.b32.xlu0 %v8411_v47, %s9102_s19  ;;  %5992 = vst.msk [vmem:[#allocation2 + $0x81] sm:$0xff] %vm13357_vm6, %v5911_v7  ;;  %vm13363_vm6 = vmmov %vm13359_vm4 }
 0x384   :  { %v2717_v20 = vpop.permute.xlu1 %2716 }
 0x385   :  { %v2693_v48 = vpop.permute.xlu0 %2692  ;;  %2856 = vst.msk [vmem:[#allocation3 + $0x1a8] sm:$0xff] %vm2802_vm10, %v2717_v20  ;;  %v11530_v60 = vpop.f32.mrb[32].mxu0 }
 0x386   :  { %2844 = vst.msk [vmem:[#allocation3 + $0x148] sm:$0xff] %vm2802_vm10, %v2693_v48  ;;  %v11532_v53 = vpop.f32.mrb[33].mxu0  ;;  %2722 = vrot.lane.b32.xlu1 %v8486_v23, %s9103_s27  ;;  %v3756_v58 = vadd.f32 %v11228_v57, %v11530_v60 }
 0x387   :  { %2698 = vrot.lane.b32.xlu0 %v8474_v36, %s9103_s27  ;;  %v3751_v41 = vadd.f32 %v11228_v57, %v11532_v53 }
 0x388   :  { %v3100_v63 = vpop.permute.xlu1 %3099  ;;  %v3942_v37 = vmax.f32 %v3756_v58, 0.0 }
 0x389   :  { %v3076_v38 = vpop.permute.xlu0 %3075  ;;  %3240 = vst.msk [vmem:[#allocation3 + $0x1a0] sm:$0xff] %vm3187_vm11, %v3100_v63  ;;  %v3941_v51 = vmax.f32 %v3751_v41, 0.0 }
 0x38a   :  { %3228 = vst.msk [vmem:[#allocation3 + $0x140] sm:$0xff] %vm3187_vm11, %v3076_v38  ;;  %1187 = vrot.lane.b32.xlu1 %v11150_v29, %s9099_s13  ;;  %v8475_v29 = vld [vmem:[%s13155_s0 + $0x279] sm:$0xff] }
 0x38b   :  { %1163 = vrot.lane.b32.xlu0 %v8411_v47, %s9099_s13  ;;  %v11639_v38 = vld [vmem:[%s13155_s0 + $0x319] sm:$0xff] }
 0x38c   :  { %v411_v1 = vpop.permute.xlu1 %410 }
 0x38d   :  { %v387_v14 = vpop.permute.xlu0 %386  ;;  %547 = vst.msk [vmem:[#allocation3 + $0x1c0] sm:$0xff] %vm13358_vm5, %v411_v1  ;;  %vm13364_vm5 = vcmask 72752  }
 0x38e   :  { %535 = vst.msk [vmem:[#allocation3 + $0x160] sm:$0xff] %vm13359_vm4, %v387_v14  ;;  %1570 = vrot.lane.b32.xlu1 %v8486_v23, %s9100_s24  ;;  %vm13365_vm4 = vmmov %vm13364_vm5 }
 0x38f   :  { %1546 = vrot.lane.b32.xlu0 %v8474_v36, %s9100_s24 }
 0x390   :  { %v1565_v42 = vpop.permute.xlu1 %1564  ;;  %v3304_v4 = vld [vmem:[#allocation3 + $0x1a0] sm:$0xff] }
 0x391   :  { %v1541_v44 = vpop.permute.xlu0 %1540  ;;  %v3292_v27 = vld [vmem:[#allocation3 + $0x140] sm:$0xff]  ;;  %1702 = vst.msk [vmem:[#allocation3 + $0x1b8] sm:$0xff] %vm1646_vm7, %v1565_v42  ;;  %8875 = vmatprep.mubr.msk.f32.mxu1 %vm13361_vm13, %v3304_v4  ;;  %vm13366_vm13 = vmmov %vm13360_vm1 }
 0x392   :  { %1690 = vst.msk [vmem:[#allocation3 + $0x158] sm:$0xff] %vm1646_vm7, %v1541_v44  ;;  %8857 = vmatprep.mubr.msk.f32.mxu0 %vm13360_vm1, %v3292_v27  ;;  %2724 = vrot.lane.b32.xlu1 %v8487_v3, %s9103_s27 }
 0x393   :  { %2700 = vrot.lane.b32.xlu0 %v8475_v29, %s9103_s27 }
 0x394   :  { %v1948_v40 = vpop.permute.xlu1 %1947 }
 0x395   :  { %v1924_v9 = vpop.permute.xlu0 %1923  ;;  %2086 = vst.msk [vmem:[#allocation3 + $0x1b0] sm:$0xff] %vm2031_vm8, %v1948_v40  ;;  %v8477_v40 = vld [vmem:[%s13155_s0 + $0x291] sm:$0xff] }
 0x396   :  { %2074 = vst.msk [vmem:[#allocation3 + $0x150] sm:$0xff] %vm2031_vm8, %v1924_v9  ;;  %3107 = vrot.lane.b32.xlu1 %v8550_v21, %s9104_s16 }
 0x397   :  { %3083 = vrot.lane.b32.xlu0 %v8538_v24, %s9104_s16 }
 0x398   :  { %v3102_v10 = vpop.permute.xlu1 %3101 }
 0x399   :  { %v3078_v46 = vpop.permute.xlu0 %3077  ;;  %3241 = vst.msk [vmem:[#allocation3 + $0x1a8] sm:$0xff] %vm3187_vm11, %v3102_v10 }
 0x39a   :  { %3229 = vst.msk [vmem:[#allocation3 + $0x148] sm:$0xff] %vm3187_vm11, %v3078_v46  ;;  %1548 = vrot.lane.b32.xlu1 %v8475_v29, %s9100_s24 }
 0x39b   :  { %418 = vrot.lane.b32.xlu0 %v8486_v23, %s9098_s26 }
 0x39c   :  { %v413_v30 = vpop.permute.xlu1 %412 }
 0x39d   :  { %v389_v13 = vpop.permute.xlu0 %388  ;;  %548 = vst.msk [vmem:[#allocation3 + $0x1c8] sm:$0xff] %vm13362_vm12, %v413_v30  ;;  %vm13367_vm12 = vmmov %vm13365_vm4 }
 0x39e   :  { %536 = vst.msk [vmem:[#allocation3 + $0x168] sm:$0xff] %vm13363_vm6, %v389_v13  ;;  %1931 = vrot.lane.b32.xlu1 %v8538_v24, %s9101_s14  ;;  %vm13368_vm6 = vmmov %vm13365_vm4 }
 0x39f   :  { %1572 = vrot.lane.b32.xlu0 %v8487_v3, %s9100_s24 }
 0x3a0   :  { %v796_v52 = vpop.permute.xlu1 %795  ;;  %v3305_v39 = vld [vmem:[#allocation3 + $0x1a8] sm:$0xff] }
 0x3a1   :  { %v772_v5 = vpop.permute.xlu0 %771  ;;  %v3293_v6 = vld [vmem:[#allocation3 + $0x148] sm:$0xff]  ;;  %932 = vst.msk [vmem:[#allocation3 + $0x1c0] sm:$0xff] %vm13364_vm5, %v796_v52  ;;  %8876 = vmatmul.mubr.msk.f32.gmra.mrb[4].mxu1 %vm13366_vm13, %v3305_v39  ;;  %vm13369_vm5 = vcmask 97352  }
 0x3a2   :  { %920 = vst.msk [vmem:[#allocation3 + $0x160] sm:$0xff] %vm13365_vm4, %v772_v5  ;;  %8858 = vmatmul.mubr.msk.f32.gmra.mrb[40].mxu0 %vm13360_vm1, %v3293_v6  ;;  %3085 = vrot.lane.b32.xlu1 %v8539_v16, %s9104_s16  ;;  %vm13370_vm4 = vmmov %vm13369_vm5  ;;  %vm13371_vm1 = vcmask 64512  }
 0x3a3   :  { %1955 = vrot.lane.b32.xlu0 %v8550_v21, %s9101_s14  ;;  %v4025_v48 = vsel %vm13371_vm1, %v3942_v37, -inf  ;;  %vm13372_vm13 = vmmov %vm13371_vm1 }
 0x3a4   :  { %v1950_v2 = vpop.permute.xlu1 %1949 }
 0x3a5   :  { %v1926_v8 = vpop.permute.xlu0 %1925  ;;  %2087 = vst.msk [vmem:[#allocation3 + $0x1b8] sm:$0xff] %vm2031_vm8, %v1950_v2 }
 0x3a6   :  { %2075 = vst.msk [vmem:[#allocation3 + $0x158] sm:$0xff] %vm2031_vm8, %v1926_v8  ;;  %420 = vrot.lane.b32.xlu1 %v8487_v3, %s9098_s26 }
 0x3a7   :  { %3109 = vrot.lane.b32.xlu0 %v8551_v22, %s9104_s16 }
 0x3a8   :  { %v2334_v17 = vpop.permute.xlu1 %2333 }
 0x3a9   :  { %v2310_v54 = vpop.permute.xlu0 %2309  ;;  %2472 = vst.msk [vmem:[#allocation3 + $0x1b0] sm:$0xff] %vm2417_vm9, %v2334_v17 }
 0x3aa   :  { %2460 = vst.msk [vmem:[#allocation3 + $0x150] sm:$0xff] %vm2417_vm9, %v2310_v54  ;;  %1933 = vrot.lane.b32.xlu1 %v8539_v16, %s9101_s14 }
 0x3ab   :  { %803 = vrot.lane.b32.xlu0 %v8550_v21, %s9097_s25 }
 0x3ac   :  { %v798_v35 = vpop.permute.xlu1 %797 }
 0x3ad   :  { %v774_v28 = vpop.permute.xlu0 %773  ;;  %933 = vst.msk [vmem:[#allocation3 + $0x1c8] sm:$0xff] %vm13367_vm12, %v798_v35  ;;  %vm13373_vm12 = vmmov %vm13371_vm1 }
 0x3ae   :  { %921 = vst.msk [vmem:[#allocation3 + $0x168] sm:$0xff] %vm13368_vm6, %v774_v28  ;;  %2317 = vrot.lane.b32.xlu1 %v8412_v19, %s9102_s19  ;;  %v4022_v60 = vsel %vm13373_vm12, %v3941_v51, -inf  ;;  %vm13374_vm6 = vmmov %vm13371_vm1  ;;  %vm13376_vm1 = vcmask 58368  }
 0x3af   :  { %1957 = vrot.lane.b32.xlu0 %v8551_v22, %s9101_s14  ;;  %vm13378_vm12 = vmmov %vm13376_vm1 }
 0x3b0   :  { %v1182_v45 = vpop.permute.xlu1 %1181 }
 0x3b1   :  { %v1158_v32 = vpop.permute.xlu0 %1157  ;;  %1318 = vst.msk [vmem:[#allocation3 + $0x1c0] sm:$0xff] %vm13369_vm5, %v1182_v45  ;;  %vm13375_vm5 = vmmov %vm13370_vm4  ;;  %v11671_v45 = vld [vmem:[%s13155_s0 + $0x321] sm:$0xff] }
 0x3b2   :  { %1306 = vst.msk [vmem:[#allocation3 + $0x160] sm:$0xff] %vm13370_vm4, %v1158_v32  ;;  %805 = vrot.lane.b32.xlu1 %v8551_v22, %s9097_s25 }
 0x3b3   :  { %2341 = vrot.lane.b32.xlu0 %v8424_v62, %s9102_s19 }
 0x3b4   :  { %v2336_v59 = vpop.permute.xlu1 %2335  ;;  %v8850_v47 = vpop.f32.mrb[34].mxu0 }
 0x3b5   :  { %v2312_v61 = vpop.permute.xlu0 %2311  ;;  %2473 = vst.msk [vmem:[#allocation3 + $0x1b8] sm:$0xff] %vm2417_vm9, %v2336_v59  ;;  %v3766_v34 = vadd.f32 %v11228_v57, %v8850_v47  ;;  %v3760_v50 = vpop.f32.mrb[35].mxu0 }
 0x3b6   :  { %2461 = vst.msk [vmem:[#allocation3 + $0x158] sm:$0xff] %vm2417_vm9, %v2312_v61  ;;  %2319 = vrot.lane.b32.xlu1 %v8413_v33, %s9102_s19  ;;  %v3761_v56 = vadd.f32 %v11228_v57, %v3760_v50 }
 0x3b7   :  { %1189 = vrot.lane.b32.xlu0 %v8424_v62, %s9099_s13  ;;  %v3944_v7 = vmax.f32 %v3766_v34, 0.0  ;;  %v8540_v62 = vld [vmem:[%s13155_s0 + $0x28a] sm:$0xff] }
 0x3b8   :  { %v2719_v23 = vpop.permute.xlu1 %2718  ;;  %v3943_v20 = vmax.f32 %v3761_v56, 0.0 }
 0x3b9   :  { %v2695_v36 = vpop.permute.xlu0 %2694  ;;  %2857 = vst.msk [vmem:[#allocation3 + $0x1b0] sm:$0xff] %vm2802_vm10, %v2719_v23  ;;  %v4026_v57 = vsel %vm13372_vm13, %v3944_v7, -inf  ;;  %vm13377_vm13 = vmmov %vm13376_vm1 }
 0x3ba   :  { %2845 = vst.msk [vmem:[#allocation3 + $0x150] sm:$0xff] %vm2802_vm10, %v2695_v36  ;;  %2702 = vrot.lane.b32.xlu1 %v8476_v55, %s9103_s27  ;;  %v4027_v53 = vmax.f32 %v4025_v48, %v4026_v57  ;;  %v4023_v63 = vsel %vm13374_vm6, %v3943_v20, -inf  ;;  %vm13379_vm6 = vmmov %vm13376_vm1  ;;  %v11682_v36 = vld [vmem:[%s13155_s0 + $0x31a] sm:$0xff] }
 0x3bb   :  { %2343 = vrot.lane.b32.xlu0 %v8425_v49, %s9102_s19  ;;  %v4024_v1 = vmax.f32 %v4022_v60, %v4023_v63 }
 0x3bc   :  { %v1184_v14 = vpop.permute.xlu1 %1183  ;;  %v4391_v29 = vcombine.high %v4027_v53, %v4027_v53  ;;  %v4398_v42 = vrot.slane %v4027_v53, %v10139_v0 }
 0x3bd   :  { %v1160_v3 = vpop.permute.xlu0 %1159  ;;  %1319 = vst.msk [vmem:[#allocation3 + $0x1c8] sm:$0xff] %vm13375_vm5, %v1184_v14  ;;  %v4374_v44 = vcombine.high %v4024_v1, %v4024_v1  ;;  %v4381_v27 = vrot.slane %v4024_v1, %v10139_v0  ;;  %vm13380_vm5 = vmmov %vm13376_vm1 }
 0x3be   :  { %1307 = vst.msk [vmem:[#allocation3 + $0x168] sm:$0xff] %vm13370_vm4, %v1160_v3  ;;  %1191 = vrot.lane.b32.xlu1 %v8425_v49, %s9099_s13  ;;  %v4405_v4 = vrot.slane %v4391_v29, %v10139_v0  ;;  %v4406_v21 = vcombine.high %v4398_v42, %v4398_v42  ;;  %v5251_v24 = vsel %vm13376_vm1, %v4398_v42, -inf  ;;  %vm13381_vm4 = vmmov %vm13376_vm1 }
 0x3bf   :  { %2726 = vrot.lane.b32.xlu0 %v11639_v38, %s9103_s27  ;;  %v5252_v9 = vrot.slane %v5251_v24, 4  ;;  %v4388_v10 = vrot.slane %v4374_v44, %v10139_v0  ;;  %v4389_v46 = vcombine.high %v4381_v27, %v4381_v27  ;;  %v5223_v30 = vsel %vm13377_vm13, %v4381_v27, -inf  ;;  %vm13382_vm13 = vmmov %vm13376_vm1 }
 0x3c0   :  { %v1567_v13 = vpop.permute.xlu1 %1566  ;;  %v4407_v52 = vcombine.high %v4405_v4, %v4405_v4  ;;  %v5258_v5 = vsel %vm13378_vm12, %v4406_v21, -inf  ;;  %v5265_v6 = vsel %vm13379_vm6, %v4405_v4, -inf  ;;  %v5224_v39 = vrot.slane %v5223_v30, 4 }
 0x3c1   :  { %v1543_v16 = vpop.permute.xlu0 %1542  ;;  %1703 = vst.msk [vmem:[#allocation3 + $0x1c0] sm:$0xff] %vm1646_vm7, %v1567_v13  ;;  %v5253_v22 = vmax.f32 %v5251_v24, %v5252_v9  ;;  %v5259_v2 = vrot.slane %v5258_v5, 4  ;;  %v5266_v8 = vrot.slane %v5265_v6, 4  ;;  %v4390_v17 = vcombine.high %v4388_v10, %v4388_v10 }
 0x3c2   :  { %1691 = vst.msk [vmem:[#allocation3 + $0x160] sm:$0xff] %vm1646_vm7, %v1543_v16  ;;  %2704 = vrot.lane.b32.xlu1 %v8477_v40, %s9103_s27  ;;  %v5272_v54 = vsel %vm13380_vm5, %v4407_v52, -inf  ;;  %v5225_v19 = vmax.f32 %v5223_v30, %v5224_v39  ;;  %v5230_v35 = vsel %vm13381_vm4, %v4389_v46, -inf  ;;  %v5237_v28 = vsel %vm13376_vm1, %v4388_v10, -inf  ;;  %v8541_v39 = vld [vmem:[%s13155_s0 + $0x292] sm:$0xff] }
 0x3c3   :  { %1574 = vrot.lane.b32.xlu0 %v11639_v38, %s9100_s24  ;;  %v5260_v32 = vmax.f32 %v5258_v5, %v5259_v2  ;;  %v5267_v58 = vmax.f32 %v5265_v6, %v5266_v8  ;;  %v5273_v41 = vrot.slane %v5272_v54, 4  ;;  %v5231_v47 = vrot.slane %v5230_v35, 4  ;;  %v8553_v6 = vld [vmem:[%s13155_s0 + $0x322] sm:$0xff] }
 0x3c4   :  { %v2721_v33 = vpop.permute.xlu1 %2720  ;;  %v5226_v61 = vrot.slane %v5225_v19, 2  ;;  %v5238_v37 = vrot.slane %v5237_v28, 4  ;;  %v5244_v34 = vsel %vm13382_vm13, %v4390_v17, -inf  ;;  %v5254_v50 = vrot.slane %v5253_v22, 2 }
 0x3c5   :  { %v2697_v59 = vpop.permute.xlu0 %2696  ;;  %2858 = vst.msk [vmem:[#allocation3 + $0x1b8] sm:$0xff] %vm2802_vm10, %v2721_v33  ;;  %v5261_v51 = vrot.slane %v5260_v32, 2  ;;  %v5274_v56 = vmax.f32 %v5272_v54, %v5273_v41  ;;  %v5232_v49 = vmax.f32 %v5230_v35, %v5231_v47  ;;  %v5245_v23 = vrot.slane %v5244_v34, 4 }
 0x3c6   :  { %2846 = vst.msk [vmem:[#allocation3 + $0x158] sm:$0xff] %vm2802_vm10, %v2697_v59  ;;  %3087 = vrot.lane.b32.xlu1 %v8540_v62, %s9104_s16  ;;  %v5227_v55 = vmax.f32 %v5225_v19, %v5226_v61  ;;  %v5239_v7 = vmax.f32 %v5237_v28, %v5238_v37  ;;  %v5268_v20 = vrot.slane %v5267_v58, 2  ;;  %v5255_v14 = vmax.f32 %v5253_v22, %v5254_v50 }
 0x3c7   :  { %2728 = vrot.lane.b32.xlu0 %v11671_v45, %s9103_s27  ;;  %v5275_v60 = vrot.slane %v5274_v56, 2  ;;  %v5233_v53 = vrot.slane %v5232_v49, 2  ;;  %v5246_v1 = vmax.f32 %v5244_v34, %v5245_v23  ;;  %v5262_v3 = vmax.f32 %v5260_v32, %v5261_v51  ;;  %v8490_v23 = vld [vmem:[%s13155_s0 + $0x331] sm:$0xff] }
 0x3c8   :  { %v3104_v48 = vpop.permute.xlu1 %3103  ;;  %v5240_v63 = vrot.slane %v5239_v7, 2  ;;  %v5228_v29 = vrot.slane %v5227_v55, 1  ;;  %v5269_v4 = vmax.f32 %v5267_v58, %v5268_v20  ;;  %vm13383_vm12 = vcmask 48152  }
 0x3c9   :  { %v3080_v57 = vpop.permute.xlu0 %3079  ;;  %3242 = vst.msk [vmem:[#allocation3 + $0x1b0] sm:$0xff] %vm3187_vm11, %v3104_v48  ;;  %v5234_v42 = vmax.f32 %v5232_v49, %v5233_v53  ;;  %v5247_v27 = vrot.slane %v5246_v1, 2  ;;  %v5276_v40 = vmax.f32 %v5274_v56, %v5275_v60  ;;  %vm13384_vm6 = vmmov %vm13383_vm12  ;;  %v5256_v30 = vrot.slane %v5255_v14, 1  ;;  %v8426_v56 = vld [vmem:[%s13155_s0 + $0x330] sm:$0xff] }
 0x3ca   :  { %3230 = vst.msk [vmem:[#allocation3 + $0x150] sm:$0xff] %vm3187_vm11, %v3080_v57  ;;  %422 = vrot.lane.b32.xlu1 %v11639_v38, %s9098_s26  ;;  %v5241_v44 = vmax.f32 %v5239_v7, %v5240_v63  ;;  %v5263_v38 = vrot.slane %v5262_v3, 1  ;;  %v5229_v13 = vmax.f32 %v5227_v55, %v5228_v29  ;;  %v5270_v22 = vrot.slane %v5269_v4, 1  ;;  %v103_v63 = vld [vmem:[%s13155_s0 + $0x318] sm:$0xff] }
 0x3cb   :  { %3111 = vrot.lane.b32.xlu0 %v11682_v36, %s9104_s16  ;;  %v5235_v9 = vrot.slane %v5234_v42, 1  ;;  %v5248_v46 = vmax.f32 %v5246_v1, %v5247_v27  ;;  %v5277_v19 = vrot.slane %v5276_v40, 1  ;;  %vm13385_vm5 = vcmask 1041409   ;;  %168 = vst.msk [vmem:[#allocation3 + $0x1f0] sm:$0xff] %vm105_vm0, %v103_v63  ;;  %v8491_v29 = vld [vmem:[%s13155_s0 + $0x339] sm:$0xff] }
 0x3cc   :  { %v415_v21 = vpop.permute.xlu1 %414  ;;  %v5242_v10 = vrot.slane %v5241_v44, 1  ;;  %vm13386_vm4 = vcmask 220160   ;;  %v5257_v62 = vmax.f32 %v5255_v14, %v5256_v30  ;;  %v5264_v58 = vmax.f32 %v5262_v3, %v5263_v38  ;;  %v8554_v3 = vld [vmem:[%s13155_s0 + $0x332] sm:$0xff]  ;;  %v104_v27 = vld [vmem:[%s13155_s0 + $0x320] sm:$0xff] }
 0x3cd   :  { %v391_v24 = vpop.permute.xlu0 %390  ;;  %549 = vst.msk [vmem:[#allocation3 + $0x1d0] sm:$0xff] %vm13383_vm12, %v415_v21  ;;  %v5236_v16 = vmax.f32 %v5234_v42, %v5235_v9  ;;  %v5249_v5 = vrot.slane %v5248_v46, 1  ;;  %vm13387_vm1 = vmmov %vm13386_vm4  ;;  %v5271_v33 = vmax.f32 %v5269_v4, %v5270_v22  ;;  %v5278_v37 = vmax.f32 %v5276_v40, %v5277_v19  ;;  %v6001_v30 = vld [vmem:[#allocation2] sm:$0xff]  ;;  %v8492_v22 = vld [vmem:[%s13155_s0 + $0x349] sm:$0xff] }
 0x3ce   :  { %537 = vst.msk [vmem:[#allocation3 + $0x170] sm:$0xff] %vm13384_vm6, %v391_v24  ;;  %1959 = vrot.lane.b32.xlu1 %v11682_v36, %s9101_s14  ;;  %v5243_v52 = vmax.f32 %v5241_v44, %v5242_v10  ;;  %vm13388_vm13 = vcmask 1046534   ;;  %vm13389_vm12 = vcmask 1047559   ;;  %vm13390_vm6 = vcmask 64512   ;;  %v8365_v24 = vld [vmem:[%s13155_s0 + $0x33a] sm:$0xff]  ;;  %v8429_v10 = vld [vmem:[%s13155_s0 + $0x350] sm:$0xff] }
 0x3cf   :  { %1576 = vrot.lane.b32.xlu0 %v11671_v45, %s9100_s24  ;;  %v5250_v35 = vmax.f32 %v5248_v46, %v5249_v5  ;;  %v5912_v28 = vsel %vm13385_vm5, %v5236_v16, %v5229_v13  ;;  %vm13391_vm5 = vcmask 48152   ;;  %169 = vst.msk [vmem:[#allocation3 + $0x1f8] sm:$0xff] %vm105_vm0, %v104_v27  ;;  %v8428_v46 = vld [vmem:[%s13155_s0 + $0x348] sm:$0xff]  ;;  %vm13402_vm0 = vcmask 64512  }
 0x3d0   :  { %v1569_v2 = vpop.permute.xlu1 %1568  ;;  %v3306_v54 = vld [vmem:[#allocation3 + $0x1b0] sm:$0xff]  ;;  %v5913_v32 = vsel %vm5851_vm2, %v5243_v52, %v5912_v28  ;;  %6017 = vst.msk [vmem:[#allocation4] sm:$0xff] %vm13402_vm0, %v6001_v30  ;;  %v6033_v28 = vld [vmem:[#allocation2 + $0x1] sm:$0xff]  ;;  %vm13409_vm0 = vcmask 72752   ;;  %v6833_v30 = vld [vmem:[%s13158_s3 + $0x38] sm:$0xff] }
 0x3d1   :  { %v1545_v8 = vpop.permute.xlu0 %1544  ;;  %v3294_v17 = vld [vmem:[#allocation3 + $0x150] sm:$0xff]  ;;  %1704 = vst.msk [vmem:[#allocation3 + $0x1c8] sm:$0xff] %vm1646_vm7, %v1569_v2  ;;  %8878 = vmatprep.mubr.msk.f32.mxu1 %vm13387_vm1, %v3306_v54  ;;  %v5914_v41 = vsel %vm13179_vm3, %v5250_v35, %v5913_v32  ;;  %vm13393_vm1 = vmmov %vm13390_vm6 }
 0x3d2   :  { %1692 = vst.msk [vmem:[#allocation3 + $0x168] sm:$0xff] %vm1646_vm7, %v1545_v8  ;;  %8860 = vmatprep.mubr.msk.f32.mxu0 %vm13386_vm4, %v3294_v17  ;;  %3113 = vrot.lane.b32.xlu1 %v8553_v6, %s9104_s16  ;;  %v5915_v59 = vsel %vm13178_vm15, %v5257_v62, %v5914_v41  ;;  %vm13392_vm4 = vmmov %vm13391_vm5  ;;  %v8557_v17 = vld [vmem:[%s13155_s0 + $0x352] sm:$0xff]  ;;  %v8556_v54 = vld [vmem:[%s13155_s0 + $0x34a] sm:$0xff] }
 0x3d3   :  { %3089 = vrot.lane.b32.xlu0 %v8541_v39, %s9104_s16  ;;  %v5916_v34 = vsel %vm13177_vm14, %v5264_v58, %v5915_v59  ;;  %v8493_v39 = vld [vmem:[%s13155_s0 + $0x351] sm:$0xff]  ;;  %v6130_v41 = vld [vmem:[#allocation2 + $0x2] sm:$0xff] }
 0x3d4   :  { %v1952_v61 = vpop.permute.xlu1 %1951  ;;  %v5917_v50 = vsel %vm13388_vm13, %v5271_v33, %v5916_v34  ;;  %vm13394_vm13 = vcmask 72752   ;;  %v6034_v58 = vld [vmem:[#allocation2 + $0x11] sm:$0xff] }
 0x3d5   :  { %v1928_v47 = vpop.permute.xlu0 %1927  ;;  %2088 = vst.msk [vmem:[#allocation3 + $0x1c0] sm:$0xff] %vm2031_vm8, %v1952_v61  ;;  %v5918_v51 = vsel %vm13389_vm12, %v5278_v37, %v5917_v50  ;;  %vm13395_vm12 = vmmov %vm13394_vm13  ;;  %v6131_v61 = vld [vmem:[#allocation2 + $0x12] sm:$0xff] }
 0x3d6   :  { %2076 = vst.msk [vmem:[#allocation3 + $0x160] sm:$0xff] %vm2031_vm8, %v1928_v47  ;;  %807 = vrot.lane.b32.xlu1 %v11682_v36, %s9097_s25  ;;  %v8427_v36 = vld [vmem:[%s13155_s0 + $0x338] sm:$0xff]  ;;  %s9109_s0 = smov 16  }
 0x3d7   :  { %424 = vrot.lane.b32.xlu0 %v11671_v45, %s9098_s26  ;;  %5993 = vst.msk [vmem:[#allocation2 + $0xb1] sm:$0xff] %vm13390_vm6, %v5918_v51  ;;  %vm13396_vm6 = vcmask 220160   ;;  %v6035_v51 = vld [vmem:[#allocation2 + $0x21] sm:$0xff] }
 0x3d8   :  { %v3106_v55 = vpop.permute.xlu1 %3105 }
 0x3d9   :  { %v3082_v49 = vpop.permute.xlu0 %3081  ;;  %3243 = vst.msk [vmem:[#allocation3 + $0x1b8] sm:$0xff] %vm3187_vm11, %v3106_v55 }
 0x3da   :  { %3231 = vst.msk [vmem:[#allocation3 + $0x158] sm:$0xff] %vm3187_vm11, %v3082_v49  ;;  %2345 = vrot.lane.b32.xlu1 %v8426_v56, %s9102_s19 }
 0x3db   :  { %1961 = vrot.lane.b32.xlu0 %v8553_v6, %s9101_s14 }
 0x3dc   :  { %v417_v7 = vpop.permute.xlu1 %416 }
 0x3dd   :  { %v393_v45 = vpop.permute.xlu0 %392  ;;  %550 = vst.msk [vmem:[#allocation3 + $0x1d8] sm:$0xff] %vm13391_vm5, %v417_v7  ;;  %vm13397_vm5 = vmmov %vm13396_vm6 }
 0x3de   :  { %538 = vst.msk [vmem:[#allocation3 + $0x178] sm:$0xff] %vm13392_vm4, %v393_v45  ;;  %1193 = vrot.lane.b32.xlu1 %v8426_v56, %s9099_s13  ;;  %v11739_v20 = vld [vmem:[#allocation2 + $0xb0] sm:$0xff]  ;;  %vm13398_vm4 = vmmov %vm13395_vm12 }
 0x3df   :  { %809 = vrot.lane.b32.xlu0 %v8553_v6, %s9097_s25  ;;  %6026 = vst.msk [vmem:[#allocation4 + $0x48] sm:$0xff] %vm13393_vm1, %v11739_v20  ;;  %vm13399_vm1 = vmmov %vm13398_vm4  ;;  %s9113_s25 = smov 56  }
 0x3e0   :  { %v800_v48 = vpop.permute.xlu1 %799  ;;  %v3307_v53 = vld [vmem:[#allocation3 + $0x1b8] sm:$0xff] }
 0x3e1   :  { %v776_v57 = vpop.permute.xlu0 %775  ;;  %v3295_v60 = vld [vmem:[#allocation3 + $0x158] sm:$0xff]  ;;  %934 = vst.msk [vmem:[#allocation3 + $0x1d0] sm:$0xff] %vm13394_vm13, %v800_v48  ;;  %8879 = vmatmul.mubr.msk.f32.gmra.mrb[6].mxu1 %vm13397_vm5, %v3307_v53  ;;  %vm13400_vm13 = vcmask 97352   ;;  %v6827_v53 = vld [vmem:[%s13158_s3 + $0x8] sm:$0xff] }
 0x3e2   :  { %922 = vst.msk [vmem:[#allocation3 + $0x170] sm:$0xff] %vm13395_vm12, %v776_v57  ;;  %8861 = vmatmul.mubr.msk.f32.gmra.mrb[42].mxu0 %vm13396_vm6, %v3295_v60  ;;  %2730 = vrot.lane.b32.xlu1 %v8490_v23, %s9103_s27  ;;  %vm13401_vm12 = vmmov %vm13400_vm13  ;;  %v6826_v60 = vld [vmem:[%s13158_s3] sm:$0xff] }
 0x3e3   :  { %2347 = vrot.lane.b32.xlu0 %v8427_v36, %s9102_s19  ;;  %vm13403_vm6 = vmmov %vm13401_vm12 }
 0x3e4   :  { %v1954_v1 = vpop.permute.xlu1 %1953  ;;  %vm13404_vm5 = vmmov %vm13403_vm6 }
 0x3e5   :  { %v1930_v14 = vpop.permute.xlu0 %1929  ;;  %2089 = vst.msk [vmem:[#allocation3 + $0x1c8] sm:$0xff] %vm2031_vm8, %v1954_v1 }
 0x3e6   :  { %2077 = vst.msk [vmem:[#allocation3 + $0x168] sm:$0xff] %vm2031_vm8, %v1930_v14  ;;  %1578 = vrot.lane.b32.xlu1 %v8490_v23, %s9100_s24  ;;  %v6036_v23 = vld [vmem:[#allocation2 + $0x31] sm:$0xff] }
 0x3e7   :  { %1195 = vrot.lane.b32.xlu0 %v8427_v36, %s9099_s13  ;;  %v6132_v36 = vld [vmem:[#allocation2 + $0x22] sm:$0xff] }
 0x3e8   :  { %v2338_v42 = vpop.permute.xlu1 %2337 }
 0x3e9   :  { %v2314_v44 = vpop.permute.xlu0 %2313  ;;  %2474 = vst.msk [vmem:[#allocation3 + $0x1c0] sm:$0xff] %vm2417_vm9, %v2338_v42  ;;  %v6829_v42 = vld [vmem:[%s13158_s3 + $0x18] sm:$0xff] }
 0x3ea   :  { %2462 = vst.msk [vmem:[#allocation3 + $0x160] sm:$0xff] %vm2417_vm9, %v2314_v44  ;;  %3115 = vrot.lane.b32.xlu1 %v8554_v3, %s9104_s16 }
 0x3eb   :  { %2732 = vrot.lane.b32.xlu0 %v8491_v29, %s9103_s27 }
 0x3ec   :  { %v802_v4 = vpop.permute.xlu1 %801 }
 0x3ed   :  { %v778_v21 = vpop.permute.xlu0 %777  ;;  %935 = vst.msk [vmem:[#allocation3 + $0x1d8] sm:$0xff] %vm13398_vm4, %v802_v4  ;;  %vm13405_vm4 = vcmask 48152  }
 0x3ee   :  { %923 = vst.msk [vmem:[#allocation3 + $0x178] sm:$0xff] %vm13399_vm1, %v778_v21  ;;  %1963 = vrot.lane.b32.xlu1 %v8554_v3, %s9101_s14  ;;  %vm13406_vm1 = vcmask 220160   ;;  %v8975_v3 = vpack.c.bf16 %v6827_v53, %v6826_v60 }
 0x3ef   :  { %1580 = vrot.lane.b32.xlu0 %v8491_v29, %s9100_s24  ;;  %v6133_v29 = vld [vmem:[#allocation2 + $0x32] sm:$0xff] }
 0x3f0   :  { %v1186_v40 = vpop.permute.xlu1 %1185  ;;  %8976 = vmatprep.subr.bf16.mxu1 %v8975_v3 }
 0x3f1   :  { %v1162_v9 = vpop.permute.xlu0 %1161  ;;  %1320 = vst.msk [vmem:[#allocation3 + $0x1d0] sm:$0xff] %vm13400_vm13, %v1186_v40  ;;  %vm13407_vm13 = vmmov %vm13406_vm1  ;;  %8978 = vmatpush3.bf16.msra.mxu1 %v8975_v3  ;;  %v6831_v40 = vld [vmem:[%s13158_s3 + $0x28] sm:$0xff] }
 0x3f2   :  { %1308 = vst.msk [vmem:[#allocation3 + $0x170] sm:$0xff] %vm13401_vm12, %v1162_v9  ;;  %1965 = vrot.lane.b32.xlu1 %v8365_v24, %s9101_s14  ;;  %vm13408_vm12 = vmmov %vm13405_vm4 }
 0x3f3   :  { %3117 = vrot.lane.b32.xlu0 %v8365_v24, %s9104_s16  ;;  %v6830_v24 = vld [vmem:[%s13158_s3 + $0x20] sm:$0xff] }
 0x3f4   :  { %v2340_v38 = vpop.permute.xlu1 %2339  ;;  %v11793_v52 = vpop.f32.mrb[0].mxu1  ;;  %v8983_v9 = vpack.c.bf16 %v6831_v40, %v6830_v24 }
 0x3f5   :  { %v2316_v13 = vpop.permute.xlu0 %2315  ;;  %2475 = vst.msk [vmem:[#allocation3 + $0x1c8] sm:$0xff] %vm2417_vm9, %v2340_v38  ;;  %v11791_v16 = vpop.f32.mrb[36].mxu0 }
 0x3f6   :  { %2463 = vst.msk [vmem:[#allocation3 + $0x168] sm:$0xff] %vm2417_vm9, %v2316_v13  ;;  %v11795_v5 = vpop.f32.mrb[37].mxu0  ;;  %2351 = vrot.lane.b32.xlu1 %v8429_v10, %s9102_s19  ;;  %v11799_v6 = vpop.f32.mrb[1].mxu1 }
 0x3f7   :  { %2349 = vrot.lane.b32.xlu0 %v8428_v46, %s9102_s19 }
 0x3f8   :  { %v2723_v2 = vpop.permute.xlu1 %2722 }
 0x3f9   :  { %v2699_v8 = vpop.permute.xlu0 %2698  ;;  %2859 = vst.msk [vmem:[#allocation3 + $0x1c0] sm:$0xff] %vm2802_vm10, %v2723_v2 }
 0x3fa   :  { %2847 = vst.msk [vmem:[#allocation3 + $0x160] sm:$0xff] %vm2802_vm10, %v2699_v8  ;;  %2736 = vrot.lane.b32.xlu1 %v8493_v39, %s9103_s27 }
 0x3fb   :  { %2734 = vrot.lane.b32.xlu0 %v8492_v22, %s9103_s27  ;;  %s9108_s27 = smov 8   ;;  %v6834_v22 = vld [vmem:[%s13158_s3 + $0x40] sm:$0xff] }
 0x3fc   :  { %v1188_v19 = vpop.permute.xlu1 %1187 }
 0x3fd   :  { %v1164_v35 = vpop.permute.xlu0 %1163  ;;  %1321 = vst.msk [vmem:[#allocation3 + $0x1d8] sm:$0xff] %vm13403_vm6, %v1188_v19  ;;  %vm13410_vm6 = vmmov %vm13406_vm1 }
 0x3fe   :  { %1309 = vst.msk [vmem:[#allocation3 + $0x178] sm:$0xff] %vm13404_vm5, %v1164_v35  ;;  %3121 = vrot.lane.b32.xlu1 %v8557_v17, %s9104_s16  ;;  %vm13411_vm5 = vmmov %vm13406_vm1  ;;  %v11904_v17 = vld [vmem:[#allocation2 + $0x41] sm:$0xff]  ;;  %v11913_v35 = vld [vmem:[%s13157_s2] ss:$0 sm:$0xff] }
 0x3ff   :  { %3119 = vrot.lane.b32.xlu0 %v8556_v54, %s9104_s16 }
 0x400   :  { %v1571_v62 = vpop.permute.xlu1 %1570 }
 0x401   :  { %v1547_v32 = vpop.permute.xlu0 %1546  ;;  %1705 = vst.msk [vmem:[#allocation3 + $0x1d0] sm:$0xff] %vm1646_vm7, %v1571_v62  ;;  %v3836_v62 = vadd.f32 %v11913_v35, %v11793_v52 }
 0x402   :  { %1693 = vst.msk [vmem:[#allocation3 + $0x170] sm:$0xff] %vm1646_vm7, %v1547_v32  ;;  %6067 = vrot.lane.b32.xlu1 %v6034_v58, %s9108_s27  ;;  %v3771_v32 = vadd.f32 %v11913_v35, %v11795_v5  ;;  %v11931_v5 = vld [vmem:[#allocation2 + $0x42] sm:$0xff] }
 0x403   :  { %6065 = vrot.lane.b32.xlu0 %v6033_v28, %s9108_s27  ;;  %v3776_v28 = vadd.f32 %v11913_v35, %v11791_v16 }
 0x404   :  { %v2725_v33 = vpop.permute.xlu1 %2724 }
 0x405   :  { %v2701_v59 = vpop.permute.xlu0 %2700  ;;  %2860 = vst.msk [vmem:[#allocation3 + $0x1c8] sm:$0xff] %vm2802_vm10, %v2725_v33  ;;  %v3946_v16 = vmax.f32 %v3776_v28, 0.0 }
 0x406   :  { %2848 = vst.msk [vmem:[#allocation3 + $0x168] sm:$0xff] %vm2802_vm10, %v2701_v59  ;;  %6164 = vrot.lane.b32.xlu1 %v6131_v61, %s9109_s0  ;;  %v3958_v59 = vmax.f32 %v3836_v62, 0.0 }
 0x407   :  { %6162 = vrot.lane.b32.xlu0 %v6130_v41, %s9109_s0 }
 0x408   :  { %v3108_v47 = vpop.permute.xlu1 %3107 }
 0x409   :  { %v3084_v37 = vpop.permute.xlu0 %3083  ;;  %3244 = vst.msk [vmem:[#allocation3 + $0x1c0] sm:$0xff] %vm3187_vm11, %v3108_v47  ;;  %v11929_v47 = vld [vmem:[#allocation2 + $0x51] sm:$0xff] }
 0x40a   :  { %3232 = vst.msk [vmem:[#allocation3 + $0x160] sm:$0xff] %vm3187_vm11, %v3084_v37  ;;  %6261 = vrot.lane.b32.xlu1 %v10438_v31, %s9104_s16  ;;  %v3945_v37 = vmax.f32 %v3771_v32, 0.0 }
 0x40b   :  { %6259 = vrot.lane.b32.xlu0 %v10266_v43, %s9104_s16 }
 0x40c   :  { %v1549_v34 = vpop.permute.xlu1 %1548 }
 0x40d   :  { %v419_v50 = vpop.permute.xlu0 %418  ;;  %1694 = vst.msk [vmem:[#allocation3 + $0x178] sm:$0xff] %vm1646_vm7, %v1549_v34 }
 0x40e   :  { %551 = vst.msk [vmem:[#allocation3 + $0x1e0] sm:$0xff] %vm13405_vm4, %v419_v50  ;;  %6069 = vrot.lane.b32.xlu1 %v6035_v51, %s9108_s27  ;;  %vm13412_vm4 = vmmov %vm13409_vm0 }
 0x40f   :  { %6356 = vrot.lane.b32.xlu0 %v6034_v58, %s9110_s17  ;;  %v3831_v58 = vadd.f32 %v11913_v35, %v11799_v6 }
 0x410   :  { %v1932_v56 = vpop.permute.xlu1 %1931  ;;  %v3308_v7 = vld [vmem:[#allocation3 + $0x1c0] sm:$0xff] }
 0x411   :  { %v1573_v55 = vpop.permute.xlu0 %1572  ;;  %v3296_v49 = vld [vmem:[#allocation3 + $0x160] sm:$0xff]  ;;  %2078 = vst.msk [vmem:[#allocation3 + $0x170] sm:$0xff] %vm2031_vm8, %v1932_v56  ;;  %8881 = vmatprep.mubr.msk.f32.mxu1 %vm13407_vm13, %v3308_v7  ;;  %v3957_v6 = vmax.f32 %v3831_v58, 0.0 }
 0x412   :  { %1706 = vst.msk [vmem:[#allocation3 + $0x1d8] sm:$0xff] %vm1646_vm7, %v1573_v55  ;;  %8863 = vmatprep.mubr.msk.f32.mxu0 %vm13406_vm1, %v3296_v49  ;;  %6453 = vrot.lane.b32.xlu1 %v6131_v61, %s9111_s18  ;;  %vm13413_vm1 = vcmask 97352  }
 0x413   :  { %6358 = vrot.lane.b32.xlu0 %v6035_v51, %s9110_s17  ;;  %vm13414_vm13 = vmmov %vm13413_vm1 }
 0x414   :  { %v3086_v43 = vpop.permute.xlu1 %3085 }
 0x415   :  { %v1956_v45 = vpop.permute.xlu0 %1955  ;;  %3233 = vst.msk [vmem:[#allocation3 + $0x168] sm:$0xff] %vm3187_vm11, %v3086_v43 }
 0x416   :  { %2090 = vst.msk [vmem:[#allocation3 + $0x1d0] sm:$0xff] %vm2031_vm8, %v1956_v45  ;;  %6166 = vrot.lane.b32.xlu1 %v6132_v36, %s9109_s0 }
 0x417   :  { %6071 = vrot.lane.b32.xlu0 %v6036_v23, %s9108_s27 }
 0x418   :  { %v421_v48 = vpop.permute.xlu1 %420 }
 0x419   :  { %v3110_v57 = vpop.permute.xlu0 %3109  ;;  %552 = vst.msk [vmem:[#allocation3 + $0x1e8] sm:$0xff] %vm13408_vm12, %v421_v48  ;;  %vm13415_vm12 = vcmask 64512  }
 0x41a   :  { %3245 = vst.msk [vmem:[#allocation3 + $0x1c8] sm:$0xff] %vm3187_vm11, %v3110_v57  ;;  %6551 = vrot.lane.b32.xlu1 %v10438_v31, %s9112_s1  ;;  %v6828_v31 = vld [vmem:[%s13158_s3 + $0x10] sm:$0xff] }
 0x41b   :  { %6455 = vrot.lane.b32.xlu0 %v6132_v36, %s9111_s18  ;;  %v8979_v44 = vpack.c.bf16 %v6829_v42, %v6828_v31 }
 0x41c   :  { %v1934_v63 = vpop.permute.xlu1 %1933  ;;  %v3297_v14 = vld [vmem:[#allocation3 + $0x168] sm:$0xff] }
 0x41d   :  { %v804_v1 = vpop.permute.xlu0 %803  ;;  %2079 = vst.msk [vmem:[#allocation3 + $0x178] sm:$0xff] %vm2031_vm8, %v1934_v63  ;;  %8864 = vmatmul.mubr.msk.f32.gmra.mrb[44].mxu0 %vm13410_vm6, %v3297_v14  ;;  %8980 = vmatprep.subr.bf16.mxu1 %v8979_v44 }
 0x41e   :  { %936 = vst.msk [vmem:[#allocation3 + $0x1e0] sm:$0xff] %vm13409_vm0, %v804_v1  ;;  %6263 = vrot.lane.b32.xlu1 %v10607_v18, %s9104_s16  ;;  %8982 = vmatpush3.bf16.msra.mxu1 %v8979_v44  ;;  %vm13416_vm0 = vmmov %vm13415_vm12 }
 0x41f   :  { %6168 = vrot.lane.b32.xlu0 %v6133_v29, %s9109_s0  ;;  %8984 = vmatprep.subr.bf16.mxu1 %v8983_v9  ;;  %v4049_v48 = vsel %vm13416_vm0, %v3958_v59, -inf  ;;  %vm13417_vm6 = vmmov %vm13416_vm0 }
 0x420   :  { %v2318_v27 = vpop.permute.xlu1 %2317  ;;  %v4028_v53 = vsel %vm13417_vm6, %v3945_v37, -inf  ;;  %vm13424_vm6 = vcmask 58368  }
 0x421   :  { %v1958_v4 = vpop.permute.xlu0 %1957  ;;  %v3309_v21 = vld [vmem:[#allocation3 + $0x1c8] sm:$0xff]  ;;  %2464 = vst.msk [vmem:[#allocation3 + $0x170] sm:$0xff] %vm2417_vm9, %v2318_v27 }
 0x422   :  { %2091 = vst.msk [vmem:[#allocation3 + $0x1d8] sm:$0xff] %vm2031_vm8, %v1958_v4  ;;  %8882 = vmatmul.mubr.msk.f32.gmra.mrb[8].mxu1 %vm13411_vm5, %v3309_v21  ;;  %6648 = vrot.lane.b32.xlu1 %v6035_v51, %s9113_s25  ;;  %vm13418_vm5 = vmmov %vm13416_vm0 }
 0x423   :  { %6553 = vrot.lane.b32.xlu0 %v10607_v18, %s9112_s1  ;;  %v6832_v18 = vld [vmem:[%s13158_s3 + $0x30] sm:$0xff]  ;;  %8986 = vmatpush3.bf16.msra.mxu1 %v8983_v9  ;;  %v4046_v63 = vsel %vm13418_vm5, %v3957_v6, -inf  ;;  %vm13425_vm5 = vmmov %vm13424_vm6 }
 0x424   :  { %v806_v10 = vpop.permute.xlu1 %805  ;;  %v8987_v38 = vpack.c.bf16 %v6833_v30, %v6832_v18 }
 0x425   :  { %v2342_v46 = vpop.permute.xlu0 %2341  ;;  %937 = vst.msk [vmem:[#allocation3 + $0x1e8] sm:$0xff] %vm13412_vm4, %v806_v10  ;;  %vm13419_vm4 = vmmov %vm13416_vm0 }
 0x426   :  { %2476 = vst.msk [vmem:[#allocation3 + $0x1d0] sm:$0xff] %vm2417_vm9, %v2342_v46  ;;  %6360 = vrot.lane.b32.xlu1 %v6036_v23, %s9110_s17  ;;  %8988 = vmatprep.subr.bf16.mxu1 %v8987_v38 }
 0x427   :  { %6265 = vrot.lane.b32.xlu0 %v10775_v26, %s9104_s16  ;;  %8990 = vmatpush3.bf16.msra.mxu1 %v8987_v38 }
 0x428   :  { %v2320_v13 = vpop.permute.xlu1 %2319  ;;  %8909 = vmatprep.subr.mxu1 %v6834_v22 }
 0x429   :  { %v1190_v39 = vpop.permute.xlu0 %1189  ;;  %2465 = vst.msk [vmem:[#allocation3 + $0x178] sm:$0xff] %vm2417_vm9, %v2320_v13 }
 0x42a   :  { %1322 = vst.msk [vmem:[#allocation3 + $0x1e0] sm:$0xff] %vm13413_vm1, %v1190_v39  ;;  %6745 = vrot.lane.b32.xlu1 %v6132_v36, %s9114_s21  ;;  %v4031_v36 = vsel %vm13415_vm12, %v3946_v16, -inf  ;;  %vm13420_vm1 = vmmov %vm13416_vm0 }
 0x42b   :  { %6650 = vrot.lane.b32.xlu0 %v6036_v23, %s9113_s25  ;;  %8910 = vmatpush3.msra.mxu1 %v6834_v22  ;;  %vm13422_vm12 = vmmov %vm13416_vm0 }
 0x42c   :  { %v2703_v2 = vpop.permute.xlu1 %2702 }
 0x42d   :  { %v2344_v8 = vpop.permute.xlu0 %2343  ;;  %2849 = vst.msk [vmem:[#allocation3 + $0x170] sm:$0xff] %vm2802_vm10, %v2703_v2 }
 0x42e   :  { %2477 = vst.msk [vmem:[#allocation3 + $0x1d8] sm:$0xff] %vm2417_vm9, %v2344_v8  ;;  %6362 = vrot.lane.b32.xlu1 %v11904_v17, %s9110_s17 }
 0x42f   :  { %6073 = vrot.lane.b32.xlu0 %v11904_v17, %s9108_s27 }
 0x430   :  { %v1192_v54 = vpop.permute.xlu1 %1191 }
 0x431   :  { %v2727_v19 = vpop.permute.xlu0 %2726  ;;  %1323 = vst.msk [vmem:[#allocation3 + $0x1e8] sm:$0xff] %vm13414_vm13, %v1192_v54  ;;  %vm13421_vm13 = vmmov %vm13416_vm0  ;;  %vm13423_vm0 = vcmask 48152  }
 0x432   :  { %2861 = vst.msk [vmem:[#allocation3 + $0x1d0] sm:$0xff] %vm2802_vm10, %v2727_v19  ;;  %6747 = vrot.lane.b32.xlu1 %v6133_v29, %s9114_s21 }
 0x433   :  { %6457 = vrot.lane.b32.xlu0 %v6133_v29, %s9111_s18 }
 0x434   :  { %v2705_v41 = vpop.permute.xlu1 %2704  ;;  %v8874_v61 = vpop.f32.mrb[2].mxu1 }
 0x435   :  { %v1575_v33 = vpop.permute.xlu0 %1574  ;;  %2850 = vst.msk [vmem:[#allocation3 + $0x178] sm:$0xff] %vm2802_vm10, %v2705_v41  ;;  %v8856_v52 = vpop.f32.mrb[38].mxu0  ;;  %v3846_v50 = vadd.f32 %v11913_v35, %v8874_v61 }
 0x436   :  { %1707 = vst.msk [vmem:[#allocation3 + $0x1e0] sm:$0xff] %vm1646_vm7, %v1575_v33  ;;  %v3786_v34 = vadd.f32 %v11913_v35, %v8856_v52  ;;  %v3780_v51 = vpop.f32.mrb[39].mxu0  ;;  %v3840_v56 = vpop.f32.mrb[3].mxu1  ;;  %6170 = vrot.lane.b32.xlu1 %v11931_v5, %s9109_s0 }
 0x437   :  { %6075 = vrot.lane.b32.xlu0 %v11929_v47, %s9108_s27  ;;  %v3781_v55 = vadd.f32 %v11913_v35, %v3780_v51  ;;  %v3841_v49 = vadd.f32 %v11913_v35, %v3840_v56  ;;  %v3960_v43 = vmax.f32 %v3846_v50, 0.0 }
 0x438   :  { %v3948_v7 = vmax.f32 %v3786_v34, 0.0  ;;  %v3088_v45 = vpop.permute.xlu1 %3087 }
 0x439   :  { %v2729_v23 = vpop.permute.xlu0 %2728  ;;  %v3947_v57 = vmax.f32 %v3781_v55, 0.0  ;;  %v3959_v60 = vmax.f32 %v3841_v49, 0.0  ;;  %3234 = vst.msk [vmem:[#allocation3 + $0x170] sm:$0xff] %vm3187_vm11, %v3088_v45  ;;  %v4050_v14 = vsel %vm13420_vm1, %v3960_v43, -inf }
 0x43a   :  { %2862 = vst.msk [vmem:[#allocation3 + $0x1d8] sm:$0xff] %vm2802_vm10, %v2729_v23  ;;  %v4032_v1 = vsel %vm13419_vm4, %v3948_v7, -inf  ;;  %6555 = vrot.lane.b32.xlu1 %v10775_v26, %s9112_s1  ;;  %v4051_v29 = vmax.f32 %v4049_v48, %v4050_v14  ;;  %v11963_v26 = vld [vmem:[#allocation2 + $0x52] sm:$0xff]  ;;  %vm13426_vm4 = vmmov %vm13425_vm5 }
 0x43b   :  { %6459 = vrot.lane.b32.xlu0 %v11931_v5, %s9111_s18  ;;  %v4033_v3 = vmax.f32 %v4031_v36, %v4032_v1  ;;  %v4029_v31 = vsel %vm13421_vm13, %v3947_v57, -inf  ;;  %v4047_v42 = vsel %vm13422_vm12, %v3959_v60, -inf  ;;  %vm13427_vm1 = vmmov %vm13426_vm4  ;;  %vm13428_vm13 = vcmask 220160  }
 0x43c   :  { %v11955_v44 = vmax.f32 %v4028_v53, %v4029_v31  ;;  %v11957_v27 = vmax.f32 %v4046_v63, %v4047_v42  ;;  %v423_v4 = vpop.permute.xlu1 %422  ;;  %v4527_v9 = vcombine.high %v4051_v29, %v4051_v29  ;;  %v4534_v10 = vrot.slane %v4051_v29, %v10139_v0  ;;  %vm13429_vm12 = vmmov %vm13427_vm1 }
 0x43d   :  { %v3112_v21 = vpop.permute.xlu0 %3111  ;;  %v4425_v24 = vcombine.high %v4033_v3, %v4033_v3  ;;  %v4432_v40 = vrot.slane %v4033_v3, %v10139_v0  ;;  %553 = vst.msk [vmem:[#allocation3 + $0x1f0] sm:$0xff] %vm13423_vm0, %v423_v4  ;;  %vm13430_vm0 = vmmov %vm13427_vm1 }
 0x43e   :  { %3246 = vst.msk [vmem:[#allocation3 + $0x1d0] sm:$0xff] %vm3187_vm11, %v3112_v21  ;;  %v4541_v38 = vrot.slane %v4527_v9, %v10139_v0  ;;  %6267 = vrot.lane.b32.xlu1 %v10962_v12, %s9104_s16  ;;  %v4542_v39 = vcombine.high %v4534_v10, %v4534_v10  ;;  %v5475_v22 = vsel %vm13425_vm5, %v4534_v10, -inf  ;;  %vm13432_vm5 = vmmov %vm13430_vm0  ;;  %v4408_v48 = vcombine.high %v11955_v44, %v11955_v44 }
 0x43f   :  { %6172 = vrot.lane.b32.xlu0 %v11963_v26, %s9109_s0  ;;  %v4439_v46 = vrot.slane %v4425_v24, %v10139_v0  ;;  %v4440_v18 = vcombine.high %v4432_v40, %v4432_v40  ;;  %v5307_v30 = vsel %vm13424_vm6, %v4432_v40, -inf  ;;  %v5476_v16 = vrot.slane %v5475_v22, 4  ;;  %vm13431_vm6 = vmmov %vm13430_vm0 }
 0x440   :  { %v5308_v13 = vrot.slane %v5307_v30, 4  ;;  %v1960_v2 = vpop.permute.xlu1 %1959  ;;  %v3298_v54 = vld [vmem:[#allocation3 + $0x170] sm:$0xff]  ;;  %v4543_v32 = vcombine.high %v4541_v38, %v4541_v38  ;;  %v5482_v52 = vsel %vm13430_vm0, %v4542_v39, -inf  ;;  %v5489_v61 = vsel %vm13431_vm6, %v4541_v38, -inf  ;;  %vm13438_vm6 = vmmov %vm13432_vm5 }
 0x441   :  { %v1577_v8 = vpop.permute.xlu0 %1576  ;;  %v4441_v19 = vcombine.high %v4439_v46, %v4439_v46  ;;  %v5314_v28 = vsel %vm13426_vm4, %v4440_v18, -inf  ;;  %v5321_v62 = vsel %vm13427_vm1, %v4439_v46, -inf  ;;  %2092 = vst.msk [vmem:[#allocation3 + $0x1e0] sm:$0xff] %vm2031_vm8, %v1960_v2  ;;  %8866 = vmatprep.mubr.msk.f32.mxu0 %vm13428_vm13, %v3298_v54  ;;  %v5477_v7 = vmax.f32 %v5475_v22, %v5476_v16  ;;  %vm13433_vm4 = vmmov %vm13428_vm13 }
 0x442   :  { %1708 = vst.msk [vmem:[#allocation3 + $0x1e8] sm:$0xff] %vm1646_vm7, %v1577_v8  ;;  %v5309_v58 = vmax.f32 %v5307_v30, %v5308_v13  ;;  %v5315_v41 = vrot.slane %v5314_v28, 4  ;;  %v5322_v33 = vrot.slane %v5321_v62, 4  ;;  %v5496_v37 = vsel %vm13432_vm5, %v4543_v32, -inf  ;;  %6652 = vrot.lane.b32.xlu1 %v11904_v17, %s9113_s25  ;;  %vm13437_vm0 = vmmov %vm13433_vm4 }
 0x443   :  { %6557 = vrot.lane.b32.xlu0 %v10962_v12, %s9112_s1  ;;  %v5328_v59 = vsel %vm13429_vm12, %v4441_v19, -inf  ;;  %v5483_v12 = vrot.slane %v5482_v52, 4  ;;  %v5490_v43 = vrot.slane %v5489_v61, 4  ;;  %v5497_v45 = vrot.slane %v5496_v37, 4  ;;  %vm13436_vm12 = vmmov %vm13433_vm4 }
 0x444   :  { %v5310_v6 = vrot.slane %v5309_v58, 2  ;;  %v5316_v34 = vmax.f32 %v5314_v28, %v5315_v41  ;;  %v5323_v50 = vmax.f32 %v5321_v62, %v5322_v33  ;;  %v5329_v51 = vrot.slane %v5328_v59, 4  ;;  %v3114_v56 = vpop.permute.xlu1 %3113 }
 0x445   :  { %v3090_v55 = vpop.permute.xlu0 %3089  ;;  %v3310_v49 = vld [vmem:[#allocation3 + $0x1d0] sm:$0xff]  ;;  %3247 = vst.msk [vmem:[#allocation3 + $0x1d8] sm:$0xff] %vm3187_vm11, %v3114_v56  ;;  %v5478_v60 = vrot.slane %v5477_v7, 2  ;;  %v5484_v53 = vmax.f32 %v5482_v52, %v5483_v12  ;;  %v4415_v63 = vrot.slane %v11955_v44, %v10139_v0  ;;  %v11999_v31 = vmax.f32 %v5489_v61, %v5490_v43 }
 0x446   :  { %3235 = vst.msk [vmem:[#allocation3 + $0x178] sm:$0xff] %vm3187_vm11, %v3090_v55  ;;  %8884 = vmatprep.mubr.msk.f32.mxu1 %vm13433_vm4, %v3310_v49  ;;  %v5311_v23 = vmax.f32 %v5309_v58, %v5310_v6  ;;  %v5317_v36 = vrot.slane %v5316_v34, 2  ;;  %v5324_v17 = vrot.slane %v5323_v50, 2  ;;  %v5330_v57 = vmax.f32 %v5328_v59, %v5329_v51  ;;  %6364 = vrot.lane.b32.xlu1 %v11929_v47, %s9110_s17  ;;  %vm13439_vm4 = vmmov %vm13432_vm5 }
 0x447   :  { %6269 = vrot.lane.b32.xlu0 %v11162_v25, %s9104_s16  ;;  %v12001_v42 = vmax.f32 %v5496_v37, %v5497_v45  ;;  %vm13434_vm1 = vcmask 72752   ;;  %vm13435_vm13 = vcmask 48152   ;;  %v4422_v21 = vrot.slane %v4408_v48, %v10139_v0 }
 0x448   :  { %v808_v1 = vpop.permute.xlu1 %807  ;;  %v5312_v3 = vrot.slane %v5311_v23, 1  ;;  %v11997_v29 = vmax.f32 %v5316_v34, %v5317_v36  ;;  %v12005_v4 = vmax.f32 %v5323_v50, %v5324_v17  ;;  %v5331_v44 = vrot.slane %v5330_v57, 2 }
 0x449   :  { %v425_v14 = vpop.permute.xlu0 %424  ;;  %938 = vst.msk [vmem:[#allocation3 + $0x1f0] sm:$0xff] %vm13434_vm1, %v808_v1  ;;  %v12010_v24 = vmax.f32 %v5477_v7, %v5478_v60  ;;  %v5485_v40 = vrot.slane %v5484_v53, 2  ;;  %v4423_v9 = vcombine.high %v4415_v63, %v4415_v63  ;;  %v4510_v10 = vcombine.high %v11957_v27, %v11957_v27  ;;  %vm13440_vm1 = vmmov %vm13439_vm4 }
 0x44a   :  { %554 = vst.msk [vmem:[#allocation3 + $0x1f8] sm:$0xff] %vm13435_vm13, %v425_v14  ;;  %6749 = vrot.lane.b32.xlu1 %v11931_v5, %s9114_s21  ;;  %v4517_v46 = vrot.slane %v11957_v27, %v10139_v0  ;;  %v12018_v39 = vmax.f32 %v5311_v23, %v5312_v3  ;;  %v5492_v22 = vrot.slane %v11999_v31, 2  ;;  %v5499_v2 = vrot.slane %v12001_v42, 2  ;;  %v12027_v5 = vld [vmem:[#allocation2 + $0x61] sm:$0xff]  ;;  %v12056_v3 = vld [vmem:[#allocation2 + $0x71] sm:$0xff] }
 0x44b   :  { %6654 = vrot.lane.b32.xlu0 %v11929_v47, %s9113_s25  ;;  %v5319_v47 = vrot.slane %v11997_v29, 1  ;;  %v5326_v27 = vrot.slane %v12005_v4, 1  ;;  %v4424_v8 = vcombine.high %v4422_v21, %v4422_v21  ;;  %v5279_v54 = vsel %vm13438_vm6, %v4415_v63, -inf }
 0x44c   :  { %v2346_v18 = vpop.permute.xlu1 %2345  ;;  %v3311_v13 = vld [vmem:[#allocation3 + $0x1d8] sm:$0xff]  ;;  %v5286_v19 = vsel %vm13432_vm5, %v4423_v9, -inf  ;;  %v12034_v28 = vmax.f32 %v5330_v57, %v5331_v44  ;;  %v5480_v62 = vrot.slane %v12010_v24, 1  ;;  %v12037_v32 = vmax.f32 %v5484_v53, %v5485_v40  ;;  %v12060_v9 = vld [vmem:[#allocation2 + $0x62] sm:$0xff] }
 0x44d   :  { %v1962_v30 = vpop.permute.xlu0 %1961  ;;  %v3299_v38 = vld [vmem:[#allocation3 + $0x178] sm:$0xff]  ;;  %2478 = vst.msk [vmem:[#allocation3 + $0x1e0] sm:$0xff] %vm2417_vm9, %v2346_v18  ;;  %8885 = vmatmul.mubr.msk.f32.gmra.mrb[10].mxu1 %vm13437_vm0, %v3311_v13  ;;  %v5280_v58 = vrot.slane %v5279_v54, 4  ;;  %v5287_v41 = vrot.slane %v5286_v19, 4  ;;  %v5293_v33 = vsel %vm13439_vm4, %v4422_v21, -inf  ;;  %v5300_v16 = vsel %vm13440_vm1, %v4424_v8, -inf  ;;  %vm13443_vm0 = vmmov %vm13440_vm1 }
 0x44e   :  { %2093 = vst.msk [vmem:[#allocation3 + $0x1e8] sm:$0xff] %vm2031_vm8, %v1962_v30  ;;  %8867 = vmatmul.mubr.msk.f32.gmra.mrb[46].mxu0 %vm13436_vm12, %v3299_v38  ;;  %6366 = vrot.lane.b32.xlu1 %v12027_v5, %s9110_s17  ;;  %v4524_v59 = vrot.slane %v4510_v10, %v10139_v0  ;;  %v5294_v6 = vrot.slane %v5293_v33, 4  ;;  %v5301_v34 = vrot.slane %v5300_v16, 4  ;;  %v4525_v50 = vcombine.high %v4517_v46, %v4517_v46  ;;  %vm13444_vm6 = vmmov %vm13443_vm0 }
 0x44f   :  { %6077 = vrot.lane.b32.xlu0 %v12027_v5, %s9108_s27  ;;  %v5281_v37 = vmax.f32 %v5279_v54, %v5280_v58  ;;  %vm13441_vm13 = vcmask 97352   ;;  %vm13442_vm12 = vcmask 72752   ;;  %v5288_v51 = vmax.f32 %v5286_v19, %v5287_v41  ;;  %vm13445_vm5 = vmmov %vm13443_vm0 }
 0x450   :  { %v1194_v52 = vpop.permute.xlu1 %1193  ;;  %v4526_v56 = vcombine.high %v4524_v59, %v4524_v59  ;;  %v5447_v55 = vsel %vm13443_vm0, %v4517_v46, -inf  ;;  %v5461_v49 = vsel %vm13444_vm6, %v4524_v59, -inf  ;;  %v5295_v12 = vmax.f32 %v5293_v33, %v5294_v6  ;;  %vm13446_vm4 = vmmov %vm13443_vm0 }
 0x451   :  { %v810_v61 = vpop.permute.xlu0 %809  ;;  %1324 = vst.msk [vmem:[#allocation3 + $0x1f0] sm:$0xff] %vm13441_vm13, %v1194_v52  ;;  %v5282_v7 = vrot.slane %v5281_v37, 2  ;;  %v5302_v43 = vmax.f32 %v5300_v16, %v5301_v34  ;;  %v5448_v45 = vrot.slane %v5447_v55, 4  ;;  %v5289_v23 = vrot.slane %v5288_v51, 2  ;;  %vm13447_vm1 = vmmov %vm13441_vm13 }
 0x452   :  { %939 = vst.msk [vmem:[#allocation3 + $0x1f8] sm:$0xff] %vm13442_vm12, %v810_v61  ;;  %6751 = vrot.lane.b32.xlu1 %v11963_v26, %s9114_s21  ;;  %v5454_v36 = vsel %vm13445_vm5, %v4525_v50, -inf  ;;  %v5462_v17 = vrot.slane %v5461_v49, 4  ;;  %v5468_v48 = vsel %vm13446_vm4, %v4526_v56, -inf  ;;  %v5296_v63 = vrot.slane %v5295_v12, 2 }
 0x453   :  { %6461 = vrot.lane.b32.xlu0 %v11963_v26, %s9111_s18  ;;  %v5283_v53 = vmax.f32 %v5281_v37, %v5282_v7  ;;  %v5303_v1 = vrot.slane %v5302_v43, 2  ;;  %v5449_v14 = vmax.f32 %v5447_v55, %v5448_v45  ;;  %v5290_v21 = vmax.f32 %v5288_v51, %v5289_v23 }
 0x454   :  { %v2731_v57 = vpop.permute.xlu1 %2730  ;;  %v5455_v26 = vrot.slane %v5454_v36, 4  ;;  %v5463_v44 = vmax.f32 %v5461_v49, %v5462_v17  ;;  %v5469_v40 = vrot.slane %v5468_v48, 4  ;;  %v5297_v46 = vmax.f32 %v5295_v12, %v5296_v63 }
 0x455   :  { %v2348_v60 = vpop.permute.xlu0 %2347  ;;  %2863 = vst.msk [vmem:[#allocation3 + $0x1e0] sm:$0xff] %vm2802_vm10, %v2731_v57  ;;  %v5284_v10 = vrot.slane %v5283_v53, 1  ;;  %v5304_v18 = vmax.f32 %v5302_v43, %v5303_v1  ;;  %v5450_v30 = vrot.slane %v5449_v14, 2  ;;  %v5291_v38 = vrot.slane %v5290_v21, 1 }
 0x456   :  { %2479 = vst.msk [vmem:[#allocation3 + $0x1e8] sm:$0xff] %vm2417_vm9, %v2348_v60  ;;  %6174 = vrot.lane.b32.xlu1 %v12060_v9, %s9109_s0  ;;  %v5456_v13 = vmax.f32 %v5454_v36, %v5455_v26  ;;  %v5464_v8 = vrot.slane %v5463_v44, 2  ;;  %v5470_v54 = vmax.f32 %v5468_v48, %v5469_v40  ;;  %v5298_v33 = vrot.slane %v5297_v46, 1  ;;  %v12084_v48 = vld [vmem:[#allocation2 + $0x72] sm:$0xff] }
 0x457   :  { %6079 = vrot.lane.b32.xlu0 %v12056_v3, %s9108_s27  ;;  %v5285_v41 = vmax.f32 %v5283_v53, %v5284_v10  ;;  %v5305_v16 = vrot.slane %v5304_v18, 1  ;;  %v5451_v59 = vmax.f32 %v5449_v14, %v5450_v30  ;;  %v5292_v52 = vmax.f32 %v5290_v21, %v5291_v38 }
 0x458   :  { %v1579_v19 = vpop.permute.xlu1 %1578  ;;  %v5457_v61 = vrot.slane %v5456_v13, 2  ;;  %v5465_v37 = vmax.f32 %v5463_v44, %v5464_v8  ;;  %v5471_v6 = vrot.slane %v5470_v54, 2  ;;  %v5333_v34 = vrot.slane %v12034_v28, 1 }
 0x459   :  { %v1196_v58 = vpop.permute.xlu0 %1195  ;;  %1709 = vst.msk [vmem:[#allocation3 + $0x1f0] sm:$0xff] %vm1646_vm7, %v1579_v19  ;;  %v5299_v50 = vmax.f32 %v5297_v46, %v5298_v33  ;;  %v5306_v51 = vmax.f32 %v5304_v18, %v5305_v16  ;;  %v5452_v56 = vrot.slane %v5451_v59, 1  ;;  %vm13448_vm13 = vcmask 1041409   ;;  %v6041_v33 = vld [vmem:[#allocation2 + $0xa1] sm:$0xff] }
 0x45a   :  { %1325 = vst.msk [vmem:[#allocation3 + $0x1f8] sm:$0xff] %vm13447_vm1, %v1196_v58  ;;  %6559 = vrot.lane.b32.xlu1 %v11162_v25, %s9112_s1  ;;  %v5919_v55 = vsel %vm13448_vm13, %v5292_v52, %v5285_v41  ;;  %v5458_v49 = vmax.f32 %v5456_v13, %v5457_v61  ;;  %v5466_v7 = vrot.slane %v5465_v37, 1  ;;  %v5472_v12 = vmax.f32 %v5470_v54, %v5471_v6  ;;  %vm13451_vm6 = vmmov %vm13448_vm13  ;;  %v6009_v16 = vld [vmem:[#allocation2 + $0xa0] sm:$0xff] }
 0x45b   :  { %6463 = vrot.lane.b32.xlu0 %v12060_v9, %s9111_s18  ;;  %v5320_v23 = vmax.f32 %v11997_v29, %v5319_v47  ;;  %v5493_v36 = vmax.f32 %v11999_v31, %v5492_v22  ;;  %v5500_v17 = vmax.f32 %v12001_v42, %v5499_v2  ;;  %v5920_v25 = vsel %vm5851_vm2, %v5299_v50, %v5919_v55 }
 0x45c   :  { %v3116_v43 = vpop.permute.xlu1 %3115  ;;  %v5327_v29 = vmax.f32 %v12005_v4, %v5326_v27  ;;  %v5921_v47 = vsel %vm13179_vm3, %v5306_v51, %v5920_v25  ;;  %v5459_v57 = vrot.slane %v5458_v49, 1  ;;  %v5473_v31 = vrot.slane %v5472_v12, 1  ;;  %v6138_v51 = vld [vmem:[#allocation2 + $0xa2] sm:$0xff] }
 0x45d   :  { %v2733_v45 = vpop.permute.xlu0 %2732  ;;  %3248 = vst.msk [vmem:[#allocation3 + $0x1e0] sm:$0xff] %vm3187_vm11, %v3116_v43  ;;  %v5334_v42 = vmax.f32 %v12034_v28, %v5333_v34  ;;  %v5487_v22 = vrot.slane %v12037_v32, 1  ;;  %v5922_v2 = vsel %vm13178_vm15, %v12018_v39, %v5921_v47  ;;  %v5467_v60 = vmax.f32 %v5465_v37, %v5466_v7  ;;  %v6526_v47 = vld [vmem:[#allocation2 + $0x90] sm:$0xff] }
 0x45e   :  { %2864 = vst.msk [vmem:[#allocation3 + $0x1e8] sm:$0xff] %vm2802_vm10, %v2733_v45  ;;  %6271 = vrot.lane.b32.xlu1 %v11355_v11, %s9104_s16  ;;  %v5923_v4 = vsel %vm13177_vm14, %v5320_v23, %v5922_v2  ;;  %v5453_v27 = vmax.f32 %v5451_v59, %v5452_v56  ;;  %v5460_v53 = vmax.f32 %v5458_v49, %v5459_v57  ;;  %v5494_v21 = vrot.slane %v5493_v36, 1  ;;  %v6042_v49 = vld [vmem:[#allocation2 + $0xb1] sm:$0xff] }
 0x45f   :  { %6176 = vrot.lane.b32.xlu0 %v12084_v48, %s9109_s0  ;;  %v5474_v63 = vmax.f32 %v5472_v12, %v5473_v31  ;;  %vm13449_vm12 = vcmask 1046534   ;;  %v5501_v28 = vrot.slane %v5500_v17, 1  ;;  %vm13450_vm0 = vcmask 1047559  }
 0x460   :  { %v1964_v1 = vpop.permute.xlu1 %1963  ;;  %v5924_v26 = vsel %vm13449_vm12, %v5327_v29, %v5923_v4  ;;  %v5940_v44 = vsel %vm13451_vm6, %v5460_v53, %v5453_v27  ;;  %v5481_v40 = vmax.f32 %v12010_v24, %v5480_v62  ;;  %vm13452_vm5 = vcmask 64512   ;;  %v6234_v24 = vld [vmem:[#allocation2 + $0x80] sm:$0xff]  ;;  %vm13454_vm4 = vmmov %vm13449_vm12  ;;  %v6139_v29 = vld [vmem:[#allocation2 + $0xb2] sm:$0xff] }
 0x461   :  { %v1581_v14 = vpop.permute.xlu0 %1580  ;;  %2094 = vst.msk [vmem:[#allocation3 + $0x1f0] sm:$0xff] %vm2031_vm8, %v1964_v1  ;;  %v5925_v39 = vsel %vm13450_vm0, %v5334_v42, %v5924_v26  ;;  %v5941_v10 = vsel %vm5851_vm2, %v5467_v60, %v5940_v44  ;;  %v5488_v46 = vmax.f32 %v12037_v32, %v5487_v22  ;;  %v5495_v8 = vmax.f32 %v5493_v36, %v5494_v21  ;;  %vm13455_vm1 = vmmov %vm13450_vm0  ;;  %v6720_v1 = vld [vmem:[#allocation2 + $0x92] sm:$0xff] }
 0x462   :  { %1710 = vst.msk [vmem:[#allocation3 + $0x1f8] sm:$0xff] %vm1646_vm7, %v1581_v14  ;;  %6656 = vrot.lane.b32.xlu1 %v12027_v5, %s9113_s25  ;;  %v5942_v18 = vsel %vm13179_vm3, %v5474_v63, %v5941_v10  ;;  %vm13453_vm7 = vcmask 220160   ;;  %v5502_v62 = vmax.f32 %v5500_v17, %v5501_v28  ;;  %vm13457_vm13 = vmmov %vm13452_vm5  ;;  %v6428_v17 = vld [vmem:[#allocation2 + $0x82] sm:$0xff] }
 0x463   :  { %6561 = vrot.lane.b32.xlu0 %v11355_v11, %s9112_s1  ;;  %5994 = vst.msk [vmem:[#allocation2 + $0xc1] sm:$0xff] %vm13452_vm5, %v5925_v39  ;;  %v5943_v11 = vsel %vm13178_vm15, %v5481_v40, %v5942_v18  ;;  %vm13458_vm12 = vmmov %vm13452_vm5 }
 0x464   :  { %v1966_v30 = vpop.permute.xlu1 %1965  ;;  %v3312_v13 = vld [vmem:[#allocation3 + $0x1e0] sm:$0xff]  ;;  %v5944_v5 = vsel %vm13177_vm14, %v5488_v46, %v5943_v11  ;;  %6025 = vst.msk [vmem:[#allocation4 + $0x40] sm:$0xff] %vm13458_vm12, %v6009_v16  ;;  %vm13460_vm0 = vmmov %vm13452_vm5  ;;  %vm13181_vm12 = vcmask 589312  }
 0x465   :  { %v3118_v38 = vpop.permute.xlu0 %3117  ;;  %2095 = vst.msk [vmem:[#allocation3 + $0x1f8] sm:$0xff] %vm2031_vm8, %v1966_v30  ;;  %8887 = vmatprep.mubr.msk.f32.mxu1 %vm13453_vm7, %v3312_v13  ;;  %v5945_v32 = vsel %vm13454_vm4, %v5495_v8, %v5944_v5  ;;  %vm13456_vm8 = vmmov %vm13452_vm5  ;;  %vm6404_vm4 = vcmask 326912  }
 0x466   :  { %3249 = vst.msk [vmem:[#allocation3 + $0x1e8] sm:$0xff] %vm3187_vm11, %v3118_v38  ;;  %6368 = vrot.lane.b32.xlu1 %v12056_v3, %s9110_s17  ;;  %v5946_v54 = vsel %vm13455_vm1, %v5502_v62, %v5945_v32  ;;  %vm13461_vm6 = vmmov %vm13453_vm7  ;;  %vm6501_vm1 = vcmask 392512  }
 0x467   :  { %6273 = vrot.lane.b32.xlu0 %v6234_v24, %s9104_s16  ;;  %5997 = vst.msk [vmem:[#allocation2 + $0xf1] sm:$0xff] %vm13456_vm8, %v5946_v54  ;;  %vm13462_vm5 = vmmov %vm13461_vm6  ;;  %vm6599_vm8 = vcmask 458112  }
 0x468   :  { %v2352_v19 = vpop.permute.xlu1 %2351  ;;  %vm13465_vm14 = vmmov %vm13460_vm0 }
 0x469   :  { %v2350_v58 = vpop.permute.xlu0 %2349  ;;  %2481 = vst.msk [vmem:[#allocation3 + $0x1f8] sm:$0xff] %vm2417_vm9, %v2352_v19  ;;  %vm13466_vm15 = vmmov %vm13460_vm0 }
 0x46a   :  { %2480 = vst.msk [vmem:[#allocation3 + $0x1f0] sm:$0xff] %vm2417_vm9, %v2350_v58  ;;  %v12130_v41 = vld [vmem:[#allocation2 + $0xc0] sm:$0xff]  ;;  %6753 = vrot.lane.b32.xlu1 %v12060_v9, %s9114_s21  ;;  %vm13459_vm9 = vmmov %vm13453_vm7  ;;  %vm6307_vm7 = vcmask 261312  }
 0x46b   :  { %6658 = vrot.lane.b32.xlu0 %v12056_v3, %s9113_s25  ;;  %6027 = vst.msk [vmem:[#allocation4 + $0x50] sm:$0xff] %vm13457_vm13, %v12130_v41  ;;  %v6331_v3 = vld [vmem:[#allocation2 + $0x81] sm:$0xff]  ;;  %vm6696_vm13 = vcmask 523712   ;;  %vm13467_vm3 = vmmov %vm13460_vm0 }
 0x46c   :  { %v2737_v59 = vpop.permute.xlu1 %2736  ;;  %v12189_v53 = vld [vmem:[#allocation2 + $0xc1] sm:$0xff] }
 0x46d   :  { %v2735_v52 = vpop.permute.xlu0 %2734  ;;  %v3313_v61 = vld [vmem:[#allocation3 + $0x1e8] sm:$0xff]  ;;  %2866 = vst.msk [vmem:[#allocation3 + $0x1f8] sm:$0xff] %vm2802_vm10, %v2737_v59 }
 0x46e   :  { %2865 = vst.msk [vmem:[#allocation3 + $0x1f0] sm:$0xff] %vm2802_vm10, %v2735_v52  ;;  %8888 = vmatmul.mubr.msk.f32.gmra.mrb[12].mxu1 %vm13459_vm9, %v3313_v61  ;;  %6370 = vrot.lane.b32.xlu1 %v6331_v3, %s9110_s17  ;;  %v12142_v6 = vld [vmem:[#allocation2 + $0xf0] sm:$0xff]  ;;  %vm6113_vm10 = vcmask 130112   ;;  %v12202_v28 = vld [vmem:[#allocation2 + $0xc2] sm:$0xff]  ;;  %vm13180_vm9 = vcmask 588800  }
 0x46f   :  { %6081 = vrot.lane.b32.xlu0 %v6041_v33, %s9108_s27  ;;  %6030 = vst.msk [vmem:[#allocation4 + $0x68] sm:$0xff] %vm13460_vm0, %v12142_v6 }
 0x470   :  { %v3122_v9 = vpop.permute.xlu1 %3121 }
 0x471   :  { %v3120_v37 = vpop.permute.xlu0 %3119  ;;  %3251 = vst.msk [vmem:[#allocation3 + $0x1f8] sm:$0xff] %vm3187_vm11, %v3122_v9 }
 0x472   :  { %3250 = vst.msk [vmem:[#allocation3 + $0x1f0] sm:$0xff] %vm3187_vm11, %v3120_v37  ;;  %6755 = vrot.lane.b32.xlu1 %v12084_v48, %s9114_s21  ;;  %vm6210_vm11 = vcmask 195712  }
 0x473   :  { %6465 = vrot.lane.b32.xlu0 %v12084_v48, %s9111_s18 }
 0x474   :  { %v6068_v56 = vpop.permute.xlu1 %6067  ;;  %v12159_v7 = vpop.f32.mrb[4].mxu1 }
 0x475   :  { %v6066_v34 = vpop.permute.xlu0 %6065  ;;  %v12152_v50 = vpop.f32.mrb[40].mxu0  ;;  %6115 = vst.msk [vmem:[#allocation4 + $0x8] sm:$0xff] %vm6113_vm10, %v6068_v56  ;;  %v3856_v54 = vadd.f32 %v11913_v35, %v12159_v7 }
 0x476   :  { %6114 = vst.msk [vmem:[#allocation4] sm:$0xff] %vm6113_vm10, %v6066_v34  ;;  %v12155_v55 = vpop.f32.mrb[41].mxu0  ;;  %6178 = vrot.lane.b32.xlu1 %v6138_v51, %s9109_s0  ;;  %v12162_v12 = vpop.f32.mrb[5].mxu1  ;;  %v3796_v32 = vadd.f32 %v11913_v35, %v12152_v50 }
 0x477   :  { %6083 = vrot.lane.b32.xlu0 %v6042_v49, %s9108_s27  ;;  %v3851_v33 = vadd.f32 %v11913_v35, %v12162_v12  ;;  %v3962_v59 = vmax.f32 %v3856_v54, 0.0 }
 0x478   :  { %v3315_v23 = vld [vmem:[#allocation3 + $0x1f8] sm:$0xff]  ;;  %v6165_v36 = vpop.permute.xlu1 %6164  ;;  %v3950_v16 = vmax.f32 %v3796_v32, 0.0 }
 0x479   :  { %v6163_v43 = vpop.permute.xlu0 %6162  ;;  %v3314_v45 = vld [vmem:[#allocation3 + $0x1f0] sm:$0xff]  ;;  %6212 = vst.msk [vmem:[#allocation4 + $0x8] sm:$0xff] %vm6210_vm11, %v6165_v36  ;;  %v3961_v51 = vmax.f32 %v3851_v33, 0.0 }
 0x47a   :  { %6211 = vst.msk [vmem:[#allocation4] sm:$0xff] %vm6210_vm11, %v6163_v43  ;;  %8890 = vmatprep.mubr.msk.f32.mxu1 %vm13461_vm6, %v3314_v45  ;;  %6563 = vrot.lane.b32.xlu1 %v6234_v24, %s9112_s1  ;;  %v4037_v45 = vsel %vm13460_vm0, %v3950_v16, -inf  ;;  %vm13463_vm6 = vmmov %vm13460_vm0 }
 0x47b   :  { %8891 = vmatmul.mubr.msk.f32.gmra.mrb[14].mxu1 %vm13462_vm5, %v3315_v23  ;;  %6467 = vrot.lane.b32.xlu0 %v6428_v17, %s9111_s18  ;;  %v4055_v23 = vsel %vm13463_vm6, %v3962_v59, -inf  ;;  %vm13464_vm5 = vmmov %vm13460_vm0 }
 0x47c   :  { %v6262_v48 = vpop.permute.xlu1 %6261  ;;  %vm13468_vm6 = vmmov %vm13460_vm0 }
 0x47d   :  { %v6260_v25 = vpop.permute.xlu0 %6259  ;;  %6309 = vst.msk [vmem:[#allocation4 + $0x8] sm:$0xff] %vm6307_vm7, %v6262_v48 }
 0x47e   :  { %6308 = vst.msk [vmem:[#allocation4] sm:$0xff] %vm6307_vm7, %v6260_v25  ;;  %6275 = vrot.lane.b32.xlu1 %v11739_v20, %s9104_s16  ;;  %v6623_v20 = vld [vmem:[#allocation2 + $0x91] sm:$0xff] }
 0x47f   :  { %6180 = vrot.lane.b32.xlu0 %v6139_v29, %s9109_s0 }
 0x480   :  { %v6070_v31 = vpop.permute.xlu1 %6069 }
 0x481   :  { %v6357_v57 = vpop.permute.xlu0 %6356  ;;  %6116 = vst.msk [vmem:[#allocation4 + $0x10] sm:$0xff] %vm6113_vm10, %v6070_v31 }
 0x482   :  { %6405 = vst.msk [vmem:[#allocation4] sm:$0xff] %vm6404_vm4, %v6357_v57  ;;  %6660 = vrot.lane.b32.xlu1 %v6331_v3, %s9113_s25 }
 0x483   :  { %6565 = vrot.lane.b32.xlu0 %v6526_v47, %s9112_s1 }
 0x484   :  { %v6454_v22 = vpop.permute.xlu1 %6453 }
 0x485   :  { %v6359_v42 = vpop.permute.xlu0 %6358  ;;  %6502 = vst.msk [vmem:[#allocation4] sm:$0xff] %vm6501_vm1, %v6454_v22 }
 0x486   :  { %6406 = vst.msk [vmem:[#allocation4 + $0x8] sm:$0xff] %vm6404_vm4, %v6359_v42  ;;  %6372 = vrot.lane.b32.xlu1 %v6042_v49, %s9110_s17  ;;  %v4052_v42 = vsel %vm13467_vm3, %v3961_v51, -inf }
 0x487   :  { %6277 = vrot.lane.b32.xlu0 %v12130_v41, %s9104_s16 }
 0x488   :  { %v6167_v60 = vpop.permute.xlu1 %6166 }
 0x489   :  { %v6072_v2 = vpop.permute.xlu0 %6071  ;;  %6213 = vst.msk [vmem:[#allocation4 + $0x10] sm:$0xff] %vm6210_vm11, %v6167_v60 }
 0x48a   :  { %6117 = vst.msk [vmem:[#allocation4 + $0x18] sm:$0xff] %vm6113_vm10, %v6072_v2  ;;  %6757 = vrot.lane.b32.xlu1 %v6428_v17, %s9114_s21 }
 0x48b   :  { %6662 = vrot.lane.b32.xlu0 %v6623_v20, %s9113_s25 }
 0x48c   :  { %v6552_v27 = vpop.permute.xlu1 %6551 }
 0x48d   :  { %v6456_v4 = vpop.permute.xlu0 %6455  ;;  %6600 = vst.msk [vmem:[#allocation4] sm:$0xff] %vm6599_vm8, %v6552_v27 }
 0x48e   :  { %6503 = vst.msk [vmem:[#allocation4 + $0x8] sm:$0xff] %vm6501_vm1, %v6456_v4  ;;  %6374 = vrot.lane.b32.xlu1 %v12189_v53, %s9110_s17 }
 0x48f   :  { %6085 = vrot.lane.b32.xlu0 %v12189_v53, %s9108_s27 }
 0x490   :  { %v6264_v14 = vpop.permute.xlu1 %6263 }
 0x491   :  { %v6169_v63 = vpop.permute.xlu0 %6168  ;;  %6310 = vst.msk [vmem:[#allocation4 + $0x10] sm:$0xff] %vm6307_vm7, %v6264_v14 }
 0x492   :  { %6214 = vst.msk [vmem:[#allocation4 + $0x18] sm:$0xff] %vm6210_vm11, %v6169_v63  ;;  %6759 = vrot.lane.b32.xlu1 %v6720_v1, %s9114_s21 }
 0x493   :  { %6469 = vrot.lane.b32.xlu0 %v6139_v29, %s9111_s18 }
 0x494   :  { %v6649_v26 = vpop.permute.xlu1 %6648 }
 0x495   :  { %v6554_v21 = vpop.permute.xlu0 %6553  ;;  %6697 = vst.msk [vmem:[#allocation4] sm:$0xff] %vm6696_vm13, %v6649_v26 }
 0x496   :  { %6601 = vst.msk [vmem:[#allocation4 + $0x8] sm:$0xff] %vm6599_vm8, %v6554_v21  ;;  %6182 = vrot.lane.b32.xlu1 %v12202_v28, %s9109_s0 }
 0x498   :  { %v6361_v44 = vpop.permute.xlu1 %6360 }
 0x499   :  { %v6266_v39 = vpop.permute.xlu0 %6265  ;;  %6407 = vst.msk [vmem:[#allocation4 + $0x10] sm:$0xff] %vm6404_vm4, %v6361_v44 }
 0x49a   :  { %6311 = vst.msk [vmem:[#allocation4 + $0x18] sm:$0xff] %vm6307_vm7, %v6266_v39  ;;  %6567 = vrot.lane.b32.xlu1 %v12130_v41, %s9112_s1  ;;  %v3791_v41 = vadd.f32 %v11913_v35, %v12155_v55 }
 0x49c   :  { %v6746_v10 = vpop.permute.xlu1 %6745  ;;  %v3949_v50 = vmax.f32 %v3791_v41, 0.0 }
 0x49d   :  { %v6651_v40 = vpop.permute.xlu0 %6650  ;;  %6794 = vst.msk [vmem:[#allocation4] sm:$0xff] %vm13181_vm12, %v6746_v10 }
 0x49e   :  { %6698 = vst.msk [vmem:[#allocation4 + $0x8] sm:$0xff] %vm6696_vm13, %v6651_v40 }
 0x4a0   :  { %v6363_v18 = vpop.permute.xlu1 %6362 }
 0x4a1   :  { %v6074_v46 = vpop.permute.xlu0 %6073  ;;  %6408 = vst.msk [vmem:[#allocation4 + $0x18] sm:$0xff] %vm6404_vm4, %v6363_v18 }
 0x4a2   :  { %6118 = vst.msk [vmem:[#allocation4 + $0x20] sm:$0xff] %vm6113_vm10, %v6074_v46 }
 0x4a4   :  { %v6748_v38 = vpop.permute.xlu1 %6747  ;;  %v6810_v13 = vld [vmem:[#allocation4] sm:$0xff] }
 0x4a5   :  { %v6458_v30 = vpop.permute.xlu0 %6457  ;;  %6795 = vst.msk [vmem:[#allocation4 + $0x8] sm:$0xff] %vm13181_vm12, %v6748_v38  ;;  %8911 = vmatprep.mubr.msk.f32.mxu1 %vm13180_vm9, %v6810_v13 }
 0x4a6   :  { %6504 = vst.msk [vmem:[#allocation4 + $0x10] sm:$0xff] %vm6501_vm1, %v6458_v30 }
 0x4a8   :  { %v6171_v11 = vpop.permute.xlu1 %6170 }
 0x4a9   :  { %v6076_v8 = vpop.permute.xlu0 %6075  ;;  %6215 = vst.msk [vmem:[#allocation4 + $0x20] sm:$0xff] %vm6210_vm11, %v6171_v11 }
 0x4aa   :  { %6119 = vst.msk [vmem:[#allocation4 + $0x28] sm:$0xff] %vm6113_vm10, %v6076_v8 }
 0x4ac   :  { %v6556_v62 = vpop.permute.xlu1 %6555  ;;  %v6811_v5 = vld [vmem:[#allocation4 + $0x8] sm:$0xff] }
 0x4ad   :  { %v6460_v24 = vpop.permute.xlu0 %6459  ;;  %6602 = vst.msk [vmem:[#allocation4 + $0x10] sm:$0xff] %vm6599_vm8, %v6556_v62  ;;  %8912 = vmatmul.mubr.msk.f32.vlgmr.msra.gmra.mrb[16].mxu1 %vm13180_vm9, %v6811_v5 }
 0x4ae   :  { %6505 = vst.msk [vmem:[#allocation4 + $0x18] sm:$0xff] %vm6501_vm1, %v6460_v24 }
 0x4b0   :  { %v6268_v58 = vpop.permute.xlu1 %6267 }
 0x4b1   :  { %v6173_v19 = vpop.permute.xlu0 %6172  ;;  %6312 = vst.msk [vmem:[#allocation4 + $0x20] sm:$0xff] %vm6307_vm7, %v6268_v58 }
 0x4b2   :  { %6216 = vst.msk [vmem:[#allocation4 + $0x28] sm:$0xff] %vm6210_vm11, %v6173_v19 }
 0x4b4   :  { %v8880_v61 = vpop.f32.mrb[6].mxu1  ;;  %v6653_v34 = vpop.permute.xlu1 %6652 }
 0x4b5   :  { %v8862_v52 = vpop.f32.mrb[42].mxu0  ;;  %v3866_v9 = vadd.f32 %v11913_v35, %v8880_v61  ;;  %v6558_v37 = vpop.permute.xlu0 %6557  ;;  %6699 = vst.msk [vmem:[#allocation4 + $0x10] sm:$0xff] %vm6696_vm13, %v6653_v34 }
 0x4b6   :  { %v3806_v3 = vadd.f32 %v11913_v35, %v8862_v52  ;;  %6603 = vst.msk [vmem:[#allocation4 + $0x18] sm:$0xff] %vm6599_vm8, %v6558_v37  ;;  %v3800_v56 = vpop.f32.mrb[43].mxu0  ;;  %v3860_v55 = vpop.f32.mrb[7].mxu1 }
 0x4b7   :  { %v3964_v7 = vmax.f32 %v3866_v9, 0.0  ;;  %v3801_v12 = vadd.f32 %v11913_v35, %v3800_v56  ;;  %v3861_v43 = vadd.f32 %v11913_v35, %v3860_v55  ;;  %v4034_v35 = vsel %vm13466_vm15, %v3949_v50, -inf }
 0x4b8   :  { %v3952_v49 = vmax.f32 %v3806_v3, 0.0  ;;  %v6365_v47 = vpop.permute.xlu1 %6364 }
 0x4b9   :  { %v4056_v17 = vsel %vm13465_vm14, %v3964_v7, -inf  ;;  %v3951_v25 = vmax.f32 %v3801_v12, 0.0  ;;  %v3963_v48 = vmax.f32 %v3861_v43, 0.0  ;;  %v6270_v29 = vpop.permute.xlu0 %6269  ;;  %6409 = vst.msk [vmem:[#allocation4 + $0x20] sm:$0xff] %vm6404_vm4, %v6365_v47  ;;  %vm13469_vm14 = vcmask 58368  }
 0x4ba   :  { %v4038_v36 = vsel %vm13464_vm5, %v3952_v49, -inf  ;;  %v4057_v31 = vmax.f32 %v4055_v23, %v4056_v17  ;;  %6313 = vst.msk [vmem:[#allocation4 + $0x28] sm:$0xff] %vm6307_vm7, %v6270_v29  ;;  %vm13470_vm3 = vmmov %vm13469_vm14 }
 0x4bb   :  { %v4039_v57 = vmax.f32 %v4037_v45, %v4038_v36  ;;  %v4035_v22 = vsel %vm13460_vm0, %v3951_v25, -inf  ;;  %v4053_v20 = vsel %vm13468_vm6, %v3963_v48, -inf  ;;  %vm13471_vm15 = vmmov %vm13470_vm3 }
 0x4bc   :  { %v4561_v4 = vcombine.high %v4057_v31, %v4057_v31  ;;  %v4568_v27 = vrot.slane %v4057_v31, %v10139_v0  ;;  %v12250_v63 = vmax.f32 %v4034_v35, %v4035_v22  ;;  %v12252_v1 = vmax.f32 %v4052_v42, %v4053_v20  ;;  %v6750_v21 = vpop.permute.xlu1 %6749  ;;  %vm13472_vm5 = vmmov %vm13470_vm3 }
 0x4bd   :  { %v4459_v2 = vcombine.high %v4039_v57, %v4039_v57  ;;  %v4466_v60 = vrot.slane %v4039_v57, %v10139_v0  ;;  %v6655_v14 = vpop.permute.xlu0 %6654  ;;  %6796 = vst.msk [vmem:[#allocation4 + $0x10] sm:$0xff] %vm13181_vm12, %v6750_v21  ;;  %vm13473_vm0 = vmmov %vm13470_vm3 }
 0x4be   :  { %v4575_v40 = vrot.slane %v4561_v4, %v10139_v0  ;;  %6700 = vst.msk [vmem:[#allocation4 + $0x18] sm:$0xff] %vm6696_vm13, %v6655_v14  ;;  %v4576_v46 = vcombine.high %v4568_v27, %v4568_v27  ;;  %v5531_v18 = vsel %vm13470_vm3, %v4568_v27, -inf  ;;  %vm13474_vm6 = vmmov %vm13473_vm0  ;;  %v4442_v36 = vcombine.high %v12250_v63, %v12250_v63 }
 0x4bf   :  { %v4473_v26 = vrot.slane %v4459_v2, %v10139_v0  ;;  %v4474_v39 = vcombine.high %v4466_v60, %v4466_v60  ;;  %v5363_v44 = vsel %vm13469_vm14, %v4466_v60, -inf  ;;  %v5532_v5 = vrot.slane %v5531_v18, 4  ;;  %vm13475_vm14 = vmmov %vm13473_vm0 }
 0x4c0   :  { %v5364_v10 = vrot.slane %v5363_v44, 4  ;;  %v4577_v8 = vcombine.high %v4575_v40, %v4575_v40  ;;  %v6367_v54 = vpop.permute.xlu1 %6366  ;;  %v5538_v58 = vsel %vm13474_vm6, %v4576_v46, -inf  ;;  %v5545_v41 = vsel %vm13475_vm14, %v4575_v40, -inf  ;;  %vm13476_vm3 = vmmov %vm13473_vm0 }
 0x4c1   :  { %v4475_v30 = vcombine.high %v4473_v26, %v4473_v26  ;;  %v5370_v38 = vsel %vm13471_vm15, %v4474_v39, -inf  ;;  %v5377_v13 = vsel %vm13472_vm5, %v4473_v26, -inf  ;;  %v6078_v32 = vpop.permute.xlu0 %6077  ;;  %6410 = vst.msk [vmem:[#allocation4 + $0x28] sm:$0xff] %vm6404_vm4, %v6367_v54  ;;  %v5533_v3 = vmax.f32 %v5531_v18, %v5532_v5  ;;  %vm13477_vm15 = vmmov %vm13473_vm0 }
 0x4c2   :  { %v5365_v11 = vmax.f32 %v5363_v44, %v5364_v10  ;;  %v5371_v24 = vrot.slane %v5370_v38, 4  ;;  %v5378_v62 = vrot.slane %v5377_v13, 4  ;;  %6120 = vst.msk [vmem:[#allocation4 + $0x30] sm:$0xff] %vm6113_vm10, %v6078_v32  ;;  %v5552_v59 = vsel %vm13476_vm3, %v4577_v8, -inf  ;;  %vm13478_vm5 = vmmov %vm13473_vm0 }
 0x4c3   :  { %v5384_v19 = vsel %vm13473_vm0, %v4475_v30, -inf  ;;  %v5539_v9 = vrot.slane %v5538_v58, 4  ;;  %v5546_v37 = vrot.slane %v5545_v41, 4  ;;  %v5553_v49 = vrot.slane %v5552_v59, 4  ;;  %vm13479_vm6 = vmmov %vm13473_vm0 }
 0x4c4   :  { %v5366_v33 = vrot.slane %v5365_v11, 2  ;;  %v5372_v16 = vmax.f32 %v5370_v38, %v5371_v24  ;;  %v5379_v52 = vmax.f32 %v5377_v13, %v5378_v62  ;;  %v5385_v61 = vrot.slane %v5384_v19, 4  ;;  %v6752_v50 = vpop.permute.xlu1 %6751  ;;  %v6812_v51 = vld [vmem:[#allocation4 + $0x10] sm:$0xff]  ;;  %vm13480_vm14 = vmmov %vm13473_vm0 }
 0x4c5   :  { %v6462_v34 = vpop.permute.xlu0 %6461  ;;  %6797 = vst.msk [vmem:[#allocation4 + $0x18] sm:$0xff] %vm13181_vm12, %v6752_v50  ;;  %8914 = vmatprep.mubr.msk.f32.mxu1 %vm13180_vm9, %v6812_v51  ;;  %v5534_v43 = vrot.slane %v5533_v3, 2  ;;  %v12271_v45 = vmax.f32 %v5538_v58, %v5539_v9  ;;  %v12273_v23 = vmax.f32 %v5545_v41, %v5546_v37  ;;  %v12279_v47 = vmax.f32 %v5552_v59, %v5553_v49  ;;  %vm13481_vm3 = vmmov %vm13473_vm0 }
 0x4c6   :  { %v5367_v56 = vmax.f32 %v5365_v11, %v5366_v33  ;;  %v5373_v55 = vrot.slane %v5372_v16, 2  ;;  %6506 = vst.msk [vmem:[#allocation4 + $0x20] sm:$0xff] %vm6501_vm1, %v6462_v34  ;;  %v5380_v7 = vrot.slane %v5379_v52, 2  ;;  %v5386_v12 = vmax.f32 %v5384_v19, %v5385_v61 }
 0x4c7   :  { %v4449_v57 = vrot.slane %v12250_v63, %v10139_v0  ;;  %v12287_v42 = vmax.f32 %v5533_v3, %v5534_v43  ;;  %v5541_v22 = vrot.slane %v12271_v45, 2  ;;  %v5548_v20 = vrot.slane %v12273_v23, 2 }
 0x4c8   :  { %v6175_v25 = vpop.permute.xlu1 %6174  ;;  %v5368_v48 = vrot.slane %v5367_v56, 1  ;;  %v12277_v29 = vmax.f32 %v5372_v16, %v5373_v55  ;;  %v12285_v31 = vmax.f32 %v5379_v52, %v5380_v7  ;;  %v5387_v35 = vrot.slane %v5386_v12, 2 }
 0x4c9   :  { %v6080_v17 = vpop.permute.xlu0 %6079  ;;  %6217 = vst.msk [vmem:[#allocation4 + $0x30] sm:$0xff] %vm6210_vm11, %v6175_v25  ;;  %v4456_v2 = vrot.slane %v4442_v36, %v10139_v0  ;;  %v4457_v60 = vcombine.high %v4449_v57, %v4449_v57  ;;  %v5335_v4 = vsel %vm13477_vm15, %v4449_v57, -inf  ;;  %v5555_v39 = vrot.slane %v12279_v47, 2  ;;  %vm13482_vm15 = vmmov %vm13473_vm0 }
 0x4ca   :  { %6121 = vst.msk [vmem:[#allocation4 + $0x38] sm:$0xff] %vm6113_vm10, %v6080_v17  ;;  %v12293_v26 = vmax.f32 %v5367_v56, %v5368_v48  ;;  %v5375_v63 = vrot.slane %v12277_v29, 1  ;;  %v5336_v44 = vrot.slane %v5335_v4, 4  ;;  %v4544_v18 = vcombine.high %v12252_v1, %v12252_v1 }
 0x4cb   :  { %v4458_v40 = vcombine.high %v4456_v2, %v4456_v2  ;;  %v5342_v10 = vsel %vm13478_vm5, %v4457_v60, -inf  ;;  %v5349_v46 = vsel %vm13473_vm0, %v4456_v2, -inf  ;;  %v4551_v8 = vrot.slane %v12252_v1, %v10139_v0  ;;  %vm13483_vm5 = vmmov %vm13473_vm0 }
 0x4cc   :  { %v6560_v14 = vpop.permute.xlu1 %6559  ;;  %v6813_v21 = vld [vmem:[#allocation4 + $0x18] sm:$0xff]  ;;  %v5337_v30 = vmax.f32 %v5335_v4, %v5336_v44  ;;  %v5343_v38 = vrot.slane %v5342_v10, 4  ;;  %v5350_v13 = vrot.slane %v5349_v46, 4  ;;  %v5382_v11 = vrot.slane %v12285_v31, 1 }
 0x4cd   :  { %v6464_v27 = vpop.permute.xlu0 %6463  ;;  %6604 = vst.msk [vmem:[#allocation4 + $0x20] sm:$0xff] %vm6599_vm8, %v6560_v14  ;;  %8915 = vmatmul.mubr.msk.f32.gmra.mrb[18].mxu1 %vm13180_vm9, %v6813_v21  ;;  %v12307_v24 = vmax.f32 %v5386_v12, %v5387_v35  ;;  %v5356_v62 = vsel %vm13479_vm6, %v4458_v40, -inf  ;;  %v4558_v5 = vrot.slane %v4544_v18, %v10139_v0  ;;  %v4559_v16 = vcombine.high %v4551_v8, %v4551_v8 }
 0x4ce   :  { %6507 = vst.msk [vmem:[#allocation4 + $0x28] sm:$0xff] %vm6501_vm1, %v6464_v27  ;;  %v5338_v19 = vrot.slane %v5337_v30, 2  ;;  %v5344_v58 = vmax.f32 %v5342_v10, %v5343_v38  ;;  %v5351_v41 = vmax.f32 %v5349_v46, %v5350_v13  ;;  %v5357_v33 = vrot.slane %v5356_v62, 4 }
 0x4cf   :  { %v4560_v1 = vcombine.high %v4558_v5, %v4558_v5  ;;  %v5503_v59 = vsel %vm13480_vm14, %v4551_v8, -inf  ;;  %v5517_v52 = vsel %vm13481_vm3, %v4558_v5, -inf  ;;  %v5510_v50 = vsel %vm13482_vm15, %v4559_v16, -inf }
 0x4d0   :  { %v6272_v54 = vpop.permute.xlu1 %6271  ;;  %v5339_v61 = vmax.f32 %v5337_v30, %v5338_v19  ;;  %v5345_v3 = vrot.slane %v5344_v58, 2  ;;  %v5352_v9 = vrot.slane %v5351_v41, 2  ;;  %v5358_v37 = vmax.f32 %v5356_v62, %v5357_v33 }
 0x4d1   :  { %v6177_v32 = vpop.permute.xlu0 %6176  ;;  %6314 = vst.msk [vmem:[#allocation4 + $0x30] sm:$0xff] %vm6307_vm7, %v6272_v54  ;;  %v5504_v34 = vrot.slane %v5503_v59, 4  ;;  %v5518_v51 = vrot.slane %v5517_v52, 4  ;;  %v5524_v56 = vsel %vm13483_vm5, %v4560_v1, -inf  ;;  %v5511_v25 = vrot.slane %v5510_v50, 4 }
 0x4d2   :  { %6218 = vst.msk [vmem:[#allocation4 + $0x38] sm:$0xff] %vm6210_vm11, %v6177_v32  ;;  %v5340_v7 = vrot.slane %v5339_v61, 1  ;;  %v5346_v12 = vmax.f32 %v5344_v58, %v5345_v3  ;;  %v5353_v43 = vmax.f32 %v5351_v41, %v5352_v9  ;;  %v5359_v36 = vrot.slane %v5358_v37, 2 }
 0x4d3   :  { %v5505_v17 = vmax.f32 %v5503_v59, %v5504_v34  ;;  %v5519_v48 = vmax.f32 %v5517_v52, %v5518_v51  ;;  %v5525_v57 = vrot.slane %v5524_v56, 4  ;;  %v5536_v35 = vrot.slane %v12287_v42, 1 }
 0x4d4   :  { %v6657_v49 = vpop.permute.xlu1 %6656  ;;  %v5347_v2 = vrot.slane %v5346_v12, 1  ;;  %v5354_v60 = vrot.slane %v5353_v43, 1  ;;  %v5360_v4 = vmax.f32 %v5358_v37, %v5359_v36  ;;  %v5512_v14 = vmax.f32 %v5510_v50, %v5511_v25 }
 0x4d5   :  { %v6562_v55 = vpop.permute.xlu0 %6561  ;;  %6701 = vst.msk [vmem:[#allocation4 + $0x20] sm:$0xff] %vm6696_vm13, %v6657_v49  ;;  %v5506_v27 = vrot.slane %v5505_v17, 2  ;;  %v5520_v21 = vrot.slane %v5519_v48, 2  ;;  %v5526_v44 = vmax.f32 %v5524_v56, %v5525_v57  ;;  %v5341_v46 = vmax.f32 %v5339_v61, %v5340_v7 }
 0x4d6   :  { %6605 = vst.msk [vmem:[#allocation4 + $0x28] sm:$0xff] %vm6599_vm8, %v6562_v55  ;;  %v5348_v18 = vmax.f32 %v5346_v12, %v5347_v2  ;;  %v5355_v30 = vmax.f32 %v5353_v43, %v5354_v60  ;;  %v5361_v38 = vrot.slane %v5360_v4, 1  ;;  %v5513_v8 = vrot.slane %v5512_v14, 2 }
 0x4d7   :  { %v5507_v13 = vmax.f32 %v5505_v17, %v5506_v27  ;;  %v5521_v62 = vmax.f32 %v5519_v48, %v5520_v21  ;;  %v5527_v5 = vrot.slane %v5526_v44, 2  ;;  %v5389_v32 = vrot.slane %v12307_v24, 1 }
 0x4d8   :  { %v6369_v10 = vpop.permute.xlu1 %6368  ;;  %v5542_v54 = vmax.f32 %v12271_v45, %v5541_v22  ;;  %v5362_v19 = vmax.f32 %v5360_v4, %v5361_v38  ;;  %vm13484_vm0 = vcmask 1041409   ;;  %v5514_v16 = vmax.f32 %v5512_v14, %v5513_v8 }
 0x4d9   :  { %v6274_v40 = vpop.permute.xlu0 %6273  ;;  %6411 = vst.msk [vmem:[#allocation4 + $0x30] sm:$0xff] %vm6404_vm4, %v6369_v10  ;;  %v5926_v58 = vsel %vm13484_vm0, %v5348_v18, %v5341_v46  ;;  %v5508_v33 = vrot.slane %v5507_v13, 1  ;;  %v5522_v1 = vrot.slane %v5521_v62, 1  ;;  %v5376_v61 = vmax.f32 %v12277_v29, %v5375_v63 }
 0x4da   :  { %6315 = vst.msk [vmem:[#allocation4 + $0x38] sm:$0xff] %vm6307_vm7, %v6274_v40  ;;  %v5927_v41 = vsel %vm5851_vm2, %v5355_v30, %v5926_v58  ;;  %v5549_v3 = vmax.f32 %v12273_v23, %v5548_v20  ;;  %vm13485_vm6 = vcmask 1043459   ;;  %v5528_v22 = vmax.f32 %v5526_v44, %v5527_v5 }
 0x4db   :  { %v5928_v45 = vsel %vm13485_vm6, %v5362_v19, %v5927_v41  ;;  %v5383_v9 = vmax.f32 %v12285_v31, %v5382_v11  ;;  %v5556_v37 = vmax.f32 %v12279_v47, %v5555_v39  ;;  %vm13486_vm14 = vcmask 1044484  }
 0x4dc   :  { %v6754_v52 = vpop.permute.xlu1 %6753  ;;  %v5929_v29 = vsel %vm13486_vm14, %v12293_v26, %v5928_v45  ;;  %v5515_v63 = vrot.slane %v5514_v16, 1  ;;  %v5390_v23 = vmax.f32 %v12307_v24, %v5389_v32  ;;  %vm13487_vm3 = vcmask 1045509  }
 0x4dd   :  { %v6659_v59 = vpop.permute.xlu0 %6658  ;;  %6798 = vst.msk [vmem:[#allocation4 + $0x20] sm:$0xff] %vm13181_vm12, %v6754_v52  ;;  %v5930_v20 = vsel %vm13487_vm3, %v5376_v61, %v5929_v29  ;;  %v5523_v34 = vmax.f32 %v5521_v62, %v5522_v1  ;;  %v5529_v50 = vrot.slane %v5528_v22, 1  ;;  %v5543_v51 = vrot.slane %v5542_v54, 1 }
 0x4de   :  { %6702 = vst.msk [vmem:[#allocation4 + $0x28] sm:$0xff] %vm6696_vm13, %v6659_v59  ;;  %vm13488_vm15 = vcmask 1046534   ;;  %v5509_v55 = vmax.f32 %v5507_v13, %v5508_v33  ;;  %v5516_v49 = vmax.f32 %v5514_v16, %v5515_v63  ;;  %v5550_v7 = vrot.slane %v5549_v3, 1 }
 0x4df   :  { %v5931_v56 = vsel %vm13488_vm15, %v5383_v9, %v5930_v20  ;;  %vm13489_vm5 = vcmask 1047559   ;;  %v5530_v39 = vmax.f32 %v5528_v22, %v5529_v50  ;;  %v5557_v26 = vrot.slane %v5556_v37, 1  ;;  %v12411_v9 = vld [vmem:[%s13157_s2] ss:$0 sm:$0xff] }
 0x4e0   :  { %v6371_v11 = vpop.permute.xlu1 %6370  ;;  %v5932_v47 = vsel %vm13489_vm5, %v5390_v23, %v5931_v56  ;;  %vm13490_vm0 = vcmask 64512   ;;  %vm13491_vm6 = vcmask 1041409   ;;  %v5537_v12 = vmax.f32 %v12287_v42, %v5536_v35 }
 0x4e1   :  { %v6082_v31 = vpop.permute.xlu0 %6081  ;;  %6412 = vst.msk [vmem:[#allocation4 + $0x38] sm:$0xff] %vm6404_vm4, %v6371_v11  ;;  %v5947_v24 = vsel %vm13491_vm6, %v5516_v49, %v5509_v55  ;;  %v5544_v36 = vmax.f32 %v5542_v54, %v5543_v51  ;;  %vm13492_vm14 = vcmask 1043459   ;;  %v5551_v2 = vmax.f32 %v5549_v3, %v5550_v7 }
 0x4e2   :  { %6122 = vst.msk [vmem:[#allocation4 + $0x40] sm:$0xff] %vm6113_vm10, %v6082_v31  ;;  %v5948_v43 = vsel %vm5851_vm2, %v5523_v34, %v5947_v24  ;;  %vm13493_vm3 = vcmask 1044484   ;;  %v5558_v4 = vmax.f32 %v5556_v37, %v5557_v26  ;;  %vm13494_vm15 = vcmask 1045509  }
 0x4e3   :  { %5995 = vst.msk [vmem:[#allocation2 + $0xd1] sm:$0xff] %vm13490_vm0, %v5932_v47  ;;  %v5949_v17 = vsel %vm13492_vm14, %v5530_v39, %v5948_v43  ;;  %vm13495_vm5 = vcmask 1046534   ;;  %vm13496_vm0 = vcmask 1047559   ;;  %vm13497_vm6 = vcmask 64512  }
 0x4e4   :  { %v6756_v48 = vpop.permute.xlu1 %6755  ;;  %v6814_v57 = vld [vmem:[#allocation4 + $0x20] sm:$0xff]  ;;  %v5950_v60 = vsel %vm13493_vm3, %v5537_v12, %v5949_v17  ;;  %vm13498_vm14 = vmmov %vm13497_vm6 }
 0x4e5   :  { %v6466_v25 = vpop.permute.xlu0 %6465  ;;  %6799 = vst.msk [vmem:[#allocation4 + $0x28] sm:$0xff] %vm13181_vm12, %v6756_v48  ;;  %8917 = vmatprep.mubr.msk.f32.mxu1 %vm13180_vm9, %v6814_v57  ;;  %v5951_v42 = vsel %vm13494_vm15, %v5544_v36, %v5950_v60  ;;  %vm13499_vm3 = vmmov %vm13497_vm6 }
 0x4e6   :  { %6508 = vst.msk [vmem:[#allocation4 + $0x30] sm:$0xff] %vm6501_vm1, %v6466_v25  ;;  %v5952_v35 = vsel %vm13495_vm5, %v5551_v2, %v5951_v42  ;;  %vm13500_vm15 = vmmov %vm13499_vm3 }
 0x4e7   :  { %v5953_v27 = vsel %vm13496_vm0, %v5558_v4, %v5952_v35  ;;  %vm13501_vm5 = vmmov %vm13499_vm3 }
 0x4e8   :  { %v6179_v21 = vpop.permute.xlu1 %6178  ;;  %5998 = vst.msk [vmem:[#allocation2 + $0x101] sm:$0xff] %vm13497_vm6, %v5953_v27  ;;  %vm13502_vm0 = vmmov %vm13499_vm3 }
 0x4e9   :  { %v6084_v14 = vpop.permute.xlu0 %6083  ;;  %6219 = vst.msk [vmem:[#allocation4 + $0x40] sm:$0xff] %vm6210_vm11, %v6179_v21  ;;  %vm13503_vm6 = vmmov %vm13502_vm0 }
 0x4ea   :  { %v12364_v44 = vld [vmem:[#allocation2 + $0xd1] sm:$0xff]  ;;  %6123 = vst.msk [vmem:[#allocation4 + $0x48] sm:$0xff] %vm6113_vm10, %v6084_v14 }
 0x4eb   :  { %v6237_v40 = vld [vmem:[#allocation2 + $0xd0] sm:$0xff]  ;;  %6087 = vrot.lane.b32.xlu0 %v12364_v44, %s9108_s27 }
 0x4ec   :  { %6279 = vrot.lane.b32.xlu1 %v6237_v40, %s9104_s16  ;;  %6028 = vst.msk [vmem:[#allocation4 + $0x58] sm:$0xff] %vm13498_vm14, %v6237_v40  ;;  %v6564_v46 = vpop.permute.xlu1 %6563  ;;  %v6815_v18 = vld [vmem:[#allocation4 + $0x28] sm:$0xff]  ;;  %v12381_v62 = vld [vmem:[#allocation2 + $0xd2] sm:$0xff]  ;;  %vm13504_vm14 = vmmov %vm13502_vm0 }
 0x4ed   :  { %v6468_v10 = vpop.permute.xlu0 %6467  ;;  %6606 = vst.msk [vmem:[#allocation4 + $0x30] sm:$0xff] %vm6599_vm8, %v6564_v46  ;;  %8918 = vmatmul.mubr.msk.f32.gmra.mrb[20].mxu1 %vm13180_vm9, %v6815_v18 }
 0x4ee   :  { %6509 = vst.msk [vmem:[#allocation4 + $0x38] sm:$0xff] %vm6501_vm1, %v6468_v10 }
 0x4ef   :  { %6471 = vrot.lane.b32.xlu0 %v12202_v28, %s9111_s18  ;;  %v12379_v8 = vld [vmem:[#allocation2 + $0x100] sm:$0xff] }
 0x4f0   :  { %6664 = vrot.lane.b32.xlu1 %v12189_v53, %s9113_s25  ;;  %v8865_v30 = vpop.f32.mrb[44].mxu0  ;;  %v6276_v13 = vpop.permute.xlu1 %6275  ;;  %6031 = vst.msk [vmem:[#allocation4 + $0x70] sm:$0xff] %vm13499_vm3, %v12379_v8  ;;  %vm13505_vm3 = vmmov %vm13502_vm0 }
 0x4f1   :  { %v6181_v38 = vpop.permute.xlu0 %6180  ;;  %6316 = vst.msk [vmem:[#allocation4 + $0x40] sm:$0xff] %vm6307_vm7, %v6276_v13  ;;  %v3810_v5 = vpop.f32.mrb[45].mxu0  ;;  %v3816_v37 = vadd.f32 %v12411_v9, %v8865_v30 }
 0x4f2   :  { %6220 = vst.msk [vmem:[#allocation4 + $0x48] sm:$0xff] %vm6210_vm11, %v6181_v38  ;;  %v3811_v29 = vadd.f32 %v12411_v9, %v3810_v5 }
 0x4f3   :  { %6184 = vrot.lane.b32.xlu0 %v12381_v62, %s9109_s0  ;;  %v3954_v20 = vmax.f32 %v3816_v37, 0.0 }
 0x4f4   :  { %6376 = vrot.lane.b32.xlu1 %v12364_v44, %s9110_s17  ;;  %v6661_v54 = vpop.permute.xlu1 %6660  ;;  %v3953_v34 = vmax.f32 %v3811_v29, 0.0 }
 0x4f5   :  { %v8883_v53 = vpop.f32.mrb[8].mxu1  ;;  %v6566_v32 = vpop.permute.xlu0 %6565  ;;  %6703 = vst.msk [vmem:[#allocation4 + $0x30] sm:$0xff] %vm6696_vm13, %v6661_v54  ;;  %v4043_v12 = vsel %vm13500_vm15, %v3954_v20, -inf  ;;  %vm13508_vm15 = vcmask 58368  }
 0x4f6   :  { %6607 = vst.msk [vmem:[#allocation4 + $0x38] sm:$0xff] %vm6599_vm8, %v6566_v32  ;;  %v3870_v19 = vpop.f32.mrb[9].mxu1  ;;  %v3876_v63 = vadd.f32 %v12411_v9, %v8883_v53  ;;  %v4040_v43 = vsel %vm13501_vm5, %v3953_v34, -inf }
 0x4f7   :  { %6569 = vrot.lane.b32.xlu0 %v6237_v40, %s9112_s1  ;;  %v3871_v23 = vadd.f32 %v12411_v9, %v3870_v19 }
 0x4f8   :  { %6761 = vrot.lane.b32.xlu1 %v12202_v28, %s9114_s21  ;;  %v6373_v41 = vpop.permute.xlu1 %6372  ;;  %v3966_v56 = vmax.f32 %v3876_v63, 0.0 }
 0x4f9   :  { %v6278_v58 = vpop.permute.xlu0 %6277  ;;  %6413 = vst.msk [vmem:[#allocation4 + $0x40] sm:$0xff] %vm6404_vm4, %v6373_v41  ;;  %v3965_v55 = vmax.f32 %v3871_v23, 0.0 }
 0x4fa   :  { %6317 = vst.msk [vmem:[#allocation4 + $0x48] sm:$0xff] %vm6307_vm7, %v6278_v58  ;;  %v4061_v25 = vsel %vm13502_vm0, %v3966_v56, -inf }
 0x4fb   :  { %v4058_v48 = vsel %vm13503_vm6, %v3965_v55, -inf }
 0x4fc   :  { %v6758_v16 = vpop.permute.xlu1 %6757 }
 0x4fd   :  { %v6663_v33 = vpop.permute.xlu0 %6662  ;;  %6800 = vst.msk [vmem:[#allocation4 + $0x30] sm:$0xff] %vm13181_vm12, %v6758_v16 }
 0x4fe   :  { %6704 = vst.msk [vmem:[#allocation4 + $0x38] sm:$0xff] %vm6696_vm13, %v6663_v33 }
 0x500   :  { %v6375_v59 = vpop.permute.xlu1 %6374 }
 0x501   :  { %v6086_v1 = vpop.permute.xlu0 %6085  ;;  %6414 = vst.msk [vmem:[#allocation4 + $0x48] sm:$0xff] %vm6404_vm4, %v6375_v59 }
 0x502   :  { %6124 = vst.msk [vmem:[#allocation4 + $0x50] sm:$0xff] %vm6113_vm10, %v6086_v1 }
 0x504   :  { %v6760_v28 = vpop.permute.xlu1 %6759  ;;  %v6816_v61 = vld [vmem:[#allocation4 + $0x30] sm:$0xff] }
 0x505   :  { %v6470_v52 = vpop.permute.xlu0 %6469  ;;  %6801 = vst.msk [vmem:[#allocation4 + $0x38] sm:$0xff] %vm13181_vm12, %v6760_v28  ;;  %8920 = vmatprep.mubr.msk.f32.mxu1 %vm13180_vm9, %v6816_v61  ;;  %vm13507_vm12 = vmmov %vm13502_vm0 }
 0x506   :  { %6510 = vst.msk [vmem:[#allocation4 + $0x40] sm:$0xff] %vm6501_vm1, %v6470_v52 }
 0x508   :  { %v6183_v3 = vpop.permute.xlu1 %6182 }
 0x509   :  { %6221 = vst.msk [vmem:[#allocation4 + $0x50] sm:$0xff] %vm6210_vm11, %v6183_v3 }
 0x50c   :  { %v6568_v45 = vpop.permute.xlu1 %6567  ;;  %v6817_v22 = vld [vmem:[#allocation4 + $0x38] sm:$0xff] }
 0x50d   :  { %6608 = vst.msk [vmem:[#allocation4 + $0x40] sm:$0xff] %vm6599_vm8, %v6568_v45  ;;  %8921 = vmatmul.mubr.msk.f32.gmra.mrb[22].mxu1 %vm13180_vm9, %v6817_v22  ;;  %vm13506_vm9 = vmmov %vm13502_vm0 }
 0x520   :  { %v8886_v51 = vpop.f32.mrb[10].mxu1 }
 0x521   :  { %v8868_v50 = vpop.f32.mrb[46].mxu0  ;;  %v3886_v31 = vadd.f32 %v12411_v9, %v8886_v51  ;;  %v3880_v7 = vpop.f32.mrb[11].mxu1 }
 0x522   :  { %v3826_v49 = vadd.f32 %v12411_v9, %v8868_v50  ;;  %v3820_v11 = vpop.f32.mrb[47].mxu0  ;;  %v3881_v39 = vadd.f32 %v12411_v9, %v3880_v7 }
 0x523   :  { %v3821_v47 = vadd.f32 %v12411_v9, %v3820_v11  ;;  %v3968_v24 = vmax.f32 %v3886_v31, 0.0 }
 0x524   :  { %v3956_v26 = vmax.f32 %v3826_v49, 0.0  ;;  %v3967_v17 = vmax.f32 %v3881_v39, 0.0 }
 0x525   :  { %v3955_v36 = vmax.f32 %v3821_v47, 0.0  ;;  %v4062_v2 = vsel %vm13505_vm3, %v3968_v24, -inf }
 0x526   :  { %v4044_v57 = vsel %vm13504_vm14, %v3956_v26, -inf  ;;  %v4063_v4 = vmax.f32 %v4061_v25, %v4062_v2  ;;  %v4059_v35 = vsel %vm13507_vm12, %v3967_v17, -inf }
 0x527   :  { %v4045_v60 = vmax.f32 %v4043_v12, %v4044_v57  ;;  %v4041_v42 = vsel %vm13506_vm9, %v3955_v36, -inf  ;;  %v12429_v14 = vmax.f32 %v4058_v48, %v4059_v35  ;;  %vm13509_vm9 = vmmov %vm13508_vm15 }
 0x528   :  { %v4042_v27 = vmax.f32 %v4040_v43, %v4041_v42  ;;  %v4595_v10 = vcombine.high %v4063_v4, %v4063_v4  ;;  %v4602_v46 = vrot.slane %v4063_v4, %v10139_v0  ;;  %vm13510_vm12 = vmmov %vm13509_vm9 }
 0x529   :  { %v4493_v21 = vcombine.high %v4045_v60, %v4045_v60  ;;  %v4500_v40 = vrot.slane %v4045_v60, %v10139_v0  ;;  %vm13511_vm5 = vmmov %vm13509_vm9  ;;  %v4578_v60 = vcombine.high %v12429_v14, %v12429_v14  ;;  %v4585_v4 = vrot.slane %v12429_v14, %v10139_v0 }
 0x52a   :  { %v4609_v13 = vrot.slane %v4595_v10, %v10139_v0  ;;  %v4610_v53 = vcombine.high %v4602_v46, %v4602_v46  ;;  %v5587_v32 = vsel %vm13509_vm9, %v4602_v46, -inf  ;;  %v4476_v54 = vcombine.high %v4042_v27, %v4042_v27  ;;  %vm13512_vm0 = vmmov %vm13511_vm5 }
 0x52b   :  { %v4507_v18 = vrot.slane %v4493_v21, %v10139_v0  ;;  %v4508_v30 = vcombine.high %v4500_v40, %v4500_v40  ;;  %v5419_v38 = vsel %vm13508_vm15, %v4500_v40, -inf  ;;  %v5588_v52 = vrot.slane %v5587_v32, 4  ;;  %vm13513_vm6 = vmmov %vm13512_vm0 }
 0x52c   :  { %v5420_v5 = vrot.slane %v5419_v38, 4  ;;  %v4611_v33 = vcombine.high %v4609_v13, %v4609_v13  ;;  %v5594_v61 = vsel %vm13513_vm6, %v4610_v53, -inf  ;;  %vm13514_vm14 = vmmov %vm13512_vm0  ;;  %v4483_v39 = vrot.slane %v4042_v27, %v10139_v0 }
 0x52d   :  { %v4509_v19 = vcombine.high %v4507_v18, %v4507_v18  ;;  %v5426_v58 = vsel %vm13510_vm12, %v4508_v30, -inf  ;;  %v5433_v41 = vsel %vm13511_vm5, %v4507_v18, -inf  ;;  %v5601_v3 = vsel %vm13514_vm14, %v4609_v13, -inf  ;;  %vm13515_vm3 = vmmov %vm13512_vm0 }
 0x52e   :  { %v5421_v16 = vmax.f32 %v5419_v38, %v5420_v5  ;;  %v5427_v1 = vrot.slane %v5426_v58, 4  ;;  %v5434_v59 = vrot.slane %v5433_v41, 4  ;;  %v5608_v45 = vsel %vm13515_vm3, %v4611_v33, -inf  ;;  %vm13516_vm15 = vmmov %vm13512_vm0 }
 0x52f   :  { %v5440_v28 = vsel %vm13512_vm0, %v4509_v19, -inf  ;;  %v5589_v23 = vmax.f32 %v5587_v32, %v5588_v52  ;;  %v5595_v20 = vrot.slane %v5594_v61, 4  ;;  %v5602_v34 = vrot.slane %v5601_v3, 4  ;;  %vm13517_vm9 = vmmov %vm13512_vm0 }
 0x530   :  { %v5422_v22 = vrot.slane %v5421_v16, 2  ;;  %v5428_v37 = vmax.f32 %v5426_v58, %v5427_v1  ;;  %v5435_v29 = vmax.f32 %v5433_v41, %v5434_v59  ;;  %v5441_v63 = vrot.slane %v5440_v28, 4  ;;  %vm13518_vm12 = vmmov %vm13512_vm0 }
 0x531   :  { %v5609_v50 = vrot.slane %v5608_v45, 4  ;;  %v5590_v31 = vrot.slane %v5589_v23, 2  ;;  %v5596_v11 = vmax.f32 %v5594_v61, %v5595_v20  ;;  %v5603_v7 = vmax.f32 %v5601_v3, %v5602_v34  ;;  %vm13519_vm5 = vmmov %vm13512_vm0 }
 0x532   :  { %v5423_v51 = vmax.f32 %v5421_v16, %v5422_v22  ;;  %v5429_v56 = vrot.slane %v5428_v37, 2  ;;  %v5436_v55 = vrot.slane %v5435_v29, 2  ;;  %v5442_v49 = vmax.f32 %v5440_v28, %v5441_v63  ;;  %vm13520_vm6 = vmmov %vm13512_vm0 }
 0x533   :  { %v5610_v47 = vmax.f32 %v5608_v45, %v5609_v50  ;;  %v12448_v36 = vmax.f32 %v5589_v23, %v5590_v31  ;;  %v4490_v17 = vrot.slane %v4476_v54, %v10139_v0  ;;  %v5597_v25 = vrot.slane %v5596_v11, 2  ;;  %vm13521_vm14 = vmmov %vm13512_vm0 }
 0x534   :  { %v5424_v26 = vrot.slane %v5423_v51, 1  ;;  %v12444_v24 = vmax.f32 %v5428_v37, %v5429_v56  ;;  %v12446_v12 = vmax.f32 %v5435_v29, %v5436_v55  ;;  %v5443_v43 = vrot.slane %v5442_v49, 2  ;;  %vm13522_vm3 = vmmov %vm13512_vm0 }
 0x535   :  { %v5604_v48 = vrot.slane %v5603_v7, 2  ;;  %v5611_v57 = vrot.slane %v5610_v47, 2  ;;  %v4491_v2 = vcombine.high %v4483_v39, %v4483_v39  ;;  %v5592_v40 = vrot.slane %v12448_v36, 1 }
 0x536   :  { %v12455_v42 = vmax.f32 %v5423_v51, %v5424_v26  ;;  %v5431_v35 = vrot.slane %v12444_v24, 1  ;;  %v5438_v27 = vrot.slane %v12446_v12, 1  ;;  %v12459_v21 = vmax.f32 %v5442_v49, %v5443_v43 }
 0x537   :  { %v4492_v10 = vcombine.high %v4490_v17, %v4490_v17  ;;  %v5391_v46 = vsel %vm13516_vm15, %v4483_v39, -inf  ;;  %v5398_v18 = vsel %vm13517_vm9, %v4491_v2, -inf  ;;  %v12464_v30 = vmax.f32 %v5596_v11, %v5597_v25 }
 0x538   :  { %v12466_v38 = vmax.f32 %v5603_v7, %v5604_v48  ;;  %v12468_v14 = vmax.f32 %v5610_v47, %v5611_v57  ;;  %v5392_v13 = vrot.slane %v5391_v46, 4  ;;  %v5399_v5 = vrot.slane %v5398_v18, 4 }
 0x539   :  { %v5405_v53 = vsel %vm13518_vm12, %v4490_v17, -inf  ;;  %v5412_v32 = vsel %vm13519_vm5, %v4492_v10, -inf  ;;  %v4592_v54 = vrot.slane %v4578_v60, %v10139_v0  ;;  %v4593_v33 = vcombine.high %v4585_v4, %v4585_v4 }
 0x53a   :  { %v5393_v19 = vmax.f32 %v5391_v46, %v5392_v13  ;;  %v5406_v58 = vrot.slane %v5405_v53, 4  ;;  %v5413_v41 = vrot.slane %v5412_v32, 4  ;;  %v5400_v16 = vmax.f32 %v5398_v18, %v5399_v5 }
 0x53b   :  { %v4594_v1 = vcombine.high %v4592_v54, %v4592_v54  ;;  %v5559_v59 = vsel %vm13512_vm0, %v4585_v4, -inf  ;;  %v5573_v52 = vsel %vm13520_vm6, %v4592_v54, -inf  ;;  %v5566_v37 = vsel %vm13521_vm14, %v4593_v33, -inf }
 0x53c   :  { %v5394_v28 = vrot.slane %v5393_v19, 2  ;;  %v5407_v61 = vmax.f32 %v5405_v53, %v5406_v58  ;;  %v5414_v3 = vmax.f32 %v5412_v32, %v5413_v41  ;;  %v5560_v45 = vrot.slane %v5559_v59, 4 }
 0x53d   :  { %v5401_v22 = vrot.slane %v5400_v16, 2  ;;  %v5574_v29 = vrot.slane %v5573_v52, 4  ;;  %v5580_v63 = vsel %vm13522_vm3, %v4594_v1, -inf  ;;  %v5567_v55 = vrot.slane %v5566_v37, 4 }
 0x53e   :  { %v5395_v23 = vmax.f32 %v5393_v19, %v5394_v28  ;;  %v5408_v20 = vrot.slane %v5407_v61, 2  ;;  %v5415_v34 = vrot.slane %v5414_v3, 2  ;;  %v5561_v50 = vmax.f32 %v5559_v59, %v5560_v45 }
 0x53f   :  { %v5402_v56 = vmax.f32 %v5400_v16, %v5401_v22  ;;  %v5575_v49 = vmax.f32 %v5573_v52, %v5574_v29  ;;  %v5581_v31 = vrot.slane %v5580_v63, 4  ;;  %v5568_v17 = vmax.f32 %v5566_v37, %v5567_v55 }
 0x540   :  { %v5396_v7 = vrot.slane %v5395_v23, 1  ;;  %v5409_v47 = vmax.f32 %v5407_v61, %v5408_v20  ;;  %v5416_v39 = vmax.f32 %v5414_v3, %v5415_v34  ;;  %v5562_v26 = vrot.slane %v5561_v50, 2 }
 0x541   :  { %v8889_v51 = vpop.f32.mrb[12].mxu1  ;;  %v5403_v43 = vrot.slane %v5402_v56, 1  ;;  %v5576_v25 = vrot.slane %v5575_v49, 2  ;;  %v5582_v48 = vmax.f32 %v5580_v63, %v5581_v31  ;;  %v5569_v46 = vrot.slane %v5568_v17, 2 }
 0x542   :  { %v3890_v11 = vpop.f32.mrb[13].mxu1  ;;  %v5397_v57 = vmax.f32 %v5395_v23, %v5396_v7  ;;  %v5410_v2 = vrot.slane %v5409_v47, 1  ;;  %v5417_v60 = vrot.slane %v5416_v39, 1  ;;  %v5563_v4 = vmax.f32 %v5561_v50, %v5562_v26 }
 0x543   :  { %v5404_v10 = vmax.f32 %v5402_v56, %v5403_v43  ;;  %v5577_v18 = vmax.f32 %v5575_v49, %v5576_v25  ;;  %v5583_v13 = vrot.slane %v5582_v48, 2  ;;  %v5445_v5 = vrot.slane %v12459_v21, 1 }
 0x544   :  { %v5411_v53 = vmax.f32 %v5409_v47, %v5410_v2  ;;  %v5418_v32 = vmax.f32 %v5416_v39, %v5417_v60  ;;  %v5564_v54 = vrot.slane %v5563_v4, 1  ;;  %vm13523_vm15 = vcmask 1041409  }
 0x545   :  { %v5933_v19 = vsel %vm13523_vm15, %v5404_v10, %v5397_v57  ;;  %v5570_v58 = vmax.f32 %v5568_v17, %v5569_v46  ;;  %v5578_v41 = vrot.slane %v5577_v18, 1  ;;  %v5584_v33 = vmax.f32 %v5582_v48, %v5583_v13  ;;  %vm13529_vm14 = vmmov %vm13523_vm15 }
 0x546   :  { %v5432_v16 = vmax.f32 %v12444_v24, %v5431_v35  ;;  %v5439_v1 = vmax.f32 %v12446_v12, %v5438_v27  ;;  %v5934_v59 = vsel %vm5851_vm2, %v5411_v53, %v5933_v19  ;;  %v3896_v52 = vadd.f32 %v12411_v9, %v8889_v51 }
 0x547   :  { %vm13524_vm9 = vcmask 1043459   ;;  %v5571_v61 = vrot.slane %v5570_v58, 1  ;;  %v5585_v3 = vrot.slane %v5584_v33, 1  ;;  %v3891_v45 = vadd.f32 %v12411_v9, %v3890_v11 }
 0x548   :  { %v5935_v28 = vsel %vm13524_vm9, %v5418_v32, %v5934_v59  ;;  %v5446_v22 = vmax.f32 %v12459_v21, %v5445_v5  ;;  %v5599_v37 = vrot.slane %v12464_v30, 1  ;;  %vm13525_vm12 = vcmask 1044484   ;;  %vm13531_vm15 = vmmov %vm13524_vm9 }
 0x549   :  { %v5936_v24 = vsel %vm13525_vm12, %v12455_v42, %v5935_v28  ;;  %v5579_v35 = vmax.f32 %v5577_v18, %v5578_v41  ;;  %vm13526_vm5 = vcmask 1045509   ;;  %v5565_v27 = vmax.f32 %v5563_v4, %v5564_v54  ;;  %vm13532_vm9 = vmmov %vm13525_vm12 }
 0x54a   :  { %v5937_v12 = vsel %vm13526_vm5, %v5432_v16, %v5936_v24  ;;  %v5572_v29 = vmax.f32 %v5570_v58, %v5571_v61  ;;  %v5586_v63 = vmax.f32 %v5584_v33, %v5585_v3  ;;  %v5606_v23 = vrot.slane %v12466_v38, 1 }
 0x54b   :  { %vm13527_vm0 = vcmask 1046534   ;;  %v3970_v34 = vmax.f32 %v3896_v52, 0.0  ;;  %v5613_v50 = vrot.slane %v12468_v14, 1  ;;  %vm13528_vm6 = vcmask 1047559  }
 0x54c   :  { %v5938_v20 = vsel %vm13527_vm0, %v5439_v1, %v5937_v12  ;;  %v5954_v51 = vsel %vm13529_vm14, %v5572_v29, %v5565_v27  ;;  %v3969_v56 = vmax.f32 %v3891_v45, 0.0  ;;  %v5593_v42 = vmax.f32 %v12448_v36, %v5592_v40 }
 0x54d   :  { %v5939_v21 = vsel %vm13528_vm6, %v5446_v22, %v5938_v20  ;;  %vm13530_vm3 = vcmask 64512   ;;  %v5955_v49 = vsel %vm5851_vm2, %v5579_v35, %v5954_v51  ;;  %v5600_v7 = vmax.f32 %v12464_v30, %v5599_v37 }
 0x54e   :  { %v8892_v55 = vpop.f32.mrb[14].mxu1  ;;  %5996 = vst.msk [vmem:[#allocation2 + $0xe1] sm:$0xff] %vm13530_vm3, %v5939_v21  ;;  %v5956_v47 = vsel %vm13531_vm15, %v5586_v63, %v5955_v49  ;;  %v5607_v26 = vmax.f32 %v12466_v38, %v5606_v23  ;;  %vm13533_vm12 = vmmov %vm13530_vm3  ;;  %v5614_v40 = vmax.f32 %v12468_v14, %v5613_v50  ;;  %vm13535_vm6 = vcmask 1046534  }
 0x54f   :  { %v3906_v31 = vadd.f32 %v12411_v9, %v8892_v55  ;;  %v3900_v11 = vpop.f32.mrb[15].mxu1  ;;  %v5957_v43 = vsel %vm13532_vm9, %v5593_v42, %v5956_v47  ;;  %v4067_v17 = vsel %vm13533_vm12, %v3970_v34, -inf  ;;  %vm13534_vm0 = vmmov %vm13530_vm3  ;;  %vm13537_vm3 = vcmask 1047559  }
 0x550   :  { %v3901_v39 = vadd.f32 %v12411_v9, %v3900_v11  ;;  %v5958_v25 = vsel %vm13526_vm5, %v5600_v7, %v5957_v43  ;;  %v4064_v48 = vsel %vm13534_vm0, %v3969_v56, -inf  ;;  %vm13536_vm14 = vmmov %vm13534_vm0  ;;  %vm13541_vm5 = vcmask 58368  }
 0x551   :  { %v3972_v36 = vmax.f32 %v3906_v31, 0.0  ;;  %v5959_v30 = vsel %vm13535_vm6, %v5607_v26, %v5958_v25  ;;  %vm13538_vm15 = vmmov %vm13534_vm0 }
 0x552   :  { %v3971_v57 = vmax.f32 %v3901_v39, 0.0  ;;  %v5960_v9 = vsel %vm13537_vm3, %v5614_v40, %v5959_v30  ;;  %vm13539_vm9 = vmmov %vm13534_vm0 }
 0x553   :  { %v4068_v2 = vsel %vm13536_vm14, %v3972_v36, -inf  ;;  %5999 = vst.msk [vmem:[#allocation2 + $0x111] sm:$0xff] %vm13539_vm9, %v5960_v9  ;;  %vm13540_vm12 = vmmov %vm13534_vm0 }
 0x554   :  { %v4069_v60 = vmax.f32 %v4067_v17, %v4068_v2  ;;  %v4065_v38 = vsel %vm13538_vm15, %v3971_v57, -inf  ;;  %vm13542_vm0 = vmmov %vm13541_vm5 }
 0x555   :  { %v4066_v4 = vmax.f32 %v4064_v48, %v4065_v38  ;;  %v12519_v10 = vld [vmem:[#allocation2 + $0xe0] sm:$0xff]  ;;  %vm13543_vm6 = vmmov %vm13542_vm0 }
 0x556   :  { %v12521_v14 = vld [vmem:[#allocation2 + $0xe1] sm:$0xff]  ;;  %v4629_v46 = vcombine.high %v4069_v60, %v4069_v60  ;;  %v4636_v18 = vrot.slane %v4069_v60, %v10139_v0  ;;  %6281 = vrot.lane.b32.xlu0 %v12519_v10, %s9104_s16  ;;  %6029 = vst.msk [vmem:[#allocation4 + $0x60] sm:$0xff] %vm13540_vm12, %v12519_v10  ;;  %vm13544_vm14 = vmmov %vm13542_vm0 }
 0x557   :  { %6378 = vrot.lane.b32.xlu1 %v12521_v14, %s9110_s17  ;;  %v4612_v13 = vcombine.high %v4066_v4, %v4066_v4  ;;  %v4619_v5 = vrot.slane %v4066_v4, %v10139_v0  ;;  %vm13545_vm3 = vmmov %vm13542_vm0  ;;  %v12549_v51 = vld [vmem:[#allocation2 + $0xe2] sm:$0xff] }
 0x558   :  { %v4643_v53 = vrot.slane %v4629_v46, %v10139_v0  ;;  %v4644_v32 = vcombine.high %v4636_v18, %v4636_v18  ;;  %v5643_v54 = vsel %vm13541_vm5, %v4636_v18, -inf  ;;  %vm13546_vm15 = vmmov %vm13542_vm0 }
 0x559   :  { %v5644_v19 = vrot.slane %v5643_v54, 4  ;;  %v4626_v58 = vrot.slane %v4612_v13, %v10139_v0  ;;  %v4627_v41 = vcombine.high %v4619_v5, %v4619_v5  ;;  %v5615_v33 = vsel %vm13542_vm0, %v4619_v5, -inf  ;;  %vm13547_vm9 = vmmov %vm13542_vm0 }
 0x55a   :  { %v4645_v16 = vcombine.high %v4643_v53, %v4643_v53  ;;  %v5650_v1 = vsel %vm13543_vm6, %v4644_v32, -inf  ;;  %v5657_v59 = vsel %vm13544_vm14, %v4643_v53, -inf  ;;  %v5616_v52 = vrot.slane %v5615_v33, 4  ;;  %6666 = vrot.lane.b32.xlu0 %v12364_v44, %s9113_s25  ;;  %v12544_v12 = vld [vmem:[#allocation2 + $0x110] sm:$0xff]  ;;  %vm13548_vm5 = vmmov %vm13542_vm0 }
 0x55b   :  { %v5645_v28 = vmax.f32 %v5643_v54, %v5644_v19  ;;  %v5651_v61 = vrot.slane %v5650_v1, 4  ;;  %v5658_v3 = vrot.slane %v5657_v59, 4  ;;  %6763 = vrot.lane.b32.xlu1 %v12381_v62, %s9114_s21  ;;  %v4628_v45 = vcombine.high %v4626_v58, %v4626_v58  ;;  %6032 = vst.msk [vmem:[#allocation4 + $0x78] sm:$0xff] %vm13540_vm12, %v12544_v12  ;;  %v6046_v53 = vld [vmem:[#allocation2 + $0xf1] sm:$0xff] }
 0x55c   :  { %v5664_v22 = vsel %vm13545_vm3, %v4645_v16, -inf  ;;  %v5617_v37 = vmax.f32 %v5615_v33, %v5616_v52  ;;  %v5622_v24 = vsel %vm13546_vm15, %v4627_v41, -inf  ;;  %v5629_v35 = vsel %vm13547_vm9, %v4626_v58, -inf }
 0x55d   :  { %v5652_v27 = vmax.f32 %v5650_v1, %v5651_v61  ;;  %v5659_v29 = vmax.f32 %v5657_v59, %v5658_v3  ;;  %v5665_v63 = vrot.slane %v5664_v22, 4  ;;  %v5623_v23 = vrot.slane %v5622_v24, 4  ;;  %v6088_v50 = vpop.permute.xlu0 %6087 }
 0x55e   :  { %v5618_v44 = vrot.slane %v5617_v37, 2  ;;  %v5630_v20 = vrot.slane %v5629_v35, 4  ;;  %v5636_v34 = vsel %vm13548_vm5, %v4628_v45, -inf  ;;  %v6280_v21 = vpop.permute.xlu1 %6279  ;;  %v5646_v56 = vrot.slane %v5645_v28, 2  ;;  %6125 = vst.msk [vmem:[#allocation4 + $0x58] sm:$0xff] %vm6113_vm10, %v6088_v50  ;;  %6089 = vrot.lane.b32.xlu0 %v12521_v14, %s9108_s27 }
 0x55f   :  { %v5653_v55 = vrot.slane %v5652_v27, 2  ;;  %v5666_v42 = vmax.f32 %v5664_v22, %v5665_v63  ;;  %6318 = vst.msk [vmem:[#allocation4 + $0x50] sm:$0xff] %vm6307_vm7, %v6280_v21  ;;  %6186 = vrot.lane.b32.xlu1 %v12549_v51, %s9109_s0  ;;  %v5624_v31 = vmax.f32 %v5622_v24, %v5623_v23  ;;  %v5637_v7 = vrot.slane %v5636_v34, 4  ;;  %v6144_v23 = vld [vmem:[#allocation2 + $0x102] sm:$0xff] }
 0x560   :  { %v5619_v49 = vmax.f32 %v5617_v37, %v5618_v44  ;;  %v5631_v11 = vmax.f32 %v5629_v35, %v5630_v20  ;;  %v5660_v47 = vrot.slane %v5659_v29, 2  ;;  %v5647_v25 = vmax.f32 %v5645_v28, %v5646_v56  ;;  %v6337_v44 = vld [vmem:[#allocation2 + $0x101] sm:$0xff]  ;;  %v6048_v56 = vld [vmem:[#allocation2 + $0x111] sm:$0xff] }
 0x561   :  { %v5667_v39 = vrot.slane %v5666_v42, 2  ;;  %v5625_v26 = vrot.slane %v5624_v31, 2  ;;  %v5638_v17 = vmax.f32 %v5636_v34, %v5637_v7  ;;  %v6472_v36 = vpop.permute.xlu0 %6471  ;;  %v5654_v48 = vmax.f32 %v5652_v27, %v5653_v55  ;;  %v6143_v27 = vld [vmem:[#allocation2 + $0xf2] sm:$0xff] }
 0x562   :  { %v5632_v43 = vrot.slane %v5631_v11, 2  ;;  %v6665_v40 = vpop.permute.xlu1 %6664  ;;  %6511 = vst.msk [vmem:[#allocation4 + $0x48] sm:$0xff] %vm6501_vm1, %v6472_v36  ;;  %6473 = vrot.lane.b32.xlu0 %v12381_v62, %s9111_s18  ;;  %v5620_v57 = vrot.slane %v5619_v49, 1  ;;  %v5661_v60 = vmax.f32 %v5659_v29, %v5660_v47  ;;  %v5648_v32 = vrot.slane %v5647_v25, 1 }
 0x563   :  { %6705 = vst.msk [vmem:[#allocation4 + $0x40] sm:$0xff] %vm6696_vm13, %v6665_v40  ;;  %6571 = vrot.lane.b32.xlu1 %v12519_v10, %s9112_s1  ;;  %v5626_v30 = vmax.f32 %v5624_v31, %v5625_v26  ;;  %v5639_v9 = vrot.slane %v5638_v17, 2  ;;  %v5668_v38 = vmax.f32 %v5666_v42, %v5667_v39  ;;  %v5655_v54 = vrot.slane %v5654_v48, 1 }
 0x564   :  { %v5633_v2 = vmax.f32 %v5631_v11, %v5632_v43  ;;  %v5621_v62 = vmax.f32 %v5619_v49, %v5620_v57  ;;  %v5662_v41 = vrot.slane %v5661_v60, 1  ;;  %vm13549_vm0 = vcmask 1041409  }
 0x565   :  { %v5627_v4 = vrot.slane %v5626_v30, 1  ;;  %v5640_v18 = vmax.f32 %v5638_v17, %v5639_v9  ;;  %v6185_v13 = vpop.permute.xlu0 %6184  ;;  %v5669_v33 = vrot.slane %v5668_v38, 1  ;;  %v5649_v28 = vmax.f32 %v5647_v25, %v5648_v32  ;;  %v6534_v9 = vld [vmem:[#allocation2 + $0x130] sm:$0xff] }
 0x566   :  { %v5634_v46 = vrot.slane %v5633_v2, 1  ;;  %v6377_v5 = vpop.permute.xlu1 %6376  ;;  %6222 = vst.msk [vmem:[#allocation4 + $0x58] sm:$0xff] %vm6210_vm11, %v6185_v13  ;;  %6091 = vrot.lane.b32.xlu0 %v6046_v53, %s9108_s27  ;;  %vm13550_vm6 = vcmask 589312   ;;  %v5656_v3 = vmax.f32 %v5654_v48, %v5655_v54  ;;  %vm13551_vm14 = vcmask 1043459   ;;  %v6631_v13 = vld [vmem:[#allocation2 + $0x131] sm:$0xff] }
 0x567   :  { %6415 = vst.msk [vmem:[#allocation4 + $0x50] sm:$0xff] %vm6404_vm4, %v6377_v5  ;;  %6283 = vrot.lane.b32.xlu1 %v12142_v6, %s9104_s16  ;;  %v5628_v10 = vmax.f32 %v5626_v30, %v5627_v4  ;;  %v5641_v58 = vrot.slane %v5640_v18, 1  ;;  %v5663_v22 = vmax.f32 %v5661_v60, %v5662_v41  ;;  %vm13552_vm3 = vcmask 1044484   ;;  %v6728_v41 = vld [vmem:[#allocation2 + $0x132] sm:$0xff] }
 0x568   :  { %v5635_v19 = vmax.f32 %v5633_v2, %v5634_v46  ;;  %v5670_v24 = vmax.f32 %v5668_v38, %v5669_v33  ;;  %vm13553_vm15 = vcmask 1045509   ;;  %vm13554_vm9 = vcmask 1046534  }
 0x569   :  { %v5642_v16 = vmax.f32 %v5640_v18, %v5641_v58  ;;  %v5961_v1 = vsel %vm13549_vm0, %v5628_v10, %v5621_v62  ;;  %v6570_v59 = vpop.permute.xlu0 %6569  ;;  %vm13555_vm12 = vcmask 1047559   ;;  %vm13556_vm5 = vcmask 64512  }
 0x56a   :  { %v6762_v52 = vpop.permute.xlu1 %6761  ;;  %v5962_v61 = vsel %vm5851_vm2, %v5635_v19, %v5961_v1  ;;  %6609 = vst.msk [vmem:[#allocation4 + $0x48] sm:$0xff] %vm6599_vm8, %v6570_v59  ;;  %6475 = vrot.lane.b32.xlu0 %v12549_v51, %s9111_s18  ;;  %vm13557_vm0 = vcmask 588800  }
 0x56b   :  { %6802 = vst.msk [vmem:[#allocation4 + $0x40] sm:$0xff] %vm13550_vm6, %v6762_v52  ;;  %6668 = vrot.lane.b32.xlu1 %v12521_v14, %s9113_s25  ;;  %v5963_v45 = vsel %vm13551_vm14, %v5642_v16, %v5962_v61  ;;  %vm7052_vm6 = vcmask 130048   ;;  %vm7253_vm14 = vcmask 123904  }
 0x56c   :  { %v5964_v37 = vsel %vm13552_vm3, %v5649_v28, %v5963_v45  ;;  %vm13558_vm3 = vcmask 1041409  }
 0x56d   :  { %v5965_v35 = vsel %vm13553_vm15, %v5656_v3, %v5964_v37  ;;  %vm13559_vm15 = vcmask 1043459  }
 0x56e   :  { %v5966_v29 = vsel %vm13554_vm9, %v5663_v22, %v5965_v35  ;;  %6188 = vrot.lane.b32.xlu0 %v6143_v27, %s9109_s0  ;;  %vm13560_vm9 = vcmask 1044484  }
 0x56f   :  { %6380 = vrot.lane.b32.xlu1 %v6046_v53, %s9110_s17  ;;  %v5967_v63 = vsel %vm13555_vm12, %v5670_v24, %v5966_v29  ;;  %vm13561_vm12 = vcmask 1045509  }
 0x570   :  { %6000 = vst.msk [vmem:[#allocation2 + $0x121] sm:$0xff] %vm13556_vm5, %v5967_v63  ;;  %vm13562_vm5 = vcmask 1046534  }
 0x572   :  { %v6818_v14 = vld [vmem:[#allocation4 + $0x40] sm:$0xff]  ;;  %6573 = vrot.lane.b32.xlu0 %v12142_v6, %s9112_s1 }
 0x573   :  { %8923 = vmatprep.mubr.msk.f32.mxu1 %vm13557_vm0, %v6818_v14  ;;  %6765 = vrot.lane.b32.xlu1 %v12549_v51, %s9114_s21  ;;  %v12599_v6 = vld [vmem:[%s13159_s4] ss:$0 sm:$0xff]  ;;  %vm13563_vm0 = vcmask 1047559  }
 0x576   :  { %6285 = vrot.lane.b32.xlu0 %v12379_v8, %s9104_s16 }
 0x577   :  { %6382 = vrot.lane.b32.xlu1 %v6337_v44, %s9110_s17  ;;  %v6242_v43 = vld [vmem:[#allocation2 + $0x120] sm:$0xff] }
 0x578   :  { %v6339_v60 = vld [vmem:[#allocation2 + $0x121] sm:$0xff] }
 0x57a   :  { %6670 = vrot.lane.b32.xlu0 %v6046_v53, %s9113_s25 }
 0x57b   :  { %6767 = vrot.lane.b32.xlu1 %v6143_v27, %s9114_s21 }
 0x57e   :  { %6093 = vrot.lane.b32.xlu0 %v6337_v44, %s9108_s27 }
 0x57f   :  { %6190 = vrot.lane.b32.xlu1 %v6144_v23, %s9109_s0 }
 0x580   :  { %v8913_v20 = vpop.f32.mrb[16].mxu1 }
 0x581   :  { %v6963_v34 = vadd.f32 %v8913_v20, %v12599_v6  ;;  %v6957_v50 = vpop.f32.mrb[17].mxu1 }
 0x582   :  { %6477 = vrot.lane.b32.xlu0 %v6143_v27, %s9111_s18  ;;  %v6958_v21 = vadd.f32 %v12599_v6, %v6957_v50 }
 0x583   :  { %6575 = vrot.lane.b32.xlu1 %v12379_v8, %s9112_s1  ;;  %v7037_v51 = vmax.f32 %v6963_v34, 0.0  ;;  %v6145_v8 = vld [vmem:[#allocation2 + $0x112] sm:$0xff] }
 0x584   :  { %v7036_v55 = vmax.f32 %v6958_v21, 0.0 }
 0x585   :  { %v7054_v42 = vsel %vm7052_vm6, %v7037_v51, -inf }
 0x586   :  { %6095 = vrot.lane.b32.xlu0 %v6048_v56, %s9108_s27  ;;  %v7053_v49 = vsel %vm7052_vm6, %v7036_v55, -inf }
 0x587   :  { %6287 = vrot.lane.b32.xlu1 %v12544_v12, %s9104_s16  ;;  %v7055_v31 = vmax.f32 %v7053_v49, %v7054_v42 }
 0x589   :  { %v7092_v11 = vrot.slane %v7055_v31, %v10139_v0  ;;  %v7085_v7 = vcombine.high %v7055_v31, %v7055_v31 }
 0x58a   :  { %6479 = vrot.lane.b32.xlu0 %v6144_v23, %s9111_s18 }
 0x58b   :  { %6672 = vrot.lane.b32.xlu1 %v6337_v44, %s9113_s25  ;;  %v7100_v47 = vcombine.high %v7092_v11, %v7092_v11  ;;  %v7099_v39 = vrot.slane %v7085_v7, %v10139_v0  ;;  %v7254_v17 = vsel %vm7253_vm14, %v7092_v11, -inf }
 0x58c   :  { %v7255_v48 = vrot.slane %v7254_v17, 4 }
 0x58d   :  { %v7261_v26 = vsel %vm7253_vm14, %v7100_v47, -inf  ;;  %v7101_v36 = vcombine.high %v7099_v39, %v7099_v39  ;;  %v7268_v25 = vsel %vm7253_vm14, %v7099_v39, -inf }
 0x58e   :  { %6192 = vrot.lane.b32.xlu0 %v6145_v8, %s9109_s0  ;;  %v7262_v40 = vrot.slane %v7261_v26, 4  ;;  %v7269_v57 = vrot.slane %v7268_v25, 4  ;;  %v7256_v38 = vmax.f32 %v7254_v17, %v7255_v48 }
 0x58f   :  { %6384 = vrot.lane.b32.xlu1 %v6048_v56, %s9110_s17  ;;  %v7275_v2 = vsel %vm7253_vm14, %v7101_v36, -inf }
 0x590   :  { %v7263_v30 = vmax.f32 %v7261_v26, %v7262_v40  ;;  %v7270_v4 = vmax.f32 %v7268_v25, %v7269_v57  ;;  %v7276_v46 = vrot.slane %v7275_v2, 4  ;;  %v7257_v53 = vrot.slane %v7256_v38, 2 }
 0x592   :  { %6577 = vrot.lane.b32.xlu0 %v12544_v12, %s9112_s1  ;;  %v6436_v12 = vld [vmem:[#allocation2 + $0x122] sm:$0xff]  ;;  %v7264_v18 = vrot.slane %v7263_v30, 2  ;;  %v7271_v62 = vrot.slane %v7270_v4, 2  ;;  %v7277_v10 = vmax.f32 %v7275_v2, %v7276_v46  ;;  %v7258_v1 = vmax.f32 %v7256_v38, %v7257_v53 }
 0x593   :  { %6769 = vrot.lane.b32.xlu1 %v6144_v23, %s9114_s21 }
 0x594   :  { %v7265_v58 = vmax.f32 %v7263_v30, %v7264_v18  ;;  %v7272_v52 = vmax.f32 %v7270_v4, %v7271_v62  ;;  %v7278_v28 = vrot.slane %v7277_v10, 2  ;;  %v7259_v22 = vrot.slane %v7258_v1, 1 }
 0x596   :  { %6289 = vrot.lane.b32.xlu0 %v6242_v43, %s9104_s16  ;;  %v7266_v3 = vrot.slane %v7265_v58, 1  ;;  %v7273_v35 = vrot.slane %v7272_v52, 1  ;;  %v7279_v27 = vmax.f32 %v7277_v10, %v7278_v28  ;;  %v7260_v20 = vmax.f32 %v7258_v1, %v7259_v22 }
 0x597   :  { %6481 = vrot.lane.b32.xlu1 %v6145_v8, %s9111_s18 }
 0x598   :  { %v7267_v29 = vmax.f32 %v7265_v58, %v7266_v3  ;;  %v7274_v42 = vmax.f32 %v7272_v52, %v7273_v35  ;;  %v7280_v49 = vrot.slane %v7279_v27, 1 }
 0x59a   :  { %6674 = vrot.lane.b32.xlu0 %v6048_v56, %s9113_s25  ;;  %v7281_v40 = vmax.f32 %v7279_v27, %v7280_v49 }
 0x59b   :  { %6483 = vrot.lane.b32.xlu1 %v6436_v12, %s9111_s18 }
 0x59e   :  { %6386 = vrot.lane.b32.xlu0 %v6339_v60, %s9110_s17 }
 0x59f   :  { %6581 = vrot.lane.b32.xlu1 %v6534_v9, %s9112_s1 }
 0x5a0   :  { %v8916_v5 = vpop.f32.mrb[18].mxu1 }
 0x5a1   :  { %v6973_v32 = vadd.f32 %v8916_v5, %v12599_v6  ;;  %v6967_v54 = vpop.f32.mrb[19].mxu1 }
 0x5a2   :  { %6771 = vrot.lane.b32.xlu0 %v6145_v8, %s9114_s21  ;;  %v6968_v19 = vadd.f32 %v12599_v6, %v6967_v54  ;;  %v7510_v8 = vsel %vm13558_vm3, %v7267_v29, %v7260_v20  ;;  %vm13564_vm3 = vcmask 589312  }
 0x5a3   :  { %6678 = vrot.lane.b32.xlu1 %v6631_v13, %s9113_s25  ;;  %v7039_v33 = vmax.f32 %v6973_v32, 0.0  ;;  %v7511_v25 = vsel %vm5851_vm2, %v7274_v42, %v7510_v8 }
 0x5a4   :  { %v7038_v16 = vmax.f32 %v6968_v19, 0.0  ;;  %v7512_v4 = vsel %vm13559_vm15, %v7281_v40, %v7511_v25  ;;  %vm13565_vm15 = vcmask 588800  }
 0x5a5   :  { %v7057_v59 = vsel %vm7052_vm6, %v7039_v33, -inf }
 0x5a6   :  { %6579 = vrot.lane.b32.xlu0 %v6242_v43, %s9112_s1  ;;  %v7056_v61 = vsel %vm7052_vm6, %v7038_v16, -inf }
 0x5a7   :  { %6775 = vrot.lane.b32.xlu1 %v6728_v41, %s9114_s21  ;;  %v7058_v45 = vmax.f32 %v7056_v61, %v7057_v59 }
 0x5a9   :  { %v7102_v37 = vcombine.high %v7058_v45, %v7058_v45  ;;  %v7109_v24 = vrot.slane %v7058_v45, %v10139_v0 }
 0x5aa   :  { %6676 = vrot.lane.b32.xlu0 %v6339_v60, %s9113_s25 }
 0x5ab   :  { %v7116_v63 = vrot.slane %v7102_v37, %v10139_v0  ;;  %v7117_v14 = vcombine.high %v7109_v24, %v7109_v24  ;;  %v7282_v44 = vsel %vm7253_vm14, %v7109_v24, -inf }
 0x5ac   :  { %v7283_v23 = vrot.slane %v7282_v44, 4 }
 0x5ad   :  { %v7118_v34 = vcombine.high %v7116_v63, %v7116_v63  ;;  %v7289_v50 = vsel %vm7253_vm14, %v7117_v14, -inf  ;;  %v7296_v21 = vsel %vm7253_vm14, %v7116_v63, -inf }
 0x5ae   :  { %6773 = vrot.lane.b32.xlu0 %v6436_v12, %s9114_s21  ;;  %v7284_v51 = vmax.f32 %v7282_v44, %v7283_v23  ;;  %v7290_v56 = vrot.slane %v7289_v50, 4  ;;  %v7297_v55 = vrot.slane %v7296_v21, 4 }
 0x5af   :  { %v7303_v31 = vsel %vm7253_vm14, %v7118_v34, -inf }
 0x5b0   :  { %v7285_v11 = vrot.slane %v7284_v51, 2  ;;  %v7291_v7 = vmax.f32 %v7289_v50, %v7290_v56  ;;  %v7298_v47 = vmax.f32 %v7296_v21, %v7297_v55  ;;  %v7304_v39 = vrot.slane %v7303_v31, 4 }
 0x5b2   :  { %v7286_v26 = vmax.f32 %v7284_v51, %v7285_v11  ;;  %v7292_v43 = vrot.slane %v7291_v7, 2  ;;  %v7299_v17 = vrot.slane %v7298_v47, 2  ;;  %v7305_v36 = vmax.f32 %v7303_v31, %v7304_v39 }
 0x5b4   :  { %v7287_v48 = vrot.slane %v7286_v26, 1  ;;  %v7293_v12 = vmax.f32 %v7291_v7, %v7292_v43  ;;  %v7300_v57 = vmax.f32 %v7298_v47, %v7299_v17  ;;  %v7306_v30 = vrot.slane %v7305_v36, 2 }
 0x5b6   :  { %v7288_v2 = vmax.f32 %v7286_v26, %v7287_v48  ;;  %v7294_v9 = vrot.slane %v7293_v12, 1  ;;  %v7301_v60 = vrot.slane %v7300_v57, 1  ;;  %v7307_v38 = vmax.f32 %v7305_v36, %v7306_v30 }
 0x5b8   :  { %v7295_v46 = vmax.f32 %v7293_v12, %v7294_v9  ;;  %v7302_v18 = vmax.f32 %v7300_v57, %v7301_v60  ;;  %v7308_v13 = vrot.slane %v7307_v38, 1  ;;  %v7513_v5 = vsel %vm13560_vm9, %v7288_v2, %v7512_v4  ;;  %vm13566_vm9 = vmmov %vm13564_vm3 }
 0x5ba   :  { %v7309_v53 = vmax.f32 %v7307_v38, %v7308_v13  ;;  %v7514_v32 = vsel %vm13561_vm12, %v7295_v46, %v7513_v5  ;;  %vm13567_vm12 = vmmov %vm13564_vm3 }
 0x5bb   :  { %v7515_v54 = vsel %vm13562_vm5, %v7302_v18, %v7514_v32  ;;  %vm13568_vm5 = vmmov %vm13565_vm15 }
 0x5bc   :  { %v7516_v62 = vsel %vm13563_vm0, %v7309_v53, %v7515_v54  ;;  %vm13569_vm0 = vcmask 1041409  }
 0x5c0   :  { %v8919_v10 = vpop.f32.mrb[20].mxu1 }
 0x5c1   :  { %v6983_v19 = vadd.f32 %v8919_v10, %v12599_v6  ;;  %v6977_v58 = vpop.f32.mrb[21].mxu1 }
 0x5c2   :  { %v6978_v41 = vadd.f32 %v12599_v6, %v6977_v58 }
 0x5c3   :  { %v7041_v33 = vmax.f32 %v6983_v19, 0.0 }
 0x5c4   :  { %v7040_v16 = vmax.f32 %v6978_v41, 0.0 }
 0x5c5   :  { %v7060_v1 = vsel %vm7052_vm6, %v7041_v33, -inf }
 0x5c6   :  { %v7059_v59 = vsel %vm7052_vm6, %v7040_v16, -inf }
 0x5c7   :  { %v7061_v61 = vmax.f32 %v7059_v59, %v7060_v1 }
 0x5c8   :  { %v6282_v52 = vpop.permute.xlu0 %6281 }
 0x5c9   :  { %v6379_v28 = vpop.permute.xlu1 %6378  ;;  %6319 = vst.msk [vmem:[#allocation4 + $0x58] sm:$0xff] %vm6307_vm7, %v6282_v52  ;;  %v7126_v22 = vrot.slane %v7061_v61, %v10139_v0  ;;  %v7119_v37 = vcombine.high %v7061_v61, %v7061_v61 }
 0x5ca   :  { %6416 = vst.msk [vmem:[#allocation4 + $0x58] sm:$0xff] %vm6404_vm4, %v6379_v28 }
 0x5cb   :  { %v7134_v27 = vcombine.high %v7126_v22, %v7126_v22  ;;  %v7133_v29 = vrot.slane %v7119_v37, %v10139_v0  ;;  %v7310_v20 = vsel %vm7253_vm14, %v7126_v22, -inf }
 0x5cc   :  { %v6667_v3 = vpop.permute.xlu0 %6666  ;;  %v7311_v55 = vrot.slane %v7310_v20, 4 }
 0x5cd   :  { %v6764_v45 = vpop.permute.xlu1 %6763  ;;  %6706 = vst.msk [vmem:[#allocation4 + $0x48] sm:$0xff] %vm6696_vm13, %v6667_v3  ;;  %v7317_v44 = vsel %vm7253_vm14, %v7134_v27, -inf  ;;  %v7135_v34 = vcombine.high %v7133_v29, %v7133_v29  ;;  %v7324_v21 = vsel %vm7253_vm14, %v7133_v29, -inf }
 0x5ce   :  { %6803 = vst.msk [vmem:[#allocation4 + $0x48] sm:$0xff] %vm13564_vm3, %v6764_v45  ;;  %v7318_v50 = vrot.slane %v7317_v44, 4  ;;  %v7325_v42 = vrot.slane %v7324_v21, 4  ;;  %v7312_v7 = vmax.f32 %v7310_v20, %v7311_v55  ;;  %vm13570_vm3 = vmmov %vm13568_vm5 }
 0x5cf   :  { %v7331_v31 = vsel %vm7253_vm14, %v7135_v34, -inf }
 0x5d0   :  { %7542 = vxpose.xlu1.b32.start [1/2] (short) (narrow) %v7516_v62, 16  ;;  %v6090_v24 = vpop.permute.xlu0 %6089  ;;  %v7319_v49 = vmax.f32 %v7317_v44, %v7318_v50  ;;  %v7326_v47 = vmax.f32 %v7324_v21, %v7325_v42  ;;  %v7332_v39 = vrot.slane %v7331_v31, 4  ;;  %v7313_v40 = vrot.slane %v7312_v7, 2 }
 0x5d1   :  { %v6187_v35 = vpop.permute.xlu1 %6186  ;;  %6126 = vst.msk [vmem:[#allocation4 + $0x60] sm:$0xff] %vm6113_vm10, %v6090_v24 }
 0x5d2   :  { %6223 = vst.msk [vmem:[#allocation4 + $0x60] sm:$0xff] %vm6210_vm11, %v6187_v35  ;;  %v7320_v26 = vrot.slane %v7319_v49, 2  ;;  %v7327_v12 = vrot.slane %v7326_v47, 2  ;;  %v7333_v57 = vmax.f32 %v7331_v31, %v7332_v39  ;;  %v7314_v46 = vmax.f32 %v7312_v7, %v7313_v40 }
 0x5d4   :  { %v6474_v63 = vpop.permute.xlu0 %6473  ;;  %v7321_v2 = vmax.f32 %v7319_v49, %v7320_v26  ;;  %v7328_v13 = vmax.f32 %v7326_v47, %v7327_v12  ;;  %v7334_v5 = vrot.slane %v7333_v57, 2  ;;  %v7315_v19 = vrot.slane %v7314_v46, 1 }
 0x5d5   :  { %v6572_v14 = vpop.permute.xlu1 %6571  ;;  %6512 = vst.msk [vmem:[#allocation4 + $0x50] sm:$0xff] %vm6501_vm1, %v6474_v63  ;;  %v6819_v23 = vld [vmem:[#allocation4 + $0x48] sm:$0xff] }
 0x5d6   :  { %6610 = vst.msk [vmem:[#allocation4 + $0x50] sm:$0xff] %vm6599_vm8, %v6572_v14  ;;  %8924 = vmatmul.mubr.msk.f32.gmra.mrb[24].mxu1 %vm13565_vm15, %v6819_v23  ;;  %v7322_v32 = vrot.slane %v7321_v2, 1  ;;  %v7329_v33 = vrot.slane %v7328_v13, 1  ;;  %v7335_v16 = vmax.f32 %v7333_v57, %v7334_v5  ;;  %v7316_v37 = vmax.f32 %v7314_v46, %v7315_v19 }
 0x5d7   :  { %vm13571_vm15 = vcmask 1043459  }
 0x5d8   :  { %v6092_v51 = vpop.permute.xlu0 %6091  ;;  %v7323_v1 = vmax.f32 %v7321_v2, %v7322_v32  ;;  %v7330_v44 = vmax.f32 %v7328_v13, %v7329_v33  ;;  %v7336_v23 = vrot.slane %v7335_v16, 1 }
 0x5d9   :  { %v6284_v56 = vpop.permute.xlu1 %6283  ;;  %6127 = vst.msk [vmem:[#allocation4 + $0x68] sm:$0xff] %vm6113_vm10, %v6092_v51 }
 0x5da   :  { %6320 = vst.msk [vmem:[#allocation4 + $0x60] sm:$0xff] %vm6307_vm7, %v6284_v56  ;;  %v7517_v50 = vsel %vm13569_vm0, %v7323_v1, %v7316_v37  ;;  %v7337_v47 = vmax.f32 %v7335_v16, %v7336_v23  ;;  %vm13575_vm0 = vcmask 1047559  }
 0x5db   :  { %v7518_v39 = vsel %vm5851_vm2, %v7330_v44, %v7517_v50 }
 0x5dc   :  { %v6476_v8 = vpop.permute.xlu0 %6475 }
 0x5dd   :  { %v6669_v11 = vpop.permute.xlu1 %6668  ;;  %6513 = vst.msk [vmem:[#allocation4 + $0x58] sm:$0xff] %vm6501_vm1, %v6476_v8 }
 0x5de   :  { %6707 = vst.msk [vmem:[#allocation4 + $0x50] sm:$0xff] %vm6696_vm13, %v6669_v11 }
 0x5e0   :  { %v6189_v43 = vpop.permute.xlu0 %6188  ;;  %v8922_v36 = vpop.f32.mrb[22].mxu1 }
 0x5e1   :  { %v6381_v17 = vpop.permute.xlu1 %6380  ;;  %6224 = vst.msk [vmem:[#allocation4 + $0x68] sm:$0xff] %vm6210_vm11, %v6189_v43  ;;  %v6993_v25 = vadd.f32 %v8922_v36, %v12599_v6  ;;  %v6987_v48 = vpop.f32.mrb[23].mxu1 }
 0x5e2   :  { %6417 = vst.msk [vmem:[#allocation4 + $0x60] sm:$0xff] %vm6404_vm4, %v6381_v17  ;;  %v6988_v30 = vadd.f32 %v12599_v6, %v6987_v48 }
 0x5e3   :  { %v7043_v60 = vmax.f32 %v6993_v25, 0.0 }
 0x5e4   :  { %v6574_v9 = vpop.permute.xlu0 %6573  ;;  %v7042_v4 = vmax.f32 %v6988_v30, 0.0 }
 0x5e5   :  { %6611 = vst.msk [vmem:[#allocation4 + $0x58] sm:$0xff] %vm6599_vm8, %v6574_v9  ;;  %v6766_v38 = vpop.permute.xlu1 %6765  ;;  %v7063_v18 = vsel %vm7052_vm6, %v7043_v60, -inf  ;;  %v7519_v9 = vsel %vm13571_vm15, %v7337_v47, %v7518_v39 }
 0x5e6   :  { %6804 = vst.msk [vmem:[#allocation4 + $0x50] sm:$0xff] %vm13566_vm9, %v6766_v38  ;;  %v7062_v53 = vsel %vm7052_vm6, %v7042_v4, -inf  ;;  %vm13572_vm9 = vcmask 1044484  }
 0x5e7   :  { %v7064_v62 = vmax.f32 %v7062_v53, %v7063_v18 }
 0x5e8   :  { %v6286_v54 = vpop.permute.xlu0 %6285 }
 0x5e9   :  { %6321 = vst.msk [vmem:[#allocation4 + $0x68] sm:$0xff] %vm6307_vm7, %v6286_v54  ;;  %v6383_v10 = vpop.permute.xlu1 %6382  ;;  %v7136_v58 = vcombine.high %v7064_v62, %v7064_v62  ;;  %v7143_v41 = vrot.slane %v7064_v62, %v10139_v0 }
 0x5ea   :  { %6418 = vst.msk [vmem:[#allocation4 + $0x68] sm:$0xff] %vm6404_vm4, %v6383_v10 }
 0x5eb   :  { %v7150_v52 = vrot.slane %v7136_v58, %v10139_v0  ;;  %v7151_v28 = vcombine.high %v7143_v41, %v7143_v41  ;;  %v7338_v61 = vsel %vm7253_vm14, %v7143_v41, -inf }
 0x5ec   :  { %v6671_v59 = vpop.permute.xlu0 %6670  ;;  %v7339_v22 = vrot.slane %v7338_v61, 4 }
 0x5ed   :  { %6708 = vst.msk [vmem:[#allocation4 + $0x58] sm:$0xff] %vm6696_vm13, %v6671_v59  ;;  %v6768_v3 = vpop.permute.xlu1 %6767  ;;  %v6820_v45 = vld [vmem:[#allocation4 + $0x50] sm:$0xff]  ;;  %v7152_v24 = vcombine.high %v7150_v52, %v7150_v52  ;;  %v7345_v35 = vsel %vm7253_vm14, %v7151_v28, -inf  ;;  %v7352_v27 = vsel %vm7253_vm14, %v7150_v52, -inf }
 0x5ee   :  { %6805 = vst.msk [vmem:[#allocation4 + $0x58] sm:$0xff] %vm13567_vm12, %v6768_v3  ;;  %8926 = vmatprep.mubr.msk.f32.mxu1 %vm13568_vm5, %v6820_v45  ;;  %v7340_v29 = vmax.f32 %v7338_v61, %v7339_v22  ;;  %v7346_v63 = vrot.slane %v7345_v35, 4  ;;  %v7353_v14 = vrot.slane %v7352_v27, 4  ;;  %vm13573_vm12 = vcmask 1045509  }
 0x5ef   :  { %v7359_v34 = vsel %vm7253_vm14, %v7152_v24, -inf  ;;  %vm13574_vm5 = vcmask 1046534  }
 0x5f0   :  { %v6094_v20 = vpop.permute.xlu0 %6093  ;;  %v7341_v21 = vrot.slane %v7340_v29, 2  ;;  %v7347_v51 = vmax.f32 %v7345_v35, %v7346_v63  ;;  %v7354_v56 = vmax.f32 %v7352_v27, %v7353_v14  ;;  %v7360_v42 = vrot.slane %v7359_v34, 4 }
 0x5f1   :  { %6128 = vst.msk [vmem:[#allocation4 + $0x70] sm:$0xff] %vm6113_vm10, %v6094_v20  ;;  %v6191_v55 = vpop.permute.xlu1 %6190 }
 0x5f2   :  { %6225 = vst.msk [vmem:[#allocation4 + $0x70] sm:$0xff] %vm6210_vm11, %v6191_v55  ;;  %v7342_v49 = vmax.f32 %v7340_v29, %v7341_v21  ;;  %v7348_v31 = vrot.slane %v7347_v51, 2  ;;  %v7355_v8 = vrot.slane %v7354_v56, 2  ;;  %v7361_v11 = vmax.f32 %v7359_v34, %v7360_v42 }
 0x5f4   :  { %v6478_v7 = vpop.permute.xlu0 %6477  ;;  %v7343_v26 = vrot.slane %v7342_v49, 1  ;;  %v7349_v36 = vmax.f32 %v7347_v51, %v7348_v31  ;;  %v7356_v40 = vmax.f32 %v7354_v56, %v7355_v8  ;;  %v7362_v25 = vrot.slane %v7361_v11, 2 }
 0x5f5   :  { %6514 = vst.msk [vmem:[#allocation4 + $0x60] sm:$0xff] %vm6501_vm1, %v6478_v7  ;;  %v6576_v43 = vpop.permute.xlu1 %6575  ;;  %v6821_v17 = vld [vmem:[#allocation4 + $0x58] sm:$0xff] }
 0x5f6   :  { %6612 = vst.msk [vmem:[#allocation4 + $0x60] sm:$0xff] %vm6599_vm8, %v6576_v43  ;;  %8927 = vmatmul.mubr.msk.f32.gmra.mrb[26].mxu1 %vm13570_vm3, %v6821_v17  ;;  %v7344_v48 = vmax.f32 %v7342_v49, %v7343_v26  ;;  %v7350_v12 = vrot.slane %v7349_v36, 1  ;;  %v7357_v57 = vrot.slane %v7356_v40, 1  ;;  %v7363_v30 = vmax.f32 %v7361_v11, %v7362_v25 }
 0x5f8   :  { %v6096_v2 = vpop.permute.xlu0 %6095  ;;  %v7351_v38 = vmax.f32 %v7349_v36, %v7350_v12  ;;  %v7358_v4 = vmax.f32 %v7356_v40, %v7357_v57  ;;  %v7364_v46 = vrot.slane %v7363_v30, 1  ;;  %v7520_v18 = vsel %vm13572_vm9, %v7344_v48, %v7519_v9 }
 0x5f9   :  { %6129 = vst.msk [vmem:[#allocation4 + $0x78] sm:$0xff] %vm6113_vm10, %v6096_v2  ;;  %v6288_v60 = vpop.permute.xlu1 %6287  ;;  %vm13576_vm10 = vcmask 589312  }
 0x5fa   :  { %6322 = vst.msk [vmem:[#allocation4 + $0x70] sm:$0xff] %vm6307_vm7, %v6288_v60  ;;  %v7365_v13 = vmax.f32 %v7363_v30, %v7364_v46  ;;  %v7521_v5 = vsel %vm13573_vm12, %v7351_v38, %v7520_v18  ;;  %vm13586_vm12 = vcmask 1044484  }
 0x5fb   :  { %v7522_v32 = vsel %vm13574_vm5, %v7358_v4, %v7521_v5  ;;  %vm13587_vm5 = vcmask 1045509  }
 0x5fc   :  { %v6480_v53 = vpop.permute.xlu0 %6479  ;;  %v7523_v62 = vsel %vm13575_vm0, %v7365_v13, %v7522_v32  ;;  %vm13588_vm0 = vcmask 1046534  }
 0x5fd   :  { %6515 = vst.msk [vmem:[#allocation4 + $0x68] sm:$0xff] %vm6501_vm1, %v6480_v53  ;;  %v6673_v54 = vpop.permute.xlu1 %6672  ;;  %7543 = vxpose.xlu1.b32.end [2/2] (short) (narrow) %v7523_v62, 16 }
 0x5fe   :  { %6709 = vst.msk [vmem:[#allocation4 + $0x60] sm:$0xff] %vm6696_vm13, %v6673_v54 }
 0x600   :  { %v6193_v10 = vpop.permute.xlu0 %6192 }
 0x601   :  { %6226 = vst.msk [vmem:[#allocation4 + $0x78] sm:$0xff] %vm6210_vm11, %v6193_v10  ;;  %v6385_v19 = vpop.permute.xlu1 %6384  ;;  %vm13577_vm11 = vmmov %vm13570_vm3 }
 0x602   :  { %6419 = vst.msk [vmem:[#allocation4 + $0x70] sm:$0xff] %vm6404_vm4, %v6385_v19 }
 0x604   :  { %v6578_v58 = vpop.permute.xlu0 %6577 }
 0x605   :  { %6613 = vst.msk [vmem:[#allocation4 + $0x68] sm:$0xff] %vm6599_vm8, %v6578_v58  ;;  %v6770_v41 = vpop.permute.xlu1 %6769 }
 0x606   :  { %6806 = vst.msk [vmem:[#allocation4 + $0x60] sm:$0xff] %vm13576_vm10, %v6770_v41 }
 0x608   :  { %v6290_v33 = vpop.permute.xlu0 %6289 }
 0x609   :  { %6323 = vst.msk [vmem:[#allocation4 + $0x78] sm:$0xff] %vm6307_vm7, %v6290_v33  ;;  %v6482_v16 = vpop.permute.xlu1 %6481  ;;  %vm13578_vm7 = vmmov %vm13576_vm10  ;;  %vm13589_vm10 = vcmask 1047559  }
 0x60a   :  { %6516 = vst.msk [vmem:[#allocation4 + $0x70] sm:$0xff] %vm6501_vm1, %v6482_v16  ;;  %vm13579_vm3 = vmmov %vm13578_vm7 }
 0x60c   :  { %v6675_v1 = vpop.permute.xlu0 %6674 }
 0x60d   :  { %6710 = vst.msk [vmem:[#allocation4 + $0x68] sm:$0xff] %vm6696_vm13, %v6675_v1  ;;  %v6484_v59 = vpop.permute.xlu1 %6483  ;;  %v6822_v52 = vld [vmem:[#allocation4 + $0x60] sm:$0xff] }
 0x60e   :  { %8929 = vmatprep.mubr.msk.f32.mxu1 %vm13577_vm11, %v6822_v52 }
 0x610   :  { %v6387_v28 = vpop.permute.xlu0 %6386 }
 0x611   :  { %6420 = vst.msk [vmem:[#allocation4 + $0x78] sm:$0xff] %vm6404_vm4, %v6387_v28  ;;  %v6582_v61 = vpop.permute.xlu1 %6581  ;;  %vm13580_vm4 = vmmov %vm13577_vm11 }
 0x612   :  { %6517 = vst.msk [vmem:[#allocation4 + $0x78] sm:$0xff] %vm6501_vm1, %v6484_v59  ;;  %vm13581_vm1 = vmmov %vm13579_vm3 }
 0x613   :  { %6615 = vst.msk [vmem:[#allocation4 + $0x78] sm:$0xff] %vm6599_vm8, %v6582_v61  ;;  %vm13582_vm15 = vmmov %vm13580_vm4 }
 0x614   :  { %v6772_v3 = vpop.permute.xlu0 %6771  ;;  %vm13583_vm9 = vmmov %vm13580_vm4 }
 0x615   :  { %6807 = vst.msk [vmem:[#allocation4 + $0x68] sm:$0xff] %vm13578_vm7, %v6772_v3  ;;  %v6679_v45 = vpop.permute.xlu1 %6678  ;;  %vm13592_vm7 = vmmov %vm13586_vm12 }
 0x616   :  { %6712 = vst.msk [vmem:[#allocation4 + $0x78] sm:$0xff] %vm6696_vm13, %v6679_v45 }
 0x618   :  { %v6580_v22 = vpop.permute.xlu0 %6579 }
 0x619   :  { %6614 = vst.msk [vmem:[#allocation4 + $0x70] sm:$0xff] %vm6599_vm8, %v6580_v22  ;;  %v6776_v37 = vpop.permute.xlu1 %6775  ;;  %vm13584_vm8 = vcmask 1041409  }
 0x61a   :  { %6809 = vst.msk [vmem:[#allocation4 + $0x78] sm:$0xff] %vm13579_vm3, %v6776_v37  ;;  %vm13593_vm3 = vmmov %vm13587_vm5 }
 0x61c   :  { %v6677_v24 = vpop.permute.xlu0 %6676  ;;  %v6823_v35 = vld [vmem:[#allocation4 + $0x68] sm:$0xff] }
 0x61d   :  { %6711 = vst.msk [vmem:[#allocation4 + $0x70] sm:$0xff] %vm6696_vm13, %v6677_v24  ;;  %8930 = vmatmul.mubr.msk.f32.gmra.mrb[28].mxu1 %vm13580_vm4, %v6823_v35  ;;  %vm13585_vm13 = vcmask 1043459   ;;  %vm13594_vm4 = vmmov %vm13588_vm0 }
 0x61e   :  { %vm13591_vm11 = vmmov %vm13585_vm13 }
 0x620   :  { %v6774_v27 = vpop.permute.xlu0 %6773 }
 0x621   :  { %6808 = vst.msk [vmem:[#allocation4 + $0x70] sm:$0xff] %vm13581_vm1, %v6774_v27  ;;  %v6825_v29 = vld [vmem:[#allocation4 + $0x78] sm:$0xff] }
 0x628   :  { %v6824_v63 = vld [vmem:[#allocation4 + $0x70] sm:$0xff] }
 0x629   :  { %8932 = vmatprep.mubr.msk.f32.mxu1 %vm13582_vm15, %v6824_v63  ;;  %vm13597_vm15 = vmmov %vm13591_vm11 }
 0x62a   :  { %8933 = vmatmul.mubr.msk.f32.gmra.mrb[30].mxu1 %vm13583_vm9, %v6825_v29  ;;  %vm13598_vm9 = vmmov %vm13593_vm3 }
 0x6a9   :  { %v8925_v14 = vpop.f32.mrb[24].mxu1 }
 0x6aa   :  { %v7003_v44 = vadd.f32 %v8925_v14, %v12599_v6  ;;  %v6997_v23 = vpop.f32.mrb[25].mxu1 }
 0x6ab   :  { %v6998_v20 = vadd.f32 %v12599_v6, %v6997_v23 }
 0x6ac   :  { %v7045_v34 = vmax.f32 %v7003_v44, 0.0 }
 0x6ad   :  { %v7044_v50 = vmax.f32 %v6998_v20, 0.0 }
 0x6ae   :  { %v7066_v21 = vsel %vm7052_vm6, %v7045_v34, -inf }
 0x6af   :  { %v7065_v51 = vsel %vm7052_vm6, %v7044_v50, -inf }
 0x6b0   :  { %v7067_v56 = vmax.f32 %v7065_v51, %v7066_v21 }
 0x6b2   :  { %v7160_v55 = vrot.slane %v7067_v56, %v10139_v0  ;;  %v7153_v42 = vcombine.high %v7067_v56, %v7067_v56 }
 0x6b4   :  { %v7168_v49 = vcombine.high %v7160_v55, %v7160_v55  ;;  %v7167_v31 = vrot.slane %v7153_v42, %v10139_v0  ;;  %v7366_v11 = vsel %vm7253_vm14, %v7160_v55, -inf }
 0x6b5   :  { %v7367_v26 = vrot.slane %v7366_v11, 4 }
 0x6b6   :  { %v7373_v8 = vsel %vm7253_vm14, %v7168_v49, -inf  ;;  %v7169_v7 = vcombine.high %v7167_v31, %v7167_v31  ;;  %v7380_v39 = vsel %vm7253_vm14, %v7167_v31, -inf }
 0x6b7   :  { %v7374_v47 = vrot.slane %v7373_v8, 4  ;;  %v7381_v43 = vrot.slane %v7380_v39, 4  ;;  %v7368_v40 = vmax.f32 %v7366_v11, %v7367_v26 }
 0x6b8   :  { %v7387_v36 = vsel %vm7253_vm14, %v7169_v7, -inf }
 0x6b9   :  { %v7375_v17 = vmax.f32 %v7373_v8, %v7374_v47  ;;  %v7382_v25 = vmax.f32 %v7380_v39, %v7381_v43  ;;  %v7388_v48 = vrot.slane %v7387_v36, 4  ;;  %v7369_v30 = vrot.slane %v7368_v40, 2 }
 0x6bb   :  { %v7376_v12 = vrot.slane %v7375_v17, 2  ;;  %v7383_v60 = vrot.slane %v7382_v25, 2  ;;  %v7389_v38 = vmax.f32 %v7387_v36, %v7388_v48  ;;  %v7370_v5 = vmax.f32 %v7368_v40, %v7369_v30 }
 0x6bd   :  { %v7377_v46 = vmax.f32 %v7375_v17, %v7376_v12  ;;  %v7384_v32 = vmax.f32 %v7382_v25, %v7383_v60  ;;  %v7390_v54 = vrot.slane %v7389_v38, 2  ;;  %v7371_v58 = vrot.slane %v7370_v5, 1 }
 0x6bf   :  { %v7378_v10 = vrot.slane %v7377_v46, 1  ;;  %v7385_v16 = vrot.slane %v7384_v32, 1  ;;  %v7391_v1 = vmax.f32 %v7389_v38, %v7390_v54  ;;  %v7372_v45 = vmax.f32 %v7370_v5, %v7371_v58 }
 0x6c1   :  { %v7379_v59 = vmax.f32 %v7377_v46, %v7378_v10  ;;  %v7386_v63 = vmax.f32 %v7384_v32, %v7385_v16  ;;  %v7392_v14 = vrot.slane %v7391_v1, 1 }
 0x6c3   :  { %v7524_v23 = vsel %vm13584_vm8, %v7379_v59, %v7372_v45  ;;  %v7393_v49 = vmax.f32 %v7391_v1, %v7392_v14 }
 0x6c4   :  { %v7525_v31 = vsel %vm5851_vm2, %v7386_v63, %v7524_v23 }
 0x6c5   :  { %v7526_v36 = vsel %vm13585_vm13, %v7393_v49, %v7525_v31 }
 0x6c9   :  { %v8928_v57 = vpop.f32.mrb[26].mxu1 }
 0x6ca   :  { %v7013_v2 = vadd.f32 %v8928_v57, %v12599_v6  ;;  %v7007_v9 = vpop.f32.mrb[27].mxu1 }
 0x6cb   :  { %v7008_v4 = vadd.f32 %v12599_v6, %v7007_v9 }
 0x6cc   :  { %v7047_v18 = vmax.f32 %v7013_v2, 0.0 }
 0x6cd   :  { %v7046_v13 = vmax.f32 %v7008_v4, 0.0 }
 0x6ce   :  { %v7069_v53 = vsel %vm7052_vm6, %v7047_v18, -inf }
 0x6cf   :  { %v7068_v62 = vsel %vm7052_vm6, %v7046_v13, -inf }
 0x6d0   :  { %v7070_v19 = vmax.f32 %v7068_v62, %v7069_v53 }
 0x6d2   :  { %v7170_v41 = vcombine.high %v7070_v19, %v7070_v19  ;;  %v7177_v33 = vrot.slane %v7070_v19, %v10139_v0 }
 0x6d4   :  { %v7184_v52 = vrot.slane %v7170_v41, %v10139_v0  ;;  %v7185_v28 = vcombine.high %v7177_v33, %v7177_v33  ;;  %v7394_v61 = vsel %vm7253_vm14, %v7177_v33, -inf }
 0x6d5   :  { %v7395_v3 = vrot.slane %v7394_v61, 4 }
 0x6d6   :  { %v7186_v22 = vcombine.high %v7184_v52, %v7184_v52  ;;  %v7401_v37 = vsel %vm7253_vm14, %v7185_v28, -inf  ;;  %v7408_v24 = vsel %vm7253_vm14, %v7184_v52, -inf }
 0x6d7   :  { %v7396_v35 = vmax.f32 %v7394_v61, %v7395_v3  ;;  %v7402_v27 = vrot.slane %v7401_v37, 4  ;;  %v7409_v29 = vrot.slane %v7408_v24, 4 }
 0x6d8   :  { %v7415_v44 = vsel %vm7253_vm14, %v7186_v22, -inf }
 0x6d9   :  { %v7397_v20 = vrot.slane %v7396_v35, 2  ;;  %v7403_v34 = vmax.f32 %v7401_v37, %v7402_v27  ;;  %v7410_v50 = vmax.f32 %v7408_v24, %v7409_v29  ;;  %v7416_v21 = vrot.slane %v7415_v44, 4 }
 0x6db   :  { %v7398_v51 = vmax.f32 %v7396_v35, %v7397_v20  ;;  %v7404_v56 = vrot.slane %v7403_v34, 2  ;;  %v7411_v55 = vrot.slane %v7410_v50, 2  ;;  %v7417_v42 = vmax.f32 %v7415_v44, %v7416_v21 }
 0x6dd   :  { %v7399_v8 = vrot.slane %v7398_v51, 1  ;;  %v7405_v11 = vmax.f32 %v7403_v34, %v7404_v56  ;;  %v7412_v7 = vmax.f32 %v7410_v50, %v7411_v55  ;;  %v7418_v47 = vrot.slane %v7417_v42, 2 }
 0x6df   :  { %v7400_v39 = vmax.f32 %v7398_v51, %v7399_v8  ;;  %v7406_v26 = vrot.slane %v7405_v11, 1  ;;  %v7413_v43 = vrot.slane %v7412_v7, 1  ;;  %v7419_v17 = vmax.f32 %v7417_v42, %v7418_v47 }
 0x6e1   :  { %v7407_v40 = vmax.f32 %v7405_v11, %v7406_v26  ;;  %v7414_v25 = vmax.f32 %v7412_v7, %v7413_v43  ;;  %v7420_v48 = vrot.slane %v7419_v17, 1  ;;  %v7527_v12 = vsel %vm13586_vm12, %v7400_v39, %v7526_v36 }
 0x6e3   :  { %v7421_v57 = vmax.f32 %v7419_v17, %v7420_v48  ;;  %v7528_v30 = vsel %vm13587_vm5, %v7407_v40, %v7527_v12 }
 0x6e4   :  { %v7529_v2 = vsel %vm13588_vm0, %v7414_v25, %v7528_v30  ;;  %vm13603_vm0 = vmmov %vm13591_vm11 }
 0x6e5   :  { %v7530_v9 = vsel %vm13589_vm10, %v7421_v57, %v7529_v2 }
 0x6e6   :  { %7574 = vxpose.xlu0.b32.start [1/2] (short) (narrow) %v7530_v9, 16 }
 0x6f0   :  { %v8931_v60 = vpop.f32.mrb[28].mxu1 }
 0x6f1   :  { %v7023_v38 = vadd.f32 %v8931_v60, %v12599_v6  ;;  %v7017_v4 = vpop.f32.mrb[29].mxu1 }
 0x6f2   :  { %v7018_v46 = vadd.f32 %v12599_v6, %v7017_v4 }
 0x6f3   :  { %v7049_v18 = vmax.f32 %v7023_v38, 0.0 }
 0x6f4   :  { %v7048_v13 = vmax.f32 %v7018_v46, 0.0 }
 0x6f5   :  { %v7072_v5 = vsel %vm7052_vm6, %v7049_v18, -inf }
 0x6f6   :  { %v7071_v53 = vsel %vm7052_vm6, %v7048_v13, -inf }
 0x6f7   :  { %v7073_v32 = vmax.f32 %v7071_v53, %v7072_v5 }
 0x6f9   :  { %v7187_v54 = vcombine.high %v7073_v32, %v7073_v32  ;;  %v7194_v62 = vrot.slane %v7073_v32, %v10139_v0 }
 0x6fb   :  { %v7201_v10 = vrot.slane %v7187_v54, %v10139_v0  ;;  %v7202_v19 = vcombine.high %v7194_v62, %v7194_v62  ;;  %v7422_v58 = vsel %vm7253_vm14, %v7194_v62, -inf }
 0x6fc   :  { %v7423_v41 = vrot.slane %v7422_v58, 4 }
 0x6fd   :  { %v7203_v33 = vcombine.high %v7201_v10, %v7201_v10  ;;  %v7429_v16 = vsel %vm7253_vm14, %v7202_v19, -inf  ;;  %v7436_v1 = vsel %vm7253_vm14, %v7201_v10, -inf  ;;  %v8934_v59 = vpop.f32.mrb[30].mxu1 }
 0x6fe   :  { %v7424_v52 = vmax.f32 %v7422_v58, %v7423_v41  ;;  %v7430_v28 = vrot.slane %v7429_v16, 4  ;;  %v7437_v61 = vrot.slane %v7436_v1, 4  ;;  %v7033_v3 = vadd.f32 %v8934_v59, %v12599_v6  ;;  %v7027_v45 = vpop.f32.mrb[31].mxu1 }
 0x6ff   :  { %v7443_v22 = vsel %vm7253_vm14, %v7203_v33, -inf  ;;  %v7028_v37 = vadd.f32 %v12599_v6, %v7027_v45 }
 0x700   :  { %v7425_v24 = vrot.slane %v7424_v52, 2  ;;  %v7431_v35 = vmax.f32 %v7429_v16, %v7430_v28  ;;  %v7438_v27 = vmax.f32 %v7436_v1, %v7437_v61  ;;  %v7444_v29 = vrot.slane %v7443_v22, 4 }
 0x701   :  { %v7051_v63 = vmax.f32 %v7033_v3, 0.0  ;;  %v7050_v14 = vmax.f32 %v7028_v37, 0.0 }
 0x702   :  { %v7432_v44 = vrot.slane %v7431_v35, 2  ;;  %v7439_v23 = vrot.slane %v7438_v27, 2  ;;  %v7445_v20 = vmax.f32 %v7443_v22, %v7444_v29  ;;  %v7426_v34 = vmax.f32 %v7424_v52, %v7425_v24  ;;  %v7558_v29 = vpop.trf.xlu1 }
 0x703   :  { %v7075_v50 = vsel %vm7052_vm6, %v7051_v63, -inf  ;;  %v7074_v21 = vsel %vm7052_vm6, %v7050_v14, -inf  ;;  %vm13590_vm6 = vmmov %vm13584_vm8  ;;  %v12786_v63 = vrot.slane %v7558_v29, %v10139_v0 }
 0x704   :  { %v7433_v51 = vmax.f32 %v7431_v35, %v7432_v44  ;;  %v7440_v56 = vmax.f32 %v7438_v27, %v7439_v23  ;;  %v7446_v55 = vrot.slane %v7445_v20, 2  ;;  %v7076_v42 = vmax.f32 %v7074_v21, %v7075_v50  ;;  %v7874_v50 = vld [vmem:[%s13160_s5 + $0x80] sm:$0xff]  ;;  %v7875_v21 = vld [vmem:[%s13160_s5 + $0x88] sm:$0xff]  ;;  %vm13596_vm1 = vmmov %vm13590_vm6 }
 0x705   :  { %v7427_v6 = vrot.slane %v7426_v34, 1  ;;  %v7669_v44 = vcombine.high %v7558_v29, %v7558_v29  ;;  %v7643_v23 = vcombine.high %v12786_v63, %v12786_v63  ;;  %vm13600_vm13 = vmmov %vm13596_vm1 }
 0x706   :  { %v7434_v49 = vrot.slane %v7433_v51, 1  ;;  %v7204_v31 = vcombine.high %v7076_v42, %v7076_v42  ;;  %v7211_v8 = vrot.slane %v7076_v42, %v10139_v0  ;;  %v7441_v11 = vrot.slane %v7440_v56, 1  ;;  %v7559_v14 = vpop.trf.xlu1  ;;  %v7859_v42 = vld [vmem:[%s13160_s5 + $0x8] sm:$0xff]  ;;  %vm13601_vm12 = vmmov %vm13596_vm1 }
 0x707   :  { %v7447_v7 = vmax.f32 %v7445_v20, %v7446_v55  ;;  %v7428_v36 = vmax.f32 %v7426_v34, %v7427_v6  ;;  %v12791_v20 = vrot.slane %v7559_v14, %v10139_v0  ;;  %v7631_v34 = vrot.slane %v12786_v63, 1  ;;  %vm13602_vm5 = vmmov %vm13596_vm1 }
 0x708   :  { %v7435_v47 = vmax.f32 %v7433_v51, %v7434_v49  ;;  %v7218_v39 = vrot.slane %v7204_v31, %v10139_v0  ;;  %v7219_v26 = vcombine.high %v7211_v8, %v7211_v8  ;;  %v7450_v43 = vsel %vm7253_vm14, %v7211_v8, -inf  ;;  %v7858_v51 = vld [vmem:[%s13160_s5] sm:$0xff] }
 0x709   :  { %v7451_v17 = vrot.slane %v7450_v43, 4  ;;  %v7442_v2 = vmax.f32 %v7440_v56, %v7441_v11  ;;  %v7448_v9 = vrot.slane %v7447_v7, 1  ;;  %v8991_v55 = vpack.c.bf16 %v7875_v21, %v7874_v50 }
 0x70a   :  { %v7220_v40 = vcombine.high %v7218_v39, %v7218_v39  ;;  %v7457_v25 = vsel %vm7253_vm14, %v7219_v26, -inf  ;;  %v7464_v48 = vsel %vm7253_vm14, %v7218_v39, -inf  ;;  %v7531_v38 = vsel %vm13590_vm6, %v7435_v47, %v7428_v36  ;;  %v7877_v36 = vld [vmem:[%s13160_s5 + $0x98] sm:$0xff]  ;;  %vm13605_vm6 = vmmov %vm13593_vm3 }
 0x70b   :  { %v7452_v12 = vmax.f32 %v7450_v43, %v7451_v17  ;;  %v7458_v57 = vrot.slane %v7457_v25, 4  ;;  %v7465_v30 = vrot.slane %v7464_v48, 4  ;;  %v7449_v62 = vmax.f32 %v7447_v7, %v7448_v9  ;;  %8992 = vmatprep.subr.bf16.mxu1 %v8991_v55  ;;  %v7876_v17 = vld [vmem:[%s13160_s5 + $0x90] sm:$0xff] }
 0x70c   :  { %v7471_v60 = vsel %vm7253_vm14, %v7220_v40, -inf  ;;  %v7532_v10 = vsel %vm5851_vm2, %v7442_v2, %v7531_v38  ;;  %vm13595_vm2 = vmmov %vm13589_vm10  ;;  %v7676_v49 = vrot.slane %v7669_v44, %v10139_v0  ;;  %v8993_v8 = vpack.c.bf16 %v7859_v42, %v7858_v51 }
 0x70d   :  { %v7453_v4 = vrot.slane %v7452_v12, 2  ;;  %v7459_v46 = vmax.f32 %v7457_v25, %v7458_v57  ;;  %v7466_v18 = vmax.f32 %v7464_v48, %v7465_v30  ;;  %v7472_v13 = vrot.slane %v7471_v60, 4  ;;  %vm13599_vm8 = vmmov %vm13595_vm2 }
 0x70e   :  { %v7533_v28 = vsel %vm13591_vm11, %v7449_v62, %v7532_v10  ;;  %v7657_v11 = vrot.slane %v7643_v23, 1  ;;  %v7760_v7 = vrot.slane %v12791_v20, 1  ;;  %v7771_v26 = vcombine.high %v12791_v20, %v12791_v20  ;;  %8994 = vmatpush3.bf16.msra.mxu1 %v8993_v8  ;;  %vm13604_vm10 = vmmov %vm13603_vm0 }
 0x70f   :  { %v7454_v5 = vmax.f32 %v7452_v12, %v7453_v4  ;;  %v7460_v53 = vrot.slane %v7459_v46, 2  ;;  %v7467_v32 = vrot.slane %v7466_v18, 2  ;;  %v7473_v54 = vmax.f32 %v7471_v60, %v7472_v13  ;;  %vm13606_vm11 = vmmov %vm13603_vm0 }
 0x710   :  { %v7795_v40 = vcombine.high %v7559_v14, %v7559_v14  ;;  %v8995_v12 = vpack.c.bf16 %v7877_v36, %v7876_v17  ;;  %v7697_v57 = vrot.slane %v7676_v49, 1  ;;  %v7784_v13 = vrot.slane %v7771_v26, 1 }
 0x711   :  { %v7455_v19 = vrot.slane %v7454_v5, 1  ;;  %v7461_v58 = vmax.f32 %v7459_v46, %v7460_v53  ;;  %v7468_v41 = vmax.f32 %v7466_v18, %v7467_v32  ;;  %v7474_v33 = vrot.slane %v7473_v54, 2 }
 0x712   :  { %8996 = vmatprep.subr.bf16.mxu1 %v8995_v12  ;;  %v7709_v18 = vcombine.high %v7676_v49, %v7676_v49 }
 0x713   :  { %v7456_v16 = vmax.f32 %v7454_v5, %v7455_v19  ;;  %v7462_v1 = vrot.slane %v7461_v58, 1  ;;  %v7469_v59 = vrot.slane %v7468_v41, 1  ;;  %v7475_v52 = vmax.f32 %v7473_v54, %v7474_v33 }
 0x714   :  { %v7802_v54 = vrot.slane %v7795_v40, %v10139_v0 }
 0x715   :  { %v7463_v61 = vmax.f32 %v7461_v58, %v7462_v1  ;;  %v7470_v3 = vmax.f32 %v7468_v41, %v7469_v59  ;;  %v7476_v45 = vrot.slane %v7475_v52, 1  ;;  %v7534_v22 = vsel %vm13592_vm7, %v7456_v16, %v7533_v28  ;;  %vm13607_vm7 = vmmov %vm13593_vm3 }
 0x716   :  { %v7833_v50 = vcombine.high %v7802_v54, %v7802_v54 }
 0x717   :  { %v7477_v37 = vmax.f32 %v7475_v52, %v7476_v45  ;;  %v7535_v24 = vsel %vm13593_vm3, %v7463_v61, %v7534_v22  ;;  %vm13608_vm3 = vmmov %vm13595_vm2  ;;  %v7822_v45 = vrot.slane %v7802_v54, 1 }
 0x718   :  { %v7536_v35 = vsel %vm13594_vm4, %v7470_v3, %v7535_v24  ;;  %vm13609_vm4 = vmmov %vm13596_vm1  ;;  %v7723_v3 = vrot.slane %v7709_v18, 1 }
 0x719   :  { %v7537_v27 = vsel %vm13595_vm2, %v7477_v37, %v7536_v35 }
 0x71a   :  { %7575 = vxpose.xlu0.b32.end [2/2] (short) (narrow) %v7537_v27, 16 }
 0x796   :  { %v7590_v56 = vpop.trf.xlu0 }
 0x797   :  { %v12808_v6 = vrot.slane %v7590_v56, %v10139_v0  ;;  %v7677_v31 = vcombine.high %v7590_v56, %v7590_v56 }
 0x799   :  { %v7644_v47 = vcombine.high %v12808_v6, %v12808_v6  ;;  %v12814_v39 = vrot.slane %v7677_v31, %v10139_v0  ;;  %v7634_v43 = vsel %vm13596_vm1, %v12808_v6, %v7631_v34  ;;  %v7624_v31 = vrot.slane %v12808_v6, 7 }
 0x79a   :  { %v7591_v25 = vpop.trf.xlu0  ;;  %v7635_v48 = vsel %vm13597_vm15, %v12808_v6, %v7634_v43  ;;  %vm13610_vm15 = vmmov %vm13596_vm1  ;;  %v7846_v43 = vrot.slane %v7833_v50, 1 }
 0x79b   :  { %v12829_v30 = vrot.slane %v7591_v25, %v10139_v0  ;;  %v7803_v2 = vcombine.high %v7591_v25, %v7591_v25  ;;  %v7636_v9 = vsel %vm13598_vm9, %v12808_v6, %v7635_v48  ;;  %v7647_v38 = vrot.slane %v7644_v47, 7  ;;  %vm13611_vm9 = vmmov %vm13605_vm6  ;;  %v7878_v25 = vld [vmem:[%s13160_s5 + $0xa0] sm:$0xff]  ;;  %v7879_v48 = vld [vmem:[%s13160_s5 + $0xa8] sm:$0xff] }
 0x79c   :  { %v7637_v60 = vsel %vm13599_vm8, %v12808_v6, %v7636_v9  ;;  %v7660_v4 = vsel %vm13600_vm13, %v7644_v47, %v7657_v11  ;;  %v7687_v46 = vrot.slane %v12814_v39, 7  ;;  %v12844_v32 = vcombine.high %v12814_v39, %v12814_v39  ;;  %vm13612_vm8 = vmmov %vm13596_vm1  ;;  %v7861_v6 = vld [vmem:[%s13160_s5 + $0x18] sm:$0xff] }
 0x79d   :  { %v7772_v5 = vcombine.high %v12829_v30, %v12829_v30  ;;  %7638 = vrot.lane.b32.xlu0 %v7637_v60, %s9109_s0  ;;  %v7763_v53 = vsel %vm13601_vm12, %v12829_v30, %v7760_v7  ;;  %v7648_v62 = vsel %vm13602_vm5, %v7647_v38, %v7643_v23  ;;  %v12851_v19 = vrot.slane %v7803_v2, %v10139_v0  ;;  %vm13613_vm13 = vmmov %vm13603_vm0  ;;  %v7862_v60 = vld [vmem:[%s13160_s5 + $0x20] sm:$0xff] }
 0x79e   :  { %v7764_v10 = vsel %vm13603_vm0, %v12829_v30, %v7763_v53  ;;  %v7649_v58 = vsel %vm13604_vm10, %v7647_v38, %v7648_v62  ;;  %v7661_v33 = vsel %vm13606_vm11, %v7644_v47, %v7660_v4  ;;  %v7688_v52 = vsel %vm13609_vm4, %v7687_v46, %v7676_v49  ;;  %vm13614_vm12 = vmmov %vm13603_vm0  ;;  %v7880_v53 = vld [vmem:[%s13160_s5 + $0xb0] sm:$0xff] }
 0x79f   :  { %v7765_v41 = vsel %vm13605_vm6, %v12829_v30, %v7764_v10  ;;  %v7650_v16 = vsel %vm13607_vm7, %v7647_v38, %v7649_v58  ;;  %v7775_v59 = vrot.slane %v7772_v5, 7  ;;  %v7787_v0 = vsel %vm13596_vm1, %v7772_v5, %v7784_v13  ;;  %vm13615_vm5 = vmmov %vm13603_vm0 }
 0x7a0   :  { %v7766_v1 = vsel %vm13608_vm3, %v12829_v30, %v7765_v41  ;;  %v7651_v28 = vsel %vm13595_vm2, %v7647_v38, %v7650_v16  ;;  %v7700_v61 = vsel %vm13610_vm15, %v12814_v39, %v7697_v57  ;;  %v7662_v22 = vsel %vm13611_vm9, %v7644_v47, %v7661_v33  ;;  %vm13616_vm0 = vmmov %vm13605_vm6  ;;  %v7863_v38 = vld [vmem:[%s13160_s5 + $0x28] sm:$0xff] }
 0x7a1   :  { %7767 = vrot.lane.b32.xlu1 %v7766_v1, %s9109_s0  ;;  %7652 = vrot.lane.b32.xlu0 %v7651_v28, %s9110_s17  ;;  %v7776_v37 = vsel %vm13612_vm8, %v7775_v59, %v7771_v26  ;;  %v7689_v35 = vsel %vm13614_vm12, %v7687_v46, %v7688_v52  ;;  %v7788_v27 = vsel %vm13615_vm5, %v7772_v5, %v7787_v0  ;;  %v7813_v29 = vrot.slane %v12851_v19, 7  ;;  %vm13617_vm10 = vmmov %vm13615_vm5  ;;  %v7860_v26 = vld [vmem:[%s13160_s5 + $0x10] sm:$0xff]  ;;  %s8164_s0 = sshll.u32 %s9120_s22, 4  ;;  %s8165_s0 = int_to_ptr.vmem [resolvable:$true] %s8164_s0 }
 0x7a2   :  { %v7777_v24 = vsel %vm13613_vm13, %v7775_v59, %v7776_v37  ;;  %v12875_v14 = vcombine.high %v12851_v19, %v12851_v19  ;;  %v7701_v23 = vsel %vm13617_vm10, %v12814_v39, %v7700_v61  ;;  %v12881_v34 = vrot.slane %v12844_v32, 7  ;;  %vm13618_vm6 = vmmov %vm13595_vm2  ;;  %v7864_v1 = vld [vmem:[%s13160_s5 + $0x30] sm:$0xff]  ;;  %p9078_p1 = scmp.lt.s32.totalorder %s8165_s0, %s8165_s0 }
 0x7a3   :  { %v7778_v44 = vsel %vm13616_vm0, %v7775_v59, %v7777_v24  ;;  %v7663_v21 = vsel %vm13618_vm6, %v7644_v47, %v7662_v22  ;;  %vm13619_vm11 = vmmov %vm13595_vm2  ;;  %v7753_v9 = vrot.slane %v12829_v30, 7  ;;  %v8999_v58 = vpack.c.bf16 %v7879_v48, %v7878_v25  ;;  %v7883_v22 = vld [vmem:[%s13160_s5 + $0xc8] sm:$0xff]  ;;  %v7872_v25 = vld [vmem:[%s13160_s5 + $0x70] sm:$0xff] }
 0x7a4   :  { %v7779_v51 = vsel %vm13619_vm11, %v7775_v59, %v7778_v44  ;;  %vm13620_vm7 = vmmov %vm13596_vm1  ;;  %v12899_v47 = vrot.slane %v12875_v14, 7  ;;  %v9001_v41 = vpack.c.bf16 %v7863_v38, %v7862_v60  ;;  %v7865_v59 = vld [vmem:[%s13160_s5 + $0x38] sm:$0xff]  ;;  %v7866_v44 = vld [vmem:[%s13160_s5 + $0x40] sm:$0xff] }
 0x7a5   :  { %v7814_v56 = vsel %vm13620_vm7, %v7813_v29, %v7802_v54  ;;  %7664 = vrot.lane.b32.xlu0 %v7663_v21, %s9112_s1  ;;  %7780 = vrot.lane.b32.xlu1 %v7779_v51, %s9110_s17  ;;  %vm13621_vm3 = vmmov %vm13616_vm0  ;;  %v7881_v54 = vld [vmem:[%s13160_s5 + $0xb8] sm:$0xff] }
 0x7a6   :  { %v7690_v55 = vsel %vm13621_vm3, %v7687_v46, %v7689_v35  ;;  %vm13622_vm4 = vmmov %vm13616_vm0  ;;  %v9003_v61 = vpack.c.bf16 %v7881_v54, %v7880_v53  ;;  %v9005_v35 = vpack.c.bf16 %v7865_v59, %v7864_v1  ;;  %v7885_v21 = vld [vmem:[%s13160_s5 + $0xd8] sm:$0xff]  ;;  %v7983_v59 = vld [vmem:[%s13162_s7 + $0x20] sm:$0xff] }
 0x7a7   :  { %v7789_v42 = vsel %vm13622_vm4, %v7772_v5, %v7788_v27  ;;  %vm13623_vm2 = vmmov %vm13615_vm5  ;;  %v7873_v48 = vld [vmem:[%s13160_s5 + $0x78] sm:$0xff] }
 0x7a8   :  { %v7815_v49 = vsel %vm13623_vm2, %v7813_v29, %v7814_v56  ;;  %vm13624_vm1 = vmmov %vm13616_vm0 }
 0x7a9   :  { %v7702_v8 = vsel %vm13624_vm1, %v12814_v39, %v7701_v23  ;;  %vm13625_vm15 = vmmov %vm13620_vm7  ;;  %v7867_v23 = vld [vmem:[%s13160_s5 + $0x48] sm:$0xff] }
 0x7aa   :  { %v7714_v11 = vsel %vm13625_vm15, %v12881_v34, %v7709_v18  ;;  %vm13626_vm9 = vmmov %vm13620_vm7  ;;  %v8997_v18 = vpack.c.bf16 %v7861_v6, %v7860_v26  ;;  %v7870_v6 = vld [vmem:[%s13160_s5 + $0x60] sm:$0xff] }
 0x7ab   :  { %v7825_v7 = vsel %vm13626_vm9, %v12851_v19, %v7822_v45  ;;  %vm13627_vm8 = vmmov %vm13618_vm6  ;;  %v7882_v45 = vld [vmem:[%s13160_s5 + $0xc0] sm:$0xff] }
 0x7ac   :  { %v7691_v17 = vsel %vm13627_vm8, %v7687_v46, %v7690_v55  ;;  %vm13628_vm13 = vmmov %vm13618_vm6  ;;  %8998 = vmatpush3.bf16.msra.mxu1 %v8997_v18  ;;  %v9009_v55 = vpack.c.bf16 %v7867_v23, %v7866_v44 }
 0x7ad   :  { %v7790_v36 = vsel %vm13628_vm13, %v7772_v5, %v7789_v42  ;;  %vm13629_vm12 = vmmov %vm13616_vm0  ;;  %7692 = vrot.lane.b32.xlu0 %v7691_v17, %s9114_s21  ;;  %9000 = vmatprep.subr.bf16.mxu1 %v8999_v58  ;;  %v7888_v17 = vld [vmem:[%s13160_s5 + $0xf0] sm:$0xff] }
 0x7ae   :  { %v7816_v40 = vsel %vm13629_vm12, %v7813_v29, %v7815_v49  ;;  %7791 = vrot.lane.b32.xlu1 %v7790_v36, %s9112_s1  ;;  %vm13630_vm5 = vmmov %vm13618_vm6 }
 0x7af   :  { %v7703_v12 = vsel %vm13630_vm5, %v12814_v39, %v7702_v8  ;;  %vm13631_vm0 = vmmov %vm13620_vm7  ;;  %v7886_v8 = vld [vmem:[%s13160_s5 + $0xe0] sm:$0xff] }
 0x7b0   :  { %v7726_v57 = vsel %vm13631_vm0, %v12844_v32, %v7723_v3  ;;  %vm13632_vm10 = vmmov %vm13631_vm0  ;;  %9002 = vmatpush3.bf16.msra.mxu1 %v9001_v41 }
 0x7b1   :  { %v7625_v2 = vsel %vm13632_vm10, %v7624_v31, %v12786_v63  ;;  %vm13633_vm6 = vmmov %vm13623_vm2  ;;  %7704 = vrot.lane.b32.xlu0 %v7703_v12, %s9115_s30  ;;  %9004 = vmatprep.subr.bf16.mxu1 %v9003_v61  ;;  %v9021_v12 = vpack.c.bf16 %v7873_v48, %v7872_v25  ;;  %v7986_v61 = vld [vmem:[%s13162_s7 + $0x38] sm:$0xff] }
 0x7b2   :  { %v7715_v4 = vsel %vm13633_vm6, %v12881_v34, %v7714_v11  ;;  %vm13634_vm11 = vmmov %vm13623_vm2  ;;  %v7887_v11 = vld [vmem:[%s13160_s5 + $0xe8] sm:$0xff] }
 0x7b3   :  { %v7826_v39 = vsel %vm13634_vm11, %v12851_v19, %v7825_v7  ;;  %vm13635_vm7 = vmmov %vm13623_vm2  ;;  %v9015_v26 = vpack.c.bf16 %v7887_v11, %v7886_v8 }
 0x7b4   :  { %v7626_v46 = vsel %vm13635_vm7, %v7624_v31, %v7625_v2  ;;  %vm13636_vm3 = vmmov %vm13630_vm5  ;;  %9006 = vmatpush3.bf16.msra.mxu1 %v9005_v35  ;;  %v8069_v35 = vld [vmem:[%s13164_s9] sm:$0xff] }
 0x7b5   :  { %v7817_v63 = vsel %vm13636_vm3, %v7813_v29, %v7816_v40  ;;  %vm13637_vm4 = vmmov %vm13631_vm0 }
 0x7b6   :  { %v7838_v30 = vsel %vm13637_vm4, %v12899_v47, %v7833_v50  ;;  %vm13638_vm2 = vmmov %vm13624_vm1  ;;  %7818 = vrot.lane.b32.xlu1 %v7817_v63, %s9114_s21  ;;  %v7884_v50 = vld [vmem:[%s13160_s5 + $0xd0] sm:$0xff] }
 0x7b7   :  { %v7627_v13 = vsel %vm13638_vm2, %v7624_v31, %v7626_v46  ;;  %vm13639_vm1 = vmmov %vm13631_vm0  ;;  %v9011_v49 = vpack.c.bf16 %v7885_v21, %v7884_v50  ;;  %v8643_v21 = vld [vmem:[%s13163_s8] ss:$0 sm:$0xff] }
 0x7b8   :  { %v7754_v5 = vsel %vm13639_vm1, %v7753_v9, %v12791_v20  ;;  %vm13640_vm15 = vmmov %vm13636_vm3 }
 0x7b9   :  { %v7628_v62 = vsel %vm13640_vm15, %v7624_v31, %v7627_v13  ;;  %vm13641_vm9 = vmmov %vm13633_vm6  ;;  %v7868_v31 = vld [vmem:[%s13160_s5 + $0x50] sm:$0xff] }
 0x7ba   :  { %v7755_v10 = vsel %vm13641_vm9, %v7753_v9, %v7754_v5  ;;  %vm13642_vm8 = vmmov %vm13638_vm2  ;;  %7630 = vst.msk [vmem:[%s13166_s11] sm:$0x3] %vm7253_vm14, %v7628_v62  ;;  %v7979_v62 = vld [vmem:[%s13162_s7] sm:$0xff] }
 0x7bb   :  { %v7716_v20 = vsel %vm13642_vm8, %v12881_v34, %v7715_v4  ;;  %vm13643_vm13 = vmmov %vm13638_vm2  ;;  %vm7641_vm8 = vcmask 255104  }
 0x7bc   :  { %v7827_v33 = vsel %vm13643_vm13, %v12851_v19, %v7826_v39  ;;  %vm13644_vm12 = vmmov %vm13638_vm2  ;;  %vm7655_vm13 = vcmask 386304  }
 0x7bd   :  { %v7756_v16 = vsel %vm13644_vm12, %v7753_v9, %v7755_v10  ;;  %vm13645_vm5 = vmmov %vm13633_vm6  ;;  %vm7667_vm12 = vcmask 517504   ;;  %v7980_v10 = vld [vmem:[%s13162_s7 + $0x8] sm:$0xff] }
 0x7be   :  { %v7727_v52 = vsel %vm13645_vm5, %v12844_v32, %v7726_v57  ;;  %vm13646_vm0 = vmmov %vm13645_vm5  ;;  %v9118_v57 = vmov 0.0|0.0   ;;  %vm7695_vm5 = vcmask 648704  }
 0x7bf   :  { %v7839_v28 = vsel %vm13646_vm0, %v12899_v47, %v7838_v30  ;;  %vm13647_vm10 = vmmov %vm13636_vm3 }
 0x7c0   :  { %v7757_v0 = vsel %vm13647_vm10, %v7753_v9, %v7756_v16  ;;  %vm13648_vm6 = vmmov %vm13639_vm1  ;;  %vm7721_vm10 = vcmask 911104   ;;  %v7982_v16 = vld [vmem:[%s13162_s7 + $0x18] sm:$0xff] }
 0x7c1   :  { %v7849_v3 = vsel %vm13648_vm6, %v12875_v14, %v7846_v43  ;;  %7759 = vst.msk [vmem:[%s13166_s11 + $0x2] sm:$0x3] %vm7253_vm14, %v7757_v0  ;;  %vm13649_vm11 = vmmov %vm13636_vm3  ;;  %v7871_v43 = vld [vmem:[%s13160_s5 + $0x68] sm:$0xff]  ;;  %vm7733_vm6 = vcmask 1042304  }
 0x7c2   :  { %v7717_v37 = vsel %vm13649_vm11, %v12881_v34, %v7716_v20  ;;  %vm13650_vm7 = vmmov %vm13636_vm3  ;;  %v9007_v34 = vpack.c.bf16 %v7883_v22, %v7882_v45  ;;  %v9017_v36 = vpack.c.bf16 %v7871_v43, %v7870_v6  ;;  %v9024_v20 = vpack.c.bf16 %v7980_v10, %v7979_v62  ;;  %v8641_v22 = vld [vmem:[%s13161_s6] ss:$0 sm:$0xff] }
 0x7c3   :  { %v7828_v24 = vsel %vm13650_vm7, %v12851_v19, %v7827_v33  ;;  %7718 = vrot.lane.b32.xlu0 %v7717_v37, %s9116_s28  ;;  %vm13651_vm14 = vmmov %vm13638_vm2  ;;  %v7981_v33 = vld [vmem:[%s13162_s7 + $0x10] sm:$0xff]  ;;  %vm9119_vm11 = vmmov 0  }
 0x7c4   :  { %7829 = vrot.lane.b32.xlu1 %v7828_v24, %s9115_s30  ;;  %v7728_v27 = vsel %vm13651_vm14, %v12844_v32, %v7727_v52  ;;  %vm13652_vm3 = vmmov %vm13638_vm2  ;;  %9008 = vmatprep.subr.bf16.mxu1 %v9007_v34  ;;  %v9027_v1 = vpack.c.bf16 %v7982_v16, %v7981_v33  ;;  %v7984_v52 = vld [vmem:[%s13162_s7 + $0x28] sm:$0xff]  ;;  %v8072_v34 = vld [vmem:[%s13164_s9 + $0x18] sm:$0xff]  ;;  %vm8080_vm14 = vcmask 261120  }
 0x7c5   :  { %v7840_v29 = vsel %vm13652_vm3, %v12899_v47, %v7839_v28  ;;  %vm13653_vm4 = vmmov %vm13646_vm0  ;;  %9010 = vmatpush3.bf16.msra.mxu1 %v9009_v55  ;;  %vm7707_vm0 = vcmask 779904   ;;  %v7985_v28 = vld [vmem:[%s13162_s7 + $0x30] sm:$0xff]  ;;  %v9030_v0 = vpack.c.bf16 %v7984_v52, %v7983_v59 }
 0x7c6   :  { %v7850_v19 = vsel %vm13653_vm4, %v12875_v14, %v7849_v3  ;;  %vm13654_vm2 = vmmov %vm13650_vm7  ;;  %9012 = vmatprep.subr.bf16.mxu1 %v9011_v49  ;;  %v9033_v3 = vpack.c.bf16 %v7986_v61, %v7985_v28  ;;  %vm7994_vm7 = vcmask 523264  }
 0x7c7   :  { %v7729_v51 = vsel %vm13654_vm2, %v12844_v32, %v7728_v27  ;;  %vm13655_vm1 = vmmov %vm13654_vm2  ;;  %v7869_v32 = vld [vmem:[%s13160_s5 + $0x58] sm:$0xff]  ;;  %v8070_v27 = vld [vmem:[%s13164_s9 + $0x8] sm:$0xff] }
 0x7c8   :  { %v7841_v56 = vsel %vm13655_vm1, %v12899_v47, %v7840_v29  ;;  %7730 = vrot.lane.b32.xlu0 %v7729_v51, %s9117_s29  ;;  %vm13656_vm15 = vmmov %vm13652_vm3  ;;  %v9013_v47 = vpack.c.bf16 %v7869_v32, %v7868_v31  ;;  %v9036_v44 = vpack.c.bf16 %v8070_v27, %v8069_v35  ;;  %vm8154_vm3 = vcmask 74752  }
 0x7c9   :  { %7842 = vrot.lane.b32.xlu1 %v7841_v56, %s9116_s28  ;;  %v7851_v42 = vsel %vm13656_vm15, %v12875_v14, %v7850_v19  ;;  %vm13657_vm9 = vmmov %vm13655_vm1  ;;  %v8071_v19 = vld [vmem:[%s13164_s9 + $0x10] sm:$0xff]  ;;  %s9073_s9 = scalar_lea.vmem %s8165_s0, 32 }
 0x7ca   :  { %v7852_v7 = vsel %vm13657_vm9, %v12875_v14, %v7851_v42  ;;  %v7889_v14 = vld [vmem:[%s13160_s5 + $0xf8] sm:$0xff]  ;;  %9014 = vmatpush3.bf16.msra.mxu1 %v9013_v47  ;;  %v9039_v50 = vpack.c.bf16 %v8072_v34, %v8071_v19  ;;  %v8645_v42 = vld [vmem:[%s13165_s10] ss:$0 sm:$0xff]  ;;  %p9074_p0 = scmp.ne.s32.totalorder %s8165_s0, %s9073_s9  ;;  %p9079_p2 = scmp.lt.s32.totalorder %s9073_s9, %s9073_s9 }
 0x7cb   :  { %9016 = vmatprep.subr.bf16.mxu1 %v9015_v26  ;;  %v9019_v40 = vpack.c.bf16 %v7889_v14, %v7888_v17 }
 0x7cc   :  { %p9080_p3 = por %p9079_p2, %p9078_p1 }
 0x7cd   :  { %7853 = vrot.lane.b32.xlu1 %v7852_v7, %s9117_s29 }
 0x7ce   :  { %9018 = vmatpush3.bf16.msra.mxu1 %v9017_v36  ;;  %p9081_p4 = pnand %p9080_p3, %p9074_p0 }
 0x7cf   :  { %9020 = vmatprep.subr.bf16.mxu1 %v9019_v40 }
 0x7d2   :  { %9022 = vmatpush3.bf16.msra.mxu1 %v9021_v12 }
 0x7d3   :  { %9023 = vmatprep.subr.bf16.mxu1 %v9118_v57 }
 0x80f   :  { %v7639_v2 = vpop.permute.xlu0 %7638 }
 0x810   :  { %7642 = vst.msk [vmem:[%s13166_s11] sm:$0x3] %vm7641_vm8, %v7639_v2 }
 0x813   :  { %v7768_v9 = vpop.permute.xlu1 %7767  ;;  %v7653_v60 = vpop.permute.xlu0 %7652 }
 0x814   :  { %7770 = vst.msk [vmem:[%s13166_s11 + $0x2] sm:$0x3] %vm7641_vm8, %v7768_v9 }
 0x815   :  { %7656 = vst.msk [vmem:[%s13166_s11] sm:$0x3] %vm7655_vm13, %v7653_v60 }
 0x817   :  { %v7665_v38 = vpop.permute.xlu0 %7664  ;;  %v7781_v4 = vpop.permute.xlu1 %7780 }
 0x818   :  { %7668 = vst.msk [vmem:[%s13166_s11] sm:$0x3] %vm7667_vm12, %v7665_v38 }
 0x819   :  { %7783 = vst.msk [vmem:[%s13166_s11 + $0x2] sm:$0x3] %vm7655_vm13, %v7781_v4 }
 0x81f   :  { %v7693_v39 = vpop.permute.xlu0 %7692 }
 0x820   :  { %v7792_v46 = vpop.permute.xlu1 %7791  ;;  %7696 = vst.msk [vmem:[%s13166_s11] sm:$0x3] %vm7695_vm5, %v7693_v39 }
 0x821   :  { %7794 = vst.msk [vmem:[%s13166_s11 + $0x2] sm:$0x3] %vm7667_vm12, %v7792_v46 }
 0x823   :  { %v7705_v18 = vpop.permute.xlu0 %7704 }
 0x824   :  { %7708 = vst.msk [vmem:[%s13166_s11] sm:$0x3] %vm7707_vm0, %v7705_v18 }
 0x828   :  { %v7819_v63 = vpop.permute.xlu1 %7818 }
 0x829   :  { %7821 = vst.msk [vmem:[%s13166_s11 + $0x2] sm:$0x3] %vm7695_vm5, %v7819_v63 }
 0x835   :  { %v7719_v30 = vpop.permute.xlu0 %7718 }
 0x836   :  { %v7830_v13 = vpop.permute.xlu1 %7829  ;;  %7722 = vst.msk [vmem:[%s13166_s11] sm:$0x3] %vm7721_vm10, %v7719_v30 }
 0x837   :  { %7832 = vst.msk [vmem:[%s13166_s11 + $0x2] sm:$0x3] %vm7707_vm0, %v7830_v13 }
 0x83a   :  { %v7731_v5 = vpop.permute.xlu0 %7730 }
 0x83b   :  { %v7843_v53 = vpop.permute.xlu1 %7842  ;;  %7734 = vst.msk [vmem:[%s13166_s11] sm:$0x3] %vm7733_vm6, %v7731_v5 }
 0x83c   :  { %7845 = vst.msk [vmem:[%s13166_s11 + $0x2] sm:$0x3] %vm7721_vm10, %v7843_v53 }
 0x83f   :  { %v7854_v54 = vpop.permute.xlu1 %7853 }
 0x840   :  { %7856 = vst.msk [vmem:[%s13166_s11 + $0x2] sm:$0x3] %vm7733_vm6, %v7854_v54 }
 0x847   :  { %v8642_v58 = vld.sshfl [vmem:[%s13166_s11] sm:$0x33 pattern:$0x76325410] }
 0x848   :  { %v7905_v41 = vcombine.high %v8642_v58, %v8642_v58 }
 0x84a   :  { %7972 = vmatprep.mubr.f32.mxu1 %v7905_v41 }
 0x84b   :  { %7973 = vmatmul.mubr.f32.vlgmr.msra.gmra.mrb[32].mxu1 %v8642_v58 }
 0x84c   :  { %9025 = vmatpush3.bf16.msra.mxu1 %v9024_v20  ;;  %8951 = vmatprep.mubr.msk.f32.mxu1 %vm9119_vm11, %v9106_v15 }
 0x84d   :  { %9026 = vmatprep.subr.bf16.mxu1 %v9118_v57 }
 0x850   :  { %9028 = vmatpush3.bf16.msra.mxu1 %v9027_v1 }
 0x851   :  { %9029 = vmatprep.subr.bf16.mxu1 %v9118_v57 }
 0x854   :  { %9031 = vmatpush3.bf16.msra.mxu1 %v9030_v0 }
 0x855   :  { %9032 = vmatprep.subr.bf16.mxu1 %v9118_v57 }
 0x858   :  { %9034 = vmatpush3.bf16.msra.mxu1 %v9033_v3 }
 0x859   :  { %9035 = vmatprep.subr.bf16.mxu1 %v9118_v57 }
 0x91e   :  { %v8772_v45 = vpop.f32.mrb[32].mxu1 }
 0x91f   :  { %v8773_v37 = vpop.f32.mrb[33].mxu1 }
 0x920   :  { %v8774_v24 = vadd.f32 %v8773_v37, %v8772_v45 }
 0x922   :  { %v7975_v29 = vadd.f32 %v8774_v24, %v8641_v22 }
 0x924   :  { %v7978_v23 = vmax.f32 %v7975_v29, 0.0 }
 0x926   :  { %8952 = vmatmul.mubr.msk.f32.vlgmr.msra.gmra.mrb[34].mxu1 %vm7994_vm7, %v7978_v23 }
 0x927   :  { %9037 = vmatpush3.bf16.msra.mxu1 %v9036_v44  ;;  %8962 = vmatprep.mubr.msk.f32.mxu1 %vm9119_vm11, %v9106_v15 }
 0x928   :  { %9038 = vmatprep.subr.bf16.mxu1 %v9118_v57 }
 0x92b   :  { %9040 = vmatpush3.bf16.msra.mxu1 %v9039_v50 }
 0x9f9   :  { %v8064_v51 = vpop.f32.mrb[34].mxu1 }
 0x9fa   :  { %v8065_v56 = vadd.f32 %v8643_v21, %v8064_v51  ;;  %v8953_v55 = vpop.f32.mrb[35].mxu1 }
 0x9fc   :  { %v8068_v15 = vmax.f32 %v8065_v56, 0.0 }
 0x9fe   :  { %8963 = vmatmul.mubr.msk.f32.vlgmr.msra.gmra.mrb[36].mxu1 %vm8080_vm14, %v8068_v15 }
 0xad1   :  { %v8150_v49 = vpop.f32.mrb[36].mxu1 }
 0xad2   :  { %v8151_v31 = vadd.f32 %v8645_v42, %v8150_v49  ;;  %v8964_v32 = vpop.f32.mrb[37].mxu1 }
 0xad4   :  { %8155 = vst.msk [vmem:[#allocation5] sm:$0x3] %vm8154_vm3, %v8151_v31 }
 0xad5   :  { %9084 = shalt.err (!%p9081_p4)
}
 0xad6   :  { %s9085_s17 = scalar_lea.hbm %s13167_s12, 32 }
 0xad7   :  { %p9086_p5 = scmp.ne.s32.totalorder %s13167_s12, %s9085_s17  ;;  %p9089_p6 = scmp.lt.u32.totalorder %s9085_s17, %s13167_s12 }
 0xad9   :  { %p9091_p7 = pnand %p9089_p6, %p9086_p5 }
 0xadb   :  { %9094 = shalt.err (!%p9091_p7)
}
 0xadc   :  { %8167 = dma.vmem_to_hbm [thread:$0]  %s8165_s0, 32, %s13167_s12, [#allocation6]  }
 0xadd   :  { %9095 = dma.done.wait [#allocation6], 32  }
 0xade   :  { %9096 = vsyncadd [#allocation6], 4294967264 }
 0xadf   :  { %8173 = vsyncpa [#allocation6], 1 }

</bundles_post_ra>
